<compile_context>
chip_gen: v6e
topology: v6e:2x2x1
jax: 0.10.0
libtpu: 0.0.40
codegen_flags: <defaults>
</compile_context>

<pallas_src>
import functools

import jax
import jax.numpy as jnp
from jax import lax
from jax.experimental import pallas as pl
from jax.experimental.pallas import tpu as pltpu

CP = 128  # lane-dense channel padding used for every internal feature map


# ----------------------------------------------------------------------------
# Pallas kernels
# ----------------------------------------------------------------------------
def _matmul_bias_act_kernel(a_ref, b_ref, bias_ref, o_ref, *, act):
    """o = act(a @ b + bias) for one M-tile. a/b are bf16, accumulate in f32."""
    acc = jnp.dot(a_ref[...], b_ref[...], preferred_element_type=jnp.float32)
    acc = acc + bias_ref[...]
    if act == "relu":
        acc = jnp.maximum(acc, 0.0)
    elif act == "tanh":
        acc = jnp.tanh(acc)
    o_ref[...] = acc.astype(o_ref.dtype)


def _vq_kernel(ze_ref, cb_ref, c2_ref, zq_ref):
    """Nearest-codebook lookup for one M-tile of flattened encoder outputs.

    argmin_k ||ze - cb_k||^2 == argmin_k (||cb_k||^2 - 2 ze.cb_k)  (the ||ze||^2
    term is constant per row, so it is dropped).  ||cb_k||^2 is precomputed on
    the host and passed in (c2_ref).  First-argmin tie-break matches torch.
    """
    ze = ze_ref[...]                                     # (TM, C) f32
    cb = cb_ref[...]                                     # (K, C)  f32
    dots = lax.dot_general(
        ze, cb, dimension_numbers=(((1,), (1,)), ((), ())),
        preferred_element_type=jnp.float32)              # (TM, K)
    d = c2_ref[...] - 2.0 * dots                         # (TM, K)

    k_total = cb.shape[0]
    dmin = jnp.min(d, axis=-1, keepdims=True)
    iota = lax.broadcasted_iota(jnp.int32, d.shape, 1)
    cand = jnp.where(d <= dmin, iota, k_total)
    idx = jnp.min(cand, axis=-1, keepdims=True)          # first argmin
    onehot = (iota == idx).astype(jnp.float32)           # (TM, K)
    zq = jnp.dot(onehot, cb, preferred_element_type=jnp.float32)
    zq_ref[...] = zq.astype(zq_ref.dtype)


# ----------------------------------------------------------------------------
# pallas_call wrappers (no M padding / output slicing: TM always divides M)
# ----------------------------------------------------------------------------
def _pick_tm(m):
    for tm in (256, 128, 64, 32, 16, 8):
        if m % tm == 0:
            return tm
    return m  # fall back to a full-array block


def pallas_matmul_bias_act(a, b, bias2, act="none", out_dtype=jnp.float32):
    """act(a @ b + bias). a:(M,K) bf16, b:(K,N) bf16, bias2:(1,N) f32."""
    M, K = a.shape
    _, N = b.shape
    TM = _pick_tm(M)
    return pl.pallas_call(
        functools.partial(_matmul_bias_act_kernel, act=act),
        out_shape=jax.ShapeDtypeStruct((M, N), out_dtype),
        grid=(M // TM,),
        in_specs=[
            pl.BlockSpec((TM, K), lambda i: (i, 0)),
            pl.BlockSpec((K, N), lambda i: (0, 0)),
            pl.BlockSpec((1, N), lambda i: (0, 0)),
        ],
        out_specs=pl.BlockSpec((TM, N), lambda i: (i, 0)),
        compiler_params=pltpu.CompilerParams(
            dimension_semantics=("parallel",)),
    )(a, b, bias2)


def pallas_vq(ze_flat, codebook, cb_sq):
    """ze_flat:(M,C) f32, codebook:(K,C) f32, cb_sq:(1,K) f32 -> z_q:(M,C)."""
    M, C = ze_flat.shape
    Kc, _ = codebook.shape
    TM = _pick_tm(M)
    return pl.pallas_call(
        _vq_kernel,
        out_shape=jax.ShapeDtypeStruct((M, C), jnp.float32),
        grid=(M // TM,),
        in_specs=[
            pl.BlockSpec((TM, C), lambda i: (i, 0)),
            pl.BlockSpec((Kc, C), lambda i: (0, 0)),
            pl.BlockSpec((1, Kc), lambda i: (0, 0)),
        ],
        out_specs=pl.BlockSpec((TM, C), lambda i: (i, 0)),
        compiler_params=pltpu.CompilerParams(
            dimension_semantics=("parallel",)),
    )(ze_flat, codebook, cb_sq)


# ----------------------------------------------------------------------------
# Conv / ConvTranspose layers (channel-padded, weights pre-packed)
# ----------------------------------------------------------------------------
def conv2d_p(x, w_mat, b2, stride, act="none", out_dtype=jnp.float32):
    """3x3 conv, padding=1. x:(N,H,W,CP); w_mat:(9*CP, CP) bf16."""
    N, H, W, Cp = x.shape
    xb = x.astype(jnp.bfloat16)
    xp = jnp.pad(xb, ((0, 0), (1, 1), (1, 1), (0, 0)))
    Ho = (H + 2 - 3) // stride + 1
    Wo = (W + 2 - 3) // stride + 1
    cols = [xp[:, dy:dy + stride * Ho:stride, dx:dx + stride * Wo:stride, :]
            for dy in range(3) for dx in range(3)]
    patches = jnp.concatenate(cols, axis=-1).reshape(N * Ho * Wo, 9 * Cp)
    out = pallas_matmul_bias_act(patches, w_mat, b2, act=act,
                                 out_dtype=out_dtype)
    return out.reshape(N, Ho, Wo, w_mat.shape[1])


def conv_transpose2d_s2_p(x, w_mat, b2, act="none", out_dtype=jnp.float32):
    """3x3 ConvTranspose2d (stride=2, padding=1, output_padding=1) via
    sub-pixel decomposition: 2x2 window patches -> one matmul producing all 4
    output phases (N columns = 4*CP, lane dense) -> depth-to-space."""
    N, H, W, Cp = x.shape
    xb = x.astype(jnp.bfloat16)
    xp = jnp.pad(xb, ((0, 0), (0, 1), (0, 1), (0, 0)))
    cols = [xp[:, di:di + H, dj:dj + W, :] for di in range(2) for dj in range(2)]
    patches = jnp.concatenate(cols, axis=-1).reshape(N * H * W, 4 * Cp)
    out = pallas_matmul_bias_act(patches, w_mat, b2, act=act,
                                 out_dtype=out_dtype)                 # (M, 4*Cp)
    out = out.reshape(N, H, W, 2, 2, Cp).transpose(0, 1, 3, 2, 4, 5)
    return out.reshape(N, 2 * H, 2 * W, Cp)


def batchnorm_relu(x, gamma, beta, eps=1e-5):
    """Training-mode BatchNorm2d (batch stats, biased variance) + ReLU, f32."""
    mean = jnp.mean(x, axis=(0, 1, 2))
    var = jnp.var(x, axis=(0, 1, 2))
    y = (x - mean) * lax.rsqrt(var + eps) * gamma + beta
    return jnp.maximum(y, 0.0)


# ----------------------------------------------------------------------------
# Parameters: raw (nn.Module-shaped) init + one-time packing/padding
# ----------------------------------------------------------------------------
def init_params(key, codebook_size=128):
    def nrm(k, shape, scale=0.05):
        return scale * jax.random.normal(k, shape, jnp.float32)

    keys = jax.random.split(key, 16)
    return {
        "c1_w": nrm(keys[0], (16, 3, 3, 3)),    "c1_b": jnp.zeros((16,), jnp.float32),
        "c2_w": nrm(keys[1], (32, 16, 3, 3)),   "c2_b": jnp.zeros((32,), jnp.float32),
        "c3_w": nrm(keys[2], (64, 32, 3, 3)),   "c3_b": jnp.zeros((64,), jnp.float32),
        "c4_w": nrm(keys[3], (128, 64, 3, 3)),  "c4_b": jnp.zeros((128,), jnp.float32),
        "c5_w": nrm(keys[4], (128, 128, 3, 3)), "c5_b": jnp.zeros((128,), jnp.float32),
        "bn1_g": jnp.ones((128,), jnp.float32), "bn1_b": jnp.zeros((128,), jnp.float32),
        "bn2_g": jnp.ones((128,), jnp.float32), "bn2_b": jnp.zeros((128,), jnp.float32),
        "codebook": jax.random.normal(keys[5], (codebook_size, 128), jnp.float32),
        "d1_w": nrm(keys[6], (128, 128, 3, 3)), "d1_b": jnp.zeros((128,), jnp.float32),
        "bn3_g": jnp.ones((128,), jnp.float32), "bn3_b": jnp.zeros((128,), jnp.float32),
        "d2_w": nrm(keys[7], (128, 64, 3, 3)),  "d2_b": jnp.zeros((64,), jnp.float32),
        "bn4_g": jnp.ones((64,), jnp.float32),  "bn4_b": jnp.zeros((64,), jnp.float32),
        "d3_w": nrm(keys[8], (64, 32, 3, 3)),   "d3_b": jnp.zeros((32,), jnp.float32),
        "d4_w": nrm(keys[9], (32, 16, 3, 3)),   "d4_b": jnp.zeros((16,), jnp.float32),
        "d5_w": nrm(keys[10], (16, 3, 3, 3)),   "d5_b": jnp.zeros((3,), jnp.float32),
    }


def _pad_c(v, cp=CP, fill=0.0):
    return jnp.pad(v, (0, cp - v.shape[0]), constant_values=fill)


def _prep_conv(w, b, cp=CP):
    """Conv2d weight (Cout,Cin,3,3) -> (9*CP, CP) bf16, bias -> (1, CP) f32."""
    Cout, Cin, kh, kw = w.shape
    wt = jnp.transpose(w, (2, 3, 1, 0))                      # (kh,kw,Cin,Cout)
    wt = jnp.pad(wt, ((0, 0), (0, 0), (0, cp - Cin), (0, cp - Cout)))
    w_mat = wt.reshape(kh * kw * cp, cp).astype(jnp.bfloat16)
    b2 = _pad_c(b, cp).reshape(1, cp).astype(jnp.float32)
    return w_mat, b2


def _prep_conv_transpose_s1(w, b, cp=CP):
    """stride-1 ConvTranspose2d(p=1) == conv with flipped kernel, swapped chans."""
    w_eq = jnp.transpose(jnp.flip(w, axis=(2, 3)), (1, 0, 2, 3))
    return _prep_conv(w_eq, b, cp)


def _prep_conv_transpose_s2(w, b, cp=CP):
    """stride-2, padding=1, output_padding=1 ConvTranspose2d -> sub-pixel matrix.

    out[2i+r, 2j+s] = sum_{di,dj in {0,1}} w[:, :, kr(r,di), kc(s,dj)] . x[i+di, j+dj]
    with kr/kc = 1 for (phase 0, offset 0), 2 for (1,0), 0 for (1,1), none for (0,1).
    Packed as (4*CP, 4*CP): rows ordered (di,dj,cin), cols ordered (r,s,cout).
    """
    Cin, Cout, kh, kw = w.shape
    tap = {(0, 0): 1, (1, 0): 2, (1, 1): 0}
    wb = jnp.zeros((2, 2, cp, 2, 2, cp), jnp.float32)
    for r in range(2):
        for s in range(2):
            for di in range(2):
                for dj in range(2):
                    kr = tap.get((r, di))
                    kc = tap.get((s, dj))
                    if kr is None or kc is None:
                        continue
                    wb = wb.at[di, dj, :Cin, r, s, :Cout].set(w[:, :, kr, kc])
    w_mat = wb.reshape(4 * cp, 4 * cp).astype(jnp.bfloat16)
    b2 = jnp.tile(_pad_c(b, cp), 4).reshape(1, 4 * cp).astype(jnp.float32)
    return w_mat, b2


def prepare_params(p):
    q = {
        "c1": _prep_conv(p["c1_w"], p["c1_b"]),
        "c2": _prep_conv(p["c2_w"], p["c2_b"]),
        "c3": _prep_conv(p["c3_w"], p["c3_b"]),
        "c4": _prep_conv(p["c4_w"], p["c4_b"]),
        "c5": _prep_conv(p["c5_w"], p["c5_b"]),
        "d1": _prep_conv(p["d1_w"], p["d1_b"]),
        "d2": _prep_conv_transpose_s2(p["d2_w"], p["d2_b"]),
        "d3": _prep_conv_transpose_s2(p["d3_w"], p["d3_b"]),
        "d4": _prep_conv_transpose_s2(p["d4_w"], p["d4_b"]),
        "d5": _prep_conv_transpose_s1(p["d5_w"], p["d5_b"]),
    }
    for bn in ("bn1", "bn2", "bn3", "bn4"):
        q[bn + "_g"] = _pad_c(p[bn + "_g"], fill=1.0)
        q[bn + "_b"] = _pad_c(p[bn + "_b"])
    q["codebook"] = p["codebook"].astype(jnp.float32)
    q["cb_sq"] = jnp.sum(q["codebook"] * q["codebook"], axis=-1).reshape(1, -1)
    return q


# ----------------------------------------------------------------------------
# Full forward pass (matches VQCAE.forward: returns recon, z_e, z_q in NCHW)
# ----------------------------------------------------------------------------
def vqcae_forward(q, x_nchw):
    x = jnp.transpose(x_nchw, (0, 2, 3, 1)).astype(jnp.float32)     # NHWC
    N, H, W, Cin = x.shape
    h = jnp.pad(x, ((0, 0), (0, 0), (0, 0), (0, CP - Cin)))         # pad chans once

    # ---- conv_net (encoder) ----
    h = conv2d_p(h, *q["c1"], stride=1, act="relu", out_dtype=jnp.bfloat16)
    h = conv2d_p(h, *q["c2"], stride=2, act="relu", out_dtype=jnp.bfloat16)
    h = conv2d_p(h, *q["c3"], stride=2, act="relu", out_dtype=jnp.bfloat16)
    h = conv2d_p(h, *q["c4"], stride=2, act="none", out_dtype=jnp.float32)
    h = batchnorm_relu(h, q["bn1_g"], q["bn1_b"])
    h = conv2d_p(h, *q["c5"], stride=1, act="none", out_dtype=jnp.float32)
    z_e = batchnorm_relu(h, q["bn2_g"], q["bn2_b"])                 # (N,2,2,128)
    B, Hh, Wh, C = z_e.shape

    # ---- vector quantization (Pallas kernel) ----
    zq_flat = pallas_vq(z_e.reshape(B * Hh * Wh, C), q["codebook"], q["cb_sq"])
    z_q = zq_flat.reshape(B, Hh, Wh, C)

    # ---- deconv_net (decoder) ----
    d = conv2d_p(z_q, *q["d1"], stride=1, act="none", out_dtype=jnp.float32)
    d = batchnorm_relu(d, q["bn3_g"], q["bn3_b"])
    d = conv_transpose2d_s2_p(d, *q["d2"], act="none", out_dtype=jnp.float32)
    d = batchnorm_relu(d, q["bn4_g"], q["bn4_b"])
    d = conv_transpose2d_s2_p(d, *q["d3"], act="relu", out_dtype=jnp.bfloat16)
    d = conv_transpose2d_s2_p(d, *q["d4"], act="relu", out_dtype=jnp.bfloat16)
    d = conv2d_p(d, *q["d5"], stride=1, act="tanh", out_dtype=jnp.float32)

    recon = jnp.transpose(d[..., :3], (0, 3, 1, 2))                 # NCHW, real chans
    z_e_out = jnp.transpose(z_e, (0, 3, 1, 2))
    z_q_out = jnp.transpose(z_q, (0, 3, 1, 2))
    return recon, z_e_out, z_q_out


if __name__ == "__main__":
    key = jax.random.PRNGKey(0)
    k_x, k_p = jax.random.split(key)

    # small shapes consistent with the module: N=2, C=3, H=W=16
    x = jax.random.normal(k_x, (2, 3, 16, 16), jnp.float32)
    raw_params = init_params(k_p, codebook_size=128)
    params = prepare_params(raw_params)     # one-time packing/padding of weights

    fwd = jax.jit(vqcae_forward)
    recon, z_e, z_q = fwd(params, x)
    jax.block_until_ready((recon, z_e, z_q))

    assert recon.shape == (2, 3, 16, 16), recon.shape
    assert z_e.shape == (2, 128, 2, 2), z_e.shape
    assert z_q.shape == (2, 128, 2, 2), z_q.shape
    assert bool(jnp.all(jnp.isfinite(recon))), "non-finite recon"
    print("KERNEL_OK")
</pallas_src>

<mosaic_0001>
module attributes {stable_mosaic.version = 11 : i64} {
  func.func @_matmul_bias_act_kernel(%arg0: i32, %arg1: memref<256x1152xbf16, #tpu.memory_space<vmem>>, %arg2: memref<1152x128xbf16, #tpu.memory_space<vmem>>, %arg3: memref<1x128xf32, #tpu.memory_space<vmem>>, %arg4: memref<256x128xbf16, #tpu.memory_space<vmem>>) attributes {dimension_semantics = [#tpu.dimension_semantics<parallel>], iteration_bounds = array<i64: 2>, scalar_prefetch = 0 : i64, scratch_operands = 0 : i64, tpu.core_type = #tpu.core_type<tc>, window_params = [{transform_indices = @transform_0, window_bounds = array<i64: 256, 1152>}, {pipeline_mode = #tpu.pipeline_mode<synchronous>, transform_indices = @transform_1, window_bounds = array<i64: 1152, 128>}, {pipeline_mode = #tpu.pipeline_mode<synchronous>, transform_indices = @transform_2, window_bounds = array<i64: 1, 128>}, {transform_indices = @transform_3, window_bounds = array<i64: 256, 128>}]} {
    %c0 = arith.constant 0 : index
    %c0_0 = arith.constant 0 : index
    %0 = vector.load %arg1[%c0, %c0_0] : memref<256x1152xbf16, #tpu.memory_space<vmem>>, vector<256x1152xbf16>
    %c0_1 = arith.constant 0 : index
    %c0_2 = arith.constant 0 : index
    %1 = vector.load %arg2[%c0_1, %c0_2] : memref<1152x128xbf16, #tpu.memory_space<vmem>>, vector<1152x128xbf16>
    %cst = arith.constant dense<0.000000e+00> : vector<256x128xf32>
    %2 = tpu.matmul %0, %1, %cst {dimension_numbers = #tpu.dot_dimension_numbers<[1], [0], [0], [1], [0, 0, 1, 1], [], []>} : vector<256x1152xbf16>, vector<1152x128xbf16>, vector<256x128xf32> -> vector<256x128xf32>
    %c0_3 = arith.constant 0 : index
    %c0_4 = arith.constant 0 : index
    %3 = vector.load %arg3[%c0_3, %c0_4] : memref<1x128xf32, #tpu.memory_space<vmem>>, vector<1x128xf32>
    %4 = vector.broadcast %3 : vector<1x128xf32> to vector<256x128xf32>
    %5 = arith.addf %2, %4 : vector<256x128xf32>
    %cst_5 = arith.constant 0.000000e+00 : f32
    %6 = vector.broadcast %cst_5 : f32 to vector<256x128xf32>
    %7 = arith.maximumf %5, %6 : vector<256x128xf32>
    %8 = arith.truncf %7 : vector<256x128xf32> to vector<256x128xbf16>
    %c0_6 = arith.constant 0 : index
    %c0_7 = arith.constant 0 : index
    %9 = vector.load %arg4[%c0_6, %c0_7] : memref<256x128xbf16, #tpu.memory_space<vmem>>, vector<256x128xbf16>
    tpu.vector_store %arg4[%c0_6, %c0_7], %8 {strides = array<i32>} : memref<256x128xbf16, #tpu.memory_space<vmem>>, vector<256x128xbf16>,
    return
  }
  func.func @transform_0(%arg0: i32) -> (i32, i32) {
    %c0_i32 = arith.constant 0 : i32
    %c0_i32_0 = arith.constant 0 : i32
    return %arg0, %c0_i32 : i32, i32
  }
  func.func @transform_1(%arg0: i32) -> (i32, i32) {
    %c0_i32 = arith.constant 0 : i32
    %c0_i32_0 = arith.constant 0 : i32
    %c0_i32_1 = arith.constant 0 : i32
    return %c0_i32, %c0_i32_0 : i32, i32
  }
  func.func @transform_2(%arg0: i32) -> (i32, i32) {
    %c0_i32 = arith.constant 0 : i32
    %c0_i32_0 = arith.constant 0 : i32
    %c0_i32_1 = arith.constant 0 : i32
    return %c0_i32, %c0_i32_0 : i32, i32
  }
  func.func @transform_3(%arg0: i32) -> (i32, i32) {
    %c0_i32 = arith.constant 0 : i32
    %c0_i32_0 = arith.constant 0 : i32
    return %arg0, %c0_i32 : i32, i32
  }
}

module attributes {stable_mosaic.version = 11 : i64} {
  func.func @_matmul_bias_act_kernel(%arg0: i32, %arg1: memref<128x1152xbf16, #tpu.memory_space<vmem>>, %arg2: memref<1152x128xbf16, #tpu.memory_space<vmem>>, %arg3: memref<1x128xf32, #tpu.memory_space<vmem>>, %arg4: memref<128x128xbf16, #tpu.memory_space<vmem>>) attributes {dimension_semantics = [#tpu.dimension_semantics<parallel>], iteration_bounds = array<i64: 1>, scalar_prefetch = 0 : i64, scratch_operands = 0 : i64, tpu.core_type = #tpu.core_type<tc>, window_params = [{transform_indices = @transform_0, window_bounds = array<i64: 128, 1152>}, {pipeline_mode = #tpu.pipeline_mode<synchronous>, transform_indices = @transform_1, window_bounds = array<i64: 1152, 128>}, {pipeline_mode = #tpu.pipeline_mode<synchronous>, transform_indices = @transform_2, window_bounds = array<i64: 1, 128>}, {transform_indices = @transform_3, window_bounds = array<i64: 128, 128>}]} {
    %c0 = arith.constant 0 : index
    %c0_0 = arith.constant 0 : index
    %0 = vector.load %arg1[%c0, %c0_0] : memref<128x1152xbf16, #tpu.memory_space<vmem>>, vector<128x1152xbf16>
    %c0_1 = arith.constant 0 : index
    %c0_2 = arith.constant 0 : index
    %1 = vector.load %arg2[%c0_1, %c0_2] : memref<1152x128xbf16, #tpu.memory_space<vmem>>, vector<1152x128xbf16>
    %cst = arith.constant dense<0.000000e+00> : vector<128x128xf32>
    %2 = tpu.matmul %0, %1, %cst {dimension_numbers = #tpu.dot_dimension_numbers<[1], [0], [0], [1], [0, 0, 1, 1], [], []>} : vector<128x1152xbf16>, vector<1152x128xbf16>, vector<128x128xf32> -> vector<128x128xf32>
    %c0_3 = arith.constant 0 : index
    %c0_4 = arith.constant 0 : index
    %3 = vector.load %arg3[%c0_3, %c0_4] : memref<1x128xf32, #tpu.memory_space<vmem>>, vector<1x128xf32>
    %4 = vector.broadcast %3 : vector<1x128xf32> to vector<128x128xf32>
    %5 = arith.addf %2, %4 : vector<128x128xf32>
    %cst_5 = arith.constant 0.000000e+00 : f32
    %6 = vector.broadcast %cst_5 : f32 to vector<128x128xf32>
    %7 = arith.maximumf %5, %6 : vector<128x128xf32>
    %8 = arith.truncf %7 : vector<128x128xf32> to vector<128x128xbf16>
    %c0_6 = arith.constant 0 : index
    %c0_7 = arith.constant 0 : index
    %9 = vector.load %arg4[%c0_6, %c0_7] : memref<128x128xbf16, #tpu.memory_space<vmem>>, vector<128x128xbf16>
    tpu.vector_store %arg4[%c0_6, %c0_7], %8 {strides = array<i32>} : memref<128x128xbf16, #tpu.memory_space<vmem>>, vector<128x128xbf16>,
    return
  }
  func.func @transform_0(%arg0: i32) -> (i32, i32) {
    %c0_i32 = arith.constant 0 : i32
    %c0_i32_0 = arith.constant 0 : i32
    return %arg0, %c0_i32 : i32, i32
  }
  func.func @transform_1(%arg0: i32) -> (i32, i32) {
    %c0_i32 = arith.constant 0 : i32
    %c0_i32_0 = arith.constant 0 : i32
    %c0_i32_1 = arith.constant 0 : i32
    return %c0_i32, %c0_i32_0 : i32, i32
  }
  func.func @transform_2(%arg0: i32) -> (i32, i32) {
    %c0_i32 = arith.constant 0 : i32
    %c0_i32_0 = arith.constant 0 : i32
    %c0_i32_1 = arith.constant 0 : i32
    return %c0_i32, %c0_i32_0 : i32, i32
  }
  func.func @transform_3(%arg0: i32) -> (i32, i32) {
    %c0_i32 = arith.constant 0 : i32
    %c0_i32_0 = arith.constant 0 : i32
    return %arg0, %c0_i32 : i32, i32
  }
}

module attributes {stable_mosaic.version = 11 : i64} {
  func.func @_matmul_bias_act_kernel(%arg0: i32, %arg1: memref<32x1152xbf16, #tpu.memory_space<vmem>>, %arg2: memref<1152x128xbf16, #tpu.memory_space<vmem>>, %arg3: memref<1x128xf32, #tpu.memory_space<vmem>>, %arg4: memref<32x128xbf16, #tpu.memory_space<vmem>>) attributes {dimension_semantics = [#tpu.dimension_semantics<parallel>], iteration_bounds = array<i64: 1>, scalar_prefetch = 0 : i64, scratch_operands = 0 : i64, tpu.core_type = #tpu.core_type<tc>, window_params = [{transform_indices = @transform_0, window_bounds = array<i64: 32, 1152>}, {pipeline_mode = #tpu.pipeline_mode<synchronous>, transform_indices = @transform_1, window_bounds = array<i64: 1152, 128>}, {pipeline_mode = #tpu.pipeline_mode<synchronous>, transform_indices = @transform_2, window_bounds = array<i64: 1, 128>}, {transform_indices = @transform_3, window_bounds = array<i64: 32, 128>}]} {
    %c0 = arith.constant 0 : index
    %c0_0 = arith.constant 0 : index
    %0 = vector.load %arg1[%c0, %c0_0] : memref<32x1152xbf16, #tpu.memory_space<vmem>>, vector<32x1152xbf16>
    %c0_1 = arith.constant 0 : index
    %c0_2 = arith.constant 0 : index
    %1 = vector.load %arg2[%c0_1, %c0_2] : memref<1152x128xbf16, #tpu.memory_space<vmem>>, vector<1152x128xbf16>
    %cst = arith.constant dense<0.000000e+00> : vector<32x128xf32>
    %2 = tpu.matmul %0, %1, %cst {dimension_numbers = #tpu.dot_dimension_numbers<[1], [0], [0], [1], [0, 0, 1, 1], [], []>} : vector<32x1152xbf16>, vector<1152x128xbf16>, vector<32x128xf32> -> vector<32x128xf32>
    %c0_3 = arith.constant 0 : index
    %c0_4 = arith.constant 0 : index
    %3 = vector.load %arg3[%c0_3, %c0_4] : memref<1x128xf32, #tpu.memory_space<vmem>>, vector<1x128xf32>
    %4 = vector.broadcast %3 : vector<1x128xf32> to vector<32x128xf32>
    %5 = arith.addf %2, %4 : vector<32x128xf32>
    %cst_5 = arith.constant 0.000000e+00 : f32
    %6 = vector.broadcast %cst_5 : f32 to vector<32x128xf32>
    %7 = arith.maximumf %5, %6 : vector<32x128xf32>
    %8 = arith.truncf %7 : vector<32x128xf32> to vector<32x128xbf16>
    %c0_6 = arith.constant 0 : index
    %c0_7 = arith.constant 0 : index
    %9 = vector.load %arg4[%c0_6, %c0_7] : memref<32x128xbf16, #tpu.memory_space<vmem>>, vector<32x128xbf16>
    tpu.vector_store %arg4[%c0_6, %c0_7], %8 {strides = array<i32>} : memref<32x128xbf16, #tpu.memory_space<vmem>>, vector<32x128xbf16>,
    return
  }
  func.func @transform_0(%arg0: i32) -> (i32, i32) {
    %c0_i32 = arith.constant 0 : i32
    %c0_i32_0 = arith.constant 0 : i32
    return %arg0, %c0_i32 : i32, i32
  }
  func.func @transform_1(%arg0: i32) -> (i32, i32) {
    %c0_i32 = arith.constant 0 : i32
    %c0_i32_0 = arith.constant 0 : i32
    %c0_i32_1 = arith.constant 0 : i32
    return %c0_i32, %c0_i32_0 : i32, i32
  }
  func.func @transform_2(%arg0: i32) -> (i32, i32) {
    %c0_i32 = arith.constant 0 : i32
    %c0_i32_0 = arith.constant 0 : i32
    %c0_i32_1 = arith.constant 0 : i32
    return %c0_i32, %c0_i32_0 : i32, i32
  }
  func.func @transform_3(%arg0: i32) -> (i32, i32) {
    %c0_i32 = arith.constant 0 : i32
    %c0_i32_0 = arith.constant 0 : i32
    return %arg0, %c0_i32 : i32, i32
  }
}

module attributes {stable_mosaic.version = 11 : i64} {
  func.func @_matmul_bias_act_kernel(%arg0: i32, %arg1: memref<8x1152xbf16, #tpu.memory_space<vmem>>, %arg2: memref<1152x128xbf16, #tpu.memory_space<vmem>>, %arg3: memref<1x128xf32, #tpu.memory_space<vmem>>, %arg4: memref<8x128xf32, #tpu.memory_space<vmem>>) attributes {dimension_semantics = [#tpu.dimension_semantics<parallel>], iteration_bounds = array<i64: 1>, scalar_prefetch = 0 : i64, scratch_operands = 0 : i64, tpu.core_type = #tpu.core_type<tc>, window_params = [{transform_indices = @transform_0, window_bounds = array<i64: 8, 1152>}, {pipeline_mode = #tpu.pipeline_mode<synchronous>, transform_indices = @transform_1, window_bounds = array<i64: 1152, 128>}, {pipeline_mode = #tpu.pipeline_mode<synchronous>, transform_indices = @transform_2, window_bounds = array<i64: 1, 128>}, {transform_indices = @transform_3, window_bounds = array<i64: 8, 128>}]} {
    %c0 = arith.constant 0 : index
    %c0_0 = arith.constant 0 : index
    %0 = vector.load %arg1[%c0, %c0_0] : memref<8x1152xbf16, #tpu.memory_space<vmem>>, vector<8x1152xbf16>
    %c0_1 = arith.constant 0 : index
    %c0_2 = arith.constant 0 : index
    %1 = vector.load %arg2[%c0_1, %c0_2] : memref<1152x128xbf16, #tpu.memory_space<vmem>>, vector<1152x128xbf16>
    %cst = arith.constant dense<0.000000e+00> : vector<8x128xf32>
    %2 = tpu.matmul %0, %1, %cst {dimension_numbers = #tpu.dot_dimension_numbers<[1], [0], [0], [1], [0, 0, 1, 1], [], []>} : vector<8x1152xbf16>, vector<1152x128xbf16>, vector<8x128xf32> -> vector<8x128xf32>
    %c0_3 = arith.constant 0 : index
    %c0_4 = arith.constant 0 : index
    %3 = vector.load %arg3[%c0_3, %c0_4] : memref<1x128xf32, #tpu.memory_space<vmem>>, vector<1x128xf32>
    %4 = vector.broadcast %3 : vector<1x128xf32> to vector<8x128xf32>
    %5 = arith.addf %2, %4 : vector<8x128xf32>
    %c0_5 = arith.constant 0 : index
    %c0_6 = arith.constant 0 : index
    %6 = vector.load %arg4[%c0_5, %c0_6] : memref<8x128xf32, #tpu.memory_space<vmem>>, vector<8x128xf32>
    tpu.vector_store %arg4[%c0_5, %c0_6], %5 {strides = array<i32>} : memref<8x128xf32, #tpu.memory_space<vmem>>, vector<8x128xf32>,
    return
  }
  func.func @transform_0(%arg0: i32) -> (i32, i32) {
    %c0_i32 = arith.constant 0 : i32
    %c0_i32_0 = arith.constant 0 : i32
    return %arg0, %c0_i32 : i32, i32
  }
  func.func @transform_1(%arg0: i32) -> (i32, i32) {
    %c0_i32 = arith.constant 0 : i32
    %c0_i32_0 = arith.constant 0 : i32
    %c0_i32_1 = arith.constant 0 : i32
    return %c0_i32, %c0_i32_0 : i32, i32
  }
  func.func @transform_2(%arg0: i32) -> (i32, i32) {
    %c0_i32 = arith.constant 0 : i32
    %c0_i32_0 = arith.constant 0 : i32
    %c0_i32_1 = arith.constant 0 : i32
    return %c0_i32, %c0_i32_0 : i32, i32
  }
  func.func @transform_3(%arg0: i32) -> (i32, i32) {
    %c0_i32 = arith.constant 0 : i32
    %c0_i32_0 = arith.constant 0 : i32
    return %arg0, %c0_i32 : i32, i32
  }
}

module attributes {stable_mosaic.version = 11 : i64} {
  func.func @_matmul_bias_act_kernel(%arg0: i32, %arg1: memref<8x512xbf16, #tpu.memory_space<vmem>>, %arg2: memref<512x512xbf16, #tpu.memory_space<vmem>>, %arg3: memref<1x512xf32, #tpu.memory_space<vmem>>, %arg4: memref<8x512xf32, #tpu.memory_space<vmem>>) attributes {dimension_semantics = [#tpu.dimension_semantics<parallel>], iteration_bounds = array<i64: 1>, scalar_prefetch = 0 : i64, scratch_operands = 0 : i64, tpu.core_type = #tpu.core_type<tc>, window_params = [{transform_indices = @transform_0, window_bounds = array<i64: 8, 512>}, {pipeline_mode = #tpu.pipeline_mode<synchronous>, transform_indices = @transform_1, window_bounds = array<i64: 512, 512>}, {pipeline_mode = #tpu.pipeline_mode<synchronous>, transform_indices = @transform_2, window_bounds = array<i64: 1, 512>}, {transform_indices = @transform_3, window_bounds = array<i64: 8, 512>}]} {
    %c0 = arith.constant 0 : index
    %c0_0 = arith.constant 0 : index
    %0 = vector.load %arg1[%c0, %c0_0] : memref<8x512xbf16, #tpu.memory_space<vmem>>, vector<8x512xbf16>
    %c0_1 = arith.constant 0 : index
    %c0_2 = arith.constant 0 : index
    %1 = vector.load %arg2[%c0_1, %c0_2] : memref<512x512xbf16, #tpu.memory_space<vmem>>, vector<512x512xbf16>
    %cst = arith.constant dense<0.000000e+00> : vector<8x512xf32>
    %2 = tpu.matmul %0, %1, %cst {dimension_numbers = #tpu.dot_dimension_numbers<[1], [0], [0], [1], [0, 0, 1, 1], [], []>} : vector<8x512xbf16>, vector<512x512xbf16>, vector<8x512xf32> -> vector<8x512xf32>
    %c0_3 = arith.constant 0 : index
    %c0_4 = arith.constant 0 : index
    %3 = vector.load %arg3[%c0_3, %c0_4] : memref<1x512xf32, #tpu.memory_space<vmem>>, vector<1x512xf32>
    %4 = vector.broadcast %3 : vector<1x512xf32> to vector<8x512xf32>
    %5 = arith.addf %2, %4 : vector<8x512xf32>
    %c0_5 = arith.constant 0 : index
    %c0_6 = arith.constant 0 : index
    %6 = vector.load %arg4[%c0_5, %c0_6] : memref<8x512xf32, #tpu.memory_space<vmem>>, vector<8x512xf32>
    tpu.vector_store %arg4[%c0_5, %c0_6], %5 {strides = array<i32>} : memref<8x512xf32, #tpu.memory_space<vmem>>, vector<8x512xf32>,
    return
  }
  func.func @transform_0(%arg0: i32) -> (i32, i32) {
    %c0_i32 = arith.constant 0 : i32
    %c0_i32_0 = arith.constant 0 : i32
    return %arg0, %c0_i32 : i32, i32
  }
  func.func @transform_1(%arg0: i32) -> (i32, i32) {
    %c0_i32 = arith.constant 0 : i32
    %c0_i32_0 = arith.constant 0 : i32
    %c0_i32_1 = arith.constant 0 : i32
    return %c0_i32, %c0_i32_0 : i32, i32
  }
  func.func @transform_2(%arg0: i32) -> (i32, i32) {
    %c0_i32 = arith.constant 0 : i32
    %c0_i32_0 = arith.constant 0 : i32
    %c0_i32_1 = arith.constant 0 : i32
    return %c0_i32, %c0_i32_0 : i32, i32
  }
  func.func @transform_3(%arg0: i32) -> (i32, i32) {
    %c0_i32 = arith.constant 0 : i32
    %c0_i32_0 = arith.constant 0 : i32
    return %arg0, %c0_i32 : i32, i32
  }
}

module attributes {stable_mosaic.version = 11 : i64} {
  func.func @_vq_kernel(%arg0: i32, %arg1: memref<8x128xf32, #tpu.memory_space<vmem>>, %arg2: memref<128x128xf32, #tpu.memory_space<vmem>>, %arg3: memref<1x128xf32, #tpu.memory_space<vmem>>, %arg4: memref<8x128xf32, #tpu.memory_space<vmem>>) attributes {dimension_semantics = [#tpu.dimension_semantics<parallel>], iteration_bounds = array<i64: 1>, scalar_prefetch = 0 : i64, scratch_operands = 0 : i64, tpu.core_type = #tpu.core_type<tc>, window_params = [{transform_indices = @transform_0, window_bounds = array<i64: 8, 128>}, {pipeline_mode = #tpu.pipeline_mode<synchronous>, transform_indices = @transform_1, window_bounds = array<i64: 128, 128>}, {pipeline_mode = #tpu.pipeline_mode<synchronous>, transform_indices = @transform_2, window_bounds = array<i64: 1, 128>}, {transform_indices = @transform_3, window_bounds = array<i64: 8, 128>}]} {
    %c0 = arith.constant 0 : index
    %c0_0 = arith.constant 0 : index
    %0 = vector.load %arg1[%c0, %c0_0] : memref<8x128xf32, #tpu.memory_space<vmem>>, vector<8x128xf32>
    %c0_1 = arith.constant 0 : index
    %c0_2 = arith.constant 0 : index
    %1 = vector.load %arg2[%c0_1, %c0_2] : memref<128x128xf32, #tpu.memory_space<vmem>>, vector<128x128xf32>
    %cst = arith.constant dense<0.000000e+00> : vector<8x128xf32>
    %2 = tpu.matmul %0, %1, %cst {dimension_numbers = #tpu.dot_dimension_numbers<[1], [1], [0], [0], [0, 0, 1, 0], [], []>} : vector<8x128xf32>, vector<128x128xf32>, vector<8x128xf32> -> vector<8x128xf32>
    %c0_3 = arith.constant 0 : index
    %c0_4 = arith.constant 0 : index
    %3 = vector.load %arg3[%c0_3, %c0_4] : memref<1x128xf32, #tpu.memory_space<vmem>>, vector<1x128xf32>
    %cst_5 = arith.constant 2.000000e+00 : f32
    %4 = vector.broadcast %cst_5 : f32 to vector<8x128xf32>
    %5 = arith.mulf %4, %2 : vector<8x128xf32>
    %6 = vector.broadcast %3 : vector<1x128xf32> to vector<8x128xf32>
    %7 = arith.subf %6, %5 : vector<8x128xf32>
    %cst_6 = arith.constant dense<0x7F800000> : vector<8xf32>
    %8 = vector.multi_reduction <minimumf>, %7, %cst_6 [1] : vector<8x128xf32> to vector<8xf32>
    %9 = vector.shape_cast %8 : vector<8xf32> to vector<8x1xf32>
    %10 = tpu.iota {dimensions = array<i32: 1>} : vector<8x128xi32>
    %11 = vector.broadcast %9 : vector<8x1xf32> to vector<8x128xf32>
    %12 = arith.cmpf ole, %7, %11 : vector<8x128xf32>
    %c128_i32 = arith.constant 128 : i32
    %13 = vector.broadcast %c128_i32 : i32 to vector<8x128xi32>
    %14 = arith.select %12, %10, %13 : vector<8x128xi1>, vector<8x128xi32>
    %cst_7 = arith.constant dense<2147483647> : vector<8xi32>
    %15 = vector.multi_reduction <minsi>, %14, %cst_7 [1] : vector<8x128xi32> to vector<8xi32>
    %16 = vector.shape_cast %15 : vector<8xi32> to vector<8x1xi32>
    %17 = vector.broadcast %16 : vector<8x1xi32> to vector<8x128xi32>
    %18 = arith.cmpi eq, %10, %17 : vector<8x128xi32>
    %19 = arith.extui %18 : vector<8x128xi1> to vector<8x128xi32>
    %20 = arith.sitofp %19 : vector<8x128xi32> to vector<8x128xf32>
    %cst_8 = arith.constant dense<0.000000e+00> : vector<8x128xf32>
    %21 = tpu.matmul %20, %1, %cst_8 {dimension_numbers = #tpu.dot_dimension_numbers<[1], [0], [0], [1], [0, 0, 1, 1], [], []>} : vector<8x128xf32>, vector<128x128xf32>, vector<8x128xf32> -> vector<8x128xf32>
    %c0_9 = arith.constant 0 : index
    %c0_10 = arith.constant 0 : index
    %22 = vector.load %arg4[%c0_9, %c0_10] : memref<8x128xf32, #tpu.memory_space<vmem>>, vector<8x128xf32>
    tpu.vector_store %arg4[%c0_9, %c0_10], %21 {strides = array<i32>} : memref<8x128xf32, #tpu.memory_space<vmem>>, vector<8x128xf32>,
    return
  }
  func.func @transform_0(%arg0: i32) -> (i32, i32) {
    %c0_i32 = arith.constant 0 : i32
    %c0_i32_0 = arith.constant 0 : i32
    return %arg0, %c0_i32 : i32, i32
  }
  func.func @transform_1(%arg0: i32) -> (i32, i32) {
    %c0_i32 = arith.constant 0 : i32
    %c0_i32_0 = arith.constant 0 : i32
    %c0_i32_1 = arith.constant 0 : i32
    return %c0_i32, %c0_i32_0 : i32, i32
  }
  func.func @transform_2(%arg0: i32) -> (i32, i32) {
    %c0_i32 = arith.constant 0 : i32
    %c0_i32_0 = arith.constant 0 : i32
    %c0_i32_1 = arith.constant 0 : i32
    return %c0_i32, %c0_i32_0 : i32, i32
  }
  func.func @transform_3(%arg0: i32) -> (i32, i32) {
    %c0_i32 = arith.constant 0 : i32
    %c0_i32_0 = arith.constant 0 : i32
    return %arg0, %c0_i32 : i32, i32
  }
}

module attributes {stable_mosaic.version = 11 : i64} {
  func.func @_matmul_bias_act_kernel(%arg0: i32, %arg1: memref<32x512xbf16, #tpu.memory_space<vmem>>, %arg2: memref<512x512xbf16, #tpu.memory_space<vmem>>, %arg3: memref<1x512xf32, #tpu.memory_space<vmem>>, %arg4: memref<32x512xbf16, #tpu.memory_space<vmem>>) attributes {dimension_semantics = [#tpu.dimension_semantics<parallel>], iteration_bounds = array<i64: 1>, scalar_prefetch = 0 : i64, scratch_operands = 0 : i64, tpu.core_type = #tpu.core_type<tc>, window_params = [{transform_indices = @transform_0, window_bounds = array<i64: 32, 512>}, {pipeline_mode = #tpu.pipeline_mode<synchronous>, transform_indices = @transform_1, window_bounds = array<i64: 512, 512>}, {pipeline_mode = #tpu.pipeline_mode<synchronous>, transform_indices = @transform_2, window_bounds = array<i64: 1, 512>}, {transform_indices = @transform_3, window_bounds = array<i64: 32, 512>}]} {
    %c0 = arith.constant 0 : index
    %c0_0 = arith.constant 0 : index
    %0 = vector.load %arg1[%c0, %c0_0] : memref<32x512xbf16, #tpu.memory_space<vmem>>, vector<32x512xbf16>
    %c0_1 = arith.constant 0 : index
    %c0_2 = arith.constant 0 : index
    %1 = vector.load %arg2[%c0_1, %c0_2] : memref<512x512xbf16, #tpu.memory_space<vmem>>, vector<512x512xbf16>
    %cst = arith.constant dense<0.000000e+00> : vector<32x512xf32>
    %2 = tpu.matmul %0, %1, %cst {dimension_numbers = #tpu.dot_dimension_numbers<[1], [0], [0], [1], [0, 0, 1, 1], [], []>} : vector<32x512xbf16>, vector<512x512xbf16>, vector<32x512xf32> -> vector<32x512xf32>
    %c0_3 = arith.constant 0 : index
    %c0_4 = arith.constant 0 : index
    %3 = vector.load %arg3[%c0_3, %c0_4] : memref<1x512xf32, #tpu.memory_space<vmem>>, vector<1x512xf32>
    %4 = vector.broadcast %3 : vector<1x512xf32> to vector<32x512xf32>
    %5 = arith.addf %2, %4 : vector<32x512xf32>
    %cst_5 = arith.constant 0.000000e+00 : f32
    %6 = vector.broadcast %cst_5 : f32 to vector<32x512xf32>
    %7 = arith.maximumf %5, %6 : vector<32x512xf32>
    %8 = arith.truncf %7 : vector<32x512xf32> to vector<32x512xbf16>
    %c0_6 = arith.constant 0 : index
    %c0_7 = arith.constant 0 : index
    %9 = vector.load %arg4[%c0_6, %c0_7] : memref<32x512xbf16, #tpu.memory_space<vmem>>, vector<32x512xbf16>
    tpu.vector_store %arg4[%c0_6, %c0_7], %8 {strides = array<i32>} : memref<32x512xbf16, #tpu.memory_space<vmem>>, vector<32x512xbf16>,
    return
  }
  func.func @transform_0(%arg0: i32) -> (i32, i32) {
    %c0_i32 = arith.constant 0 : i32
    %c0_i32_0 = arith.constant 0 : i32
    return %arg0, %c0_i32 : i32, i32
  }
  func.func @transform_1(%arg0: i32) -> (i32, i32) {
    %c0_i32 = arith.constant 0 : i32
    %c0_i32_0 = arith.constant 0 : i32
    %c0_i32_1 = arith.constant 0 : i32
    return %c0_i32, %c0_i32_0 : i32, i32
  }
  func.func @transform_2(%arg0: i32) -> (i32, i32) {
    %c0_i32 = arith.constant 0 : i32
    %c0_i32_0 = arith.constant 0 : i32
    %c0_i32_1 = arith.constant 0 : i32
    return %c0_i32, %c0_i32_0 : i32, i32
  }
  func.func @transform_3(%arg0: i32) -> (i32, i32) {
    %c0_i32 = arith.constant 0 : i32
    %c0_i32_0 = arith.constant 0 : i32
    return %arg0, %c0_i32 : i32, i32
  }
}

module attributes {stable_mosaic.version = 11 : i64} {
  func.func @_matmul_bias_act_kernel(%arg0: i32, %arg1: memref<128x512xbf16, #tpu.memory_space<vmem>>, %arg2: memref<512x512xbf16, #tpu.memory_space<vmem>>, %arg3: memref<1x512xf32, #tpu.memory_space<vmem>>, %arg4: memref<128x512xbf16, #tpu.memory_space<vmem>>) attributes {dimension_semantics = [#tpu.dimension_semantics<parallel>], iteration_bounds = array<i64: 1>, scalar_prefetch = 0 : i64, scratch_operands = 0 : i64, tpu.core_type = #tpu.core_type<tc>, window_params = [{transform_indices = @transform_0, window_bounds = array<i64: 128, 512>}, {pipeline_mode = #tpu.pipeline_mode<synchronous>, transform_indices = @transform_1, window_bounds = array<i64: 512, 512>}, {pipeline_mode = #tpu.pipeline_mode<synchronous>, transform_indices = @transform_2, window_bounds = array<i64: 1, 512>}, {transform_indices = @transform_3, window_bounds = array<i64: 128, 512>}]} {
    %c0 = arith.constant 0 : index
    %c0_0 = arith.constant 0 : index
    %0 = vector.load %arg1[%c0, %c0_0] : memref<128x512xbf16, #tpu.memory_space<vmem>>, vector<128x512xbf16>
    %c0_1 = arith.constant 0 : index
    %c0_2 = arith.constant 0 : index
    %1 = vector.load %arg2[%c0_1, %c0_2] : memref<512x512xbf16, #tpu.memory_space<vmem>>, vector<512x512xbf16>
    %cst = arith.constant dense<0.000000e+00> : vector<128x512xf32>
    %2 = tpu.matmul %0, %1, %cst {dimension_numbers = #tpu.dot_dimension_numbers<[1], [0], [0], [1], [0, 0, 1, 1], [], []>} : vector<128x512xbf16>, vector<512x512xbf16>, vector<128x512xf32> -> vector<128x512xf32>
    %c0_3 = arith.constant 0 : index
    %c0_4 = arith.constant 0 : index
    %3 = vector.load %arg3[%c0_3, %c0_4] : memref<1x512xf32, #tpu.memory_space<vmem>>, vector<1x512xf32>
    %4 = vector.broadcast %3 : vector<1x512xf32> to vector<128x512xf32>
    %5 = arith.addf %2, %4 : vector<128x512xf32>
    %cst_5 = arith.constant 0.000000e+00 : f32
    %6 = vector.broadcast %cst_5 : f32 to vector<128x512xf32>
    %7 = arith.maximumf %5, %6 : vector<128x512xf32>
    %8 = arith.truncf %7 : vector<128x512xf32> to vector<128x512xbf16>
    %c0_6 = arith.constant 0 : index
    %c0_7 = arith.constant 0 : index
    %9 = vector.load %arg4[%c0_6, %c0_7] : memref<128x512xbf16, #tpu.memory_space<vmem>>, vector<128x512xbf16>
    tpu.vector_store %arg4[%c0_6, %c0_7], %8 {strides = array<i32>} : memref<128x512xbf16, #tpu.memory_space<vmem>>, vector<128x512xbf16>,
    return
  }
  func.func @transform_0(%arg0: i32) -> (i32, i32) {
    %c0_i32 = arith.constant 0 : i32
    %c0_i32_0 = arith.constant 0 : i32
    return %arg0, %c0_i32 : i32, i32
  }
  func.func @transform_1(%arg0: i32) -> (i32, i32) {
    %c0_i32 = arith.constant 0 : i32
    %c0_i32_0 = arith.constant 0 : i32
    %c0_i32_1 = arith.constant 0 : i32
    return %c0_i32, %c0_i32_0 : i32, i32
  }
  func.func @transform_2(%arg0: i32) -> (i32, i32) {
    %c0_i32 = arith.constant 0 : i32
    %c0_i32_0 = arith.constant 0 : i32
    %c0_i32_1 = arith.constant 0 : i32
    return %c0_i32, %c0_i32_0 : i32, i32
  }
  func.func @transform_3(%arg0: i32) -> (i32, i32) {
    %c0_i32 = arith.constant 0 : i32
    %c0_i32_0 = arith.constant 0 : i32
    return %arg0, %c0_i32 : i32, i32
  }
}

module attributes {stable_mosaic.version = 11 : i64} {
  func.func @_matmul_bias_act_kernel(%arg0: i32, %arg1: memref<256x1152xbf16, #tpu.memory_space<vmem>>, %arg2: memref<1152x128xbf16, #tpu.memory_space<vmem>>, %arg3: memref<1x128xf32, #tpu.memory_space<vmem>>, %arg4: memref<256x128xf32, #tpu.memory_space<vmem>>) attributes {dimension_semantics = [#tpu.dimension_semantics<parallel>], iteration_bounds = array<i64: 2>, scalar_prefetch = 0 : i64, scratch_operands = 0 : i64, tpu.core_type = #tpu.core_type<tc>, window_params = [{transform_indices = @transform_0, window_bounds = array<i64: 256, 1152>}, {pipeline_mode = #tpu.pipeline_mode<synchronous>, transform_indices = @transform_1, window_bounds = array<i64: 1152, 128>}, {pipeline_mode = #tpu.pipeline_mode<synchronous>, transform_indices = @transform_2, window_bounds = array<i64: 1, 128>}, {transform_indices = @transform_3, window_bounds = array<i64: 256, 128>}]} {
    %c0 = arith.constant 0 : index
    %c0_0 = arith.constant 0 : index
    %0 = vector.load %arg1[%c0, %c0_0] : memref<256x1152xbf16, #tpu.memory_space<vmem>>, vector<256x1152xbf16>
    %c0_1 = arith.constant 0 : index
    %c0_2 = arith.constant 0 : index
    %1 = vector.load %arg2[%c0_1, %c0_2] : memref<1152x128xbf16, #tpu.memory_space<vmem>>, vector<1152x128xbf16>
    %cst = arith.constant dense<0.000000e+00> : vector<256x128xf32>
    %2 = tpu.matmul %0, %1, %cst {dimension_numbers = #tpu.dot_dimension_numbers<[1], [0], [0], [1], [0, 0, 1, 1], [], []>} : vector<256x1152xbf16>, vector<1152x128xbf16>, vector<256x128xf32> -> vector<256x128xf32>
    %c0_3 = arith.constant 0 : index
    %c0_4 = arith.constant 0 : index
    %3 = vector.load %arg3[%c0_3, %c0_4] : memref<1x128xf32, #tpu.memory_space<vmem>>, vector<1x128xf32>
    %4 = vector.broadcast %3 : vector<1x128xf32> to vector<256x128xf32>
    %5 = arith.addf %2, %4 : vector<256x128xf32>
    %6 = math.tanh %5 : vector<256x128xf32>
    %c0_5 = arith.constant 0 : index
    %c0_6 = arith.constant 0 : index
    %7 = vector.load %arg4[%c0_5, %c0_6] : memref<256x128xf32, #tpu.memory_space<vmem>>, vector<256x128xf32>
    tpu.vector_store %arg4[%c0_5, %c0_6], %6 {strides = array<i32>} : memref<256x128xf32, #tpu.memory_space<vmem>>, vector<256x128xf32>,
    return
  }
  func.func @transform_0(%arg0: i32) -> (i32, i32) {
    %c0_i32 = arith.constant 0 : i32
    %c0_i32_0 = arith.constant 0 : i32
    return %arg0, %c0_i32 : i32, i32
  }
  func.func @transform_1(%arg0: i32) -> (i32, i32) {
    %c0_i32 = arith.constant 0 : i32
    %c0_i32_0 = arith.constant 0 : i32
    %c0_i32_1 = arith.constant 0 : i32
    return %c0_i32, %c0_i32_0 : i32, i32
  }
  func.func @transform_2(%arg0: i32) -> (i32, i32) {
    %c0_i32 = arith.constant 0 : i32
    %c0_i32_0 = arith.constant 0 : i32
    %c0_i32_1 = arith.constant 0 : i32
    return %c0_i32, %c0_i32_0 : i32, i32
  }
  func.func @transform_3(%arg0: i32) -> (i32, i32) {
    %c0_i32 = arith.constant 0 : i32
    %c0_i32_0 = arith.constant 0 : i32
    return %arg0, %c0_i32 : i32, i32
  }
}

</mosaic_0001>

<bundles_post_ra>
// kernel: vqcae_forward.11
= control target key start
LH: loop header
LB: loop body
LE: loop exit
PB: predicated region body
PF: predicated region fallthrough
CT: control target
= control target key end

     0   :  { %s3950_s12 = smov 0   ;;  %s4799_s0 = inlined_call_operand.vmem [shape: bf16[512,1152], index: 0, kind: input, shape index: {}]   ;;  %s4800_s1 = inlined_call_operand.vmem [shape: bf16[1152,128], index: 1, kind: input, shape index: {}]   ;;  %s4801_s2 = inlined_call_operand.vmem [shape: f32[1,128], index: 2, kind: input, shape index: {}]   ;;  %s4802_s3 = inlined_call_operand.vmem [shape: bf16[512,128], index: 3, kind: output, shape index: {}]  }
   0x1 LB: > { %s2710_s13 = sadd.s32 4294967295, %s3928_s12   ;;  %p2714_p0 = scmp.ge.s32.totalorder %s3928_s12, 1  ;;  %s3928_s12 = sphi %s3950_s12, %s13_s12  }
   0x2   : > { %p139_p1 = scmp.lt.s32.totalorder %s3928_s12, 3 }
   0x4   : > { %p140_p2 = pnand %p2714_p0, %p139_p1 }
   0x6   : > { %143 = sbr.rel (%p140_p2) target bundleno = 534 (0x216), region = 32 }
   0xb   : > { %v3642_v0 = vld [vmem:[%s4800_s1 + $0x78] sm:$0xff]   ;;  %s2715_s16 = sshll.u32 %s2710_s13, 5  ;;  %v3644_v2 = vld [vmem:[%s4800_s1 + $0x70] sm:$0xff]   ;;  %v3646_v4 = vld [vmem:[%s4800_s1 + $0x68] sm:$0xff]  }
   0xc   : > { %v3643_v1 = vld [vmem:[%s4800_s1 + $0x38] sm:$0xff]   ;;  %3097 = vmatprep.subr.bf16.mxu0 %v3642_v0  ;;  %3617 = vmatprep.subr.bf16.mxu1 %v3642_v0  ;;  %p165_p3 = scmp.lt.s32.totalorder %s2715_s16, 63  ;;  %v3645_v3 = vld [vmem:[%s4800_s1 + $0x30] sm:$0xff]   ;;  %v3647_v5 = vld [vmem:[%s4800_s1 + $0x28] sm:$0xff]  }
   0xd   : > { %3098 = vmatpush3.bf16.msra.mxu0 %v3643_v1  ;;  %3625 = vmatpush3.bf16.msra.mxu1 %v3643_v1  ;;  %v3648_v6 = vld [vmem:[%s4800_s1 + $0x60] sm:$0xff]   ;;  %v3650_v8 = vld [vmem:[%s4800_s1 + $0x58] sm:$0xff]   ;;  %v3652_v10 = vld [vmem:[%s4800_s1 + $0x50] sm:$0xff]  }
   0xe   : > { %3099 = vmatprep.subr.bf16.mxu0 %v3644_v2  ;;  %3618 = vmatprep.subr.bf16.mxu1 %v3644_v2  ;;  %s4826_s16 = smov (!%p165_p3, %s2715_s16), 63  ;;  %v3649_v7 = vld [vmem:[%s4800_s1 + $0x20] sm:$0xff]   ;;  %v3651_v9 = vld [vmem:[%s4800_s1 + $0x18] sm:$0xff]   ;;  %v3653_v13 = vld [vmem:[%s4800_s1 + $0x10] sm:$0xff]  }
   0xf   : > { %s3633_s29 = smul.u32 36, %s4826_s16  ;;  %v3654_v14 = vld [vmem:[%s4800_s1 + $0x48] sm:$0xff]   ;;  %v3656_v16 = vld [vmem:[%s4800_s1 + $0x40] sm:$0xff]   ;;  %v3664_v18 = vld [vmem:[%s4800_s1 + $0xf8] sm:$0xff]  }
  0x10   : > { %v3655_v15 = vld [vmem:[%s4800_s1 + $0x8] sm:$0xff]   ;;  %v3657_v17 = vld [vmem:[%s4800_s1] sm:$0xff]   ;;  %v3667_v21 = vld [vmem:[%s4800_s1 + $0x178] sm:$0xff]  }
  0x11   : > { %3100 = vmatpush3.bf16.msra.mxu0 %v3645_v3  ;;  %3626 = vmatpush3.bf16.msra.mxu1 %v3645_v3  ;;  %s3991_s9 = scalar_lea.vmem %s4799_s0, %s3633_s29  ;;  %v3665_v22 = vld [vmem:[%s4800_s1 + $0xb8] sm:$0xff]   ;;  %v3666_v23 = vld [vmem:[%s4800_s1 + $0xf0] sm:$0xff]   ;;  %v3676_v31 = vld [vmem:[%s4800_s1 + $0xe8] sm:$0xff]  }
  0x12   : > { %3101 = vmatprep.subr.bf16.mxu0 %v3646_v4  ;;  %3619 = vmatprep.subr.bf16.mxu1 %v3646_v4  ;;  %v3660_v11 = vld [vmem:[%s3991_s9 + $0x4] ss:$36 sps:$4 sm:$0xff]   ;;  %v3669_v24 = vld [vmem:[%s4800_s1 + $0x138] sm:$0xff]   ;;  %v3670_v25 = vld [vmem:[%s3991_s9 + $0x4c] ss:$36 sps:$4 sm:$0xff]  }
  0x13   : > { %v3663_v12 = vld [vmem:[%s3991_s9 + $0x364] ss:$36 sps:$4 sm:$0xff]   ;;  %1689 = vmatprep.mubr.bf16.mxu0 %v3660_v11  ;;  %v3672_v26 = vld [vmem:[%s3991_s9 + $0x3ac] ss:$36 sps:$4 sm:$0xff]   ;;  %v3680_v35 = vld [vmem:[%s3991_s9 + $0x94] ss:$36 sps:$4 sm:$0xff]  }
  0x14   : > { %1785 = vmatprep.mubr.bf16.mxu1 %v3663_v12  ;;  %v3658_v19 = vld [vmem:[%s3991_s9] ss:$36 sps:$4 sm:$0xff]   ;;  %v3668_v27 = vld [vmem:[%s4800_s1 + $0xb0] sm:$0xff]   ;;  %v3674_v29 = vld [vmem:[%s3991_s9 + $0x48] ss:$36 sps:$4 sm:$0xff]  }
  0x15   : > { %3102 = vmatpush3.bf16.msra.mxu0 %v3647_v5  ;;  %3627 = vmatpush3.bf16.msra.mxu1 %v3647_v5  ;;  %v3661_v20 = vld [vmem:[%s3991_s9 + $0x360] ss:$36 sps:$4 sm:$0xff]   ;;  %v3687_v28 = vld [vmem:[%s4800_s1 + $0x170] sm:$0xff]   ;;  %v3675_v30 = vld [vmem:[%s3991_s9 + $0x3a8] ss:$36 sps:$4 sm:$0xff]  }
  0x16   : > { %3103 = vmatprep.subr.bf16.mxu0 %v3648_v6  ;;  %3620 = vmatprep.subr.bf16.mxu1 %v3648_v6  ;;  %v3677_v32 = vld [vmem:[%s4800_s1 + $0xa8] sm:$0xff]   ;;  %v3689_v33 = vld [vmem:[%s4800_s1 + $0x130] sm:$0xff]   ;;  %v3678_v34 = vld [vmem:[%s4800_s1 + $0xe0] sm:$0xff]  }
  0x17   : > { %v3682_v36 = vld [vmem:[%s3991_s9 + $0x3f4] ss:$36 sps:$4 sm:$0xff]   ;;  %v3679_v37 = vld [vmem:[%s4800_s1 + $0xa0] sm:$0xff]   ;;  %v3701_v43 = vld [vmem:[%s4800_s1 + $0x168] sm:$0xff]  }
  0x18   : > { %v3684_v38 = vld [vmem:[%s3991_s9 + $0x90] ss:$36 sps:$4 sm:$0xff]   ;;  %v3686_v40 = vld [vmem:[%s4800_s1 + $0xd8] sm:$0xff]   ;;  %v3703_v46 = vld [vmem:[%s4800_s1 + $0x128] sm:$0xff]  }
  0x19   : > { %3104 = vmatpush3.bf16.msra.mxu0 %v3649_v7  ;;  %3628 = vmatpush3.bf16.msra.mxu1 %v3649_v7  ;;  %v3685_v39 = vld [vmem:[%s3991_s9 + $0x3f0] ss:$36 sps:$4 sm:$0xff]   ;;  %v3688_v41 = vld [vmem:[%s4800_s1 + $0x98] sm:$0xff]   ;;  %v3698_v48 = vld [vmem:[%s4800_s1 + $0xc8] sm:$0xff]  }
  0x1a   : > { %3105 = vmatprep.subr.bf16.mxu0 %v3650_v8  ;;  %3621 = vmatprep.subr.bf16.mxu1 %v3650_v8  ;;  %v3690_v42 = vld [vmem:[%s4800_s1 + $0xd0] sm:$0xff]   ;;  %v3692_v44 = vld [vmem:[%s3991_s9 + $0xdc] ss:$36 sps:$4 sm:$0xff]   ;;  %v3699_v51 = vld [vmem:[%s4800_s1 + $0x88] sm:$0xff]  }
  0x1b   : > { %v3694_v45 = vld [vmem:[%s3991_s9 + $0x43c] ss:$36 sps:$4 sm:$0xff]   ;;  %v3691_v47 = vld [vmem:[%s4800_s1 + $0x90] sm:$0xff]   ;;  %v3704_v53 = vld [vmem:[%s3991_s9 + $0x124] ss:$36 sps:$4 sm:$0xff]  }
  0x1c   : > { %v3696_v49 = vld [vmem:[%s3991_s9 + $0xd8] ss:$36 sps:$4 sm:$0xff]   ;;  %v3700_v52 = vld [vmem:[%s4800_s1 + $0xc0] sm:$0xff]   ;;  %v3708_v54 = vld [vmem:[%s3991_s9 + $0xc] ss:$36 sps:$4 sm:$0xff]  }
  0x1d   : > { %3106 = vmatpush3.bf16.msra.mxu0 %v3651_v9  ;;  %3629 = vmatpush3.bf16.msra.mxu1 %v3651_v9  ;;  %v3697_v50 = vld [vmem:[%s3991_s9 + $0x438] ss:$36 sps:$4 sm:$0xff]   ;;  %v3718_v55 = vld [vmem:[%s4800_s1 + $0x160] sm:$0xff]   ;;  %v3706_v58 = vld [vmem:[%s3991_s9 + $0x8] ss:$36 sps:$4 sm:$0xff]  }
  0x1e   : > { %3107 = vmatprep.subr.bf16.mxu0 %v3652_v10  ;;  %3622 = vmatprep.subr.bf16.mxu1 %v3652_v10  ;;  %v3719_v56 = vld [vmem:[%s4800_s1 + $0x120] sm:$0xff]   ;;  %v3710_v60 = vld [vmem:[%s4800_s1 + $0x1f8] sm:$0xff]   ;;  %v3712_v62 = vld [vmem:[%s3991_s9 + $0x16c] ss:$36 sps:$4 sm:$0xff]  }
  0x1f   : > { %v3702_v57 = vld [vmem:[%s4800_s1 + $0x80] sm:$0xff]   ;;  %v3711_v61 = vld [vmem:[%s4800_s1 + $0x1b8] sm:$0xff]   ;;  %v3726_v1 = vld [vmem:[%s4800_s1 + $0x1f0] sm:$0xff]  }
  0x20   : > { %v3709_v59 = vld [vmem:[%s3991_s9 + $0x120] ss:$36 sps:$4 sm:$0xff]   ;;  %v3714_v63 = vld [vmem:[%s3991_s9 + $0x54] ss:$36 sps:$4 sm:$0xff]   ;;  %v3716_v4 = vld [vmem:[%s3991_s9 + $0x168] ss:$36 sps:$4 sm:$0xff]  }
  0x21   : > { %3108 = vmatpush3.bf16.msra.mxu0 %v3653_v13  ;;  %3630 = vmatpush3.bf16.msra.mxu1 %v3653_v13  ;;  %v3728_v0 = vld [vmem:[%s4800_s1 + $0x158] sm:$0xff]   ;;  %v3727_v3 = vld [vmem:[%s4800_s1 + $0x1b0] sm:$0xff]   ;;  %v3743_v9 = vld [vmem:[%s4800_s1 + $0x1e8] sm:$0xff]  }
  0x22   : > { %3109 = vmatprep.subr.bf16.mxu0 %v3654_v14  ;;  %3623 = vmatprep.subr.bf16.mxu1 %v3654_v14  ;;  %v3729_v2 = vld [vmem:[%s4800_s1 + $0x118] sm:$0xff]   ;;  %v3717_v5 = vld [vmem:[%s3991_s9 + $0x50] ss:$36 sps:$4 sm:$0xff]   ;;  %v3745_v11 = vld [vmem:[%s4800_s1 + $0x1a8] sm:$0xff]  }
  0x23   : > { %v3720_v6 = vld [vmem:[%s3991_s9 + $0x1b4] ss:$36 sps:$4 sm:$0xff]   ;;  %v3722_v7 = vld [vmem:[%s3991_s9 + $0x9c] ss:$36 sps:$4 sm:$0xff]  }
  0x24   : > { %v3742_v8 = vld [vmem:[%s4800_s1 + $0x150] sm:$0xff]   ;;  %v3725_v13 = vld [vmem:[%s3991_s9 + $0x98] ss:$36 sps:$4 sm:$0xff]  }
  0x25   : > { %3110 = vmatpush3.bf16.msra.mxu0 %v3655_v15  ;;  %3631 = vmatpush3.bf16.msra.mxu1 %v3655_v15  ;;  %v3744_v10 = vld [vmem:[%s4800_s1 + $0x110] sm:$0xff]   ;;  %v3730_v14 = vld [vmem:[%s3991_s9 + $0x1fc] ss:$36 sps:$4 sm:$0xff]   ;;  %v3752_v15 = vld [vmem:[%s4800_s1 + $0x148] sm:$0xff]  }
  0x26   : > { %3111 = vmatprep.subr.bf16.mxu0 %v3656_v16  ;;  %3624 = vmatprep.subr.bf16.mxu1 %v3656_v16  ;;  %v3724_v12 = vld [vmem:[%s3991_s9 + $0x1b0] ss:$36 sps:$4 sm:$0xff]   ;;  %v3753_v16 = vld [vmem:[%s4800_s1 + $0x108] sm:$0xff]  }
  0x29   : > { %3112 = vmatpush3.bf16.msra.mxu0 %v3657_v17  ;;  %3632 = vmatpush3.bf16.msra.mxu1 %v3657_v17  ;;  %v3732_v17 = vld [vmem:[%s3991_s9 + $0xe4] ss:$36 sps:$4 sm:$0xff]  }
  0x2a   : > { %3209 = vmatprep.subr.bf16.mxu1 %v3664_v18  ;;  %3321 = vmatprep.subr.bf16.mxu0 %v3667_v21  ;;  %v3760_v18 = vld [vmem:[%s4800_s1 + $0x1e0] sm:$0xff]  }
  0x2b   : > { %v3735_v21 = vld [vmem:[%s3991_s9 + $0xe0] ss:$36 sps:$4 sm:$0xff]  }
  0x2c   : > { %1690 = vmatmul.mubr.bf16.vlgmr.msra.gmra.mxu0 %v3658_v19  ;;  %1786 = vmatmul.mubr.bf16.vlgmr.msra.gmra.mxu1 %v3661_v20  ;;  %v3761_v19 = vld [vmem:[%s4800_s1 + $0x1a0] sm:$0xff]   ;;  %v3734_v20 = vld [vmem:[%s3991_s9 + $0x1f8] ss:$36 sps:$4 sm:$0xff]  }
  0x2d   : > { %3210 = vmatpush3.bf16.msra.mxu1 %v3665_v22  ;;  %3322 = vmatpush3.bf16.msra.mxu0 %v3669_v24  ;;  %v3736_v22 = vld [vmem:[%s3991_s9 + $0x244] ss:$36 sps:$4 sm:$0xff]  }
  0x2e   : > { %3211 = vmatprep.subr.bf16.mxu1 %v3666_v23  ;;  %1697 = vmatprep.mubr.bf16.mxu0 %v3670_v25  ;;  %v3738_v23 = vld [vmem:[%s3991_s9 + $0x12c] ss:$36 sps:$4 sm:$0xff]   ;;  %v3768_v24 = vld [vmem:[%s4800_s1 + $0x140] sm:$0xff]  }
  0x2f   : > { %1793 = vmatprep.mubr.bf16.mxu1 %v3672_v26  ;;  %3323 = vmatprep.subr.bf16.mxu0 %v3687_v28  ;;  %v3769_v25 = vld [vmem:[%s4800_s1 + $0x100] sm:$0xff]   ;;  %v3776_v26 = vld [vmem:[%s4800_s1 + $0x1d8] sm:$0xff]  }
  0x30   : > { %v3777_v28 = vld [vmem:[%s4800_s1 + $0x198] sm:$0xff]  }
  0x31   : > { %3212 = vmatpush3.bf16.msra.mxu1 %v3668_v27  ;;  %3324 = vmatpush3.bf16.msra.mxu0 %v3689_v33  ;;  %v3740_v27 = vld [vmem:[%s3991_s9 + $0x240] ss:$36 sps:$4 sm:$0xff]   ;;  %v3791_v33 = vld [vmem:[%s4800_s1 + $0x1d0] sm:$0xff]  }
  0x32   : > { %3213 = vmatprep.subr.bf16.mxu1 %v3676_v31  ;;  %3325 = vmatprep.subr.bf16.mxu0 %v3701_v43  ;;  %v3746_v31 = vld [vmem:[%s3991_s9 + $0x28c] ss:$36 sps:$4 sm:$0xff]   ;;  %v3762_v43 = vld [vmem:[%s3991_s9 + $0x31c] ss:$36 sps:$4 sm:$0xff]  }
  0x34   : > { %1698 = vmatmul.mubr.bf16.gmra.mxu0 %v3674_v29  ;;  %1794 = vmatmul.mubr.bf16.gmra.mxu1 %v3675_v30  ;;  %v3778_v29 = vld [vmem:[%s4800_s1 + $0x238] sm:$0xff]   ;;  %v3741_v30 = vld [vmem:[%s3991_s9 + $0x128] ss:$36 sps:$4 sm:$0xff]  }
  0x35   : > { %3214 = vmatpush3.bf16.msra.mxu1 %v3677_v32  ;;  %1705 = vmatprep.mubr.bf16.mxu0 %v3680_v35  ;;  %v3748_v32 = vld [vmem:[%s3991_s9 + $0x174] ss:$36 sps:$4 sm:$0xff]  }
  0x36   : > { %3215 = vmatprep.subr.bf16.mxu1 %v3678_v34  ;;  %1801 = vmatprep.mubr.bf16.mxu1 %v3682_v36  ;;  %v3750_v34 = vld [vmem:[%s3991_s9 + $0x288] ss:$36 sps:$4 sm:$0xff]   ;;  %v3792_v35 = vld [vmem:[%s4800_s1 + $0x190] sm:$0xff]  }
  0x37   : > { %3326 = vmatpush3.bf16.msra.mxu0 %v3703_v46  ;;  %v3751_v36 = vld [vmem:[%s3991_s9 + $0x170] ss:$36 sps:$4 sm:$0xff]   ;;  %v3767_v46 = vld [vmem:[%s3991_s9 + $0x200] ss:$36 sps:$4 sm:$0xff]  }
  0x38   : > { %3327 = vmatprep.subr.bf16.mxu0 %v3718_v55  ;;  %v3793_v55 = vld [vmem:[%s4800_s1 + $0x230] sm:$0xff]  }
  0x39   : > { %3216 = vmatpush3.bf16.msra.mxu1 %v3679_v37  ;;  %v3754_v37 = vld [vmem:[%s3991_s9 + $0x2d4] ss:$36 sps:$4 sm:$0xff]  }
  0x3a   : > { %3217 = vmatprep.subr.bf16.mxu1 %v3686_v40  ;;  %v3759_v40 = vld [vmem:[%s3991_s9 + $0x1b8] ss:$36 sps:$4 sm:$0xff]  }
  0x3b   : > { %3328 = vmatpush3.bf16.msra.mxu0 %v3719_v56  ;;  %v3808_v56 = vld [vmem:[%s4800_s1 + $0x228] sm:$0xff]  }
  0x3c   : > { %1706 = vmatmul.mubr.bf16.gmra.mxu0 %v3684_v38  ;;  %1802 = vmatmul.mubr.bf16.gmra.mxu1 %v3685_v39  ;;  %v3756_v38 = vld [vmem:[%s3991_s9 + $0x1bc] ss:$36 sps:$4 sm:$0xff]   ;;  %v3758_v39 = vld [vmem:[%s3991_s9 + $0x2d0] ss:$36 sps:$4 sm:$0xff]  }
  0x3d   : > { %3218 = vmatpush3.bf16.msra.mxu1 %v3688_v41  ;;  %1713 = vmatprep.mubr.bf16.mxu0 %v3692_v44  ;;  %v3806_v41 = vld [vmem:[%s4800_s1 + $0x1c8] sm:$0xff]  }
  0x3e   : > { %3219 = vmatprep.subr.bf16.mxu1 %v3690_v42  ;;  %1809 = vmatprep.mubr.bf16.mxu1 %v3694_v45  ;;  %v3807_v42 = vld [vmem:[%s4800_s1 + $0x188] sm:$0xff]   ;;  %v3766_v45 = vld [vmem:[%s3991_s9 + $0x318] ss:$36 sps:$4 sm:$0xff]  }
  0x3f   : > { %3329 = vmatprep.subr.bf16.mxu0 %v3728_v0  ;;  %v3764_v44 = vld [vmem:[%s3991_s9 + $0x204] ss:$36 sps:$4 sm:$0xff]  }
  0x40   : > { %3330 = vmatpush3.bf16.msra.mxu0 %v3729_v2  ;;  %v3790_v0 = vld [vmem:[%s3991_s9 + $0xa0] ss:$36 sps:$4 sm:$0xff]   ;;  %v3796_v2 = vld [vmem:[%s3991_s9 + $0xec] ss:$36 sps:$4 sm:$0xff]  }
  0x41   : > { %3220 = vmatpush3.bf16.msra.mxu1 %v3691_v47  ;;  %3331 = vmatprep.subr.bf16.mxu0 %v3742_v8  ;;  %v3821_v47 = vld [vmem:[%s4800_s1 + $0x1c0] sm:$0xff]   ;;  %v3802_v8 = vld [vmem:[%s3991_s9 + $0x134] ss:$36 sps:$4 sm:$0xff]  }
  0x42   : > { %3221 = vmatprep.subr.bf16.mxu1 %v3698_v48  ;;  %v3822_v48 = vld [vmem:[%s4800_s1 + $0x180] sm:$0xff]  }
  0x44   : > { %1714 = vmatmul.mubr.bf16.gmra.mxu0 %v3696_v49  ;;  %1810 = vmatmul.mubr.bf16.gmra.mxu1 %v3697_v50  ;;  %v3770_v49 = vld [vmem:[%s3991_s9 + $0x24c] ss:$36 sps:$4 sm:$0xff]   ;;  %v3774_v50 = vld [vmem:[%s3991_s9 + $0x14] ss:$36 sps:$4 sm:$0xff]  }
  0x45   : > { %3222 = vmatpush3.bf16.msra.mxu1 %v3699_v51  ;;  %1721 = vmatprep.mubr.bf16.mxu0 %v3704_v53  ;;  %v3772_v51 = vld [vmem:[%s3991_s9 + $0x10] ss:$36 sps:$4 sm:$0xff]  }
  0x46   : > { %3223 = vmatprep.subr.bf16.mxu1 %v3700_v52  ;;  %1850 = vmatprep.mubr.bf16.mxu1 %v3708_v54  ;;  %v3775_v52 = vld [vmem:[%s3991_s9 + $0x248] ss:$36 sps:$4 sm:$0xff]   ;;  %v3779_v53 = vld [vmem:[%s3991_s9 + $0x294] ss:$36 sps:$4 sm:$0xff]   ;;  %v3781_v54 = vld [vmem:[%s3991_s9 + $0x5c] ss:$36 sps:$4 sm:$0xff]  }
  0x47   : > { %3332 = vmatpush3.bf16.msra.mxu0 %v3744_v10  ;;  %v3804_v10 = vld [vmem:[%s3991_s9 + $0x368] ss:$36 sps:$4 sm:$0xff]  }
  0x48   : > { %3333 = vmatprep.subr.bf16.mxu0 %v3752_v15  ;;  %v3814_v15 = vld [vmem:[%s3991_s9 + $0x178] ss:$36 sps:$4 sm:$0xff]  }
  0x49   : > { %3224 = vmatpush3.bf16.msra.mxu1 %v3702_v57  ;;  %v3783_v57 = vld [vmem:[%s3991_s9 + $0x290] ss:$36 sps:$4 sm:$0xff]  }
  0x4a   : > { %3433 = vmatprep.subr.bf16.mxu1 %v3710_v60  ;;  %v3787_v60 = vld [vmem:[%s3991_s9 + $0xa4] ss:$36 sps:$4 sm:$0xff]  }
  0x4b   : > { %3334 = vmatpush3.bf16.msra.mxu0 %v3753_v16  ;;  %v3815_v16 = vld [vmem:[%s3991_s9 + $0x3fc] ss:$36 sps:$4 sm:$0xff]  }
  0x4c   : > { %1722 = vmatmul.mubr.bf16.gmra.mxu0 %v3709_v59  ;;  %1851 = vmatmul.mubr.bf16.vlgmr.msra.gmra.mxu1 %v3706_v58  ;;  %v3784_v58 = vld [vmem:[%s3991_s9 + $0x58] ss:$36 sps:$4 sm:$0xff]  }
  0x4d   : > { %3434 = vmatpush3.bf16.msra.mxu1 %v3711_v61  ;;  %1729 = vmatprep.mubr.bf16.mxu0 %v3712_v62  ;;  %v3785_v59 = vld [vmem:[%s3991_s9 + $0x2dc] ss:$36 sps:$4 sm:$0xff]  }
  0x4e   : > { %1858 = vmatprep.mubr.bf16.mxu1 %v3714_v63  ;;  %3435 = vmatprep.subr.bf16.mxu1 %v3726_v1  ;;  %v3823_v61 = vld [vmem:[%s4800_s1 + $0x220] sm:$0xff]   ;;  %v3789_v62 = vld [vmem:[%s3991_s9 + $0x2d8] ss:$36 sps:$4 sm:$0xff]  }
  0x4f   : > { %3335 = vmatprep.subr.bf16.mxu0 %v3768_v24  ;;  %v3836_v63 = vld [vmem:[%s4800_s1 + $0x218] sm:$0xff]   ;;  %v3794_v1 = vld [vmem:[%s3991_s9 + $0x324] ss:$36 sps:$4 sm:$0xff]  }
  0x50   : > { %3336 = vmatpush3.bf16.msra.mxu0 %v3769_v25  ;;  %v3830_v24 = vld [vmem:[%s3991_s9 + $0x254] ss:$36 sps:$4 sm:$0xff]   ;;  %v3834_v25 = vld [vmem:[%s3991_s9 + $0x1c] ss:$36 sps:$4 sm:$0xff]  }
  0x51   : > { %3436 = vmatpush3.bf16.msra.mxu1 %v3727_v3  ;;  %3569 = vmatprep.subr.bf16.mxu0 %v3778_v29  ;;  %v3849_v3 = vld [vmem:[%s4800_s1 + $0x210] sm:$0xff]  }
  0x52   : > { %3437 = vmatprep.subr.bf16.mxu1 %v3743_v9  ;;  %v3875_v9 = vld [vmem:[%s4800_s1 + $0x200] sm:$0xff]  }
  0x54   : > { %1730 = vmatmul.mubr.bf16.gmra.mxu0 %v3716_v4  ;;  %1859 = vmatmul.mubr.bf16.gmra.mxu1 %v3717_v5  ;;  %v3798_v4 = vld [vmem:[%s3991_s9 + $0x320] ss:$36 sps:$4 sm:$0xff]   ;;  %v3862_v5 = vld [vmem:[%s4800_s1 + $0x208] sm:$0xff]  }
  0x55   : > { %1737 = vmatprep.mubr.bf16.mxu0 %v3720_v6  ;;  %1866 = vmatprep.mubr.bf16.mxu1 %v3722_v7  ;;  %v3799_v6 = vld [vmem:[%s3991_s9 + $0xe8] ss:$36 sps:$4 sm:$0xff]  }
  0x56   : > { %3438 = vmatpush3.bf16.msra.mxu1 %v3745_v11  ;;  %v3800_v7 = vld [vmem:[%s3991_s9 + $0x36c] ss:$36 sps:$4 sm:$0xff]  }
  0x57   : > { %3439 = vmatprep.subr.bf16.mxu1 %v3760_v18  ;;  %v3805_v11 = vld [vmem:[%s3991_s9 + $0x130] ss:$36 sps:$4 sm:$0xff]   ;;  %v3819_v18 = vld [vmem:[%s3991_s9 + $0x3f8] ss:$36 sps:$4 sm:$0xff]  }
  0x5a   : > { %3440 = vmatpush3.bf16.msra.mxu1 %v3761_v19  ;;  %v3820_v19 = vld [vmem:[%s3991_s9 + $0x1c0] ss:$36 sps:$4 sm:$0xff]  }
  0x5b   : > { %3441 = vmatprep.subr.bf16.mxu1 %v3776_v26  ;;  %v3832_v26 = vld [vmem:[%s3991_s9 + $0x18] ss:$36 sps:$4 sm:$0xff]  }
  0x5c   : > { %1738 = vmatmul.mubr.bf16.gmra.mxu0 %v3724_v12  ;;  %1867 = vmatmul.mubr.bf16.gmra.mxu1 %v3725_v13  ;;  %v3809_v12 = vld [vmem:[%s3991_s9 + $0x3b4] ss:$36 sps:$4 sm:$0xff]   ;;  %v3811_v13 = vld [vmem:[%s3991_s9 + $0x17c] ss:$36 sps:$4 sm:$0xff]  }
  0x5d   : > { %1745 = vmatprep.mubr.bf16.mxu0 %v3730_v14  ;;  %1874 = vmatprep.mubr.bf16.mxu1 %v3732_v17  ;;  %v3813_v14 = vld [vmem:[%s3991_s9 + $0x3b0] ss:$36 sps:$4 sm:$0xff]   ;;  %v3817_v17 = vld [vmem:[%s3991_s9 + $0x1c4] ss:$36 sps:$4 sm:$0xff]  }
  0x5e   : > { %3442 = vmatpush3.bf16.msra.mxu1 %v3777_v28  ;;  %v3837_v28 = vld [vmem:[%s3991_s9 + $0x29c] ss:$36 sps:$4 sm:$0xff]  }
  0x5f   : > { %3443 = vmatprep.subr.bf16.mxu1 %v3791_v33  ;;  %v3845_v33 = vld [vmem:[%s3991_s9 + $0xac] ss:$36 sps:$4 sm:$0xff]  }
  0x62   : > { %3444 = vmatpush3.bf16.msra.mxu1 %v3792_v35  ;;  %v3848_v35 = vld [vmem:[%s3991_s9 + $0xa8] ss:$36 sps:$4 sm:$0xff]  }
  0x63   : > { %3445 = vmatprep.subr.bf16.mxu1 %v3806_v41  ;;  %v3858_v41 = vld [vmem:[%s3991_s9 + $0x13c] ss:$36 sps:$4 sm:$0xff]  }
  0x64   : > { %1746 = vmatmul.mubr.bf16.gmra.mxu0 %v3734_v20  ;;  %1875 = vmatmul.mubr.bf16.gmra.mxu1 %v3735_v21  ;;  %v3824_v20 = vld [vmem:[%s3991_s9 + $0x444] ss:$36 sps:$4 sm:$0xff]   ;;  %v3826_v21 = vld [vmem:[%s3991_s9 + $0x20c] ss:$36 sps:$4 sm:$0xff]  }
  0x65   : > { %1753 = vmatprep.mubr.bf16.mxu0 %v3736_v22  ;;  %1882 = vmatprep.mubr.bf16.mxu1 %v3738_v23  ;;  %v3828_v22 = vld [vmem:[%s3991_s9 + $0x440] ss:$36 sps:$4 sm:$0xff]   ;;  %v3829_v23 = vld [vmem:[%s3991_s9 + $0x208] ss:$36 sps:$4 sm:$0xff]  }
  0x66   : > { %3446 = vmatpush3.bf16.msra.mxu1 %v3807_v42  ;;  %v3860_v42 = vld [vmem:[%s3991_s9 + $0x370] ss:$36 sps:$4 sm:$0xff]  }
  0x67   : > { %3447 = vmatprep.subr.bf16.mxu1 %v3821_v47 }
  0x6a   : > { %3448 = vmatpush3.bf16.msra.mxu1 %v3822_v48 }
  0x6c   : > { %1754 = vmatmul.mubr.bf16.gmra.mxu0 %v3740_v27  ;;  %1883 = vmatmul.mubr.bf16.gmra.mxu1 %v3741_v30  ;;  %v3835_v27 = vld [vmem:[%s3991_s9 + $0x250] ss:$36 sps:$4 sm:$0xff]   ;;  %v3841_v30 = vld [vmem:[%s3991_s9 + $0x298] ss:$36 sps:$4 sm:$0xff]  }
  0x6d   : > { %1761 = vmatprep.mubr.bf16.mxu0 %v3746_v31  ;;  %1890 = vmatprep.mubr.bf16.mxu1 %v3748_v32  ;;  %v3842_v31 = vld [vmem:[%s3991_s9 + $0x60] ss:$36 sps:$4 sm:$0xff]  }
  0x6e   : > { %v3843_v32 = vld [vmem:[%s3991_s9 + $0x2e4] ss:$36 sps:$4 sm:$0xff]  }
  0x74   : > { %1762 = vmatmul.mubr.bf16.gmra.mxu0 %v3750_v34  ;;  %1891 = vmatmul.mubr.bf16.gmra.mxu1 %v3751_v36  ;;  %v3847_v34 = vld [vmem:[%s3991_s9 + $0x2e0] ss:$36 sps:$4 sm:$0xff]   ;;  %v3850_v36 = vld [vmem:[%s3991_s9 + $0x32c] ss:$36 sps:$4 sm:$0xff]  }
  0x75   : > { %1769 = vmatprep.mubr.bf16.mxu0 %v3754_v37  ;;  %1898 = vmatprep.mubr.bf16.mxu1 %v3756_v38  ;;  %v3852_v37 = vld [vmem:[%s3991_s9 + $0xf4] ss:$36 sps:$4 sm:$0xff]   ;;  %v3854_v38 = vld [vmem:[%s3991_s9 + $0x328] ss:$36 sps:$4 sm:$0xff]  }
  0x7c   : > { %1770 = vmatmul.mubr.bf16.gmra.mxu0 %v3758_v39  ;;  %1899 = vmatmul.mubr.bf16.gmra.mxu1 %v3759_v40  ;;  %v3855_v39 = vld [vmem:[%s3991_s9 + $0xf0] ss:$36 sps:$4 sm:$0xff]  }
  0x7d   : > { %1777 = vmatprep.mubr.bf16.mxu0 %v3762_v43  ;;  %1906 = vmatprep.mubr.bf16.mxu1 %v3764_v44  ;;  %v3856_v40 = vld [vmem:[%s3991_s9 + $0x374] ss:$36 sps:$4 sm:$0xff]   ;;  %v3863_v44 = vld [vmem:[%s3991_s9 + $0x3bc] ss:$36 sps:$4 sm:$0xff]  }
  0x7e   : > { %v3861_v43 = vld [vmem:[%s3991_s9 + $0x138] ss:$36 sps:$4 sm:$0xff]  }
  0x84   : > { %1778 = vmatmul.mubr.bf16.gmra.mxu0 %v3766_v45  ;;  %1907 = vmatmul.mubr.bf16.gmra.mxu1 %v3767_v46  ;;  %v3865_v45 = vld [vmem:[%s3991_s9 + $0x184] ss:$36 sps:$4 sm:$0xff]  }
  0x85   : > { %1914 = vmatprep.mubr.bf16.mxu1 %v3770_v49  ;;  %2011 = vmatprep.mubr.bf16.mxu0 %v3774_v50 }
  0x8c   : > { %1915 = vmatmul.mubr.bf16.gmra.mxu1 %v3775_v52  ;;  %2012 = vmatmul.mubr.bf16.vlgmr.msra.gmra.mxu0 %v3772_v51 }
  0x8d   : > { %3570 = vmatpush3.bf16.msra.mxu0 %v3778_v29  ;;  %1922 = vmatprep.mubr.bf16.mxu1 %v3779_v53  ;;  %v3839_v29 = vld [vmem:[%s3991_s9 + $0x64] ss:$36 sps:$4 sm:$0xff]  }
  0x8e   : > { %2019 = vmatprep.mubr.bf16.mxu0 %v3781_v54  ;;  %3571 = vmatprep.subr.bf16.mxu0 %v3793_v55  ;;  %v3867_v54 = vld [vmem:[%s3991_s9 + $0x3b8] ss:$36 sps:$4 sm:$0xff]  }
  0x91   : > { %3572 = vmatpush3.bf16.msra.mxu0 %v3793_v55  ;;  %v3868_v55 = vld [vmem:[%s3991_s9 + $0x180] ss:$36 sps:$4 sm:$0xff]  }
  0x92   : > { %3573 = vmatprep.subr.bf16.mxu0 %v3808_v56 }
  0x94   : > { %1923 = vmatmul.mubr.bf16.gmra.mxu1 %v3783_v57  ;;  %2020 = vmatmul.mubr.bf16.gmra.mxu0 %v3784_v58  ;;  %v3871_v57 = vld [vmem:[%s3991_s9 + $0x1cc] ss:$36 sps:$4 sm:$0xff]  }
  0x95   : > { %1930 = vmatprep.mubr.bf16.mxu1 %v3785_v59  ;;  %2027 = vmatprep.mubr.bf16.mxu0 %v3787_v60 }
  0x96   : > { %3574 = vmatpush3.bf16.msra.mxu0 %v3808_v56  ;;  %v3869_v56 = vld [vmem:[%s3991_s9 + $0x404] ss:$36 sps:$4 sm:$0xff]  }
  0x97   : > { %3575 = vmatprep.subr.bf16.mxu0 %v3823_v61 }
  0x9a   : > { %3576 = vmatpush3.bf16.msra.mxu0 %v3823_v61 }
  0x9b   : > { %3577 = vmatprep.subr.bf16.mxu0 %v3836_v63 }
  0x9c   : > { %1931 = vmatmul.mubr.bf16.gmra.mxu1 %v3789_v62  ;;  %2028 = vmatmul.mubr.bf16.gmra.mxu0 %v3790_v0 }
  0x9d   : > { %1938 = vmatprep.mubr.bf16.mxu1 %v3794_v1  ;;  %2035 = vmatprep.mubr.bf16.mxu0 %v3796_v2 }
  0x9e   : > { %3578 = vmatpush3.bf16.msra.mxu0 %v3836_v63 }
  0x9f   : > { %3579 = vmatprep.subr.bf16.mxu0 %v3849_v3 }
  0xa2   : > { %3580 = vmatpush3.bf16.msra.mxu0 %v3849_v3 }
  0xa3   : > { %3581 = vmatprep.subr.bf16.mxu0 %v3862_v5 }
  0xa4   : > { %1939 = vmatmul.mubr.bf16.gmra.mxu1 %v3798_v4  ;;  %2036 = vmatmul.mubr.bf16.gmra.mxu0 %v3799_v6  ;;  %v3873_v6 = vld [vmem:[%s3991_s9 + $0x400] ss:$36 sps:$4 sm:$0xff]  }
  0xa5   : > { %1946 = vmatprep.mubr.bf16.mxu1 %v3800_v7  ;;  %2043 = vmatprep.mubr.bf16.mxu0 %v3802_v8  ;;  %v3874_v7 = vld [vmem:[%s3991_s9 + $0x1c8] ss:$36 sps:$4 sm:$0xff]  }
  0xa6   : > { %3582 = vmatpush3.bf16.msra.mxu0 %v3862_v5  ;;  %v3876_v8 = vld [vmem:[%s3991_s9 + $0x44c] ss:$36 sps:$4 sm:$0xff]  }
  0xa7   : > { %3583 = vmatprep.subr.bf16.mxu0 %v3875_v9 }
  0xaa   : > { %3584 = vmatpush3.bf16.msra.mxu0 %v3875_v9  ;;  %v3878_v9 = vld [vmem:[%s3991_s9 + $0x214] ss:$36 sps:$4 sm:$0xff]  }
  0xac   : > { %1947 = vmatmul.mubr.bf16.gmra.mxu1 %v3804_v10  ;;  %2044 = vmatmul.mubr.bf16.gmra.mxu0 %v3805_v11 }
  0xad   : > { %1954 = vmatprep.mubr.bf16.mxu1 %v3809_v12  ;;  %2051 = vmatprep.mubr.bf16.mxu0 %v3811_v13 }
  0xb4   : > { %1955 = vmatmul.mubr.bf16.gmra.mxu1 %v3813_v14  ;;  %2052 = vmatmul.mubr.bf16.gmra.mxu0 %v3814_v15 }
  0xb5   : > { %1962 = vmatprep.mubr.bf16.mxu1 %v3815_v16  ;;  %2059 = vmatprep.mubr.bf16.mxu0 %v3817_v17 }
  0xbc   : > { %1963 = vmatmul.mubr.bf16.gmra.mxu1 %v3819_v18  ;;  %2060 = vmatmul.mubr.bf16.gmra.mxu0 %v3820_v19 }
  0xbd   : > { %1970 = vmatprep.mubr.bf16.mxu1 %v3824_v20  ;;  %2067 = vmatprep.mubr.bf16.mxu0 %v3826_v21 }
  0xc4   : > { %1971 = vmatmul.mubr.bf16.gmra.mxu1 %v3828_v22  ;;  %2068 = vmatmul.mubr.bf16.gmra.mxu0 %v3829_v23  ;;  %v3880_v22 = vld [vmem:[%s3991_s9 + $0x448] ss:$36 sps:$4 sm:$0xff]   ;;  %v3881_v23 = vld [vmem:[%s3991_s9 + $0x210] ss:$36 sps:$4 sm:$0xff]  }
  0xc5   : > { %2075 = vmatprep.mubr.bf16.mxu0 %v3830_v24  ;;  %2172 = vmatprep.mubr.bf16.mxu1 %v3834_v25  ;;  %v3884_v24 = vld [vmem:[%s3991_s9 + $0x25c] ss:$36 sps:$4 sm:$0xff]  }
  0xc6   : > { %v3885_v25 = vld [vmem:[%s3991_s9 + $0x20] ss:$36 sps:$4 sm:$0xff]  }
  0xcc   : > { %2076 = vmatmul.mubr.bf16.gmra.mxu0 %v3835_v27  ;;  %2173 = vmatmul.mubr.bf16.vlgmr.msra.gmra.mxu1 %v3832_v26 }
  0xcd   : > { %2083 = vmatprep.mubr.bf16.mxu0 %v3837_v28  ;;  %2180 = vmatprep.mubr.bf16.mxu1 %v3839_v29 }
  0xd4   : > { %2084 = vmatmul.mubr.bf16.gmra.mxu0 %v3841_v30  ;;  %2181 = vmatmul.mubr.bf16.gmra.mxu1 %v3842_v31 }
  0xd5   : > { %2091 = vmatprep.mubr.bf16.mxu0 %v3843_v32  ;;  %2188 = vmatprep.mubr.bf16.mxu1 %v3845_v33 }
  0xdc   : > { %2092 = vmatmul.mubr.bf16.gmra.mxu0 %v3847_v34  ;;  %2189 = vmatmul.mubr.bf16.gmra.mxu1 %v3848_v35 }
  0xdd   : > { %2099 = vmatprep.mubr.bf16.mxu0 %v3850_v36  ;;  %2196 = vmatprep.mubr.bf16.mxu1 %v3852_v37 }
  0xe4   : > { %2100 = vmatmul.mubr.bf16.gmra.mxu0 %v3854_v38  ;;  %2197 = vmatmul.mubr.bf16.gmra.mxu1 %v3855_v39  ;;  %v3882_v38 = vld [vmem:[%s3991_s9 + $0x258] ss:$36 sps:$4 sm:$0xff]   ;;  %v3886_v39 = vld [vmem:[%s3991_s9 + $0x68] ss:$36 sps:$4 sm:$0xff]  }
  0xe5   : > { %2107 = vmatprep.mubr.bf16.mxu0 %v3856_v40  ;;  %2204 = vmatprep.mubr.bf16.mxu1 %v3858_v41  ;;  %v3889_v40 = vld [vmem:[%s3991_s9 + $0x2a4] ss:$36 sps:$4 sm:$0xff]   ;;  %v3890_v41 = vld [vmem:[%s3991_s9 + $0xb0] ss:$36 sps:$4 sm:$0xff]  }
  0xec   : > { %v3113_v46 = vpop.f32.mrf.mxu0  ;;  %v3185_v47 = vpop.f32.mrf.mxu1  ;;  %2108 = vmatmul.mubr.bf16.gmra.mxu0 %v3860_v42  ;;  %2205 = vmatmul.mubr.bf16.gmra.mxu1 %v3861_v43 }
  0xed   : > { %2115 = vmatprep.mubr.bf16.mxu0 %v3863_v44  ;;  %2212 = vmatprep.mubr.bf16.mxu1 %v3865_v45 }
  0xee   : > { %v3114_v48 = vpop.f32.mrf.mxu0  ;;  %v3186_v49 = vpop.f32.mrf.mxu1 }
  0xef   : > { %v4284_v50 = vadd.f32 %v3114_v48, %v3113_v46  ;;  %v4286_v51 = vadd.f32 %v3186_v49, %v3185_v47  ;;  %v4335_v48 = vld [vmem:[%s4801_s2] ss:$0 sm:$0xff] }
  0xf0   : > { %v3116_v52 = vpop.f32.mrf.mxu0  ;;  %v3188_v53 = vpop.f32.mrf.mxu1 }
  0xf2   : > { %v3117_v58 = vpop.f32.mrf.mxu0  ;;  %v3189_v59 = vpop.f32.mrf.mxu1 }
  0xf3   : > { %v4292_v60 = vadd.f32 %v3117_v58, %v3116_v52  ;;  %v4294_v61 = vadd.f32 %v3189_v59, %v3188_v53  ;;  %v1692_v53 = vadd.f32 %v4284_v50, %v4335_v48  ;;  %v3887_v58 = vld [vmem:[%s3991_s9 + $0x2a0] ss:$36 sps:$4 sm:$0xff]   ;;  %v3891_v59 = vld [vmem:[%s3991_s9 + $0xf8] ss:$36 sps:$4 sm:$0xff]  }
  0xf4   : > { %v3119_v62 = vpop.f32.mrf.mxu0  ;;  %v3191_v63 = vpop.f32.mrf.mxu1  ;;  %2116 = vmatmul.mubr.bf16.gmra.mxu0 %v3867_v54  ;;  %2213 = vmatmul.mubr.bf16.gmra.mxu1 %v3868_v55 }
  0xf5   : > { %2123 = vmatprep.mubr.bf16.mxu0 %v3869_v56  ;;  %2220 = vmatprep.mubr.bf16.mxu1 %v3871_v57 }
  0xf6   : > { %v3120_v0 = vpop.f32.mrf.mxu0  ;;  %v3192_v1 = vpop.f32.mrf.mxu1 }
  0xf7   : > { %v4296_v2 = vadd.f32 %v3120_v0, %v3119_v62  ;;  %v4298_v3 = vadd.f32 %v3192_v1, %v3191_v63  ;;  %v3894_v63 = vld [vmem:[%s3991_s9 + $0x2ec] ss:$36 sps:$4 sm:$0xff]   ;;  %v3895_v0 = vld [vmem:[%s3991_s9 + $0x140] ss:$36 sps:$4 sm:$0xff]  }
  0xf8   : > { %v3122_v4 = vpop.f32.mrf.mxu0  ;;  %v3194_v5 = vpop.f32.mrf.mxu1 }
  0xfa   : > { %v3123_v10 = vpop.f32.mrf.mxu0  ;;  %v3195_v11 = vpop.f32.mrf.mxu1 }
  0xfb   : > { %v4304_v12 = vadd.f32 %v3123_v10, %v3122_v4  ;;  %v4306_v13 = vadd.f32 %v3195_v11, %v3194_v5  ;;  %v1695_v5 = vadd.f32 %v4292_v60, %v4335_v48  ;;  %v1700_v60 = vadd.f32 %v4296_v2, %v4335_v48 }
  0xfc   : > { %v3125_v14 = vpop.f32.mrf.mxu0  ;;  %v3197_v15 = vpop.f32.mrf.mxu1  ;;  %2124 = vmatmul.mubr.bf16.gmra.mxu0 %v3873_v6  ;;  %2221 = vmatmul.mubr.bf16.gmra.mxu1 %v3874_v7 }
  0xfd   : > { %2131 = vmatprep.mubr.bf16.mxu0 %v3876_v8  ;;  %2228 = vmatprep.mubr.bf16.mxu1 %v3878_v9 }
  0xfe   : > { %v3126_v16 = vpop.f32.mrf.mxu0  ;;  %v3198_v17 = vpop.f32.mrf.mxu1 }
  0xff   : > { %v4308_v18 = vadd.f32 %v3126_v16, %v3125_v14  ;;  %v4310_v19 = vadd.f32 %v3198_v17, %v3197_v15 }
 0x100   : > { %v3128_v20 = vpop.f32.mrf.mxu0  ;;  %v3200_v21 = vpop.f32.mrf.mxu1 }
 0x102   : > { %v3129_v26 = vpop.f32.mrf.mxu0  ;;  %v3201_v27 = vpop.f32.mrf.mxu1 }
 0x103   : > { %v4316_v28 = vadd.f32 %v3129_v26, %v3128_v20  ;;  %v4318_v29 = vadd.f32 %v3201_v27, %v3200_v21  ;;  %v3892_v20 = vld [vmem:[%s3991_s9 + $0x2e8] ss:$36 sps:$4 sm:$0xff]   ;;  %v1703_v27 = vadd.f32 %v4304_v12, %v4335_v48  ;;  %v1708_v12 = vadd.f32 %v4308_v18, %v4335_v48 }
 0x104   : > { %v3131_v30 = vpop.f32.mrf.mxu0  ;;  %v3203_v31 = vpop.f32.mrf.mxu1  ;;  %2132 = vmatmul.mubr.bf16.gmra.mxu0 %v3880_v22  ;;  %2229 = vmatmul.mubr.bf16.gmra.mxu1 %v3881_v23  ;;  %v3896_v21 = vld [vmem:[%s3991_s9 + $0x188] ss:$36 sps:$4 sm:$0xff]   ;;  %v3899_v23 = vld [vmem:[%s3991_s9 + $0x334] ss:$36 sps:$4 sm:$0xff]  }
 0x105   : > { %2236 = vmatprep.mubr.bf16.mxu1 %v3884_v24  ;;  %3585 = vmatprep.mubr.bf16.mxu0 %v3885_v25  ;;  %v3900_v24 = vld [vmem:[%s3991_s9 + $0x1d0] ss:$36 sps:$4 sm:$0xff]  }
 0x106   : > { %v3132_v32 = vpop.f32.mrf.mxu0  ;;  %v3204_v33 = vpop.f32.mrf.mxu1 }
 0x107   : > { %v4320_v34 = vadd.f32 %v3132_v32, %v3131_v30  ;;  %v4322_v35 = vadd.f32 %v3204_v33, %v3203_v31 }
 0x108   : > { %v3134_v36 = vpop.f32.mrf.mxu0  ;;  %v3206_v37 = vpop.f32.mrf.mxu1 }
 0x10a   : > { %v3135_v42 = vpop.f32.mrf.mxu0  ;;  %v3207_v43 = vpop.f32.mrf.mxu1 }
 0x10b   : > { %v4328_v44 = vadd.f32 %v3135_v42, %v3134_v36  ;;  %v4330_v45 = vadd.f32 %v3207_v43, %v3206_v37  ;;  %v3897_v42 = vld [vmem:[%s3991_s9 + $0x330] ss:$36 sps:$4 sm:$0xff]   ;;  %v3901_v43 = vld [vmem:[%s3991_s9 + $0x218] ss:$36 sps:$4 sm:$0xff]  }
 0x10c   : > { %v3137_v46 = vpop.f32.mrf.mxu0  ;;  %v3225_v47 = vpop.f32.mrf.mxu1  ;;  %2237 = vmatmul.mubr.bf16.gmra.mxu1 %v3882_v38  ;;  %3586 = vmatmul.mubr.bf16.vlgmr.msra.gmra.mxu0 %v3886_v39 }
 0x10d   : > { %2244 = vmatprep.mubr.bf16.mxu1 %v3889_v40  ;;  %3589 = vmatprep.mubr.bf16.mxu0 %v3890_v41 }
 0x10e   : > { %v3138_v49 = vpop.f32.mrf.mxu0  ;;  %v3226_v52 = vpop.f32.mrf.mxu1 }
 0x10f   : > { %v4339_v54 = vadd.f32 %v3138_v49, %v3137_v46  ;;  %v3227_v55 = vadd.f32 %v3226_v52, %v3225_v47  ;;  %v3904_v47 = vld [vmem:[%s3991_s9 + $0x37c] ss:$36 sps:$4 sm:$0xff]  }
 0x110   : > { %v3140_v56 = vpop.f32.mrf.mxu0  ;;  %v3228_v57 = vpop.f32.mrf.mxu1  ;;  %v3905_v49 = vld [vmem:[%s3991_s9 + $0x260] ss:$36 sps:$4 sm:$0xff]  }
 0x111   : > { %v4343_v62 = vadd.f32 %v3227_v55, %v1692_v53  ;;  %v1711_v55 = vadd.f32 %v4316_v28, %v4335_v48  ;;  %v1716_v28 = vadd.f32 %v4320_v34, %v4335_v48 }
 0x112   : > { %v3141_v1 = vpop.f32.mrf.mxu0  ;;  %v3229_v4 = vpop.f32.mrf.mxu1 }
 0x113   : > { %v4349_v6 = vadd.f32 %v3141_v1, %v3140_v56  ;;  %v3230_v50 = vadd.f32 %v3229_v4, %v3228_v57 }
 0x114   : > { %v3143_v7 = vpop.f32.mrf.mxu0  ;;  %v3231_v8 = vpop.f32.mrf.mxu1  ;;  %2245 = vmatmul.mubr.bf16.gmra.mxu1 %v3887_v58  ;;  %3590 = vmatmul.mubr.bf16.gmra.mxu0 %v3891_v59 }
 0x115   : > { %v4351_v9 = vadd.f32 %v3230_v50, %v1695_v5  ;;  %2252 = vmatprep.mubr.bf16.mxu1 %v3894_v63  ;;  %3593 = vmatprep.mubr.bf16.mxu0 %v3895_v0 }
 0x116   : > { %v3144_v10 = vpop.f32.mrf.mxu0  ;;  %v3232_v11 = vpop.f32.mrf.mxu1 }
 0x117   : > { %v4355_v14 = vadd.f32 %v3144_v10, %v3143_v7  ;;  %v3233_v15 = vadd.f32 %v3232_v11, %v3231_v8  ;;  %v3902_v7 = vld [vmem:[%s3991_s9 + $0x378] ss:$36 sps:$4 sm:$0xff]   ;;  %v3906_v8 = vld [vmem:[%s3991_s9 + $0x2a8] ss:$36 sps:$4 sm:$0xff]  }
 0x118   : > { %v3146_v16 = vpop.f32.mrf.mxu0  ;;  %v3234_v17 = vpop.f32.mrf.mxu1  ;;  %v3909_v11 = vld [vmem:[%s3991_s9 + $0x3c4] ss:$36 sps:$4 sm:$0xff]  }
 0x119   : > { %v4359_v22 = vadd.f32 %v3233_v15, %v1700_v60  ;;  %v3910_v60 = vld [vmem:[%s3991_s9 + $0x2f0] ss:$36 sps:$4 sm:$0xff]  }
 0x11a   : > { %v3147_v25 = vpop.f32.mrf.mxu0  ;;  %v3235_v26 = vpop.f32.mrf.mxu1 }
 0x11b   : > { %v4365_v30 = vadd.f32 %v3147_v25, %v3146_v16  ;;  %v3236_v2 = vadd.f32 %v3235_v26, %v3234_v17  ;;  %v1719_v17 = vadd.f32 %v4328_v44, %v4335_v48  ;;  %v1724_v44 = vadd.f32 %v4339_v54, %v4335_v48 }
 0x11c   : > { %v3149_v31 = vpop.f32.mrf.mxu0  ;;  %v3237_v32 = vpop.f32.mrf.mxu1  ;;  %2253 = vmatmul.mubr.bf16.gmra.mxu1 %v3892_v20  ;;  %3594 = vmatmul.mubr.bf16.gmra.mxu0 %v3896_v21 }
 0x11d   : > { %v4367_v33 = vadd.f32 %v3236_v2, %v1703_v27  ;;  %2260 = vmatprep.mubr.bf16.mxu1 %v3899_v23  ;;  %3597 = vmatprep.mubr.bf16.mxu0 %v3900_v24 }
 0x11e   : > { %v3150_v36 = vpop.f32.mrf.mxu0  ;;  %v3238_v37 = vpop.f32.mrf.mxu1 }
 0x11f   : > { %v4371_v38 = vadd.f32 %v3150_v36, %v3149_v31  ;;  %v3239_v39 = vadd.f32 %v3238_v37, %v3237_v32  ;;  %v3907_v36 = vld [vmem:[%s3991_s9 + $0x3c0] ss:$36 sps:$4 sm:$0xff]   ;;  %v3911_v37 = vld [vmem:[%s3991_s9 + $0x338] ss:$36 sps:$4 sm:$0xff]  }
 0x120   : > { %v3152_v40 = vpop.f32.mrf.mxu0  ;;  %v3240_v41 = vpop.f32.mrf.mxu1 }
 0x121   : > { %v4375_v46 = vadd.f32 %v3239_v39, %v1708_v12  ;;  %v3914_v39 = vld [vmem:[%s3991_s9 + $0x40c] ss:$36 sps:$4 sm:$0xff]  }
 0x122   : > { %v3153_v52 = vpop.f32.mrf.mxu0  ;;  %v3241_v53 = vpop.f32.mrf.mxu1 }
 0x123   : > { %v4381_v56 = vadd.f32 %v3153_v52, %v3152_v40  ;;  %v3242_v18 = vadd.f32 %v3241_v53, %v3240_v41  ;;  %v3915_v40 = vld [vmem:[%s3991_s9 + $0x380] ss:$36 sps:$4 sm:$0xff]  }
 0x124   : > { %v3155_v57 = vpop.f32.mrf.mxu0  ;;  %v3243_v58 = vpop.f32.mrf.mxu1  ;;  %2261 = vmatmul.mubr.bf16.gmra.mxu1 %v3897_v42  ;;  %3598 = vmatmul.mubr.bf16.gmra.mxu0 %v3901_v43  ;;  %v1727_v43 = vadd.f32 %v4349_v6, %v4335_v48  ;;  %v1732_v6 = vadd.f32 %v4355_v14, %v4335_v48 }
 0x125   : > { %v4383_v59 = vadd.f32 %v3242_v18, %v1711_v55  ;;  %2268 = vmatprep.mubr.bf16.mxu1 %v3904_v47  ;;  %3601 = vmatprep.mubr.bf16.mxu0 %v3905_v49 }
 0x126   : > { %v3156_v63 = vpop.f32.mrf.mxu0  ;;  %v3244_v0 = vpop.f32.mrf.mxu1 }
 0x127   : > { %v4387_v1 = vadd.f32 %v3156_v63, %v3155_v57  ;;  %v3245_v4 = vadd.f32 %v3244_v0, %v3243_v58 }
 0x128   : > { %v3158_v5 = vpop.f32.mrf.mxu0  ;;  %v3246_v50 = vpop.f32.mrf.mxu1 }
 0x129   : > { %v4391_v10 = vadd.f32 %v3245_v4, %v1716_v28  ;;  %v3912_v28 = vld [vmem:[%s3991_s9 + $0x408] ss:$36 sps:$4 sm:$0xff]  }
 0x12a   : > { %v3159_v15 = vpop.f32.mrf.mxu0  ;;  %v3247_v16 = vpop.f32.mrf.mxu1  ;;  %v3916_v4 = vld [vmem:[%s3991_s9 + $0x3c8] ss:$36 sps:$4 sm:$0xff]  }
 0x12b   : > { %v4397_v20 = vadd.f32 %v3159_v15, %v3158_v5  ;;  %v3248_v34 = vadd.f32 %v3247_v16, %v3246_v50  ;;  %v3919_v50 = vld [vmem:[%s3991_s9 + $0x454] ss:$36 sps:$4 sm:$0xff]  }
 0x12c   : > { %v3161_v21 = vpop.f32.mrf.mxu0  ;;  %v3249_v23 = vpop.f32.mrf.mxu1  ;;  %2269 = vmatmul.mubr.bf16.gmra.mxu1 %v3902_v7  ;;  %3602 = vmatmul.mubr.bf16.gmra.mxu0 %v3906_v8  ;;  %v3920_v7 = vld [vmem:[%s3991_s9 + $0x410] ss:$36 sps:$4 sm:$0xff]  }
 0x12d   : > { %v4399_v24 = vadd.f32 %v3248_v34, %v1719_v17  ;;  %2276 = vmatprep.mubr.bf16.mxu1 %v3909_v11  ;;  %3605 = vmatprep.mubr.bf16.mxu0 %v3910_v60  ;;  %v1735_v60 = vadd.f32 %v4365_v30, %v4335_v48 }
 0x12e   : > { %v3162_v25 = vpop.f32.mrf.mxu0  ;;  %v3250_v26 = vpop.f32.mrf.mxu1 }
 0x12f   : > { %v4403_v27 = vadd.f32 %v3162_v25, %v3161_v21  ;;  %v3251_v2 = vadd.f32 %v3250_v26, %v3249_v23  ;;  %v1740_v25 = vadd.f32 %v4371_v38, %v4335_v48 }
 0x130   : > { %v3164_v31 = vpop.f32.mrf.mxu0  ;;  %v3252_v32 = vpop.f32.mrf.mxu1 }
 0x131   : > { %v4407_v12 = vadd.f32 %v3251_v2, %v1724_v44 }
 0x132   : > { %v3165_v41 = vpop.f32.mrf.mxu0  ;;  %v3253_v42 = vpop.f32.mrf.mxu1 }
 0x133   : > { %v4413_v47 = vadd.f32 %v3165_v41, %v3164_v31  ;;  %v3254_v54 = vadd.f32 %v3253_v42, %v3252_v32  ;;  %v3917_v31 = vld [vmem:[%s3991_s9 + $0x450] ss:$36 sps:$4 sm:$0xff]   ;;  %v3921_v32 = vld [vmem:[%s3991_s9 + $0x458] ss:$36 sps:$4 sm:$0xff]   ;;  %s2718_s9 = sshll.u32 %s4826_s16, 2 }
 0x134   : > { %v3167_v49 = vpop.f32.mrf.mxu0  ;;  %v3255_v52 = vpop.f32.mrf.mxu1  ;;  %2277 = vmatmul.mubr.bf16.gmra.mxu1 %v3907_v36  ;;  %3606 = vmatmul.mubr.bf16.gmra.mxu0 %v3911_v37  ;;  %s4712_s21 = scalar_lea.vmem %s4802_s3, %s2718_s9 }
 0x135   : > { %v4415_v53 = vadd.f32 %v3254_v54, %v1727_v43  ;;  %2284 = vmatprep.mubr.bf16.mxu1 %v3914_v39  ;;  %3609 = vmatprep.mubr.bf16.mxu0 %v3915_v40  ;;  %v1743_v40 = vadd.f32 %v4381_v56, %v4335_v48 }
 0x136   : > { %v3168_v55 = vpop.f32.mrf.mxu0  ;;  %v3256_v18 = vpop.f32.mrf.mxu1 }
 0x137   : > { %v4419_v57 = vadd.f32 %v3168_v55, %v3167_v49  ;;  %v3257_v58 = vadd.f32 %v3256_v18, %v3255_v52  ;;  %v1748_v55 = vadd.f32 %v4387_v1, %v4335_v48 }
 0x138   : > { %v3170_v63 = vpop.f32.mrf.mxu0  ;;  %v3258_v0 = vpop.f32.mrf.mxu1 }
 0x139   : > { %v4423_v5 = vadd.f32 %v3257_v58, %v1732_v6 }
 0x13a   : > { %v3171_v8 = vpop.f32.mrf.mxu0  ;;  %v3259_v11 = vpop.f32.mrf.mxu1 }
 0x13b   : > { %v4429_v15 = vadd.f32 %v3171_v8, %v3170_v63  ;;  %v3260_v14 = vadd.f32 %v3259_v11, %v3258_v0 }
 0x13c   : > { %v3173_v16 = vpop.f32.mrf.mxu0  ;;  %v3261_v17 = vpop.f32.mrf.mxu1  ;;  %2285 = vmatmul.mubr.bf16.gmra.mxu1 %v3912_v28  ;;  %3610 = vmatmul.mubr.bf16.gmra.mxu0 %v3916_v4  ;;  %v1751_v4 = vadd.f32 %v4397_v20, %v4335_v48 }
 0x13d   : > { %v4431_v34 = vadd.f32 %v3260_v14, %v1735_v60  ;;  %2292 = vmatprep.mubr.bf16.mxu1 %v3919_v50  ;;  %3613 = vmatprep.mubr.bf16.mxu0 %v3920_v7 }
 0x13e   : > { %v3174_v21 = vpop.f32.mrf.mxu0  ;;  %v3262_v23 = vpop.f32.mrf.mxu1 }
 0x13f   : > { %v4435_v26 = vadd.f32 %v3174_v21, %v3173_v16  ;;  %v3263_v30 = vadd.f32 %v3262_v23, %v3261_v17  ;;  %v1756_v16 = vadd.f32 %v4403_v27, %v4335_v48 }
 0x140   : > { %v3176_v44 = vpop.f32.mrf.mxu0  ;;  %v3264_v2 = vpop.f32.mrf.mxu1 }
 0x141   : > { %v4439_v36 = vadd.f32 %v3263_v30, %v1740_v25 }
 0x142   : > { %v3177_v37 = vpop.f32.mrf.mxu0  ;;  %v3265_v39 = vpop.f32.mrf.mxu1 }
 0x143   : > { %v4443_v41 = vadd.f32 %v3177_v37, %v3176_v44  ;;  %v3266_v42 = vadd.f32 %v3265_v39, %v3264_v2 }
 0x144   : > { %v3179_v43 = vpop.f32.mrf.mxu0  ;;  %v3267_v54 = vpop.f32.mrf.mxu1  ;;  %2293 = vmatmul.mubr.bf16.gmra.mxu1 %v3917_v31  ;;  %3614 = vmatmul.mubr.bf16.gmra.mxu0 %v3921_v32  ;;  %v1759_v31 = vadd.f32 %v4413_v47, %v4335_v48 }
 0x145   : > { %v4445_v38 = vadd.f32 %v3266_v42, %v1743_v40 }
 0x146   : > { %v3180_v49 = vpop.f32.mrf.mxu0  ;;  %v3268_v52 = vpop.f32.mrf.mxu1 }
 0x147   : > { %v4449_v18 = vadd.f32 %v3180_v49, %v3179_v43  ;;  %v3269_v6 = vadd.f32 %v3268_v52, %v3267_v54 }
 0x148   : > { %v3182_v58 = vpop.f32.mrf.mxu0  ;;  %v3270_v63 = vpop.f32.mrf.mxu1 }
 0x149   : > { %v4451_v56 = vadd.f32 %v3269_v6, %v1748_v55 }
 0x14a   : > { %v3183_v0 = vpop.f32.mrf.mxu0  ;;  %v3271_v28 = vpop.f32.mrf.mxu1 }
 0x14b   : > { %v4455_v50 = vadd.f32 %v3183_v0, %v3182_v58  ;;  %v3272_v7 = vadd.f32 %v3271_v28, %v3270_v63 }
 0x14c   : > { %v3273_v8 = vpop.f32.mrf.mxu1  ;;  %v3337_v11 = vpop.f32.mrf.mxu0 }
 0x14d   : > { %v4457_v60 = vadd.f32 %v3272_v7, %v1751_v4 }
 0x14e   : > { %v3274_v1 = vpop.f32.mrf.mxu1  ;;  %v3338_v14 = vpop.f32.mrf.mxu0 }
 0x14f   : > { %v3275_v17 = vadd.f32 %v3274_v1, %v3273_v8  ;;  %v3339_v21 = vadd.f32 %v3338_v14, %v3337_v11 }
 0x150   : > { %v3276_v23 = vpop.f32.mrf.mxu1  ;;  %v3340_v25 = vpop.f32.mrf.mxu0 }
 0x151   : > { %v4461_v30 = vadd.f32 %v3275_v17, %v1756_v16  ;;  %v4464_v20 = vadd.f32 %v3339_v21, %v4343_v62  ;;  %v1764_v62 = vadd.f32 %v4419_v57, %v4335_v48 }
 0x152   : > { %v3277_v44 = vpop.f32.mrf.mxu1  ;;  %v3341_v2 = vpop.f32.mrf.mxu0 }
 0x153   : > { %v3278_v32 = vadd.f32 %v3277_v44, %v3276_v23  ;;  %v3342_v37 = vadd.f32 %v3341_v2, %v3340_v25 }
 0x154   : > { %v3279_v39 = vpop.f32.mrf.mxu1  ;;  %v3343_v40 = vpop.f32.mrf.mxu0 }
 0x155   : > { %v4468_v42 = vadd.f32 %v3278_v32, %v1759_v31  ;;  %v4471_v27 = vadd.f32 %v3342_v37, %v4351_v9  ;;  %v1767_v9 = vadd.f32 %v4429_v15, %v4335_v48 }
 0x156   : > { %v3280_v43 = vpop.f32.mrf.mxu1  ;;  %v3344_v54 = vpop.f32.mrf.mxu0 }
 0x157   : > { %v3281_v49 = vadd.f32 %v3280_v43, %v3279_v39  ;;  %v3345_v52 = vadd.f32 %v3344_v54, %v3343_v40 }
 0x158   : > { %v3282_v55 = vpop.f32.mrf.mxu1  ;;  %v3346_v6 = vpop.f32.mrf.mxu0 }
 0x159   : > { %v4475_v58 = vadd.f32 %v3281_v49, %v1764_v62  ;;  %v4478_v47 = vadd.f32 %v3345_v52, %v4359_v22  ;;  %v1772_v22 = vadd.f32 %v4435_v26, %v4335_v48 }
 0x15a   : > { %v3283_v63 = vpop.f32.mrf.mxu1  ;;  %v3347_v0 = vpop.f32.mrf.mxu0 }
 0x15b   : > { %v3284_v28 = vadd.f32 %v3283_v63, %v3282_v55  ;;  %v3348_v4 = vadd.f32 %v3347_v0, %v3346_v6 }
 0x15c   : > { %v3285_v7 = vpop.f32.mrf.mxu1  ;;  %v3349_v8 = vpop.f32.mrf.mxu0 }
 0x15d   : > { %v4482_v11 = vadd.f32 %v3284_v28, %v1767_v9  ;;  %v4485_v57 = vadd.f32 %v3348_v4, %v4367_v33  ;;  %v1775_v33 = vadd.f32 %v4443_v41, %v4335_v48 }
 0x15e   : > { %v3286_v1 = vpop.f32.mrf.mxu1  ;;  %v3350_v14 = vpop.f32.mrf.mxu0 }
 0x15f   : > { %v3287_v16 = vadd.f32 %v3286_v1, %v3285_v7  ;;  %v3351_v17 = vadd.f32 %v3350_v14, %v3349_v8 }
 0x160   : > { %v3288_v21 = vpop.f32.mrf.mxu1  ;;  %v3352_v23 = vpop.f32.mrf.mxu0 }
 0x161   : > { %v4489_v25 = vadd.f32 %v3287_v16, %v1772_v22  ;;  %v4492_v15 = vadd.f32 %v3351_v17, %v4375_v46  ;;  %v1780_v46 = vadd.f32 %v4449_v18, %v4335_v48 }
 0x162   : > { %v3289_v44 = vpop.f32.mrf.mxu1  ;;  %v3353_v2 = vpop.f32.mrf.mxu0 }
 0x163   : > { %v3290_v31 = vadd.f32 %v3289_v44, %v3288_v21  ;;  %v3354_v32 = vadd.f32 %v3353_v2, %v3352_v23 }
 0x164   : > { %v3291_v37 = vpop.f32.mrf.mxu1  ;;  %v3355_v39 = vpop.f32.mrf.mxu0 }
 0x165   : > { %v4496_v40 = vadd.f32 %v3290_v31, %v1775_v33  ;;  %v4499_v26 = vadd.f32 %v3354_v32, %v4383_v59  ;;  %v1783_v59 = vadd.f32 %v4455_v50, %v4335_v48 }
 0x166   : > { %v3292_v43 = vpop.f32.mrf.mxu1  ;;  %v3356_v54 = vpop.f32.mrf.mxu0 }
 0x167   : > { %v3293_v62 = vadd.f32 %v3292_v43, %v3291_v37  ;;  %v3357_v49 = vadd.f32 %v3356_v54, %v3355_v39 }
 0x168   : > { %v3294_v52 = vpop.f32.mrf.mxu1  ;;  %v3358_v55 = vpop.f32.mrf.mxu0 }
 0x169   : > { %v4503_v6 = vadd.f32 %v3293_v62, %v1780_v46  ;;  %v4506_v41 = vadd.f32 %v3357_v49, %v4391_v10  ;;  %v1788_v10 = vadd.f32 %v4286_v51, %v4335_v48 }
 0x16a   : > { %v3295_v63 = vpop.f32.mrf.mxu1  ;;  %v3359_v0 = vpop.f32.mrf.mxu0 }
 0x16b   : > { %v3296_v9 = vadd.f32 %v3295_v63, %v3294_v52  ;;  %v3360_v28 = vadd.f32 %v3359_v0, %v3358_v55 }
 0x16c   : > { %v3297_v4 = vpop.f32.mrf.mxu1  ;;  %v3361_v7 = vpop.f32.mrf.mxu0 }
 0x16d   : > { %v4510_v8 = vadd.f32 %v3296_v9, %v1783_v59  ;;  %v4513_v18 = vadd.f32 %v3360_v28, %v4399_v24  ;;  %v1791_v24 = vadd.f32 %v4294_v61, %v4335_v48 }
 0x16e   : > { %v3298_v1 = vpop.f32.mrf.mxu1  ;;  %v3362_v14 = vpop.f32.mrf.mxu0 }
 0x16f   : > { %v3299_v22 = vadd.f32 %v3298_v1, %v3297_v4  ;;  %v3363_v16 = vadd.f32 %v3362_v14, %v3361_v7 }
 0x170   : > { %v3300_v17 = vpop.f32.mrf.mxu1  ;;  %v3364_v21 = vpop.f32.mrf.mxu0 }
 0x171   : > { %v4517_v23 = vadd.f32 %v3299_v22, %v1788_v10  ;;  %v4520_v50 = vadd.f32 %v3363_v16, %v4407_v12  ;;  %v1796_v12 = vadd.f32 %v4298_v3, %v4335_v48 }
 0x172   : > { %v3301_v44 = vpop.f32.mrf.mxu1  ;;  %v3365_v2 = vpop.f32.mrf.mxu0 }
 0x173   : > { %v3302_v33 = vadd.f32 %v3301_v44, %v3300_v17  ;;  %v3366_v31 = vadd.f32 %v3365_v2, %v3364_v21 }
 0x174   : > { %v3303_v32 = vpop.f32.mrf.mxu1  ;;  %v3367_v37 = vpop.f32.mrf.mxu0 }
 0x175   : > { %v4524_v39 = vadd.f32 %v3302_v33, %v1791_v24  ;;  %v4527_v51 = vadd.f32 %v3366_v31, %v4415_v53  ;;  %v1799_v53 = vadd.f32 %v4306_v13, %v4335_v48 }
 0x176   : > { %v3304_v43 = vpop.f32.mrf.mxu1  ;;  %v3368_v54 = vpop.f32.mrf.mxu0 }
 0x177   : > { %v3305_v46 = vadd.f32 %v3304_v43, %v3303_v32  ;;  %v3369_v62 = vadd.f32 %v3368_v54, %v3367_v37 }
 0x178   : > { %v3306_v49 = vpop.f32.mrf.mxu1  ;;  %v3370_v52 = vpop.f32.mrf.mxu0 }
 0x179   : > { %v4531_v55 = vadd.f32 %v3305_v46, %v1796_v12  ;;  %v4534_v61 = vadd.f32 %v3369_v62, %v4423_v5  ;;  %v1804_v5 = vadd.f32 %v4310_v19, %v4335_v48 }
 0x17a   : > { %v3307_v63 = vpop.f32.mrf.mxu1  ;;  %v3371_v0 = vpop.f32.mrf.mxu0 }
 0x17b   : > { %v3308_v59 = vadd.f32 %v3307_v63, %v3306_v49  ;;  %v3372_v9 = vadd.f32 %v3371_v0, %v3370_v52 }
 0x17c   : > { %v3309_v28 = vpop.f32.mrf.mxu1  ;;  %v3373_v4 = vpop.f32.mrf.mxu0 }
 0x17d   : > { %v4538_v7 = vadd.f32 %v3308_v59, %v1799_v53  ;;  %v4541_v3 = vadd.f32 %v3372_v9, %v4431_v34  ;;  %v1807_v34 = vadd.f32 %v4318_v29, %v4335_v48 }
 0x17e   : > { %v3310_v1 = vpop.f32.mrf.mxu1  ;;  %v3374_v14 = vpop.f32.mrf.mxu0 }
 0x17f   : > { %v3311_v10 = vadd.f32 %v3310_v1, %v3309_v28  ;;  %v3375_v22 = vadd.f32 %v3374_v14, %v3373_v4 }
 0x180   : > { %v3312_v16 = vpop.f32.mrf.mxu1  ;;  %v3376_v17 = vpop.f32.mrf.mxu0 }
 0x181   : > { %v4545_v21 = vadd.f32 %v3311_v10, %v1804_v5  ;;  %v4548_v13 = vadd.f32 %v3375_v22, %v4439_v36  ;;  %v1812_v36 = vadd.f32 %v4322_v35, %v4335_v48 }
 0x182   : > { %v3313_v44 = vpop.f32.mrf.mxu1  ;;  %v3377_v2 = vpop.f32.mrf.mxu0 }
 0x183   : > { %v3314_v24 = vadd.f32 %v3313_v44, %v3312_v16  ;;  %v3378_v33 = vadd.f32 %v3377_v2, %v3376_v17 }
 0x184   : > { %v3315_v31 = vpop.f32.mrf.mxu1  ;;  %v3379_v32 = vpop.f32.mrf.mxu0 }
 0x185   : > { %v4552_v37 = vadd.f32 %v3314_v24, %v1807_v34  ;;  %v4555_v19 = vadd.f32 %v3378_v33, %v4445_v38  ;;  %v1815_v38 = vadd.f32 %v4330_v45, %v4335_v48 }
 0x186   : > { %v3316_v43 = vpop.f32.mrf.mxu1  ;;  %v3380_v54 = vpop.f32.mrf.mxu0 }
 0x187   : > { %v3317_v12 = vadd.f32 %v3316_v43, %v3315_v31  ;;  %v3381_v46 = vadd.f32 %v3380_v54, %v3379_v32 }
 0x188   : > { %v3318_v62 = vpop.f32.mrf.mxu1  ;;  %v3382_v49 = vpop.f32.mrf.mxu0 }
 0x189   : > { %v4559_v52 = vadd.f32 %v3317_v12, %v1812_v36  ;;  %v4562_v29 = vadd.f32 %v3381_v46, %v4451_v56 }
 0x18a   : > { %v3319_v63 = vpop.f32.mrf.mxu1  ;;  %v3383_v0 = vpop.f32.mrf.mxu0 }
 0x18b   : > { %v3320_v53 = vadd.f32 %v3319_v63, %v3318_v62  ;;  %v3384_v59 = vadd.f32 %v3383_v0, %v3382_v49 }
 0x18c   : > { %v3385_v9 = vpop.f32.mrf.mxu0  ;;  %v3449_v28 = vpop.f32.mrf.mxu1 }
 0x18d   : > { %v4566_v4 = vadd.f32 %v3320_v53, %v1815_v38  ;;  %v4569_v35 = vadd.f32 %v3384_v59, %v4457_v60 }
 0x18e   : > { %v3386_v1 = vpop.f32.mrf.mxu0  ;;  %v3450_v14 = vpop.f32.mrf.mxu1 }
 0x18f   : > { %v3387_v5 = vadd.f32 %v3386_v1, %v3385_v9  ;;  %v3451_v10 = vadd.f32 %v3450_v14, %v3449_v28 }
 0x190   : > { %v3388_v56 = vpop.f32.mrf.mxu0  ;;  %v4571_v22 = vpop.f32.mrf.mxu1 }
 0x191   : > { %v4574_v16 = vadd.f32 %v3387_v5, %v4461_v30  ;;  %v4577_v45 = vadd.f32 %v3451_v10, %v4464_v20 }
 0x192   : > { %v3389_v48 = vpop.f32.mrf.mxu0  ;;  %v4579_v17 = vpop.f32.mrf.mxu1 }
 0x193   : > { %v3390_v44 = vadd.f32 %v3389_v48, %v3388_v56 }
 0x194   : > { %v3391_v2 = vpop.f32.mrf.mxu0  ;;  %v4581_v60 = vpop.f32.mrf.mxu1 }
 0x195   : > { %v4584_v34 = vadd.f32 %v3390_v44, %v4468_v42 }
 0x196   : > { %v3392_v24 = vpop.f32.mrf.mxu0  ;;  %v4586_v33 = vpop.f32.mrf.mxu1 }
 0x197   : > { %v3393_v31 = vadd.f32 %v3392_v24, %v3391_v2 }
 0x198   : > { %v3394_v32 = vpop.f32.mrf.mxu0  ;;  %v4588_v30 = vpop.f32.mrf.mxu1 }
 0x199   : > { %v4591_v20 = vadd.f32 %v3393_v31, %v4475_v58 }
 0x19a   : > { %v3395_v43 = vpop.f32.mrf.mxu0  ;;  %v4593_v54 = vpop.f32.mrf.mxu1 }
 0x19b   : > { %v3396_v36 = vadd.f32 %v3395_v43, %v3394_v32 }
 0x19c   : > { %v3397_v12 = vpop.f32.mrf.mxu0  ;;  %v4595_v46 = vpop.f32.mrf.mxu1 }
 0x19d   : > { %v4598_v42 = vadd.f32 %v3396_v36, %v4482_v11 }
 0x19e   : > { %v3398_v62 = vpop.f32.mrf.mxu0  ;;  %v4600_v49 = vpop.f32.mrf.mxu1 }
 0x19f   : > { %v3399_v63 = vadd.f32 %v3398_v62, %v3397_v12 }
 0x1a0   : > { %v3400_v0 = vpop.f32.mrf.mxu0  ;;  %v4602_v38 = vpop.f32.mrf.mxu1 }
 0x1a1   : > { %v4605_v58 = vadd.f32 %v3399_v63, %v4489_v25 }
 0x1a2   : > { %v3401_v53 = vpop.f32.mrf.mxu0  ;;  %v4607_v59 = vpop.f32.mrf.mxu1 }
 0x1a3   : > { %4803 = vst [vmem:[#allocation2_spill] sm:$0xff] %v4605_v58  ;;  %v3402_v9 = vadd.f32 %v3401_v53, %v3400_v0 }
 0x1a4   : > { %v3403_v28 = vpop.f32.mrf.mxu0  ;;  %v4609_v1 = vpop.f32.mrf.mxu1 }
 0x1a5   : > { %v4612_v11 = vadd.f32 %v3402_v9, %v4496_v40 }
 0x1a6   : > { %v3404_v14 = vpop.f32.mrf.mxu0  ;;  %v4614_v5 = vpop.f32.mrf.mxu1 }
 0x1a7   : > { %4804 = vst [vmem:[#allocation3_spill] sm:$0xff] %v4612_v11  ;;  %v3405_v10 = vadd.f32 %v3404_v14, %v3403_v28 }
 0x1a8   : > { %v3406_v56 = vpop.f32.mrf.mxu0  ;;  %v4616_v48 = vpop.f32.mrf.mxu1 }
 0x1a9   : > { %v4619_v25 = vadd.f32 %v3405_v10, %v4503_v6 }
 0x1aa   : > { %v3407_v44 = vpop.f32.mrf.mxu0  ;;  %v4621_v2 = vpop.f32.mrf.mxu1 }
 0x1ab   : > { %4805 = vst [vmem:[#allocation4_spill] sm:$0xff] %v4619_v25  ;;  %v3408_v24 = vadd.f32 %v3407_v44, %v3406_v56 }
 0x1ac   : > { %v3409_v31 = vpop.f32.mrf.mxu0  ;;  %v4623_v32 = vpop.f32.mrf.mxu1 }
 0x1ad   : > { %v4626_v40 = vadd.f32 %v3408_v24, %v4510_v8 }
 0x1ae   : > { %v3410_v43 = vpop.f32.mrf.mxu0  ;;  %v4628_v36 = vpop.f32.mrf.mxu1 }
 0x1af   : > { %4806 = vst [vmem:[#allocation5_spill] sm:$0xff] %v4626_v40  ;;  %v3411_v12 = vadd.f32 %v3410_v43, %v3409_v31 }
 0x1b0   : > { %v3412_v62 = vpop.f32.mrf.mxu0  ;;  %v4630_v63 = vpop.f32.mrf.mxu1 }
 0x1b1   : > { %v4633_v6 = vadd.f32 %v3411_v12, %v4517_v23 }
 0x1b2   : > { %v3413_v0 = vpop.f32.mrf.mxu0  ;;  %v4635_v53 = vpop.f32.mrf.mxu1 }
 0x1b3   : > { %4807 = vst [vmem:[#allocation6_spill] sm:$0xff] %v4633_v6  ;;  %v3414_v9 = vadd.f32 %v3413_v0, %v3412_v62 }
 0x1b4   : > { %v3415_v28 = vpop.f32.mrf.mxu0  ;;  %v4637_v14 = vpop.f32.mrf.mxu1 }
 0x1b5   : > { %v4640_v8 = vadd.f32 %v3414_v9, %v4524_v39 }
 0x1b6   : > { %v3416_v10 = vpop.f32.mrf.mxu0  ;;  %v4642_v56 = vpop.f32.mrf.mxu1 }
 0x1b7   : > { %4808 = vst [vmem:[#allocation7_spill] sm:$0xff] %v4640_v8  ;;  %v3417_v44 = vadd.f32 %v3416_v10, %v3415_v28 }
 0x1b8   : > { %v3418_v24 = vpop.f32.mrf.mxu0  ;;  %v4644_v31 = vpop.f32.mrf.mxu1 }
 0x1b9   : > { %v4647_v23 = vadd.f32 %v3417_v44, %v4531_v55 }
 0x1ba   : > { %v3419_v43 = vpop.f32.mrf.mxu0  ;;  %v4649_v12 = vpop.f32.mrf.mxu1 }
 0x1bb   : > { %4809 = vst [vmem:[#allocation8_spill] sm:$0xff] %v4647_v23  ;;  %v3420_v62 = vadd.f32 %v3419_v43, %v3418_v24 }
 0x1bc   : > { %v3421_v0 = vpop.f32.mrf.mxu0  ;;  %v4651_v6 = vpop.f32.mrf.mxu1 }
 0x1bd   : > { %v4654_v39 = vadd.f32 %v3420_v62, %v4538_v7 }
 0x1be   : > { %v3422_v9 = vpop.f32.mrf.mxu0  ;;  %v4656_v8 = vpop.f32.mrf.mxu1 }
 0x1bf   : > { %4810 = vst [vmem:[#allocation9_spill] sm:$0xff] %v4654_v39  ;;  %v3423_v28 = vadd.f32 %v3422_v9, %v3421_v0 }
 0x1c0   : > { %v3424_v10 = vpop.f32.mrf.mxu0  ;;  %v4658_v11 = vpop.f32.mrf.mxu1 }
 0x1c1   : > { %v4661_v55 = vadd.f32 %v3423_v28, %v4545_v21  ;;  %v3457_v21 = vadd.f32 %v4586_v33, %v4581_v60 }
 0x1c2   : > { %v3425_v44 = vpop.f32.mrf.mxu0  ;;  %v4663_v23 = vpop.f32.mrf.mxu1 }
 0x1c3   : > { %4811 = vst [vmem:[#allocation10_spill] sm:$0xff] %v4661_v55  ;;  %v3426_v24 = vadd.f32 %v3425_v44, %v3424_v10 }
 0x1c4   : > { %v3427_v43 = vpop.f32.mrf.mxu0  ;;  %v4665_v40 = vpop.f32.mrf.mxu1 }
 0x1c5   : > { %v4668_v7 = vadd.f32 %v3426_v24, %v4552_v37  ;;  %v3460_v37 = vadd.f32 %v4593_v54, %v4588_v30  ;;  %v3469_v54 = vadd.f32 %v4614_v5, %v4609_v1  ;;  %v3466_v1 = vadd.f32 %v4607_v59, %v4602_v38 }
 0x1c6   : > { %v3428_v62 = vpop.f32.mrf.mxu0  ;;  %v4670_v39 = vpop.f32.mrf.mxu1 }
 0x1c7   : > { %4812 = vst [vmem:[#allocation11_spill] sm:$0xff] %v4668_v7  ;;  %v3429_v0 = vadd.f32 %v3428_v62, %v3427_v43  ;;  %v3454_v62 = vadd.f32 %v4579_v17, %v4571_v22 }
 0x1c8   : > { %v3430_v9 = vpop.f32.mrf.mxu0  ;;  %v4672_v58 = vpop.f32.mrf.mxu1 }
 0x1c9   : > { %v4677_v28 = vadd.f32 %v3429_v0, %v4559_v52  ;;  %v2183_v52 = vadd.f32 %v3457_v21, %v4478_v47  ;;  %v3463_v47 = vadd.f32 %v4600_v49, %v4595_v46 }
 0x1ca   : > { %v3431_v10 = vpop.f32.mrf.mxu0  ;;  %v4679_v44 = vpop.f32.mrf.mxu1 }
 0x1cb   : > { %4813 = vst [vmem:[#allocation12_spill] sm:$0xff] %v4677_v28  ;;  %v3432_v24 = vadd.f32 %v3431_v10, %v3430_v9  ;;  %v2186_v28 = vadd.f32 %v3460_v37, %v4485_v57  ;;  %v3472_v57 = vadd.f32 %v4621_v2, %v4616_v48  ;;  %v2199_v48 = vadd.f32 %v3469_v54, %v4506_v41 }
 0x1cc   : > { %v4683_v7 = vpop.f32.mrf.mxu1  ;;  %v3587_v43 = vpop.f32.mrf.mxu0  ;;  %v2194_v41 = vadd.f32 %v3466_v1, %v4499_v26  ;;  %v3475_v54 = vadd.f32 %v4628_v36, %v4623_v32 }
 0x1cd   : > { %v4688_v55 = vadd.f32 %v3432_v24, %v4566_v4  ;;  %v2344_v0 = vadd.f32 %v3587_v43, %v2183_v52  ;;  %v2178_v4 = vadd.f32 %v3454_v62, %v4471_v27  ;;  %v2191_v43 = vadd.f32 %v3463_v47, %v4492_v15 }
 0x1ce   : > { %v4691_v60 = vpop.f32.mrf.mxu1  ;;  %v2335_v33 = vpop.f32.mrf.mxu0  ;;  %v2202_v62 = vadd.f32 %v3472_v57, %v4513_v18  ;;  %v3484_v15 = vadd.f32 %v4649_v12, %v4644_v31  ;;  %v2207_v1 = vadd.f32 %v3475_v54, %v4520_v50  ;;  %v3496_v50 = vadd.f32 %v4679_v44, %v4672_v58 }
 0x1cf   : > { %v2336_v9 = vadd.f32 %v2335_v33, %v4577_v45  ;;  %v2464_v10 = vmax.f32 %v2344_v0, 0.0  ;;  %v3481_v0 = vadd.f32 %v4642_v56, %v4637_v14  ;;  %v3478_v14 = vadd.f32 %v4635_v53, %v4630_v63 }
 0x1d0   : > { %v4694_v25 = vpop.f32.mrf.mxu1  ;;  %v3588_v30 = vpop.f32.mrf.mxu0  ;;  %v2234_v44 = vadd.f32 %v3496_v50, %v4569_v35 }
 0x1d1   : > { %v2347_v22 = vadd.f32 %v3588_v30, %v2186_v28  ;;  %v2462_v46 = vmax.f32 %v2336_v9, 0.0  ;;  %v2215_v32 = vadd.f32 %v3481_v0, %v4534_v61  ;;  %v2210_v61 = vadd.f32 %v3478_v14, %v4527_v51 }
 0x1d2   : > { %v4703_v17 = vpop.f32.mrf.mxu1  ;;  %v2338_v21 = vpop.f32.mrf.mxu0 }
 0x1d3   : > { %v2465_v37 = vmax.f32 %v2347_v22, 0.0  ;;  %v2339_v24 = vadd.f32 %v2338_v21, %v2178_v4 }
 0x1d4   : > { %v4714_v27 = vpop.f32.mrf.mxu1  ;;  %v3591_v45 = vpop.f32.mrf.mxu0 }
 0x1d5   : > { %v3010_v49 = vpack.c.bf16 %v2465_v37, %v2464_v10  ;;  %v2463_v5 = vmax.f32 %v2339_v24, 0.0  ;;  %v2360_v59 = vadd.f32 %v3591_v45, %v2199_v48  ;;  %v2218_v45 = vadd.f32 %v3484_v15, %v4541_v3 }
 0x1d6   : > { %v4717_v2 = vpop.f32.mrf.mxu1  ;;  %v2351_v28 = vpop.f32.mrf.mxu0  ;;  %v3487_v48 = vadd.f32 %v4656_v8, %v4651_v6 }
 0x1d7   : > { %3082 = vst [vmem:[%s4712_s21 + $0x8] sm:$0xff] %v3010_v49   ;;  %v3005_v38 = vpack.c.bf16 %v2463_v5, %v2462_v46  ;;  %v2352_v30 = vadd.f32 %v2351_v28, %v2191_v43  ;;  %v2468_v18 = vmax.f32 %v2360_v59, 0.0  ;;  %v3493_v46 = vadd.f32 %v4670_v39, %v4665_v40 }
 0x1d8   : > { %v4722_v52 = vpop.f32.mrf.mxu1  ;;  %v3592_v33 = vpop.f32.mrf.mxu0  ;;  %v3490_v40 = vadd.f32 %v4663_v23, %v4658_v11  ;;  %v2223_v58 = vadd.f32 %v3487_v48, %v4548_v13  ;;  %v3505_v11 = vadd.f32 %v4717_v2, %v4714_v27 }
 0x1d9   : > { %3006 = vst [vmem:[%s4712_s21] sm:$0xff] %v3005_v38   ;;  %v2363_v9 = vadd.f32 %v3592_v33, %v2202_v62  ;;  %v2466_v26 = vmax.f32 %v2352_v30, 0.0  ;;  %v2231_v6 = vadd.f32 %v3493_v46, %v4562_v29  ;;  %v3499_v29 = vadd.f32 %v4691_v60, %v4683_v7 }
 0x1da   : > { %v3507_v22 = vpop.f32.mrf.mxu1  ;;  %v2354_v4 = vpop.f32.mrf.mxu0 }
 0x1db   : > { %v2469_v47 = vmax.f32 %v2363_v9, 0.0  ;;  %v2355_v21 = vadd.f32 %v2354_v4, %v2194_v41  ;;  %v3508_v13 = vadd.f32 %v3507_v22, %v4722_v52  ;;  %v2239_v52 = vadd.f32 %v3499_v29, %v4574_v16 }
 0x1dc   : > { %v4734_v56 = vpop.f32.mrf.mxu1  ;;  %v3595_v57 = vpop.f32.mrf.mxu0 }
 0x1dd   : > { %v3020_v10 = vpack.c.bf16 %v2469_v47, %v2468_v18  ;;  %v2467_v37 = vmax.f32 %v2355_v21, 0.0  ;;  %v2376_v12 = vadd.f32 %v3595_v57, %v2215_v32  ;;  %v2226_v18 = vadd.f32 %v3490_v40, %v4555_v19  ;;  %v4814_v40 = vld [vmem:[#allocation4_spill] sm:$0xff] }
 0x1de   : > { %v4737_v36 = vpop.f32.mrf.mxu1  ;;  %v2367_v24 = vpop.f32.mrf.mxu0  ;;  %v2247_v32 = vadd.f32 %v3505_v11, %v4591_v20  ;;  %v2250_v22 = vadd.f32 %v3508_v13, %v4598_v42 }
 0x1df   : > { %3084 = vst [vmem:[%s4712_s21 + $0x18] sm:$0xff] %v3020_v10   ;;  %v3015_v31 = vpack.c.bf16 %v2467_v37, %v2466_v26  ;;  %v2368_v49 = vadd.f32 %v2367_v24, %v2207_v1  ;;  %v2472_v3 = vmax.f32 %v2376_v12, 0.0  ;;  %v3502_v26 = vadd.f32 %v4703_v17, %v4694_v25 }
 0x1e0   : > { %v4742_v63 = vpop.f32.mrf.mxu1  ;;  %v3596_v53 = vpop.f32.mrf.mxu0  ;;  %v3511_v20 = vadd.f32 %v4737_v36, %v4734_v56 }
 0x1e1   : > { %3083 = vst [vmem:[%s4712_s21 + $0x10] sm:$0xff] %v3015_v31   ;;  %v2379_v5 = vadd.f32 %v3596_v53, %v2218_v45  ;;  %v2470_v33 = vmax.f32 %v2368_v49, 0.0  ;;  %v2242_v53 = vadd.f32 %v3502_v26, %v4584_v34 }
 0x1e2   : > { %v3513_v28 = vpop.f32.mrf.mxu1  ;;  %v2370_v38 = vpop.f32.mrf.mxu0 }
 0x1e3   : > { %v2473_v59 = vmax.f32 %v2379_v5, 0.0  ;;  %v2371_v43 = vadd.f32 %v2370_v38, %v2210_v61  ;;  %v3514_v42 = vadd.f32 %v3513_v28, %v4742_v63 }
 0x1e4   : > { %v3515_v39 = vpop.f32.mrf.mxu1  ;;  %v3599_v62 = vpop.f32.mrf.mxu0 }
 0x1e5   : > { %v3030_v51 = vpack.c.bf16 %v2473_v59, %v2472_v3  ;;  %v2471_v0 = vmax.f32 %v2371_v43, 0.0  ;;  %v2392_v41 = vadd.f32 %v3599_v62, %v2231_v6 }
 0x1e6   : > { %v3516_v8 = vpop.f32.mrf.mxu1  ;;  %v2383_v30 = vpop.f32.mrf.mxu0 }
 0x1e7   : > { %3086 = vst [vmem:[%s4712_s21 + $0x28] sm:$0xff] %v3030_v51   ;;  %v3025_v9 = vpack.c.bf16 %v2471_v0, %v2470_v33  ;;  %v2384_v23 = vadd.f32 %v2383_v30, %v2223_v58  ;;  %v2476_v14 = vmax.f32 %v2392_v41, 0.0  ;;  %v3517_v25 = vadd.f32 %v3516_v8, %v3515_v39  ;;  %v4815_v33 = vld [vmem:[#allocation2_spill] sm:$0xff]  ;;  %v4816_v0 = vld [vmem:[#allocation5_spill] sm:$0xff]  ;;  %v4817_v41 = vld [vmem:[#allocation3_spill] sm:$0xff] }
 0x1e8   : > { %v3518_v54 = vpop.f32.mrf.mxu1  ;;  %v3600_v4 = vpop.f32.mrf.mxu0  ;;  %v2255_v51 = vadd.f32 %v3511_v20, %v4815_v33  ;;  %v2258_v58 = vadd.f32 %v3514_v42, %v4817_v41  ;;  %v4824_v33 = vld [vmem:[#allocation11_spill] sm:$0xff] }
 0x1e9   : > { %3085 = vst [vmem:[%s4712_s21 + $0x20] sm:$0xff] %v3025_v9   ;;  %v2395_v15 = vadd.f32 %v3600_v4, %v2234_v44  ;;  %v2474_v10 = vmax.f32 %v2384_v23, 0.0  ;;  %v2263_v34 = vadd.f32 %v3517_v25, %v4814_v40 }
 0x1ea   : > { %v3519_v47 = vpop.f32.mrf.mxu1  ;;  %v2386_v21 = vpop.f32.mrf.mxu0 }
 0x1eb   : > { %v2477_v35 = vmax.f32 %v2395_v15, 0.0  ;;  %v2387_v57 = vadd.f32 %v2386_v21, %v2226_v18  ;;  %v3520_v5 = vadd.f32 %v3519_v47, %v3518_v54 }
 0x1ec   : > { %v3521_v27 = vpop.f32.mrf.mxu1  ;;  %v3603_v2 = vpop.f32.mrf.mxu0 }
 0x1ed   : > { %v3040_v37 = vpack.c.bf16 %v2477_v35, %v2476_v14  ;;  %v2475_v19 = vmax.f32 %v2387_v57, 0.0  ;;  %v2408_v31 = vadd.f32 %v3603_v2, %v2247_v32  ;;  %v2266_v6 = vadd.f32 %v3520_v5, %v4816_v0  ;;  %v4818_v57 = vld [vmem:[#allocation8_spill] sm:$0xff] }
 0x1ee   : > { %v3522_v7 = vpop.f32.mrf.mxu1  ;;  %v2399_v60 = vpop.f32.mrf.mxu0 }
 0x1ef   : > { %3088 = vst [vmem:[%s4712_s21 + $0x38] sm:$0xff] %v3040_v37   ;;  %v3035_v24 = vpack.c.bf16 %v2475_v19, %v2474_v10  ;;  %v2400_v17 = vadd.f32 %v2399_v60, %v2239_v52  ;;  %v2480_v61 = vmax.f32 %v2408_v31, 0.0  ;;  %v3523_v44 = vadd.f32 %v3522_v7, %v3521_v27  ;;  %v4819_v19 = vld [vmem:[#allocation6_spill] sm:$0xff]  ;;  %v4820_v7 = vld [vmem:[#allocation9_spill] sm:$0xff] }
 0x1f0   : > { %v3524_v12 = vpop.f32.mrf.mxu1  ;;  %v3604_v1 = vpop.f32.mrf.mxu0 }
 0x1f1   : > { %3087 = vst [vmem:[%s4712_s21 + $0x30] sm:$0xff] %v3035_v24   ;;  %v2411_v45 = vadd.f32 %v3604_v1, %v2250_v22  ;;  %v2478_v3 = vmax.f32 %v2400_v17, 0.0  ;;  %v2271_v32 = vadd.f32 %v3523_v44, %v4819_v19 }
 0x1f2   : > { %v3525_v46 = vpop.f32.mrf.mxu1  ;;  %v2402_v49 = vpop.f32.mrf.mxu0 }
 0x1f3   : > { %v2481_v48 = vmax.f32 %v2411_v45, 0.0  ;;  %v2403_v16 = vadd.f32 %v2402_v49, %v2242_v53  ;;  %v3526_v29 = vadd.f32 %v3525_v46, %v3524_v12  ;;  %v4821_v12 = vld [vmem:[#allocation7_spill] sm:$0xff] }
 0x1f4   : > { %v3527_v38 = vpop.f32.mrf.mxu1  ;;  %v3607_v50 = vpop.f32.mrf.mxu0 }
 0x1f5   : > { %v3050_v59 = vpack.c.bf16 %v2481_v48, %v2480_v61  ;;  %v2479_v43 = vmax.f32 %v2403_v16, 0.0  ;;  %v2424_v36 = vadd.f32 %v3607_v50, %v2263_v34  ;;  %v2274_v1 = vadd.f32 %v3526_v29, %v4821_v12 }
 0x1f6   : > { %v3528_v39 = vpop.f32.mrf.mxu1  ;;  %v2415_v62 = vpop.f32.mrf.mxu0 }
 0x1f7   : > { %3090 = vst [vmem:[%s4712_s21 + $0x48] sm:$0xff] %v3050_v59   ;;  %v3045_v56 = vpack.c.bf16 %v2479_v43, %v2478_v3  ;;  %v3529_v63 = vadd.f32 %v3528_v39, %v3527_v38  ;;  %v2416_v28 = vadd.f32 %v2415_v62, %v2255_v51  ;;  %v2484_v11 = vmax.f32 %v2424_v36, 0.0  ;;  %v4822_v43 = vld [vmem:[#allocation10_spill] sm:$0xff]  ;;  %v4823_v62 = vld [vmem:[#allocation12_spill] sm:$0xff] }
 0x1f8   : > { %v3530_v8 = vpop.f32.mrf.mxu1  ;;  %v3608_v30 = vpop.f32.mrf.mxu0 }
 0x1f9   : > { %3089 = vst [vmem:[%s4712_s21 + $0x40] sm:$0xff] %v3045_v56   ;;  %v2427_v9 = vadd.f32 %v3608_v30, %v2266_v6  ;;  %v2482_v13 = vmax.f32 %v2416_v28, 0.0  ;;  %v2279_v26 = vadd.f32 %v3529_v63, %v4818_v57 }
 0x1fa   : > { %v3531_v54 = vpop.f32.mrf.mxu1  ;;  %v2418_v4 = vpop.f32.mrf.mxu0 }
 0x1fb   : > { %v2485_v23 = vmax.f32 %v2427_v9, 0.0  ;;  %v3532_v15 = vadd.f32 %v3531_v54, %v3530_v8  ;;  %v2419_v18 = vadd.f32 %v2418_v4, %v2258_v58 }
 0x1fc   : > { %v3533_v47 = vpop.f32.mrf.mxu1  ;;  %v3611_v21 = vpop.f32.mrf.mxu0 }
 0x1fd   : > { %v3060_v14 = vpack.c.bf16 %v2485_v23, %v2484_v11  ;;  %v2483_v35 = vmax.f32 %v2419_v18, 0.0  ;;  %v2440_v37 = vadd.f32 %v3611_v21, %v2279_v26  ;;  %v2282_v60 = vadd.f32 %v3532_v15, %v4820_v7 }
 0x1fe   : > { %v3534_v2 = vpop.f32.mrf.mxu1  ;;  %v2431_v10 = vpop.f32.mrf.mxu0 }
 0x1ff   : > { %3092 = vst [vmem:[%s4712_s21 + $0x58] sm:$0xff] %v3060_v14   ;;  %v3055_v27 = vpack.c.bf16 %v2483_v35, %v2482_v13  ;;  %v2432_v52 = vadd.f32 %v2431_v10, %v2271_v32  ;;  %v2488_v45 = vmax.f32 %v2440_v37, 0.0  ;;  %v3535_v53 = vadd.f32 %v3534_v2, %v3533_v47 }
 0x200   : > { %v3536_v24 = vpop.f32.mrf.mxu1  ;;  %v3612_v31 = vpop.f32.mrf.mxu0 }
 0x201   : > { %3091 = vst [vmem:[%s4712_s21 + $0x50] sm:$0xff] %v3055_v27   ;;  %v2443_v22 = vadd.f32 %v3612_v31, %v2282_v60  ;;  %v2486_v61 = vmax.f32 %v2432_v52, 0.0  ;;  %v2287_v40 = vadd.f32 %v3535_v53, %v4822_v43 }
 0x202   : > { %v3537_v25 = vpop.f32.mrf.mxu1  ;;  %v2434_v17 = vpop.f32.mrf.mxu0 }
 0x203   : > { %v2489_v20 = vmax.f32 %v2443_v22, 0.0  ;;  %v2435_v46 = vadd.f32 %v2434_v17, %v2274_v1  ;;  %v3538_v16 = vadd.f32 %v3537_v25, %v3536_v24 }
 0x204   : > { %v3539_v49 = vpop.f32.mrf.mxu1  ;;  %v3615_v5 = vpop.f32.mrf.mxu0 }
 0x205   : > { %v3070_v48 = vpack.c.bf16 %v2489_v20, %v2488_v45  ;;  %v2487_v42 = vmax.f32 %v2435_v46, 0.0  ;;  %v2290_v51 = vadd.f32 %v3538_v16, %v4824_v33 }
 0x206   : > { %v3540_v38 = vpop.f32.mrf.mxu1  ;;  %v2447_v50 = vpop.f32.mrf.mxu0 }
 0x207   : > { %3094 = vst [vmem:[%s4712_s21 + $0x68] sm:$0xff] %v3070_v48   ;;  %v3065_v3 = vpack.c.bf16 %v2487_v42, %v2486_v61  ;;  %v3541_v59 = vadd.f32 %v3540_v38, %v3539_v49  ;;  %v2448_v36 = vadd.f32 %v2447_v50, %v2287_v40 }
 0x208   : > { %v3542_v34 = vpop.f32.mrf.mxu1  ;;  %v3616_v39 = vpop.f32.mrf.mxu0 }
 0x209   : > { %3093 = vst [vmem:[%s4712_s21 + $0x60] sm:$0xff] %v3065_v3   ;;  %v2295_v56 = vadd.f32 %v3541_v59, %v4823_v62  ;;  %v2490_v28 = vmax.f32 %v2448_v36, 0.0 }
 0x20a   : > { %v3543_v0 = vpop.f32.mrf.mxu1  ;;  %v2450_v6 = vpop.f32.mrf.mxu0 }
 0x20b   : > { %v3544_v8 = vadd.f32 %v3543_v0, %v3542_v34  ;;  %v2451_v30 = vadd.f32 %v2450_v6, %v2290_v51  ;;  %v2456_v63 = vadd.f32 %v3615_v5, %v2295_v56 }
 0x20d   : > { %v2298_v9 = vadd.f32 %v3544_v8, %v4688_v55  ;;  %v2491_v41 = vmax.f32 %v2451_v30, 0.0  ;;  %v2492_v54 = vmax.f32 %v2456_v63, 0.0 }
 0x20f   : > { %v2459_v58 = vadd.f32 %v3616_v39, %v2298_v9  ;;  %v3075_v44 = vpack.c.bf16 %v2491_v41, %v2490_v28 }
 0x211   : > { %v2493_v4 = vmax.f32 %v2459_v58, 0.0  ;;  %3095 = vst [vmem:[%s4712_s21 + $0x70] sm:$0xff] %v3075_v44  }
 0x213   : > { %v3080_v11 = vpack.c.bf16 %v2493_v4, %v2492_v54 }
 0x215   : > { %3096 = vst [vmem:[%s4712_s21 + $0x78] sm:$0xff] %v3080_v11  }
 0x216 PF: > { %s13_s12 = sadd.s32 1, %s3928_s12  }
 0x217   : > { %p10_p4 = scmp.ge.s32.totalorder %s13_s12, 4  }
 0x219   :  { %12 = sbr.rel (!%p10_p4) target bundleno = 1 (0x1), region = 62 }

// kernel: vqcae_forward.12
= control target key start
LH: loop header
LB: loop body
LE: loop exit
PB: predicated region body
PF: predicated region fallthrough
CT: control target
= control target key end

     0   :  { %s2950_s1 = inlined_call_operand.vmem [shape: bf16[1152,128], index: 1, kind: input, shape index: {}]   ;;  %s2951_s0 = inlined_call_operand.vmem [shape: bf16[128,1152], index: 0, kind: input, shape index: {}]   ;;  %s2952_s2 = inlined_call_operand.vmem [shape: f32[1,128], index: 2, kind: input, shape index: {}]   ;;  %s2953_s3 = inlined_call_operand.vmem [shape: bf16[128,128], index: 3, kind: output, shape index: {}]  }
   0x1   :  { %v2175_v0 = vld [vmem:[%s2950_s1 + $0x78] sm:$0xff]   ;;  %v2179_v4 = vld [vmem:[%s2950_s1 + $0x70] sm:$0xff]   ;;  %v2183_v8 = vld [vmem:[%s2950_s1 + $0x68] sm:$0xff]  }
   0x2   :  { %v2176_v1 = vld [vmem:[%s2950_s1 + $0xf8] sm:$0xff]   ;;  %1855 = vmatprep.subr.bf16.mxu0 %v2175_v0  ;;  %v2180_v5 = vld [vmem:[%s2950_s1 + $0xf0] sm:$0xff]   ;;  %v2184_v9 = vld [vmem:[%s2950_s1 + $0xe8] sm:$0xff]  }
   0x3   :  { %v2177_v2 = vld [vmem:[%s2950_s1 + $0x38] sm:$0xff]   ;;  %1919 = vmatprep.subr.bf16.mxu1 %v2176_v1  ;;  %v2181_v6 = vld [vmem:[%s2950_s1 + $0x30] sm:$0xff]   ;;  %v2185_v10 = vld [vmem:[%s2950_s1 + $0x28] sm:$0xff]  }
   0x4   :  { %v2178_v3 = vld [vmem:[%s2950_s1 + $0xb8] sm:$0xff]   ;;  %1856 = vmatpush3.bf16.msra.mxu0 %v2177_v2  ;;  %v2182_v7 = vld [vmem:[%s2950_s1 + $0xb0] sm:$0xff]   ;;  %v2186_v11 = vld [vmem:[%s2950_s1 + $0xa8] sm:$0xff]  }
   0x5   :  { %1920 = vmatpush3.bf16.msra.mxu1 %v2178_v3  ;;  %1857 = vmatprep.subr.bf16.mxu0 %v2179_v4  ;;  %v2187_v12 = vld [vmem:[%s2950_s1 + $0x60] sm:$0xff]   ;;  %v2191_v16 = vld [vmem:[%s2950_s1 + $0x58] sm:$0xff]   ;;  %v2195_v20 = vld [vmem:[%s2950_s1 + $0x50] sm:$0xff]  }
   0x6   :  { %1921 = vmatprep.subr.bf16.mxu1 %v2180_v5  ;;  %v2188_v13 = vld [vmem:[%s2950_s1 + $0xe0] sm:$0xff]   ;;  %v2192_v17 = vld [vmem:[%s2950_s1 + $0xd8] sm:$0xff]   ;;  %v2196_v21 = vld [vmem:[%s2950_s1 + $0xd0] sm:$0xff]  }
   0x7   :  { %v2189_v14 = vld [vmem:[%s2950_s1 + $0x20] sm:$0xff]   ;;  %v2193_v18 = vld [vmem:[%s2950_s1 + $0x18] sm:$0xff]   ;;  %v2197_v22 = vld [vmem:[%s2950_s1 + $0x10] sm:$0xff]  }
   0x8   :  { %1858 = vmatpush3.bf16.msra.mxu0 %v2181_v6  ;;  %v2190_v15 = vld [vmem:[%s2950_s1 + $0xa0] sm:$0xff]   ;;  %v2194_v19 = vld [vmem:[%s2950_s1 + $0x98] sm:$0xff]   ;;  %v2198_v23 = vld [vmem:[%s2950_s1 + $0x90] sm:$0xff]  }
   0x9   :  { %1922 = vmatpush3.bf16.msra.mxu1 %v2182_v7  ;;  %1859 = vmatprep.subr.bf16.mxu0 %v2183_v8  ;;  %v2199_v24 = vld [vmem:[%s2950_s1 + $0x48] sm:$0xff]   ;;  %v2203_v28 = vld [vmem:[%s2950_s1 + $0x40] sm:$0xff]   ;;  %v2213_v36 = vld [vmem:[%s2950_s1 + $0x178] sm:$0xff]  }
   0xa   :  { %1923 = vmatprep.subr.bf16.mxu1 %v2184_v9  ;;  %v2200_v25 = vld [vmem:[%s2950_s1 + $0xc8] sm:$0xff]   ;;  %v2204_v29 = vld [vmem:[%s2950_s1 + $0xc0] sm:$0xff]   ;;  %v2214_v37 = vld [vmem:[%s2950_s1 + $0x1f8] sm:$0xff]  }
   0xb   :  { %v2201_v26 = vld [vmem:[%s2950_s1 + $0x8] sm:$0xff]   ;;  %v2205_v30 = vld [vmem:[%s2950_s1] sm:$0xff]   ;;  %v2215_v38 = vld [vmem:[%s2950_s1 + $0x138] sm:$0xff]  }
   0xc   :  { %1860 = vmatpush3.bf16.msra.mxu0 %v2185_v10  ;;  %v2202_v27 = vld [vmem:[%s2950_s1 + $0x88] sm:$0xff]   ;;  %v2206_v31 = vld [vmem:[%s2950_s1 + $0x80] sm:$0xff]   ;;  %v2216_v39 = vld [vmem:[%s2950_s1 + $0x1b8] sm:$0xff]  }
   0xd   :  { %1924 = vmatpush3.bf16.msra.mxu1 %v2186_v11  ;;  %1861 = vmatprep.subr.bf16.mxu0 %v2187_v12  ;;  %v2207_v32 = vld [vmem:[%s2951_s0] ss:$36 sps:$4 sm:$0xff]   ;;  %v2210_v34 = vld [vmem:[%s2951_s0 + $0x8] ss:$36 sps:$4 sm:$0xff]   ;;  %v2219_v41 = vld [vmem:[%s2951_s0 + $0x54] ss:$36 sps:$4 sm:$0xff]  }
   0xe   :  { %1925 = vmatprep.subr.bf16.mxu1 %v2188_v13  ;;  %v2209_v33 = vld [vmem:[%s2951_s0 + $0x4] ss:$36 sps:$4 sm:$0xff]   ;;  %v2212_v35 = vld [vmem:[%s2951_s0 + $0xc] ss:$36 sps:$4 sm:$0xff]   ;;  %v2227_v48 = vld [vmem:[%s2951_s0 + $0x94] ss:$36 sps:$4 sm:$0xff]  }
   0xf   :  { %1078 = vmatprep.mubr.bf16.mxu0 %v2209_v33  ;;  %1175 = vmatprep.mubr.bf16.mxu1 %v2212_v35  ;;  %v2217_v40 = vld [vmem:[%s2951_s0 + $0x4c] ss:$36 sps:$4 sm:$0xff]   ;;  %v2229_v49 = vld [vmem:[%s2951_s0 + $0x9c] ss:$36 sps:$4 sm:$0xff]   ;;  %v2239_v57 = vld [vmem:[%s2951_s0 + $0xe4] ss:$36 sps:$4 sm:$0xff]  }
  0x10   :  { %1862 = vmatpush3.bf16.msra.mxu0 %v2189_v14  ;;  %v2221_v42 = vld [vmem:[%s2951_s0 + $0x48] ss:$36 sps:$4 sm:$0xff]   ;;  %v2222_v43 = vld [vmem:[%s2951_s0 + $0x50] ss:$36 sps:$4 sm:$0xff]   ;;  %v2232_v51 = vld [vmem:[%s2951_s0 + $0x98] ss:$36 sps:$4 sm:$0xff]  }
  0x11   :  { %1926 = vmatpush3.bf16.msra.mxu1 %v2190_v15  ;;  %1863 = vmatprep.subr.bf16.mxu0 %v2191_v16  ;;  %v2223_v44 = vld [vmem:[%s2950_s1 + $0x170] sm:$0xff]   ;;  %v2233_v52 = vld [vmem:[%s2950_s1 + $0x168] sm:$0xff]   ;;  %v2237_v56 = vld [vmem:[%s2951_s0 + $0xdc] ss:$36 sps:$4 sm:$0xff]  }
  0x12   :  { %1927 = vmatprep.subr.bf16.mxu1 %v2192_v17  ;;  %v2224_v45 = vld [vmem:[%s2950_s1 + $0x1f0] sm:$0xff]   ;;  %v2234_v53 = vld [vmem:[%s2950_s1 + $0x1e8] sm:$0xff]   ;;  %v2241_v58 = vld [vmem:[%s2951_s0 + $0xd8] ss:$36 sps:$4 sm:$0xff]  }
  0x13   :  { %v2225_v46 = vld [vmem:[%s2950_s1 + $0x130] sm:$0xff]   ;;  %v2235_v54 = vld [vmem:[%s2950_s1 + $0x128] sm:$0xff]   ;;  %v2242_v59 = vld [vmem:[%s2951_s0 + $0xe0] ss:$36 sps:$4 sm:$0xff]  }
  0x14   :  { %1864 = vmatpush3.bf16.msra.mxu0 %v2193_v18  ;;  %v2226_v47 = vld [vmem:[%s2950_s1 + $0x1b0] sm:$0xff]   ;;  %v2236_v55 = vld [vmem:[%s2950_s1 + $0x1a8] sm:$0xff]   ;;  %v2243_v60 = vld [vmem:[%s2950_s1 + $0x160] sm:$0xff]  }
  0x15   :  { %1928 = vmatpush3.bf16.msra.mxu1 %v2194_v19  ;;  %1865 = vmatprep.subr.bf16.mxu0 %v2195_v20  ;;  %v2231_v50 = vld [vmem:[%s2951_s0 + $0x90] ss:$36 sps:$4 sm:$0xff]   ;;  %v2244_v61 = vld [vmem:[%s2950_s1 + $0x1e0] sm:$0xff]   ;;  %v2253_v3 = vld [vmem:[%s2950_s1 + $0x158] sm:$0xff]  }
  0x16   :  { %1929 = vmatprep.subr.bf16.mxu1 %v2196_v21  ;;  %v2245_v62 = vld [vmem:[%s2950_s1 + $0x120] sm:$0xff]   ;;  %v2249_v1 = vld [vmem:[%s2951_s0 + $0x12c] ss:$36 sps:$4 sm:$0xff]   ;;  %v2254_v5 = vld [vmem:[%s2950_s1 + $0x1d8] sm:$0xff]  }
  0x17   :  { %v2246_v63 = vld [vmem:[%s2950_s1 + $0x1a0] sm:$0xff]   ;;  %v2252_v4 = vld [vmem:[%s2951_s0 + $0x128] ss:$36 sps:$4 sm:$0xff]   ;;  %v2255_v6 = vld [vmem:[%s2950_s1 + $0x118] sm:$0xff]  }
  0x18   :  { %1866 = vmatpush3.bf16.msra.mxu0 %v2197_v22  ;;  %v2247_v0 = vld [vmem:[%s2951_s0 + $0x124] ss:$36 sps:$4 sm:$0xff]   ;;  %v2256_v7 = vld [vmem:[%s2950_s1 + $0x198] sm:$0xff]   ;;  %v2257_v8 = vld [vmem:[%s2951_s0 + $0x16c] ss:$36 sps:$4 sm:$0xff]  }
  0x19   :  { %1930 = vmatpush3.bf16.msra.mxu1 %v2198_v23  ;;  %1867 = vmatprep.subr.bf16.mxu0 %v2199_v24  ;;  %v2251_v2 = vld [vmem:[%s2951_s0 + $0x120] ss:$36 sps:$4 sm:$0xff]   ;;  %v2259_v9 = vld [vmem:[%s2951_s0 + $0x174] ss:$36 sps:$4 sm:$0xff]   ;;  %v2261_v12 = vld [vmem:[%s2951_s0 + $0x168] ss:$36 sps:$4 sm:$0xff]  }
  0x1a   :  { %1931 = vmatprep.subr.bf16.mxu1 %v2200_v25  ;;  %v2263_v10 = vld [vmem:[%s2950_s1 + $0x150] sm:$0xff]   ;;  %v2269_v17 = vld [vmem:[%s2951_s0 + $0x1bc] ss:$36 sps:$4 sm:$0xff]   ;;  %v2273_v18 = vld [vmem:[%s2950_s1 + $0x148] sm:$0xff]  }
  0x1b   :  { %v2264_v11 = vld [vmem:[%s2950_s1 + $0x1d0] sm:$0xff]   ;;  %v2274_v19 = vld [vmem:[%s2950_s1 + $0x1c8] sm:$0xff]   ;;  %v2272_v23 = vld [vmem:[%s2951_s0 + $0x1b8] ss:$36 sps:$4 sm:$0xff]  }
  0x1c   :  { %1868 = vmatpush3.bf16.msra.mxu0 %v2201_v26  ;;  %v2265_v13 = vld [vmem:[%s2950_s1 + $0x110] sm:$0xff]   ;;  %v2275_v20 = vld [vmem:[%s2950_s1 + $0x108] sm:$0xff]   ;;  %v2277_v24 = vld [vmem:[%s2951_s0 + $0x1fc] ss:$36 sps:$4 sm:$0xff]  }
  0x1d   :  { %1932 = vmatpush3.bf16.msra.mxu1 %v2202_v27  ;;  %1869 = vmatprep.subr.bf16.mxu0 %v2203_v28  ;;  %v2266_v14 = vld [vmem:[%s2950_s1 + $0x190] sm:$0xff]   ;;  %v2276_v21 = vld [vmem:[%s2950_s1 + $0x188] sm:$0xff]   ;;  %v2283_v26 = vld [vmem:[%s2950_s1 + $0x140] sm:$0xff]  }
  0x1e   :  { %1933 = vmatprep.subr.bf16.mxu1 %v2204_v29  ;;  %v2262_v15 = vld [vmem:[%s2951_s0 + $0x170] ss:$36 sps:$4 sm:$0xff]   ;;  %v2279_v25 = vld [vmem:[%s2951_s0 + $0x204] ss:$36 sps:$4 sm:$0xff]  }
  0x1f   :  { %v2267_v16 = vld [vmem:[%s2951_s0 + $0x1b4] ss:$36 sps:$4 sm:$0xff]   ;;  %v2284_v27 = vld [vmem:[%s2950_s1 + $0x1c0] sm:$0xff]  }
  0x20   :  { %1870 = vmatpush3.bf16.msra.mxu0 %v2205_v30  ;;  %v2271_v22 = vld [vmem:[%s2951_s0 + $0x1b0] ss:$36 sps:$4 sm:$0xff]   ;;  %v2285_v28 = vld [vmem:[%s2950_s1 + $0x100] sm:$0xff]   ;;  %v2281_v30 = vld [vmem:[%s2951_s0 + $0x1f8] ss:$36 sps:$4 sm:$0xff]  }
  0x21   :  { %1934 = vmatpush3.bf16.msra.mxu1 %v2206_v31  ;;  %1983 = vmatprep.subr.bf16.mxu0 %v2213_v36  ;;  %v2286_v29 = vld [vmem:[%s2950_s1 + $0x180] sm:$0xff]   ;;  %v2289_v33 = vld [vmem:[%s2951_s0 + $0x14] ss:$36 sps:$4 sm:$0xff]  }
  0x22   :  { %2047 = vmatprep.subr.bf16.mxu1 %v2214_v37  ;;  %v2282_v31 = vld [vmem:[%s2951_s0 + $0x200] ss:$36 sps:$4 sm:$0xff]   ;;  %v2287_v35 = vld [vmem:[%s2951_s0 + $0x10] ss:$36 sps:$4 sm:$0xff]   ;;  %v2290_v36 = vld [vmem:[%s2951_s0 + $0x18] ss:$36 sps:$4 sm:$0xff]  }
  0x23   :  { %1079 = vmatmul.mubr.bf16.vlgmr.msra.gmra.mxu0 %v2207_v32  ;;  %v2293_v32 = vld [vmem:[%s2950_s1 + $0x238] sm:$0xff]  }
  0x24   :  { %1176 = vmatmul.mubr.bf16.vlgmr.msra.gmra.mxu1 %v2210_v34  ;;  %1984 = vmatpush3.bf16.msra.mxu0 %v2215_v38  ;;  %v2292_v34 = vld [vmem:[%s2951_s0 + $0x1c] ss:$36 sps:$4 sm:$0xff]   ;;  %v2296_v38 = vld [vmem:[%s2951_s0 + $0x64] ss:$36 sps:$4 sm:$0xff]  }
  0x25   :  { %2048 = vmatpush3.bf16.msra.mxu1 %v2216_v39  ;;  %1086 = vmatprep.mubr.bf16.mxu0 %v2217_v40  ;;  %v2294_v37 = vld [vmem:[%s2951_s0 + $0x5c] ss:$36 sps:$4 sm:$0xff]   ;;  %v2300_v39 = vld [vmem:[%s2950_s1 + $0x230] sm:$0xff]   ;;  %v2307_v40 = vld [vmem:[%s2950_s1 + $0x228] sm:$0xff]  }
  0x26   :  { %1183 = vmatprep.mubr.bf16.mxu1 %v2219_v41  ;;  %1985 = vmatprep.subr.bf16.mxu0 %v2223_v44  ;;  %v2298_v41 = vld [vmem:[%s2951_s0 + $0x58] ss:$36 sps:$4 sm:$0xff]   ;;  %v2303_v44 = vld [vmem:[%s2951_s0 + $0xac] ss:$36 sps:$4 sm:$0xff]  }
  0x27   :  { %2049 = vmatprep.subr.bf16.mxu1 %v2224_v45  ;;  %v2314_v45 = vld [vmem:[%s2950_s1 + $0x220] sm:$0xff]  }
  0x28   :  { %1986 = vmatpush3.bf16.msra.mxu0 %v2225_v46  ;;  %v2321_v46 = vld [vmem:[%s2950_s1 + $0x218] sm:$0xff]  }
  0x29   :  { %2050 = vmatpush3.bf16.msra.mxu1 %v2226_v47  ;;  %1987 = vmatprep.subr.bf16.mxu0 %v2233_v52  ;;  %v2305_v47 = vld [vmem:[%s2951_s0 + $0xa0] ss:$36 sps:$4 sm:$0xff]   ;;  %v2312_v52 = vld [vmem:[%s2951_s0 + $0xe8] ss:$36 sps:$4 sm:$0xff]  }
  0x2a   :  { %2051 = vmatprep.subr.bf16.mxu1 %v2234_v53  ;;  %v2335_v53 = vld [vmem:[%s2950_s1 + $0x208] sm:$0xff]  }
  0x2b   :  { %1087 = vmatmul.mubr.bf16.gmra.mxu0 %v2221_v42  ;;  %v2299_v42 = vld [vmem:[%s2951_s0 + $0x60] ss:$36 sps:$4 sm:$0xff]  }
  0x2c   :  { %1184 = vmatmul.mubr.bf16.gmra.mxu1 %v2222_v43  ;;  %1094 = vmatprep.mubr.bf16.mxu0 %v2227_v48  ;;  %v2301_v43 = vld [vmem:[%s2951_s0 + $0xa4] ss:$36 sps:$4 sm:$0xff]  }
  0x2d   :  { %1191 = vmatprep.mubr.bf16.mxu1 %v2229_v49  ;;  %1988 = vmatpush3.bf16.msra.mxu0 %v2235_v54  ;;  %v2306_v48 = vld [vmem:[%s2951_s0 + $0xa8] ss:$36 sps:$4 sm:$0xff]   ;;  %v2313_v54 = vld [vmem:[%s2951_s0 + $0xf0] ss:$36 sps:$4 sm:$0xff]  }
  0x2e   :  { %2052 = vmatpush3.bf16.msra.mxu1 %v2236_v55  ;;  %1989 = vmatprep.subr.bf16.mxu0 %v2243_v60  ;;  %v2308_v49 = vld [vmem:[%s2951_s0 + $0xec] ss:$36 sps:$4 sm:$0xff]   ;;  %v2315_v55 = vld [vmem:[%s2951_s0 + $0x134] ss:$36 sps:$4 sm:$0xff]   ;;  %v2322_v60 = vld [vmem:[%s2951_s0 + $0x17c] ss:$36 sps:$4 sm:$0xff]  }
  0x2f   :  { %2053 = vmatprep.subr.bf16.mxu1 %v2244_v61  ;;  %v2324_v61 = vld [vmem:[%s2951_s0 + $0x184] ss:$36 sps:$4 sm:$0xff]  }
  0x31   :  { %1990 = vmatpush3.bf16.msra.mxu0 %v2245_v62  ;;  %v2326_v62 = vld [vmem:[%s2951_s0 + $0x178] ss:$36 sps:$4 sm:$0xff]  }
  0x32   :  { %2054 = vmatpush3.bf16.msra.mxu1 %v2246_v63  ;;  %1991 = vmatprep.subr.bf16.mxu0 %v2253_v3  ;;  %v2327_v63 = vld [vmem:[%s2951_s0 + $0x180] ss:$36 sps:$4 sm:$0xff]   ;;  %v2334_v3 = vld [vmem:[%s2951_s0 + $0x1c8] ss:$36 sps:$4 sm:$0xff]  }
  0x33   :  { %1095 = vmatmul.mubr.bf16.gmra.mxu0 %v2231_v50  ;;  %2055 = vmatprep.subr.bf16.mxu1 %v2254_v5  ;;  %v2310_v50 = vld [vmem:[%s2951_s0 + $0xf4] ss:$36 sps:$4 sm:$0xff]  }
  0x34   :  { %1192 = vmatmul.mubr.bf16.gmra.mxu1 %v2232_v51  ;;  %1102 = vmatprep.mubr.bf16.mxu0 %v2237_v56  ;;  %v2328_v51 = vld [vmem:[%s2950_s1 + $0x210] sm:$0xff]   ;;  %v2317_v56 = vld [vmem:[%s2951_s0 + $0x13c] ss:$36 sps:$4 sm:$0xff]  }
  0x35   :  { %1199 = vmatprep.mubr.bf16.mxu1 %v2239_v57  ;;  %1992 = vmatpush3.bf16.msra.mxu0 %v2255_v6  ;;  %v2342_v57 = vld [vmem:[%s2950_s1 + $0x200] sm:$0xff]   ;;  %v2338_v5 = vld [vmem:[%s2951_s0 + $0x214] ss:$36 sps:$4 sm:$0xff]   ;;  %v2340_v6 = vld [vmem:[%s2951_s0 + $0x208] ss:$36 sps:$4 sm:$0xff]  }
  0x36   :  { %2056 = vmatpush3.bf16.msra.mxu1 %v2256_v7  ;;  %1993 = vmatprep.subr.bf16.mxu0 %v2263_v10  ;;  %v2341_v7 = vld [vmem:[%s2951_s0 + $0x210] ss:$36 sps:$4 sm:$0xff]   ;;  %v2345_v10 = vld [vmem:[%s2951_s0 + $0x68] ss:$36 sps:$4 sm:$0xff]  }
  0x37   :  { %2057 = vmatprep.subr.bf16.mxu1 %v2264_v11  ;;  %v2346_v11 = vld [vmem:[%s2951_s0 + $0x188] ss:$36 sps:$4 sm:$0xff]  }
  0x39   :  { %1994 = vmatpush3.bf16.msra.mxu0 %v2265_v13  ;;  %v2348_v13 = vld [vmem:[%s2951_s0 + $0x1d0] ss:$36 sps:$4 sm:$0xff]  }
  0x3a   :  { %2058 = vmatpush3.bf16.msra.mxu1 %v2266_v14  ;;  %1995 = vmatprep.subr.bf16.mxu0 %v2273_v18  ;;  %v2349_v14 = vld [vmem:[%s2951_s0 + $0xf8] ss:$36 sps:$4 sm:$0xff]   ;;  %v2806_v18 = vld [vmem:[%s2952_s2] ss:$0 sm:$0xff] }
  0x3b   :  { %1103 = vmatmul.mubr.bf16.gmra.mxu0 %v2241_v58  ;;  %2059 = vmatprep.subr.bf16.mxu1 %v2274_v19  ;;  %v2319_v58 = vld [vmem:[%s2951_s0 + $0x130] ss:$36 sps:$4 sm:$0xff]  }
  0x3c   :  { %1200 = vmatmul.mubr.bf16.gmra.mxu1 %v2242_v59  ;;  %1110 = vmatprep.mubr.bf16.mxu0 %v2247_v0  ;;  %v2320_v59 = vld [vmem:[%s2951_s0 + $0x138] ss:$36 sps:$4 sm:$0xff]   ;;  %v2329_v0 = vld [vmem:[%s2951_s0 + $0x1c4] ss:$36 sps:$4 sm:$0xff]  }
  0x3d   :  { %1207 = vmatprep.mubr.bf16.mxu1 %v2249_v1  ;;  %1996 = vmatpush3.bf16.msra.mxu0 %v2275_v20  ;;  %v2331_v1 = vld [vmem:[%s2951_s0 + $0x1cc] ss:$36 sps:$4 sm:$0xff]  }
  0x3e   :  { %2060 = vmatpush3.bf16.msra.mxu1 %v2276_v21  ;;  %1997 = vmatprep.subr.bf16.mxu0 %v2283_v26 }
  0x3f   :  { %2061 = vmatprep.subr.bf16.mxu1 %v2284_v27 }
  0x41   :  { %1998 = vmatpush3.bf16.msra.mxu0 %v2285_v28 }
  0x42   :  { %2062 = vmatpush3.bf16.msra.mxu1 %v2286_v29  ;;  %2127 = vmatprep.subr.bf16.mxu0 %v2293_v32 }
  0x43   :  { %1111 = vmatmul.mubr.bf16.gmra.mxu0 %v2251_v2  ;;  %2159 = vmatprep.subr.bf16.mxu1 %v2293_v32  ;;  %v2333_v2 = vld [vmem:[%s2951_s0 + $0x1c0] ss:$36 sps:$4 sm:$0xff]  }
  0x44   :  { %1208 = vmatmul.mubr.bf16.gmra.mxu1 %v2252_v4  ;;  %1118 = vmatprep.mubr.bf16.mxu0 %v2257_v8  ;;  %v2336_v4 = vld [vmem:[%s2951_s0 + $0x20c] ss:$36 sps:$4 sm:$0xff]   ;;  %v2343_v8 = vld [vmem:[%s2951_s0 + $0x20] ss:$36 sps:$4 sm:$0xff]  }
  0x45   :  { %1215 = vmatprep.mubr.bf16.mxu1 %v2259_v9  ;;  %v2344_v9 = vld [vmem:[%s2951_s0 + $0x140] ss:$36 sps:$4 sm:$0xff]  }
  0x4b   :  { %1119 = vmatmul.mubr.bf16.gmra.mxu0 %v2261_v12  ;;  %v2347_v12 = vld [vmem:[%s2951_s0 + $0xb0] ss:$36 sps:$4 sm:$0xff]  }
  0x4c   :  { %1216 = vmatmul.mubr.bf16.gmra.mxu1 %v2262_v15  ;;  %1126 = vmatprep.mubr.bf16.mxu0 %v2267_v16  ;;  %v2350_v15 = vld [vmem:[%s2951_s0 + $0x218] ss:$36 sps:$4 sm:$0xff]  }
  0x4d   :  { %1223 = vmatprep.mubr.bf16.mxu1 %v2269_v17 }
  0x53   :  { %1127 = vmatmul.mubr.bf16.gmra.mxu0 %v2271_v22 }
  0x54   :  { %1224 = vmatmul.mubr.bf16.gmra.mxu1 %v2272_v23  ;;  %1134 = vmatprep.mubr.bf16.mxu0 %v2277_v24 }
  0x55   :  { %1231 = vmatprep.mubr.bf16.mxu1 %v2279_v25 }
  0x5b   :  { %1135 = vmatmul.mubr.bf16.gmra.mxu0 %v2281_v30 }
  0x5c   :  { %1232 = vmatmul.mubr.bf16.gmra.mxu1 %v2282_v31  ;;  %1272 = vmatprep.mubr.bf16.mxu0 %v2289_v33 }
  0x5d   :  { %1369 = vmatprep.mubr.bf16.mxu1 %v2292_v34 }
  0x63   :  { %1273 = vmatmul.mubr.bf16.vlgmr.msra.gmra.mxu0 %v2287_v35 }
  0x64   :  { %1370 = vmatmul.mubr.bf16.vlgmr.msra.gmra.mxu1 %v2290_v36  ;;  %2128 = vmatpush3.bf16.msra.mxu0 %v2293_v32 }
  0x65   :  { %2167 = vmatpush3.bf16.msra.mxu1 %v2293_v32  ;;  %1280 = vmatprep.mubr.bf16.mxu0 %v2294_v37 }
  0x66   :  { %1377 = vmatprep.mubr.bf16.mxu1 %v2296_v38  ;;  %2129 = vmatprep.subr.bf16.mxu0 %v2300_v39 }
  0x67   :  { %2160 = vmatprep.subr.bf16.mxu1 %v2300_v39 }
  0x68   :  { %2130 = vmatpush3.bf16.msra.mxu0 %v2300_v39 }
  0x69   :  { %2168 = vmatpush3.bf16.msra.mxu1 %v2300_v39  ;;  %2131 = vmatprep.subr.bf16.mxu0 %v2307_v40 }
  0x6a   :  { %2161 = vmatprep.subr.bf16.mxu1 %v2307_v40 }
  0x6b   :  { %1281 = vmatmul.mubr.bf16.gmra.mxu0 %v2298_v41 }
  0x6c   :  { %1378 = vmatmul.mubr.bf16.gmra.mxu1 %v2299_v42  ;;  %1288 = vmatprep.mubr.bf16.mxu0 %v2301_v43 }
  0x6d   :  { %1385 = vmatprep.mubr.bf16.mxu1 %v2303_v44  ;;  %2132 = vmatpush3.bf16.msra.mxu0 %v2307_v40 }
  0x6e   :  { %2169 = vmatpush3.bf16.msra.mxu1 %v2307_v40  ;;  %2133 = vmatprep.subr.bf16.mxu0 %v2314_v45 }
  0x6f   :  { %2162 = vmatprep.subr.bf16.mxu1 %v2314_v45 }
  0x71   :  { %2134 = vmatpush3.bf16.msra.mxu0 %v2314_v45 }
  0x72   :  { %2170 = vmatpush3.bf16.msra.mxu1 %v2314_v45  ;;  %2135 = vmatprep.subr.bf16.mxu0 %v2321_v46 }
  0x73   :  { %1289 = vmatmul.mubr.bf16.gmra.mxu0 %v2305_v47  ;;  %2163 = vmatprep.subr.bf16.mxu1 %v2321_v46 }
  0x74   :  { %1386 = vmatmul.mubr.bf16.gmra.mxu1 %v2306_v48  ;;  %1296 = vmatprep.mubr.bf16.mxu0 %v2308_v49 }
  0x75   :  { %1393 = vmatprep.mubr.bf16.mxu1 %v2310_v50  ;;  %2136 = vmatpush3.bf16.msra.mxu0 %v2321_v46 }
  0x76   :  { %2171 = vmatpush3.bf16.msra.mxu1 %v2321_v46  ;;  %2137 = vmatprep.subr.bf16.mxu0 %v2328_v51 }
  0x77   :  { %2164 = vmatprep.subr.bf16.mxu1 %v2328_v51 }
  0x79   :  { %2138 = vmatpush3.bf16.msra.mxu0 %v2328_v51 }
  0x7a   :  { %2172 = vmatpush3.bf16.msra.mxu1 %v2328_v51  ;;  %2139 = vmatprep.subr.bf16.mxu0 %v2335_v53 }
  0x7b   :  { %1297 = vmatmul.mubr.bf16.gmra.mxu0 %v2312_v52  ;;  %2165 = vmatprep.subr.bf16.mxu1 %v2335_v53 }
  0x7c   :  { %1394 = vmatmul.mubr.bf16.gmra.mxu1 %v2313_v54  ;;  %1304 = vmatprep.mubr.bf16.mxu0 %v2315_v55 }
  0x7d   :  { %1401 = vmatprep.mubr.bf16.mxu1 %v2317_v56  ;;  %2140 = vmatpush3.bf16.msra.mxu0 %v2335_v53 }
  0x7e   :  { %2173 = vmatpush3.bf16.msra.mxu1 %v2335_v53  ;;  %2141 = vmatprep.subr.bf16.mxu0 %v2342_v57 }
  0x7f   :  { %2166 = vmatprep.subr.bf16.mxu1 %v2342_v57 }
  0x81   :  { %2142 = vmatpush3.bf16.msra.mxu0 %v2342_v57 }
  0x82   :  { %2174 = vmatpush3.bf16.msra.mxu1 %v2342_v57 }
  0x83   :  { %1305 = vmatmul.mubr.bf16.gmra.mxu0 %v2319_v58 }
  0x84   :  { %1402 = vmatmul.mubr.bf16.gmra.mxu1 %v2320_v59  ;;  %1312 = vmatprep.mubr.bf16.mxu0 %v2322_v60 }
  0x85   :  { %1409 = vmatprep.mubr.bf16.mxu1 %v2324_v61 }
  0x8b   :  { %1313 = vmatmul.mubr.bf16.gmra.mxu0 %v2326_v62 }
  0x8c   :  { %1410 = vmatmul.mubr.bf16.gmra.mxu1 %v2327_v63  ;;  %1320 = vmatprep.mubr.bf16.mxu0 %v2329_v0 }
  0x8d   :  { %1417 = vmatprep.mubr.bf16.mxu1 %v2331_v1 }
  0x93   :  { %1321 = vmatmul.mubr.bf16.gmra.mxu0 %v2333_v2 }
  0x94   :  { %1418 = vmatmul.mubr.bf16.gmra.mxu1 %v2334_v3  ;;  %1328 = vmatprep.mubr.bf16.mxu0 %v2336_v4 }
  0x95   :  { %1425 = vmatprep.mubr.bf16.mxu1 %v2338_v5 }
  0x9b   :  { %1329 = vmatmul.mubr.bf16.gmra.mxu0 %v2340_v6 }
  0x9c   :  { %1426 = vmatmul.mubr.bf16.gmra.mxu1 %v2341_v7  ;;  %2143 = vmatprep.mubr.bf16.mxu0 %v2343_v8 }
  0x9d   :  { %2151 = vmatprep.mubr.bf16.mxu1 %v2344_v9 }
  0xa3   :  { %2144 = vmatmul.mubr.bf16.vlgmr.msra.gmra.mxu0 %v2345_v10 }
  0xa4   :  { %2152 = vmatmul.mubr.bf16.vlgmr.msra.gmra.mxu1 %v2346_v11  ;;  %2147 = vmatprep.mubr.bf16.mxu0 %v2347_v12 }
  0xa5   :  { %2155 = vmatprep.mubr.bf16.mxu1 %v2348_v13 }
  0xab   :  { %2148 = vmatmul.mubr.bf16.gmra.mxu0 %v2349_v14 }
  0xac   :  { %2156 = vmatmul.mubr.bf16.gmra.mxu1 %v2350_v15 }
  0xe3   :  { %v1871_v16 = vpop.f32.mrf.mxu0 }
  0xe4   :  { %v1935_v17 = vpop.f32.mrf.mxu1 }
  0xe5   :  { %v1872_v19 = vpop.f32.mrf.mxu0 }
  0xe6   :  { %v1873_v20 = vadd.f32 %v1872_v19, %v1871_v16  ;;  %v1936_v21 = vpop.f32.mrf.mxu1 }
  0xe7   :  { %v1937_v22 = vadd.f32 %v1936_v21, %v1935_v17  ;;  %v1874_v23 = vpop.f32.mrf.mxu0 }
  0xe8   :  { %v1081_v24 = vadd.f32 %v1873_v20, %v2806_v18  ;;  %v1938_v25 = vpop.f32.mrf.mxu1 }
  0xe9   :  { %v1875_v26 = vpop.f32.mrf.mxu0 }
  0xea   :  { %v2809_v27 = vadd.f32 %v1937_v22, %v1081_v24  ;;  %v1876_v28 = vadd.f32 %v1875_v26, %v1874_v23  ;;  %v1939_v29 = vpop.f32.mrf.mxu1 }
  0xeb   :  { %v1940_v30 = vadd.f32 %v1939_v29, %v1938_v25  ;;  %v1877_v31 = vpop.f32.mrf.mxu0 }
  0xec   :  { %v1084_v32 = vadd.f32 %v1876_v28, %v2806_v18  ;;  %v1941_v33 = vpop.f32.mrf.mxu1 }
  0xed   :  { %v1878_v34 = vpop.f32.mrf.mxu0 }
  0xee   :  { %v2812_v35 = vadd.f32 %v1940_v30, %v1084_v32  ;;  %v1879_v36 = vadd.f32 %v1878_v34, %v1877_v31  ;;  %v1942_v37 = vpop.f32.mrf.mxu1 }
  0xef   :  { %v1943_v38 = vadd.f32 %v1942_v37, %v1941_v33  ;;  %v1880_v39 = vpop.f32.mrf.mxu0 }
  0xf0   :  { %v1089_v40 = vadd.f32 %v1879_v36, %v2806_v18  ;;  %v1944_v41 = vpop.f32.mrf.mxu1 }
  0xf1   :  { %v1881_v42 = vpop.f32.mrf.mxu0 }
  0xf2   :  { %v2815_v43 = vadd.f32 %v1943_v38, %v1089_v40  ;;  %v1882_v44 = vadd.f32 %v1881_v42, %v1880_v39  ;;  %v1945_v45 = vpop.f32.mrf.mxu1 }
  0xf3   :  { %v1946_v46 = vadd.f32 %v1945_v45, %v1944_v41  ;;  %v1883_v47 = vpop.f32.mrf.mxu0 }
  0xf4   :  { %v1092_v48 = vadd.f32 %v1882_v44, %v2806_v18  ;;  %v1947_v49 = vpop.f32.mrf.mxu1 }
  0xf5   :  { %v1884_v50 = vpop.f32.mrf.mxu0 }
  0xf6   :  { %v2818_v51 = vadd.f32 %v1946_v46, %v1092_v48  ;;  %v1885_v52 = vadd.f32 %v1884_v50, %v1883_v47  ;;  %v1948_v53 = vpop.f32.mrf.mxu1 }
  0xf7   :  { %v1949_v54 = vadd.f32 %v1948_v53, %v1947_v49  ;;  %v1886_v55 = vpop.f32.mrf.mxu0 }
  0xf8   :  { %v1097_v56 = vadd.f32 %v1885_v52, %v2806_v18  ;;  %v1950_v57 = vpop.f32.mrf.mxu1 }
  0xf9   :  { %v1887_v58 = vpop.f32.mrf.mxu0 }
  0xfa   :  { %v2821_v59 = vadd.f32 %v1949_v54, %v1097_v56  ;;  %v1888_v60 = vadd.f32 %v1887_v58, %v1886_v55  ;;  %v1951_v61 = vpop.f32.mrf.mxu1 }
  0xfb   :  { %v1952_v62 = vadd.f32 %v1951_v61, %v1950_v57  ;;  %v1889_v63 = vpop.f32.mrf.mxu0 }
  0xfc   :  { %v1100_v0 = vadd.f32 %v1888_v60, %v2806_v18  ;;  %v1953_v1 = vpop.f32.mrf.mxu1 }
  0xfd   :  { %v1890_v2 = vpop.f32.mrf.mxu0 }
  0xfe   :  { %v2824_v3 = vadd.f32 %v1952_v62, %v1100_v0  ;;  %v1891_v4 = vadd.f32 %v1890_v2, %v1889_v63  ;;  %v1954_v5 = vpop.f32.mrf.mxu1 }
  0xff   :  { %v1955_v6 = vadd.f32 %v1954_v5, %v1953_v1  ;;  %v1892_v7 = vpop.f32.mrf.mxu0 }
 0x100   :  { %2954 = vst [vmem:[#allocation2_spill] sm:$0xff] %v2824_v3  ;;  %v1105_v8 = vadd.f32 %v1891_v4, %v2806_v18  ;;  %v1956_v9 = vpop.f32.mrf.mxu1 }
 0x101   :  { %v1893_v10 = vpop.f32.mrf.mxu0 }
 0x102   :  { %v2827_v11 = vadd.f32 %v1955_v6, %v1105_v8  ;;  %v1894_v12 = vadd.f32 %v1893_v10, %v1892_v7  ;;  %v1957_v13 = vpop.f32.mrf.mxu1 }
 0x103   :  { %v1958_v14 = vadd.f32 %v1957_v13, %v1956_v9  ;;  %v1895_v15 = vpop.f32.mrf.mxu0 }
 0x104   :  { %v1108_v16 = vadd.f32 %v1894_v12, %v2806_v18  ;;  %v1959_v17 = vpop.f32.mrf.mxu1 }
 0x105   :  { %v1896_v19 = vpop.f32.mrf.mxu0 }
 0x106   :  { %v2830_v20 = vadd.f32 %v1958_v14, %v1108_v16  ;;  %v1897_v21 = vadd.f32 %v1896_v19, %v1895_v15  ;;  %v1960_v22 = vpop.f32.mrf.mxu1 }
 0x107   :  { %v1961_v23 = vadd.f32 %v1960_v22, %v1959_v17  ;;  %v1898_v24 = vpop.f32.mrf.mxu0 }
 0x108   :  { %2955 = vst [vmem:[#allocation3_spill] sm:$0xff] %v2830_v20  ;;  %v1113_v25 = vadd.f32 %v1897_v21, %v2806_v18  ;;  %v1962_v26 = vpop.f32.mrf.mxu1 }
 0x109   :  { %v1899_v28 = vpop.f32.mrf.mxu0 }
 0x10a   :  { %v2833_v29 = vadd.f32 %v1961_v23, %v1113_v25  ;;  %v1900_v30 = vadd.f32 %v1899_v28, %v1898_v24  ;;  %v1963_v31 = vpop.f32.mrf.mxu1 }
 0x10b   :  { %v1964_v32 = vadd.f32 %v1963_v31, %v1962_v26  ;;  %v1901_v33 = vpop.f32.mrf.mxu0 }
 0x10c   :  { %v1116_v34 = vadd.f32 %v1900_v30, %v2806_v18  ;;  %v1965_v36 = vpop.f32.mrf.mxu1 }
 0x10d   :  { %v1902_v37 = vpop.f32.mrf.mxu0 }
 0x10e   :  { %v2836_v38 = vadd.f32 %v1964_v32, %v1116_v34  ;;  %v1903_v39 = vadd.f32 %v1902_v37, %v1901_v33  ;;  %v1966_v40 = vpop.f32.mrf.mxu1 }
 0x10f   :  { %v1967_v41 = vadd.f32 %v1966_v40, %v1965_v36  ;;  %v1904_v42 = vpop.f32.mrf.mxu0 }
 0x110   :  { %2956 = vst [vmem:[#allocation4_spill] sm:$0xff] %v2836_v38  ;;  %v1121_v44 = vadd.f32 %v1903_v39, %v2806_v18  ;;  %v1968_v45 = vpop.f32.mrf.mxu1 }
 0x111   :  { %v1905_v46 = vpop.f32.mrf.mxu0 }
 0x112   :  { %v2839_v47 = vadd.f32 %v1967_v41, %v1121_v44  ;;  %v1906_v48 = vadd.f32 %v1905_v46, %v1904_v42  ;;  %v1969_v49 = vpop.f32.mrf.mxu1 }
 0x113   :  { %v1970_v50 = vadd.f32 %v1969_v49, %v1968_v45  ;;  %v1907_v52 = vpop.f32.mrf.mxu0 }
 0x114   :  { %v1124_v53 = vadd.f32 %v1906_v48, %v2806_v18  ;;  %v1971_v54 = vpop.f32.mrf.mxu1 }
 0x115   :  { %v1908_v55 = vpop.f32.mrf.mxu0 }
 0x116   :  { %v2842_v56 = vadd.f32 %v1970_v50, %v1124_v53  ;;  %v1909_v57 = vadd.f32 %v1908_v55, %v1907_v52  ;;  %v1972_v58 = vpop.f32.mrf.mxu1 }
 0x117   :  { %v1973_v60 = vadd.f32 %v1972_v58, %v1971_v54  ;;  %v1910_v61 = vpop.f32.mrf.mxu0 }
 0x118   :  { %2957 = vst [vmem:[#allocation5_spill] sm:$0xff] %v2842_v56  ;;  %v1129_v62 = vadd.f32 %v1909_v57, %v2806_v18  ;;  %v1974_v63 = vpop.f32.mrf.mxu1 }
 0x119   :  { %v1911_v0 = vpop.f32.mrf.mxu0 }
 0x11a   :  { %v2845_v1 = vadd.f32 %v1973_v60, %v1129_v62  ;;  %v1912_v2 = vadd.f32 %v1911_v0, %v1910_v61  ;;  %v1975_v4 = vpop.f32.mrf.mxu1 }
 0x11b   :  { %v1976_v5 = vadd.f32 %v1975_v4, %v1974_v63  ;;  %v1913_v6 = vpop.f32.mrf.mxu0 }
 0x11c   :  { %2958 = vst [vmem:[#allocation6_spill] sm:$0xff] %v2845_v1  ;;  %v1132_v7 = vadd.f32 %v1912_v2, %v2806_v18  ;;  %v1977_v8 = vpop.f32.mrf.mxu1 }
 0x11d   :  { %v1914_v9 = vpop.f32.mrf.mxu0 }
 0x11e   :  { %v2848_v10 = vadd.f32 %v1976_v5, %v1132_v7  ;;  %v1915_v12 = vadd.f32 %v1914_v9, %v1913_v6  ;;  %v1978_v13 = vpop.f32.mrf.mxu1 }
 0x11f   :  { %v1979_v14 = vadd.f32 %v1978_v13, %v1977_v8  ;;  %v1916_v15 = vpop.f32.mrf.mxu0 }
 0x120   :  { %2959 = vst [vmem:[#allocation7_spill] sm:$0xff] %v2848_v10  ;;  %v1137_v16 = vadd.f32 %v1915_v12, %v2806_v18  ;;  %v1980_v17 = vpop.f32.mrf.mxu1 }
 0x121   :  { %v1917_v19 = vpop.f32.mrf.mxu0 }
 0x122   :  { %v2851_v21 = vadd.f32 %v1979_v14, %v1137_v16  ;;  %v1918_v22 = vadd.f32 %v1917_v19, %v1916_v15  ;;  %v1981_v23 = vpop.f32.mrf.mxu1 }
 0x123   :  { %v1982_v24 = vadd.f32 %v1981_v23, %v1980_v17  ;;  %v1999_v25 = vpop.f32.mrf.mxu0 }
 0x124   :  { %2960 = vst [vmem:[#allocation8_spill] sm:$0xff] %v2851_v21  ;;  %v1140_v26 = vadd.f32 %v1918_v22, %v2806_v18  ;;  %v2063_v28 = vpop.f32.mrf.mxu1 }
 0x125   :  { %v2000_v30 = vpop.f32.mrf.mxu0 }
 0x126   :  { %v2854_v31 = vadd.f32 %v1982_v24, %v1140_v26  ;;  %v2001_v32 = vadd.f32 %v2000_v30, %v1999_v25  ;;  %v2064_v33 = vpop.f32.mrf.mxu1 }
 0x127   :  { %v2002_v34 = vpop.f32.mrf.mxu0  ;;  %v2065_v37 = vadd.f32 %v2064_v33, %v2063_v28 }
 0x128   :  { %2961 = vst [vmem:[#allocation9_spill] sm:$0xff] %v2854_v31  ;;  %v1275_v36 = vadd.f32 %v2001_v32, %v2809_v27  ;;  %v2857_v39 = vpop.f32.mrf.mxu1 }
 0x129   :  { %v2003_v40 = vpop.f32.mrf.mxu0 }
 0x12a   :  { %v2859_v41 = vpop.f32.mrf.mxu1  ;;  %v2861_v42 = vadd.f32 %v2065_v37, %v1275_v36  ;;  %v2004_v10 = vadd.f32 %v2003_v40, %v2002_v34 }
 0x12b   :  { %v2005_v44 = vpop.f32.mrf.mxu0 }
 0x12c   :  { %2962 = vst [vmem:[#allocation10_spill] sm:$0xff] %v2861_v42  ;;  %v2069_v45 = vpop.f32.mrf.mxu1  ;;  %v1278_v56 = vadd.f32 %v2004_v10, %v2812_v35 }
 0x12d   :  { %v2006_v18 = vpop.f32.mrf.mxu0 }
 0x12e   :  { %v2070_v46 = vpop.f32.mrf.mxu1  ;;  %v2007_v42 = vadd.f32 %v2006_v18, %v2005_v44  ;;  %v2068_v44 = vadd.f32 %v2859_v41, %v2857_v39 }
 0x12f   :  { %v2008_v48 = vpop.f32.mrf.mxu0  ;;  %v2071_v18 = vadd.f32 %v2070_v46, %v2069_v45 }
 0x130   :  { %v2072_v49 = vpop.f32.mrf.mxu1 }
 0x131   :  { %v2009_v50 = vpop.f32.mrf.mxu0 }
 0x132   :  { %v2073_v52 = vpop.f32.mrf.mxu1  ;;  %v2010_v21 = vadd.f32 %v2009_v50, %v2008_v48 }
 0x133   :  { %v2011_v53 = vpop.f32.mrf.mxu0  ;;  %v2074_v48 = vadd.f32 %v2073_v52, %v2072_v49 }
 0x134   :  { %v2075_v54 = vpop.f32.mrf.mxu1 }
 0x135   :  { %v2012_v55 = vpop.f32.mrf.mxu0 }
 0x136   :  { %v2076_v27 = vpop.f32.mrf.mxu1 }
 0x137   :  { %v2014_v57 = vpop.f32.mrf.mxu0 }
 0x138   :  { %v2863_v58 = vpop.f32.mrf.mxu1 }
 0x139   :  { %v2015_v60 = vpop.f32.mrf.mxu0 }
 0x13a   :  { %v2865_v61 = vpop.f32.mrf.mxu1  ;;  %v2016_v35 = vadd.f32 %v2015_v60, %v2014_v57 }
 0x13b   :  { %v2017_v62 = vpop.f32.mrf.mxu0  ;;  %v2899_v41 = vadd.f32 %v2865_v61, %v2863_v58 }
 0x13c   :  { %v2867_v63 = vpop.f32.mrf.mxu1 }
 0x13d   :  { %v2018_v0 = vpop.f32.mrf.mxu0 }
 0x13e   :  { %v2082_v2 = vpop.f32.mrf.mxu1  ;;  %v2019_v38 = vadd.f32 %v2018_v0, %v2017_v62 }
 0x13f   :  { %v2020_v4 = vpop.f32.mrf.mxu0  ;;  %v2083_v45 = vadd.f32 %v2082_v2, %v2867_v63 }
 0x140   :  { %v2869_v5 = vpop.f32.mrf.mxu1 }
 0x141   :  { %2963 = vst [vmem:[#allocation11_spill] sm:$0xff] %v2869_v5  ;;  %v2021_v6 = vpop.f32.mrf.mxu0 }
 0x142   :  { %v2871_v7 = vpop.f32.mrf.mxu1  ;;  %v2022_v46 = vadd.f32 %v2021_v6, %v2020_v4 }
 0x143   :  { %2964 = vst [vmem:[#allocation12_spill] sm:$0xff] %v2871_v7  ;;  %v2023_v8 = vpop.f32.mrf.mxu0  ;;  %v2013_v7 = vadd.f32 %v2012_v55, %v2011_v53  ;;  %v2077_v55 = vadd.f32 %v2076_v27, %v2075_v54  ;;  %v2971_v27 = vld [vmem:[#allocation5_spill] sm:$0xff] }
 0x144   :  { %v2873_v9 = vpop.f32.mrf.mxu1 }
 0x145   :  { %2965 = vst [vmem:[#allocation13_spill] sm:$0xff] %v2873_v9  ;;  %v2024_v12 = vpop.f32.mrf.mxu0  ;;  %v1291_v34 = vadd.f32 %v2013_v7, %v2821_v59 }
 0x146   :  { %v2088_v13 = vpop.f32.mrf.mxu1  ;;  %v2025_v50 = vadd.f32 %v2024_v12, %v2023_v8 }
 0x147   :  { %v2026_v14 = vpop.f32.mrf.mxu0  ;;  %v2895_v39 = vadd.f32 %v2077_v55, %v1291_v34  ;;  %v2981_v55 = vld [vmem:[#allocation7_spill] sm:$0xff] }
 0x148   :  { %v2090_v15 = vpop.f32.mrf.mxu1  ;;  %v1307_v49 = vadd.f32 %v2025_v50, %v2833_v29 }
 0x149   :  { %v2027_v16 = vpop.f32.mrf.mxu0 }
 0x14a   :  { %v2091_v17 = vpop.f32.mrf.mxu1  ;;  %v2028_v10 = vadd.f32 %v2027_v16, %v2026_v14 }
 0x14b   :  { %v2029_v19 = vpop.f32.mrf.mxu0  ;;  %v2092_v14 = vadd.f32 %v2091_v17, %v2090_v15 }
 0x14c   :  { %v2093_v22 = vpop.f32.mrf.mxu1  ;;  %v2972_v8 = vld [vmem:[#allocation13_spill] sm:$0xff] }
 0x14d   :  { %v2030_v23 = vpop.f32.mrf.mxu0  ;;  %v2089_v12 = vadd.f32 %v2088_v13, %v2972_v8 }
 0x14e   :  { %v2094_v24 = vpop.f32.mrf.mxu1  ;;  %v2031_v40 = vadd.f32 %v2030_v23, %v2029_v19  ;;  %v2973_v23 = vld [vmem:[#allocation3_spill] sm:$0xff] }
 0x14f   :  { %v2032_v25 = vpop.f32.mrf.mxu0  ;;  %v2095_v54 = vadd.f32 %v2094_v24, %v2093_v22  ;;  %v1404_v24 = vadd.f32 %v2089_v12, %v1307_v49 }
 0x150   :  { %v2096_v26 = vpop.f32.mrf.mxu1  ;;  %v1315_v59 = vadd.f32 %v2031_v40, %v2839_v47 }
 0x151   :  { %v2033_v28 = vpop.f32.mrf.mxu0 }
 0x152   :  { %v2097_v30 = vpop.f32.mrf.mxu1  ;;  %v2034_v62 = vadd.f32 %v2033_v28, %v2032_v25  ;;  %v1412_v29 = vadd.f32 %v2095_v54, %v1315_v59  ;;  %v1302_v25 = vadd.f32 %v2022_v46, %v2973_v23  ;;  %v2974_v28 = vld [vmem:[#allocation11_spill] sm:$0xff]  ;;  %v2982_v46 = vld [vmem:[#allocation9_spill] sm:$0xff] }
 0x153   :  { %v2035_v32 = vpop.f32.mrf.mxu0  ;;  %v2098_v63 = vadd.f32 %v2097_v30, %v2096_v26  ;;  %v2978_v30 = vld [vmem:[#allocation8_spill] sm:$0xff] }
 0x154   :  { %v2875_v33 = vpop.f32.mrf.mxu1  ;;  %v1318_v57 = vadd.f32 %v2034_v62, %v2971_v27 }
 0x155   :  { %2966 = vst [vmem:[#allocation14_spill] sm:$0xff] %v2875_v33  ;;  %v2036_v36 = vpop.f32.mrf.mxu0  ;;  %v1283_v33 = vadd.f32 %v2007_v42, %v2815_v43  ;;  %v1299_v43 = vadd.f32 %v2019_v38, %v2827_v11  ;;  %v2969_v38 = vld [vmem:[#allocation2_spill] sm:$0xff] }
 0x156   :  { %v2877_v37 = vpop.f32.mrf.mxu1  ;;  %v2904_v52 = vadd.f32 %v2016_v35, %v2969_v38  ;;  %v2037_v2 = vadd.f32 %v2036_v36, %v2035_v32  ;;  %v1415_v15 = vadd.f32 %v2098_v63, %v1318_v57 }
 0x157   :  { %2967 = vst [vmem:[#allocation15_spill] sm:$0xff] %v2877_v37  ;;  %v2038_v31 = vpop.f32.mrf.mxu0  ;;  %v1286_v37 = vadd.f32 %v2010_v21, %v2818_v51  ;;  %v1375_v51 = vadd.f32 %v2068_v44, %v1278_v56  ;;  %v1380_v7 = vadd.f32 %v2071_v18, %v1283_v33  ;;  %v2970_v56 = vld [vmem:[#allocation4_spill] sm:$0xff]  ;;  %v1396_v16 = vadd.f32 %v2083_v45, %v1299_v43 }
 0x158   :  { %v2879_v1 = vpop.f32.mrf.mxu1  ;;  %v1310_v47 = vadd.f32 %v2028_v10, %v2970_v56  ;;  %v2975_v33 = vld [vmem:[#allocation12_spill] sm:$0xff] }
 0x159   :  { %2968 = vst [vmem:[#allocation16_spill] sm:$0xff] %v2879_v1  ;;  %v2039_v5 = vpop.f32.mrf.mxu0  ;;  %v1383_v19 = vadd.f32 %v2074_v48, %v1286_v37  ;;  %v2086_v37 = vadd.f32 %v2975_v33, %v2974_v28  ;;  %v2980_v48 = vld [vmem:[#allocation6_spill] sm:$0xff] }
 0x15a   :  { %v2881_v20 = vpop.f32.mrf.mxu1  ;;  %v2040_v4 = vadd.f32 %v2039_v5, %v2038_v31  ;;  %v2979_v5 = vld [vmem:[#allocation10_spill] sm:$0xff]  ;;  %v1323_v50 = vadd.f32 %v2037_v2, %v2980_v48 }
 0x15b   :  { %v2041_v9 = vpop.f32.mrf.mxu0 }
 0x15c   :  { %v2884_v3 = vpop.f32.mrf.mxu1  ;;  %v1326_v35 = vadd.f32 %v2040_v4, %v2981_v55  ;;  %v1399_v4 = vadd.f32 %v2086_v37, %v1302_v25  ;;  %v1391_v25 = vadd.f32 %v2899_v41, %v2904_v52 }
 0x15d   :  { %v2042_v1 = vpop.f32.mrf.mxu0 }
 0x15e   :  { %v2106_v53 = vpop.f32.mrf.mxu1  ;;  %v2043_v58 = vadd.f32 %v2042_v1, %v2041_v9  ;;  %v1407_v1 = vadd.f32 %v2092_v14, %v1310_v47  ;;  %v2976_v9 = vld [vmem:[#allocation14_spill] sm:$0xff]  ;;  %v2977_v17 = vld [vmem:[#allocation15_spill] sm:$0xff] }
 0x15f   :  { %v2044_v0 = vpop.f32.mrf.mxu0  ;;  %v2101_v26 = vadd.f32 %v2977_v17, %v2976_v9  ;;  %v2107_v43 = vadd.f32 %v2106_v53, %v2884_v3 }
 0x160   :  { %v2892_v42 = vpop.f32.mrf.mxu1  ;;  %v1331_v31 = vadd.f32 %v2043_v58, %v2978_v30 }
 0x161   :  { %v2045_v21 = vpop.f32.mrf.mxu0  ;;  %v1420_v63 = vadd.f32 %v2101_v26, %v1323_v50 }
 0x162   :  { %v2109_v11 = vpop.f32.mrf.mxu1  ;;  %v2046_v40 = vadd.f32 %v2045_v21, %v2044_v0 }
 0x163   :  { %v2145_v60 = vpop.f32.mrf.mxu0  ;;  %v2110_v12 = vadd.f32 %v2109_v11, %v2892_v42 }
 0x164   :  { %v2153_v61 = vpop.f32.mrf.mxu1  ;;  %v1477_v22 = vadd.f32 %v2145_v60, %v1380_v7  ;;  %v1334_v49 = vadd.f32 %v2046_v40, %v2982_v46  ;;  %v1428_v60 = vadd.f32 %v2107_v43, %v1331_v31 }
 0x165   :  { %v1468_v6 = vpop.f32.mrf.mxu0  ;;  %v1509_v44 = vadd.f32 %v2153_v61, %v1412_v29  ;;  %v2983_v29 = vld [vmem:[#allocation16_spill] sm:$0xff] }
 0x166   :  { %v1500_v34 = vpop.f32.mrf.mxu1  ;;  %v1469_v32 = vadd.f32 %v1468_v6, %v2979_v5  ;;  %v1533_v59 = vmax.f32 %v1477_v22, 0.0  ;;  %v2104_v6 = vadd.f32 %v2881_v20, %v2983_v29  ;;  %v1431_v28 = vadd.f32 %v2110_v12, %v1334_v49 }
 0x167   :  { %v2146_v13 = vpop.f32.mrf.mxu0  ;;  %v1501_v10 = vadd.f32 %v1500_v34, %v1404_v24  ;;  %v1541_v38 = vmax.f32 %v1509_v44, 0.0 }
 0x168   :  { %v1480_v36 = vadd.f32 %v2146_v13, %v1383_v19  ;;  %v2154_v18 = vpop.f32.mrf.mxu1  ;;  %v1531_v54 = vmax.f32 %v1469_v32, 0.0  ;;  %v1423_v34 = vadd.f32 %v2104_v6, %v1326_v35 }
 0x169   :  { %v1512_v62 = vadd.f32 %v2154_v18, %v1415_v15  ;;  %v1471_v0 = vpop.f32.mrf.mxu0  ;;  %v1539_v14 = vmax.f32 %v1501_v10, 0.0 }
 0x16a   :  { %v1534_v21 = vmax.f32 %v1480_v36, 0.0  ;;  %v1472_v7 = vadd.f32 %v1471_v0, %v1375_v51  ;;  %v1503_v45 = vpop.f32.mrf.mxu1 }
 0x16b   :  { %v1542_v56 = vmax.f32 %v1512_v62, 0.0  ;;  %v1504_v47 = vadd.f32 %v1503_v45, %v1407_v1  ;;  %v2149_v19 = vpop.f32.mrf.mxu0 }
 0x16c   :  { %v1816_v27 = vpack.c.bf16 %v1534_v21, %v1533_v59  ;;  %v1532_v57 = vmax.f32 %v1472_v7, 0.0  ;;  %v2157_v8 = vpop.f32.mrf.mxu1  ;;  %v1493_v61 = vadd.f32 %v2149_v19, %v1396_v16 }
 0x16d   :  { %v1836_v58 = vpack.c.bf16 %v1542_v56, %v1541_v38  ;;  %v1540_v3 = vmax.f32 %v1504_v47, 0.0  ;;  %v1484_v53 = vpop.f32.mrf.mxu0  ;;  %v1525_v11 = vadd.f32 %v2157_v8, %v1428_v60 }
 0x16e   :  { %1848 = vst [vmem:[%s2953_s3 + $0x8] sm:$0xff] %v1816_v27   ;;  %v1811_v51 = vpack.c.bf16 %v1532_v57, %v1531_v54  ;;  %v1516_v2 = vpop.f32.mrf.mxu1  ;;  %v1485_v16 = vadd.f32 %v1484_v53, %v2895_v39  ;;  %v1537_v40 = vmax.f32 %v1493_v61, 0.0 }
 0x16f   :  { %1852 = vst [vmem:[%s2953_s3 + $0x28] sm:$0xff] %v1836_v58   ;;  %v1831_v42 = vpack.c.bf16 %v1540_v3, %v1539_v14  ;;  %v2150_v23 = vpop.f32.mrf.mxu0  ;;  %v1517_v20 = vadd.f32 %v1516_v2, %v1420_v63  ;;  %v1545_v1 = vmax.f32 %v1525_v11, 0.0 }
 0x170   :  { %1812 = vst [vmem:[%s2953_s3] sm:$0xff] %v1811_v51   ;;  %v1496_v33 = vadd.f32 %v2150_v23, %v1399_v4  ;;  %v2158_v22 = vpop.f32.mrf.mxu1  ;;  %v1535_v17 = vmax.f32 %v1485_v16, 0.0 }
 0x171   :  { %1851 = vst [vmem:[%s2953_s3 + $0x20] sm:$0xff] %v1831_v42   ;;  %v1528_v37 = vadd.f32 %v2158_v22, %v1431_v28  ;;  %v1487_v24 = vpop.f32.mrf.mxu0  ;;  %v1543_v31 = vmax.f32 %v1517_v20, 0.0 }
 0x172   :  { %v1538_v44 = vmax.f32 %v1496_v33, 0.0  ;;  %v1488_v13 = vadd.f32 %v1487_v24, %v1391_v25  ;;  %v1519_v15 = vpop.f32.mrf.mxu1 }
 0x173   :  { %v1546_v9 = vmax.f32 %v1528_v37, 0.0  ;;  %v1520_v39 = vadd.f32 %v1519_v15, %v1423_v34 }
 0x174   :  { %v1826_v26 = vpack.c.bf16 %v1538_v44, %v1537_v40  ;;  %v1536_v30 = vmax.f32 %v1488_v13, 0.0 }
 0x175   :  { %v1846_v41 = vpack.c.bf16 %v1546_v9, %v1545_v1  ;;  %v1544_v52 = vmax.f32 %v1520_v39, 0.0 }
 0x176   :  { %1850 = vst [vmem:[%s2953_s3 + $0x18] sm:$0xff] %v1826_v26   ;;  %v1821_v5 = vpack.c.bf16 %v1536_v30, %v1535_v17 }
 0x177   :  { %1854 = vst [vmem:[%s2953_s3 + $0x38] sm:$0xff] %v1846_v41   ;;  %v1841_v32 = vpack.c.bf16 %v1544_v52, %v1543_v31 }
 0x178   :  { %1849 = vst [vmem:[%s2953_s3 + $0x10] sm:$0xff] %v1821_v5  }
 0x179   :  { %1853 = vst [vmem:[%s2953_s3 + $0x30] sm:$0xff] %v1841_v32  }

// kernel: vqcae_forward.13
= control target key start
LH: loop header
LB: loop body
LE: loop exit
PB: predicated region body
PF: predicated region fallthrough
CT: control target
= control target key end

     0   :  { %s1632_s1 = inlined_call_operand.vmem [shape: bf16[1152,128], index: 1, kind: input, shape index: {}]   ;;  %s1633_s0 = inlined_call_operand.vmem [shape: bf16[32,1152], index: 0, kind: input, shape index: {}]   ;;  %s1634_s2 = inlined_call_operand.vmem [shape: f32[1,128], index: 2, kind: input, shape index: {}]   ;;  %s1635_s3 = inlined_call_operand.vmem [shape: bf16[32,128], index: 3, kind: output, shape index: {}]  }
   0x1   :  { %v1235_v0 = vld [vmem:[%s1632_s1 + $0x78] sm:$0xff]   ;;  %v1239_v4 = vld [vmem:[%s1632_s1 + $0x70] sm:$0xff]   ;;  %v1243_v8 = vld [vmem:[%s1632_s1 + $0x68] sm:$0xff]  }
   0x2   :  { %v1236_v1 = vld [vmem:[%s1632_s1 + $0x38] sm:$0xff]   ;;  %1093 = vmatprep.subr.bf16.mxu0 %v1235_v0  ;;  %v1240_v5 = vld [vmem:[%s1632_s1 + $0x30] sm:$0xff]   ;;  %v1244_v9 = vld [vmem:[%s1632_s1 + $0x28] sm:$0xff]  }
   0x3   :  { %v1237_v2 = vld [vmem:[%s1632_s1 + $0xf8] sm:$0xff]   ;;  %1094 = vmatpush3.bf16.msra.mxu0 %v1236_v1  ;;  %v1241_v6 = vld [vmem:[%s1632_s1 + $0xf0] sm:$0xff]   ;;  %v1245_v10 = vld [vmem:[%s1632_s1 + $0xe8] sm:$0xff]  }
   0x4   :  { %v1238_v3 = vld [vmem:[%s1632_s1 + $0xb8] sm:$0xff]   ;;  %1121 = vmatprep.subr.bf16.mxu1 %v1237_v2  ;;  %1095 = vmatprep.subr.bf16.mxu0 %v1239_v4  ;;  %v1242_v7 = vld [vmem:[%s1632_s1 + $0xb0] sm:$0xff]   ;;  %v1246_v11 = vld [vmem:[%s1632_s1 + $0xa8] sm:$0xff]  }
   0x5   :  { %1122 = vmatpush3.bf16.msra.mxu1 %v1238_v3  ;;  %v1247_v12 = vld [vmem:[%s1632_s1 + $0x60] sm:$0xff]   ;;  %v1251_v16 = vld [vmem:[%s1632_s1 + $0x58] sm:$0xff]   ;;  %v1255_v20 = vld [vmem:[%s1632_s1 + $0x50] sm:$0xff]  }
   0x6   :  { %1123 = vmatprep.subr.bf16.mxu1 %v1241_v6  ;;  %v1248_v13 = vld [vmem:[%s1632_s1 + $0x20] sm:$0xff]   ;;  %v1252_v17 = vld [vmem:[%s1632_s1 + $0x18] sm:$0xff]   ;;  %v1256_v21 = vld [vmem:[%s1632_s1 + $0x10] sm:$0xff]  }
   0x7   :  { %1096 = vmatpush3.bf16.msra.mxu0 %v1240_v5  ;;  %v1249_v14 = vld [vmem:[%s1632_s1 + $0xe0] sm:$0xff]   ;;  %v1253_v18 = vld [vmem:[%s1632_s1 + $0xd8] sm:$0xff]   ;;  %v1257_v22 = vld [vmem:[%s1632_s1 + $0xd0] sm:$0xff]  }
   0x8   :  { %1097 = vmatprep.subr.bf16.mxu0 %v1243_v8  ;;  %v1250_v15 = vld [vmem:[%s1632_s1 + $0xa0] sm:$0xff]   ;;  %v1254_v19 = vld [vmem:[%s1632_s1 + $0x98] sm:$0xff]   ;;  %v1258_v23 = vld [vmem:[%s1632_s1 + $0x90] sm:$0xff]  }
   0x9   :  { %1124 = vmatpush3.bf16.msra.mxu1 %v1242_v7  ;;  %v1259_v24 = vld [vmem:[%s1632_s1 + $0x48] sm:$0xff]   ;;  %v1263_v28 = vld [vmem:[%s1632_s1 + $0x40] sm:$0xff]   ;;  %v1270_v34 = vld [vmem:[%s1632_s1 + $0x178] sm:$0xff]  }
   0xa   :  { %1125 = vmatprep.subr.bf16.mxu1 %v1245_v10  ;;  %v1260_v25 = vld [vmem:[%s1632_s1 + $0x8] sm:$0xff]   ;;  %v1264_v29 = vld [vmem:[%s1632_s1] sm:$0xff]   ;;  %v1274_v37 = vld [vmem:[%s1632_s1 + $0x138] sm:$0xff]  }
   0xb   :  { %1098 = vmatpush3.bf16.msra.mxu0 %v1244_v9  ;;  %v1261_v26 = vld [vmem:[%s1632_s1 + $0xc8] sm:$0xff]   ;;  %v1265_v30 = vld [vmem:[%s1632_s1 + $0xc0] sm:$0xff]   ;;  %v1275_v38 = vld [vmem:[%s1632_s1 + $0x1f8] sm:$0xff]  }
   0xc   :  { %1099 = vmatprep.subr.bf16.mxu0 %v1247_v12  ;;  %v1262_v27 = vld [vmem:[%s1632_s1 + $0x88] sm:$0xff]   ;;  %v1266_v31 = vld [vmem:[%s1633_s0] ss:$36 sps:$4 sm:$0xff]   ;;  %v1276_v39 = vld [vmem:[%s1632_s1 + $0x1b8] sm:$0xff]  }
   0xd   :  { %1126 = vmatpush3.bf16.msra.mxu1 %v1246_v11  ;;  %v1268_v32 = vld [vmem:[%s1633_s0 + $0x4] ss:$36 sps:$4 sm:$0xff]   ;;  %v1273_v36 = vld [vmem:[%s1633_s0 + $0xc] ss:$36 sps:$4 sm:$0xff]   ;;  %v1289_v52 = vld [vmem:[%s1632_s1 + $0x158] sm:$0xff]  }
   0xe   :  { %1127 = vmatprep.subr.bf16.mxu1 %v1249_v14  ;;  %v1269_v33 = vld [vmem:[%s1632_s1 + $0x80] sm:$0xff]   ;;  %742 = vmatprep.mubr.bf16.mxu0 %v1268_v32  ;;  %v1271_v35 = vld [vmem:[%s1633_s0 + $0x8] ss:$36 sps:$4 sm:$0xff]   ;;  %v1277_v40 = vld [vmem:[%s1632_s1 + $0x170] sm:$0xff]  }
   0xf   :  { %1100 = vmatpush3.bf16.msra.mxu0 %v1248_v13  ;;  %791 = vmatprep.mubr.bf16.mxu1 %v1273_v36  ;;  %v1278_v41 = vld [vmem:[%s1632_s1 + $0x130] sm:$0xff]   ;;  %v1281_v44 = vld [vmem:[%s1632_s1 + $0x168] sm:$0xff]   ;;  %v1285_v48 = vld [vmem:[%s1632_s1 + $0x160] sm:$0xff]  }
  0x10   :  { %1101 = vmatprep.subr.bf16.mxu0 %v1251_v16  ;;  %v1279_v42 = vld [vmem:[%s1632_s1 + $0x1f0] sm:$0xff]   ;;  %v1282_v45 = vld [vmem:[%s1632_s1 + $0x128] sm:$0xff]   ;;  %v1286_v49 = vld [vmem:[%s1632_s1 + $0x120] sm:$0xff]  }
  0x11   :  { %1128 = vmatpush3.bf16.msra.mxu1 %v1250_v15  ;;  %v1280_v43 = vld [vmem:[%s1632_s1 + $0x1b0] sm:$0xff]   ;;  %v1283_v46 = vld [vmem:[%s1632_s1 + $0x1e8] sm:$0xff]   ;;  %v1287_v50 = vld [vmem:[%s1632_s1 + $0x1e0] sm:$0xff]  }
  0x12   :  { %1129 = vmatprep.subr.bf16.mxu1 %v1253_v18  ;;  %v1284_v47 = vld [vmem:[%s1632_s1 + $0x1a8] sm:$0xff]   ;;  %v1288_v51 = vld [vmem:[%s1632_s1 + $0x1a0] sm:$0xff]   ;;  %v1290_v53 = vld [vmem:[%s1632_s1 + $0x118] sm:$0xff]  }
  0x13   :  { %1102 = vmatpush3.bf16.msra.mxu0 %v1252_v17  ;;  %v1291_v54 = vld [vmem:[%s1633_s0 + $0x4c] ss:$36 sps:$4 sm:$0xff]   ;;  %v1293_v55 = vld [vmem:[%s1632_s1 + $0x1d8] sm:$0xff]   ;;  %v1307_v4 = vld [vmem:[%s1632_s1 + $0x140] sm:$0xff]  }
  0x14   :  { %1103 = vmatprep.subr.bf16.mxu0 %v1255_v20  ;;  %v1294_v56 = vld [vmem:[%s1633_s0 + $0x48] ss:$36 sps:$4 sm:$0xff]   ;;  %v1295_v57 = vld [vmem:[%s1632_s1 + $0x198] sm:$0xff]   ;;  %v1298_v59 = vld [vmem:[%s1632_s1 + $0x150] sm:$0xff]  }
  0x15   :  { %1130 = vmatpush3.bf16.msra.mxu1 %v1254_v19  ;;  %v1296_v58 = vld [vmem:[%s1633_s0 + $0x54] ss:$36 sps:$4 sm:$0xff]   ;;  %v1303_v0 = vld [vmem:[%s1632_s1 + $0x148] sm:$0xff]   ;;  %v1308_v5 = vld [vmem:[%s1632_s1 + $0x100] sm:$0xff]  }
  0x16   :  { %1131 = vmatprep.subr.bf16.mxu1 %v1257_v22  ;;  %v1299_v60 = vld [vmem:[%s1633_s0 + $0x50] ss:$36 sps:$4 sm:$0xff]   ;;  %v1304_v1 = vld [vmem:[%s1632_s1 + $0x108] sm:$0xff]   ;;  %v1309_v6 = vld [vmem:[%s1632_s1 + $0x1c0] sm:$0xff]  }
  0x17   :  { %1104 = vmatpush3.bf16.msra.mxu0 %v1256_v21  ;;  %v1300_v61 = vld [vmem:[%s1632_s1 + $0x110] sm:$0xff]   ;;  %v1305_v2 = vld [vmem:[%s1632_s1 + $0x1c8] sm:$0xff]   ;;  %v1313_v9 = vld [vmem:[%s1632_s1 + $0x180] sm:$0xff]  }
  0x18   :  { %1105 = vmatprep.subr.bf16.mxu0 %v1259_v24  ;;  %v1301_v62 = vld [vmem:[%s1632_s1 + $0x1d0] sm:$0xff]   ;;  %v1306_v3 = vld [vmem:[%s1632_s1 + $0x188] sm:$0xff]   ;;  %v1314_v10 = vld [vmem:[%s1632_s1 + $0x238] sm:$0xff]  }
  0x19   :  { %1132 = vmatpush3.bf16.msra.mxu1 %v1258_v23  ;;  %v1302_v63 = vld [vmem:[%s1632_s1 + $0x190] sm:$0xff]   ;;  %v1315_v11 = vld [vmem:[%s1633_s0 + $0x18] ss:$36 sps:$4 sm:$0xff]   ;;  %v1322_v16 = vld [vmem:[%s1632_s1 + $0x228] sm:$0xff]  }
  0x1a   :  { %1133 = vmatprep.subr.bf16.mxu1 %v1261_v26  ;;  %v1310_v7 = vld [vmem:[%s1633_s0 + $0x10] ss:$36 sps:$4 sm:$0xff]   ;;  %v1317_v12 = vld [vmem:[%s1633_s0 + $0x1c] ss:$36 sps:$4 sm:$0xff]   ;;  %v1323_v17 = vld [vmem:[%s1633_s0 + $0x64] ss:$36 sps:$4 sm:$0xff]  }
  0x1b   :  { %1106 = vmatpush3.bf16.msra.mxu0 %v1260_v25  ;;  %v1312_v8 = vld [vmem:[%s1633_s0 + $0x14] ss:$36 sps:$4 sm:$0xff]   ;;  %v1319_v14 = vld [vmem:[%s1633_s0 + $0x5c] ss:$36 sps:$4 sm:$0xff]   ;;  %v1329_v23 = vld [vmem:[%s1632_s1 + $0x208] sm:$0xff]  }
  0x1c   :  { %1107 = vmatprep.subr.bf16.mxu0 %v1263_v28  ;;  %v1318_v13 = vld [vmem:[%s1632_s1 + $0x230] sm:$0xff]   ;;  %v1321_v15 = vld [vmem:[%s1633_s0 + $0x58] ss:$36 sps:$4 sm:$0xff]   ;;  %v1325_v18 = vld [vmem:[%s1633_s0 + $0x60] ss:$36 sps:$4 sm:$0xff]  }
  0x1d   :  { %1134 = vmatpush3.bf16.msra.mxu1 %v1262_v27  ;;  %v1326_v19 = vld [vmem:[%s1632_s1 + $0x220] sm:$0xff]   ;;  %v1327_v20 = vld [vmem:[%s1632_s1 + $0x218] sm:$0xff]   ;;  %v1328_v22 = vld [vmem:[%s1632_s1 + $0x210] sm:$0xff]  }
  0x1e   :  { %1135 = vmatprep.subr.bf16.mxu1 %v1265_v30  ;;  %v1331_v21 = vld [vmem:[%s1633_s0 + $0x20] ss:$36 sps:$4 sm:$0xff]   ;;  %v1332_v25 = vld [vmem:[%s1633_s0 + $0x68] ss:$36 sps:$4 sm:$0xff]  }
  0x1f   :  { %1108 = vmatpush3.bf16.msra.mxu0 %v1264_v29  ;;  %v1330_v24 = vld [vmem:[%s1632_s1 + $0x200] sm:$0xff]  }
  0x20   :  { %1149 = vmatprep.subr.bf16.mxu0 %v1270_v34 }
  0x21   :  { %1136 = vmatpush3.bf16.msra.mxu1 %v1269_v33 }
  0x22   :  { %743 = vmatmul.mubr.bf16.vlgmr.msra.gmra.mxu0 %v1266_v31  ;;  %1177 = vmatprep.subr.bf16.mxu1 %v1275_v38 }
  0x23   :  { %1150 = vmatpush3.bf16.msra.mxu0 %v1274_v37  ;;  %750 = vmatprep.mubr.bf16.mxu0 %v1291_v54 }
  0x24   :  { %792 = vmatmul.mubr.bf16.vlgmr.msra.gmra.mxu1 %v1271_v35  ;;  %1151 = vmatprep.subr.bf16.mxu0 %v1277_v40 }
  0x25   :  { %1178 = vmatpush3.bf16.msra.mxu1 %v1276_v39  ;;  %799 = vmatprep.mubr.bf16.mxu1 %v1296_v58 }
  0x26   :  { %1179 = vmatprep.subr.bf16.mxu1 %v1279_v42 }
  0x27   :  { %1152 = vmatpush3.bf16.msra.mxu0 %v1278_v41 }
  0x28   :  { %1153 = vmatprep.subr.bf16.mxu0 %v1281_v44 }
  0x29   :  { %1180 = vmatpush3.bf16.msra.mxu1 %v1280_v43 }
  0x2a   :  { %1181 = vmatprep.subr.bf16.mxu1 %v1283_v46  ;;  %751 = vmatmul.mubr.bf16.gmra.mxu0 %v1294_v56 }
  0x2b   :  { %1154 = vmatpush3.bf16.msra.mxu0 %v1282_v45  ;;  %840 = vmatprep.mubr.bf16.mxu0 %v1312_v8 }
  0x2c   :  { %1155 = vmatprep.subr.bf16.mxu0 %v1285_v48  ;;  %800 = vmatmul.mubr.bf16.gmra.mxu1 %v1299_v60 }
  0x2d   :  { %1182 = vmatpush3.bf16.msra.mxu1 %v1284_v47  ;;  %889 = vmatprep.mubr.bf16.mxu1 %v1317_v12 }
  0x2e   :  { %1183 = vmatprep.subr.bf16.mxu1 %v1287_v50 }
  0x2f   :  { %1156 = vmatpush3.bf16.msra.mxu0 %v1286_v49 }
  0x30   :  { %1157 = vmatprep.subr.bf16.mxu0 %v1289_v52 }
  0x31   :  { %1184 = vmatpush3.bf16.msra.mxu1 %v1288_v51 }
  0x32   :  { %1185 = vmatprep.subr.bf16.mxu1 %v1293_v55 }
  0x33   :  { %1158 = vmatpush3.bf16.msra.mxu0 %v1290_v53 }
  0x34   :  { %1159 = vmatprep.subr.bf16.mxu0 %v1298_v59 }
  0x35   :  { %1186 = vmatpush3.bf16.msra.mxu1 %v1295_v57  ;;  %v983_v57 = vld [vmem:[%s1634_s2] ss:$0 sm:$0xff] }
  0x36   :  { %1187 = vmatprep.subr.bf16.mxu1 %v1301_v62 }
  0x37   :  { %1160 = vmatpush3.bf16.msra.mxu0 %v1300_v61 }
  0x38   :  { %1161 = vmatprep.subr.bf16.mxu0 %v1303_v0 }
  0x39   :  { %1188 = vmatpush3.bf16.msra.mxu1 %v1302_v63 }
  0x3a   :  { %1189 = vmatprep.subr.bf16.mxu1 %v1305_v2 }
  0x3b   :  { %1162 = vmatpush3.bf16.msra.mxu0 %v1304_v1 }
  0x3c   :  { %1163 = vmatprep.subr.bf16.mxu0 %v1307_v4 }
  0x3d   :  { %1190 = vmatpush3.bf16.msra.mxu1 %v1306_v3 }
  0x3e   :  { %1191 = vmatprep.subr.bf16.mxu1 %v1309_v6 }
  0x3f   :  { %1164 = vmatpush3.bf16.msra.mxu0 %v1308_v5 }
  0x40   :  { %1215 = vmatprep.subr.bf16.mxu0 %v1314_v10 }
  0x41   :  { %1192 = vmatpush3.bf16.msra.mxu1 %v1313_v9 }
  0x42   :  { %841 = vmatmul.mubr.bf16.vlgmr.msra.gmra.mxu0 %v1310_v7 }
  0x43   :  { %1216 = vmatpush3.bf16.msra.mxu0 %v1314_v10  ;;  %848 = vmatprep.mubr.bf16.mxu0 %v1319_v14 }
  0x44   :  { %890 = vmatmul.mubr.bf16.vlgmr.msra.gmra.mxu1 %v1315_v11  ;;  %1217 = vmatprep.subr.bf16.mxu0 %v1318_v13 }
  0x45   :  { %897 = vmatprep.mubr.bf16.mxu1 %v1323_v17 }
  0x47   :  { %1218 = vmatpush3.bf16.msra.mxu0 %v1318_v13 }
  0x48   :  { %1219 = vmatprep.subr.bf16.mxu0 %v1322_v16 }
  0x4a   :  { %849 = vmatmul.mubr.bf16.gmra.mxu0 %v1321_v15 }
  0x4b   :  { %1220 = vmatpush3.bf16.msra.mxu0 %v1322_v16  ;;  %1231 = vmatprep.mubr.bf16.mxu0 %v1331_v21 }
  0x4c   :  { %898 = vmatmul.mubr.bf16.gmra.mxu1 %v1325_v18  ;;  %1221 = vmatprep.subr.bf16.mxu0 %v1326_v19 }
  0x4f   :  { %1222 = vmatpush3.bf16.msra.mxu0 %v1326_v19 }
  0x50   :  { %1223 = vmatprep.subr.bf16.mxu0 %v1327_v20 }
  0x53   :  { %1224 = vmatpush3.bf16.msra.mxu0 %v1327_v20 }
  0x54   :  { %1225 = vmatprep.subr.bf16.mxu0 %v1328_v22 }
  0x57   :  { %1226 = vmatpush3.bf16.msra.mxu0 %v1328_v22 }
  0x58   :  { %1227 = vmatprep.subr.bf16.mxu0 %v1329_v23 }
  0x5b   :  { %1228 = vmatpush3.bf16.msra.mxu0 %v1329_v23 }
  0x5c   :  { %1229 = vmatprep.subr.bf16.mxu0 %v1330_v24 }
  0x5f   :  { %1230 = vmatpush3.bf16.msra.mxu0 %v1330_v24 }
  0x62   :  { %1232 = vmatmul.mubr.bf16.vlgmr.msra.gmra.mxu0 %v1332_v25 }
  0xe2   :  { %v1109_v26 = vpop.f32.mrf.mxu0 }
  0xe4   :  { %v1137_v27 = vpop.f32.mrf.mxu1  ;;  %v1110_v28 = vpop.f32.mrf.mxu0 }
  0xe5   :  { %v1111_v54 = vadd.f32 %v1110_v28, %v1109_v26 }
  0xe6   :  { %v1138_v29 = vpop.f32.mrf.mxu1  ;;  %v1112_v30 = vpop.f32.mrf.mxu0 }
  0xe7   :  { %v745_v62 = vadd.f32 %v1111_v54, %v983_v57  ;;  %v1139_v63 = vadd.f32 %v1138_v29, %v1137_v27 }
  0xe8   :  { %v1140_v31 = vpop.f32.mrf.mxu1  ;;  %v1113_v32 = vpop.f32.mrf.mxu0 }
  0xe9   :  { %v1114_v59 = vadd.f32 %v1113_v32, %v1112_v30  ;;  %v794_v10 = vadd.f32 %v1139_v63, %v745_v62 }
  0xea   :  { %v1115_v33 = vpop.f32.mrf.mxu0  ;;  %v1141_v34 = vpop.f32.mrf.mxu1 }
  0xeb   :  { %v748_v5 = vadd.f32 %v1114_v59, %v983_v57  ;;  %v1142_v6 = vadd.f32 %v1141_v34, %v1140_v31 }
  0xec   :  { %v1143_v35 = vpop.f32.mrf.mxu1  ;;  %v1116_v36 = vpop.f32.mrf.mxu0 }
  0xed   :  { %v1117_v53 = vadd.f32 %v1116_v36, %v1115_v33  ;;  %v797_v16 = vadd.f32 %v1142_v6, %v748_v5 }
  0xee   :  { %v1144_v37 = vpop.f32.mrf.mxu1  ;;  %v1118_v38 = vpop.f32.mrf.mxu0 }
  0xef   :  { %v753_v60 = vadd.f32 %v1117_v53, %v983_v57  ;;  %v1145_v61 = vadd.f32 %v1144_v37, %v1143_v35 }
  0xf0   :  { %v1146_v39 = vpop.f32.mrf.mxu1  ;;  %v1119_v40 = vpop.f32.mrf.mxu0 }
  0xf1   :  { %v1120_v58 = vadd.f32 %v1119_v40, %v1118_v38  ;;  %v802_v7 = vadd.f32 %v1145_v61, %v753_v60 }
  0xf2   :  { %v1147_v42 = vpop.f32.mrf.mxu1 }
  0xf3   :  { %v756_v2 = vadd.f32 %v1120_v58, %v983_v57  ;;  %v1148_v3 = vadd.f32 %v1147_v42, %v1146_v39 }
  0xf5   :  { %v805_v12 = vadd.f32 %v1148_v3, %v756_v2 }
 0x102   :  { %v1165_v41 = vpop.f32.mrf.mxu0 }
 0x104   :  { %v1166_v43 = vpop.f32.mrf.mxu0  ;;  %v1193_v44 = vpop.f32.mrf.mxu1 }
 0x105   :  { %v1167_v8 = vadd.f32 %v1166_v43, %v1165_v41 }
 0x106   :  { %v1168_v45 = vpop.f32.mrf.mxu0  ;;  %v1194_v46 = vpop.f32.mrf.mxu1 }
 0x107   :  { %v843_v17 = vadd.f32 %v1167_v8, %v794_v10  ;;  %v1195_v18 = vadd.f32 %v1194_v46, %v1193_v44 }
 0x108   :  { %v1169_v47 = vpop.f32.mrf.mxu0  ;;  %v1196_v48 = vpop.f32.mrf.mxu1 }
 0x109   :  { %v1170_v13 = vadd.f32 %v1169_v47, %v1168_v45  ;;  %v892_v27 = vadd.f32 %v1195_v18, %v843_v17 }
 0x10a   :  { %v1171_v49 = vpop.f32.mrf.mxu0  ;;  %v1197_v50 = vpop.f32.mrf.mxu1 }
 0x10b   :  { %v846_v22 = vadd.f32 %v1170_v13, %v797_v16  ;;  %v1198_v23 = vadd.f32 %v1197_v50, %v1196_v48 }
 0x10c   :  { %v1172_v51 = vpop.f32.mrf.mxu0  ;;  %v1199_v52 = vpop.f32.mrf.mxu1 }
 0x10d   :  { %v1173_v4 = vadd.f32 %v1172_v51, %v1171_v49  ;;  %v895_v32 = vadd.f32 %v1198_v23, %v846_v22 }
 0x10e   :  { %v1174_v55 = vpop.f32.mrf.mxu0  ;;  %v1200_v56 = vpop.f32.mrf.mxu1 }
 0x10f   :  { %v851_v14 = vadd.f32 %v1173_v4, %v802_v7  ;;  %v1201_v15 = vadd.f32 %v1200_v56, %v1199_v52 }
 0x110   :  { %v1175_v0 = vpop.f32.mrf.mxu0  ;;  %v1202_v1 = vpop.f32.mrf.mxu1 }
 0x111   :  { %v1176_v9 = vadd.f32 %v1175_v0, %v1174_v55  ;;  %v900_v24 = vadd.f32 %v1201_v15, %v851_v14 }
 0x112   :  { %v1203_v11 = vpop.f32.mrf.mxu1 }
 0x113   :  { %v854_v19 = vadd.f32 %v1176_v9, %v805_v12  ;;  %v1204_v20 = vadd.f32 %v1203_v11, %v1202_v1 }
 0x115   :  { %v903_v28 = vadd.f32 %v1204_v20, %v854_v19 }
 0x122   :  { %v1233_v21 = vpop.f32.mrf.mxu0 }
 0x123   :  { %v949_v26 = vadd.f32 %v1233_v21, %v900_v24 }
 0x124   :  { %v940_v25 = vpop.f32.mrf.mxu0 }
 0x125   :  { %v941_v30 = vadd.f32 %v940_v25, %v892_v27  ;;  %v957_v34 = vmax.f32 %v949_v26, 0.0 }
 0x126   :  { %v1234_v29 = vpop.f32.mrf.mxu0 }
 0x127   :  { %v952_v31 = vadd.f32 %v1234_v29, %v903_v28  ;;  %v955_v37 = vmax.f32 %v941_v30, 0.0 }
 0x128   :  { %v943_v33 = vpop.f32.mrf.mxu0 }
 0x129   :  { %v958_v35 = vmax.f32 %v952_v31, 0.0  ;;  %v944_v36 = vadd.f32 %v943_v33, %v895_v32 }
 0x12b   :  { %v1090_v38 = vpack.c.bf16 %v958_v35, %v957_v34  ;;  %v956_v39 = vmax.f32 %v944_v36, 0.0 }
 0x12d   :  { %1092 = vst [vmem:[%s1635_s3 + $0x8] sm:$0xff] %v1090_v38   ;;  %v1085_v40 = vpack.c.bf16 %v956_v39, %v955_v37 }
 0x12f   :  { %1086 = vst [vmem:[%s1635_s3] sm:$0xff] %v1085_v40  }

// kernel: vqcae_forward.14
= control target key start
LH: loop header
LB: loop body
LE: loop exit
PB: predicated region body
PF: predicated region fallthrough
CT: control target
= control target key end

     0   :  { %vm1123_vm0 = vmmov 0   ;;  %s1381_s1 = inlined_call_operand.vmem [shape: bf16[1152,128], index: 1, kind: input, shape index: {}]   ;;  %s1382_s0 = inlined_call_operand.vmem [shape: bf16[8,1152], index: 0, kind: input, shape index: {}]   ;;  %s1383_s2 = inlined_call_operand.vmem [shape: f32[1,128], index: 2, kind: input, shape index: {}]   ;;  %s1384_s3 = inlined_call_operand.vmem [shape: f32[8,128], index: 3, kind: output, shape index: {}]  }
   0x1   :  { %v1041_v0 = vld [vmem:[%s1381_s1 + $0x78] sm:$0xff]   ;;  %v1045_v4 = vld [vmem:[%s1381_s1 + $0x70] sm:$0xff]   ;;  %v1049_v8 = vld [vmem:[%s1381_s1 + $0x68] sm:$0xff]  }
   0x2   :  { %v1042_v1 = vld [vmem:[%s1381_s1 + $0x38] sm:$0xff]   ;;  %922 = vmatprep.subr.bf16.mxu0 %v1041_v0  ;;  %v1046_v5 = vld [vmem:[%s1381_s1 + $0x30] sm:$0xff]   ;;  %v1050_v9 = vld [vmem:[%s1381_s1 + $0x28] sm:$0xff]  }
   0x3   :  { %v1043_v2 = vld [vmem:[%s1381_s1 + $0xf8] sm:$0xff]   ;;  %923 = vmatpush3.bf16.msra.mxu0 %v1042_v1  ;;  %v1047_v6 = vld [vmem:[%s1381_s1 + $0xf0] sm:$0xff]   ;;  %v1051_v10 = vld [vmem:[%s1381_s1 + $0xe8] sm:$0xff]  }
   0x4   :  { %v1044_v3 = vld [vmem:[%s1381_s1 + $0xb8] sm:$0xff]   ;;  %944 = vmatprep.subr.bf16.mxu1 %v1043_v2  ;;  %924 = vmatprep.subr.bf16.mxu0 %v1045_v4  ;;  %v1048_v7 = vld [vmem:[%s1381_s1 + $0xb0] sm:$0xff]   ;;  %v1052_v11 = vld [vmem:[%s1381_s1 + $0xa8] sm:$0xff]  }
   0x5   :  { %945 = vmatpush3.bf16.msra.mxu1 %v1044_v3  ;;  %v1053_v12 = vld [vmem:[%s1381_s1 + $0x60] sm:$0xff]   ;;  %v1057_v16 = vld [vmem:[%s1381_s1 + $0x58] sm:$0xff]   ;;  %v1061_v20 = vld [vmem:[%s1381_s1 + $0x50] sm:$0xff]  }
   0x6   :  { %946 = vmatprep.subr.bf16.mxu1 %v1047_v6  ;;  %v1054_v13 = vld [vmem:[%s1381_s1 + $0x20] sm:$0xff]   ;;  %v1058_v17 = vld [vmem:[%s1381_s1 + $0x18] sm:$0xff]   ;;  %v1062_v21 = vld [vmem:[%s1381_s1 + $0x10] sm:$0xff]  }
   0x7   :  { %925 = vmatpush3.bf16.msra.mxu0 %v1046_v5  ;;  %v1055_v14 = vld [vmem:[%s1381_s1 + $0xe0] sm:$0xff]   ;;  %v1059_v18 = vld [vmem:[%s1381_s1 + $0xd8] sm:$0xff]   ;;  %v1063_v22 = vld [vmem:[%s1381_s1 + $0xd0] sm:$0xff]  }
   0x8   :  { %926 = vmatprep.subr.bf16.mxu0 %v1049_v8  ;;  %v1056_v15 = vld [vmem:[%s1381_s1 + $0xa0] sm:$0xff]   ;;  %v1060_v19 = vld [vmem:[%s1381_s1 + $0x98] sm:$0xff]   ;;  %v1064_v23 = vld [vmem:[%s1381_s1 + $0x90] sm:$0xff]  }
   0x9   :  { %947 = vmatpush3.bf16.msra.mxu1 %v1048_v7  ;;  %v1065_v24 = vld [vmem:[%s1381_s1 + $0x48] sm:$0xff]   ;;  %v1069_v28 = vld [vmem:[%s1381_s1 + $0x40] sm:$0xff]   ;;  %v1075_v35 = vld [vmem:[%s1381_s1 + $0x178] sm:$0xff]  }
   0xa   :  { %948 = vmatprep.subr.bf16.mxu1 %v1051_v10  ;;  %v1066_v25 = vld [vmem:[%s1381_s1 + $0x8] sm:$0xff]   ;;  %v1070_v29 = vld [vmem:[%s1381_s1] sm:$0xff]   ;;  %v1078_v39 = vld [vmem:[%s1381_s1 + $0x138] sm:$0xff]  }
   0xb   :  { %927 = vmatpush3.bf16.msra.mxu0 %v1050_v9  ;;  %v1067_v26 = vld [vmem:[%s1381_s1 + $0xc8] sm:$0xff]   ;;  %v1071_v30 = vld [vmem:[%s1381_s1 + $0xc0] sm:$0xff]   ;;  %v1079_v40 = vld [vmem:[%s1381_s1 + $0x1f8] sm:$0xff]   ;;  %v1122_v9 = vmov 0.0  }
   0xc   :  { %928 = vmatprep.subr.bf16.mxu0 %v1053_v12  ;;  %v1068_v27 = vld [vmem:[%s1381_s1 + $0x88] sm:$0xff]   ;;  %v15_v31 = vld [vmem:[%s1382_s0] sm:$0xff]  ;;  %v1080_v41 = vld [vmem:[%s1381_s1 + $0x1b8] sm:$0xff]  }
   0xd   :  { %949 = vmatpush3.bf16.msra.mxu1 %v1052_v11  ;;  %v841_v32 = vcombine.low %v15_v31, %v15_v31  ;;  %v842_v33 = vcombine.high %v15_v31, %v15_v31  ;;  %v1074_v34 = vld [vmem:[%s1381_s1 + $0x80] sm:$0xff]   ;;  %v16_v36 = vld [vmem:[%s1382_s0 + $0x8] sm:$0xff]  ;;  %v1081_v42 = vld [vmem:[%s1381_s1 + $0x170] sm:$0xff]  }
   0xe   :  { %950 = vmatprep.subr.bf16.mxu1 %v1055_v14  ;;  %v843_v37 = vcombine.low %v16_v36, %v16_v36  ;;  %v844_v38 = vcombine.high %v16_v36, %v16_v36  ;;  %v1082_v43 = vld [vmem:[%s1381_s1 + $0x130] sm:$0xff]   ;;  %v1085_v46 = vld [vmem:[%s1381_s1 + $0x168] sm:$0xff]   ;;  %v1089_v50 = vld [vmem:[%s1381_s1 + $0x160] sm:$0xff]  }
   0xf   :  { %929 = vmatpush3.bf16.msra.mxu0 %v1054_v13  ;;  %667 = vmatprep.mubr.bf16.mxu0 %v842_v33  ;;  %v1083_v44 = vld [vmem:[%s1381_s1 + $0x1f0] sm:$0xff]   ;;  %v1086_v47 = vld [vmem:[%s1381_s1 + $0x128] sm:$0xff]   ;;  %v1090_v51 = vld [vmem:[%s1381_s1 + $0x120] sm:$0xff]  }
  0x10   :  { %930 = vmatprep.subr.bf16.mxu0 %v1057_v16  ;;  %707 = vmatprep.mubr.bf16.mxu1 %v844_v38  ;;  %v1084_v45 = vld [vmem:[%s1381_s1 + $0x1b0] sm:$0xff]   ;;  %v1087_v48 = vld [vmem:[%s1381_s1 + $0x1e8] sm:$0xff]   ;;  %v1091_v52 = vld [vmem:[%s1381_s1 + $0x1e0] sm:$0xff]  }
  0x11   :  { %951 = vmatpush3.bf16.msra.mxu1 %v1056_v15  ;;  %v1088_v49 = vld [vmem:[%s1381_s1 + $0x1a8] sm:$0xff]   ;;  %v1092_v53 = vld [vmem:[%s1381_s1 + $0x1a0] sm:$0xff]   ;;  %v1093_v54 = vld [vmem:[%s1381_s1 + $0x158] sm:$0xff]  }
  0x12   :  { %952 = vmatprep.subr.bf16.mxu1 %v1059_v18  ;;  %v1094_v55 = vld [vmem:[%s1381_s1 + $0x118] sm:$0xff]   ;;  %v1097_v58 = vld [vmem:[%s1381_s1 + $0x150] sm:$0xff]   ;;  %v1101_v62 = vld [vmem:[%s1381_s1 + $0x148] sm:$0xff]  }
  0x13   :  { %931 = vmatpush3.bf16.msra.mxu0 %v1058_v17  ;;  %v1095_v56 = vld [vmem:[%s1381_s1 + $0x1d8] sm:$0xff]   ;;  %v1098_v59 = vld [vmem:[%s1381_s1 + $0x110] sm:$0xff]   ;;  %v1102_v63 = vld [vmem:[%s1381_s1 + $0x108] sm:$0xff]  }
  0x14   :  { %932 = vmatprep.subr.bf16.mxu0 %v1061_v20  ;;  %v1096_v57 = vld [vmem:[%s1381_s1 + $0x198] sm:$0xff]   ;;  %v1099_v60 = vld [vmem:[%s1381_s1 + $0x1d0] sm:$0xff]   ;;  %v1103_v0 = vld [vmem:[%s1381_s1 + $0x1c8] sm:$0xff]  }
  0x15   :  { %953 = vmatpush3.bf16.msra.mxu1 %v1060_v19  ;;  %v1100_v61 = vld [vmem:[%s1381_s1 + $0x190] sm:$0xff]   ;;  %v1104_v1 = vld [vmem:[%s1381_s1 + $0x188] sm:$0xff]   ;;  %v1105_v2 = vld [vmem:[%s1381_s1 + $0x140] sm:$0xff]  }
  0x16   :  { %954 = vmatprep.subr.bf16.mxu1 %v1063_v22  ;;  %v1106_v3 = vld [vmem:[%s1381_s1 + $0x100] sm:$0xff]   ;;  %v17_v5 = vld [vmem:[%s1382_s0 + $0x10] sm:$0xff]  ;;  %v18_v10 = vld [vmem:[%s1382_s0 + $0x18] sm:$0xff] }
  0x17   :  { %933 = vmatpush3.bf16.msra.mxu0 %v1062_v21  ;;  %v1107_v4 = vld [vmem:[%s1381_s1 + $0x1c0] sm:$0xff]   ;;  %v845_v6 = vcombine.low %v17_v5, %v17_v5  ;;  %v846_v7 = vcombine.high %v17_v5, %v17_v5  ;;  %v847_v11 = vcombine.low %v18_v10, %v18_v10  ;;  %v848_v12 = vcombine.high %v18_v10, %v18_v10  ;;  %v1113_v13 = vld [vmem:[%s1381_s1 + $0x238] sm:$0xff]   ;;  %v1114_v14 = vld [vmem:[%s1381_s1 + $0x230] sm:$0xff]  }
  0x18   :  { %934 = vmatprep.subr.bf16.mxu0 %v1065_v24  ;;  %v1110_v8 = vld [vmem:[%s1381_s1 + $0x180] sm:$0xff]   ;;  %v1115_v15 = vld [vmem:[%s1381_s1 + $0x228] sm:$0xff]   ;;  %v1117_v17 = vld [vmem:[%s1381_s1 + $0x218] sm:$0xff]  }
  0x19   :  { %955 = vmatpush3.bf16.msra.mxu1 %v1064_v23  ;;  %v1116_v16 = vld [vmem:[%s1381_s1 + $0x220] sm:$0xff]   ;;  %v1118_v18 = vld [vmem:[%s1381_s1 + $0x210] sm:$0xff]   ;;  %v1119_v19 = vld [vmem:[%s1381_s1 + $0x208] sm:$0xff]  }
  0x1a   :  { %956 = vmatprep.subr.bf16.mxu1 %v1067_v26  ;;  %v1120_v20 = vld [vmem:[%s1381_s1 + $0x200] sm:$0xff]  }
  0x1b   :  { %935 = vmatpush3.bf16.msra.mxu0 %v1066_v25  ;;  %v1121_v21 = vld [vmem:[%s1382_s0 + $0x20] ss:$0 sps:$4 sm:$0xff]  }
  0x1c   :  { %936 = vmatprep.subr.bf16.mxu0 %v1069_v28 }
  0x1d   :  { %957 = vmatpush3.bf16.msra.mxu1 %v1068_v27 }
  0x1e   :  { %958 = vmatprep.subr.bf16.mxu1 %v1071_v30 }
  0x1f   :  { %937 = vmatpush3.bf16.msra.mxu0 %v1070_v29 }
  0x20   :  { %966 = vmatprep.subr.bf16.mxu0 %v1075_v35 }
  0x21   :  { %959 = vmatpush3.bf16.msra.mxu1 %v1074_v34 }
  0x22   :  { %668 = vmatmul.mubr.bf16.vlgmr.msra.gmra.mxu0 %v841_v32  ;;  %988 = vmatprep.subr.bf16.mxu1 %v1079_v40 }
  0x23   :  { %967 = vmatpush3.bf16.msra.mxu0 %v1078_v39  ;;  %747 = vmatprep.mubr.bf16.mxu0 %v846_v7  ;;  %v840_v39 = vld [vmem:[%s1383_s2] ss:$0 sm:$0xff] }
  0x24   :  { %708 = vmatmul.mubr.bf16.vlgmr.msra.gmra.mxu1 %v843_v37  ;;  %968 = vmatprep.subr.bf16.mxu0 %v1081_v42 }
  0x25   :  { %989 = vmatpush3.bf16.msra.mxu1 %v1080_v41  ;;  %787 = vmatprep.mubr.bf16.mxu1 %v848_v12 }
  0x26   :  { %990 = vmatprep.subr.bf16.mxu1 %v1083_v44 }
  0x27   :  { %969 = vmatpush3.bf16.msra.mxu0 %v1082_v43 }
  0x28   :  { %970 = vmatprep.subr.bf16.mxu0 %v1085_v46 }
  0x29   :  { %991 = vmatpush3.bf16.msra.mxu1 %v1084_v45 }
  0x2a   :  { %992 = vmatprep.subr.bf16.mxu1 %v1087_v48 }
  0x2b   :  { %971 = vmatpush3.bf16.msra.mxu0 %v1086_v47 }
  0x2c   :  { %972 = vmatprep.subr.bf16.mxu0 %v1089_v50 }
  0x2d   :  { %993 = vmatpush3.bf16.msra.mxu1 %v1088_v49 }
  0x2e   :  { %994 = vmatprep.subr.bf16.mxu1 %v1091_v52 }
  0x2f   :  { %973 = vmatpush3.bf16.msra.mxu0 %v1090_v51 }
  0x30   :  { %974 = vmatprep.subr.bf16.mxu0 %v1093_v54 }
  0x31   :  { %995 = vmatpush3.bf16.msra.mxu1 %v1092_v53 }
  0x32   :  { %996 = vmatprep.subr.bf16.mxu1 %v1095_v56 }
  0x33   :  { %975 = vmatpush3.bf16.msra.mxu0 %v1094_v55 }
  0x34   :  { %976 = vmatprep.subr.bf16.mxu0 %v1097_v58 }
  0x35   :  { %997 = vmatpush3.bf16.msra.mxu1 %v1096_v57 }
  0x36   :  { %998 = vmatprep.subr.bf16.mxu1 %v1099_v60 }
  0x37   :  { %977 = vmatpush3.bf16.msra.mxu0 %v1098_v59 }
  0x38   :  { %978 = vmatprep.subr.bf16.mxu0 %v1101_v62 }
  0x39   :  { %999 = vmatpush3.bf16.msra.mxu1 %v1100_v61 }
  0x3a   :  { %1000 = vmatprep.subr.bf16.mxu1 %v1103_v0 }
  0x3b   :  { %979 = vmatpush3.bf16.msra.mxu0 %v1102_v63 }
  0x3c   :  { %980 = vmatprep.subr.bf16.mxu0 %v1105_v2 }
  0x3d   :  { %1001 = vmatpush3.bf16.msra.mxu1 %v1104_v1 }
  0x3e   :  { %1002 = vmatprep.subr.bf16.mxu1 %v1107_v4 }
  0x3f   :  { %981 = vmatpush3.bf16.msra.mxu0 %v1106_v3 }
  0x40   :  { %1019 = vmatprep.subr.bf16.mxu0 %v1122_v9 }
  0x41   :  { %1003 = vmatpush3.bf16.msra.mxu1 %v1110_v8 }
  0x42   :  { %748 = vmatmul.mubr.bf16.vlgmr.msra.gmra.mxu0 %v845_v6 }
  0x43   :  { %1020 = vmatpush3.bf16.msra.mxu0 %v1113_v13  ;;  %1035 = vmatprep.mubr.msk.bf16.mxu0 %vm1123_vm0, %v1122_v9 }
  0x44   :  { %788 = vmatmul.mubr.bf16.vlgmr.msra.gmra.mxu1 %v847_v11  ;;  %1021 = vmatprep.subr.bf16.mxu0 %v1122_v9 }
  0x47   :  { %1022 = vmatpush3.bf16.msra.mxu0 %v1114_v14 }
  0x48   :  { %1023 = vmatprep.subr.bf16.mxu0 %v1122_v9 }
  0x4b   :  { %1024 = vmatpush3.bf16.msra.mxu0 %v1115_v15 }
  0x4c   :  { %1025 = vmatprep.subr.bf16.mxu0 %v1122_v9 }
  0x4f   :  { %1026 = vmatpush3.bf16.msra.mxu0 %v1116_v16 }
  0x50   :  { %1027 = vmatprep.subr.bf16.mxu0 %v1122_v9 }
  0x53   :  { %1028 = vmatpush3.bf16.msra.mxu0 %v1117_v17 }
  0x54   :  { %1029 = vmatprep.subr.bf16.mxu0 %v1122_v9 }
  0x57   :  { %1030 = vmatpush3.bf16.msra.mxu0 %v1118_v18 }
  0x58   :  { %1031 = vmatprep.subr.bf16.mxu0 %v1122_v9 }
  0x5b   :  { %1032 = vmatpush3.bf16.msra.mxu0 %v1119_v19 }
  0x5c   :  { %1033 = vmatprep.subr.bf16.mxu0 %v1122_v9 }
  0x5f   :  { %1034 = vmatpush3.bf16.msra.mxu0 %v1120_v20 }
  0x62   :  { %1036 = vmatmul.mubr.bf16.vlgmr.msra.gmra.mxu0 %v1121_v21 }
  0xe2   :  { %v938_v22 = vpop.f32.mrf.mxu0 }
  0xe4   :  { %v939_v23 = vpop.f32.mrf.mxu0  ;;  %v960_v24 = vpop.f32.mrf.mxu1 }
  0xe5   :  { %v940_v38 = vadd.f32 %v939_v23, %v938_v22 }
  0xe6   :  { %v941_v25 = vpop.f32.mrf.mxu0  ;;  %v961_v26 = vpop.f32.mrf.mxu1 }
  0xe7   :  { %v670_v40 = vadd.f32 %v940_v38, %v840_v39  ;;  %v962_v41 = vadd.f32 %v961_v26, %v960_v24 }
  0xe8   :  { %v942_v27 = vpop.f32.mrf.mxu0  ;;  %v963_v28 = vpop.f32.mrf.mxu1 }
  0xe9   :  { %v710_v43 = vadd.f32 %v962_v41, %v670_v40 }
  0xea   :  { %v964_v29 = vpop.f32.mrf.mxu1 }
 0x102   :  { %v982_v30 = vpop.f32.mrf.mxu0 }
 0x104   :  { %v983_v31 = vpop.f32.mrf.mxu0  ;;  %v1004_v32 = vpop.f32.mrf.mxu1 }
 0x105   :  { %v984_v42 = vadd.f32 %v983_v31, %v982_v30 }
 0x106   :  { %v985_v33 = vpop.f32.mrf.mxu0  ;;  %v1005_v34 = vpop.f32.mrf.mxu1 }
 0x107   :  { %v750_v44 = vadd.f32 %v984_v42, %v710_v43  ;;  %v1006_v45 = vadd.f32 %v1005_v34, %v1004_v32 }
 0x108   :  { %v986_v35 = vpop.f32.mrf.mxu0  ;;  %v1007_v36 = vpop.f32.mrf.mxu1 }
 0x109   :  { %v790_v46 = vadd.f32 %v1006_v45, %v750_v44 }
 0x10a   :  { %v1008_v37 = vpop.f32.mrf.mxu1 }
 0x122   :  { %v829_v47 = vpop.f32.mrf.mxu0 }
 0x123   :  { %v830_v48 = vadd.f32 %v829_v47, %v790_v46 }
 0x124   :  { %v1037_v49 = vpop.f32.mrf.mxu0 }
 0x125   :  { %835 = vst [vmem:[%s1384_s3] sm:$0xff] %v830_v48 }
 0x126   :  { %v832_v50 = vpop.f32.mrf.mxu0 }
 0x128   :  { %v1038_v51 = vpop.f32.mrf.mxu0 }

// kernel: vqcae_forward.16
= control target key start
LH: loop header
LB: loop body
LE: loop exit
PB: predicated region body
PF: predicated region fallthrough
CT: control target
= control target key end

     0   :  { %v318_v0 = vmov 0.0   ;;  %vm319_vm0 = vmmov 0   ;;  %v112_v23 = vlaneseq  ;;  %v320_v38 = vmov 1.0   ;;  %s432_s1 = inlined_call_operand.vmem [shape: f32[128,128], index: 1, kind: input, shape index: {}]   ;;  %s433_s0 = inlined_call_operand.vmem [shape: f32[8,128], index: 0, kind: input, shape index: {}]   ;;  %s434_s2 = inlined_call_operand.vmem [shape: f32[1,128], index: 2, kind: input, shape index: {}]   ;;  %s435_s3 = inlined_call_operand.vmem [shape: f32[8,128], index: 3, kind: output, shape index: {}]  }
   0x1   :  { %245 = vmatprep.subr.mxu0 %v318_v0  ;;  %v30_v1 = vld [vmem:[%s432_s1 + $0x78] sm:$0xff]  ;;  %277 = vmatprep.mubr.msk.f32.mxu0 %vm319_vm0, %v318_v0  ;;  %v29_v2 = vld [vmem:[%s432_s1 + $0x70] sm:$0xff]  ;;  %v28_v3 = vld [vmem:[%s432_s1 + $0x68] sm:$0xff] }
   0x2   :  { %246 = vmatpush3.xpose.msra.mxu0 %v30_v1  ;;  %280 = vmatprep.subr.mxu1 %v318_v0  ;;  %v27_v4 = vld [vmem:[%s432_s1 + $0x60] sm:$0xff]  ;;  %v26_v5 = vld [vmem:[%s432_s1 + $0x58] sm:$0xff]  ;;  %v25_v6 = vld [vmem:[%s432_s1 + $0x50] sm:$0xff]  ;;  %v113_v24 = vand.u32 127, %v112_v23 }
   0x3   :  { %247 = vmatprep.subr.mxu0 %v318_v0  ;;  %281 = vmatpush3.msra.mxu1 %v30_v1  ;;  %v24_v7 = vld [vmem:[%s432_s1 + $0x48] sm:$0xff]  ;;  %v23_v8 = vld [vmem:[%s432_s1 + $0x40] sm:$0xff]  ;;  %v22_v9 = vld [vmem:[%s432_s1 + $0x38] sm:$0xff] }
   0x4   :  { %282 = vmatprep.subr.mxu1 %v318_v0  ;;  %312 = vmatprep.mubr.msk.f32.mxu1 %vm319_vm0, %v318_v0  ;;  %v21_v10 = vld [vmem:[%s432_s1 + $0x30] sm:$0xff]  ;;  %v20_v11 = vld [vmem:[%s432_s1 + $0x28] sm:$0xff]  ;;  %v19_v12 = vld [vmem:[%s432_s1 + $0x20] sm:$0xff] }
   0x5   :  { %283 = vmatpush3.msra.mxu1 %v29_v2  ;;  %v18_v13 = vld [vmem:[%s432_s1 + $0x18] sm:$0xff]  ;;  %v17_v14 = vld [vmem:[%s432_s1 + $0x10] sm:$0xff]  ;;  %v16_v15 = vld [vmem:[%s432_s1 + $0x8] sm:$0xff] }
   0x6   :  { %248 = vmatpush3.xpose.msra.mxu0 %v29_v2  ;;  %284 = vmatprep.subr.mxu1 %v318_v0  ;;  %v15_v16 = vld [vmem:[%s432_s1] sm:$0xff] }
   0x7   :  { %249 = vmatprep.subr.mxu0 %v318_v0  ;;  %285 = vmatpush3.msra.mxu1 %v28_v3  ;;  %v14_v17 = vld [vmem:[%s433_s0] sm:$0xff] }
   0x8   :  { %286 = vmatprep.subr.mxu1 %v318_v0  ;;  %v208_v19 = vld [vmem:[%s434_s2] ss:$0 sm:$0xff] }
   0x9   :  { %287 = vmatpush3.msra.mxu1 %v27_v4 }
   0xa   :  { %250 = vmatpush3.xpose.msra.mxu0 %v28_v3  ;;  %288 = vmatprep.subr.mxu1 %v318_v0 }
   0xb   :  { %251 = vmatprep.subr.mxu0 %v318_v0  ;;  %289 = vmatpush3.msra.mxu1 %v26_v5 }
   0xc   :  { %290 = vmatprep.subr.mxu1 %v318_v0 }
   0xd   :  { %291 = vmatpush3.msra.mxu1 %v25_v6 }
   0xe   :  { %252 = vmatpush3.xpose.msra.mxu0 %v27_v4  ;;  %292 = vmatprep.subr.mxu1 %v318_v0 }
   0xf   :  { %253 = vmatprep.subr.mxu0 %v318_v0  ;;  %293 = vmatpush3.msra.mxu1 %v24_v7 }
  0x10   :  { %294 = vmatprep.subr.mxu1 %v318_v0 }
  0x11   :  { %295 = vmatpush3.msra.mxu1 %v23_v8 }
  0x12   :  { %254 = vmatpush3.xpose.msra.mxu0 %v26_v5  ;;  %296 = vmatprep.subr.mxu1 %v318_v0 }
  0x13   :  { %255 = vmatprep.subr.mxu0 %v318_v0  ;;  %297 = vmatpush3.msra.mxu1 %v22_v9 }
  0x14   :  { %298 = vmatprep.subr.mxu1 %v318_v0 }
  0x15   :  { %299 = vmatpush3.msra.mxu1 %v21_v10 }
  0x16   :  { %256 = vmatpush3.xpose.msra.mxu0 %v25_v6  ;;  %300 = vmatprep.subr.mxu1 %v318_v0 }
  0x17   :  { %257 = vmatprep.subr.mxu0 %v318_v0  ;;  %301 = vmatpush3.msra.mxu1 %v20_v11 }
  0x18   :  { %302 = vmatprep.subr.mxu1 %v318_v0 }
  0x19   :  { %303 = vmatpush3.msra.mxu1 %v19_v12 }
  0x1a   :  { %258 = vmatpush3.xpose.msra.mxu0 %v24_v7  ;;  %304 = vmatprep.subr.mxu1 %v318_v0 }
  0x1b   :  { %259 = vmatprep.subr.mxu0 %v318_v0  ;;  %305 = vmatpush3.msra.mxu1 %v18_v13 }
  0x1c   :  { %306 = vmatprep.subr.mxu1 %v318_v0 }
  0x1d   :  { %307 = vmatpush3.msra.mxu1 %v17_v14 }
  0x1e   :  { %260 = vmatpush3.xpose.msra.mxu0 %v23_v8  ;;  %308 = vmatprep.subr.mxu1 %v318_v0 }
  0x1f   :  { %261 = vmatprep.subr.mxu0 %v318_v0  ;;  %309 = vmatpush3.msra.mxu1 %v16_v15 }
  0x20   :  { %310 = vmatprep.subr.mxu1 %v318_v0 }
  0x21   :  { %311 = vmatpush3.msra.mxu1 %v15_v16 }
  0x22   :  { %262 = vmatpush3.xpose.msra.mxu0 %v22_v9 }
  0x23   :  { %263 = vmatprep.subr.mxu0 %v318_v0 }
  0x26   :  { %264 = vmatpush3.xpose.msra.mxu0 %v21_v10 }
  0x27   :  { %265 = vmatprep.subr.mxu0 %v318_v0 }
  0x2a   :  { %266 = vmatpush3.xpose.msra.mxu0 %v20_v11 }
  0x2b   :  { %267 = vmatprep.subr.mxu0 %v318_v0 }
  0x2e   :  { %268 = vmatpush3.xpose.msra.mxu0 %v19_v12 }
  0x2f   :  { %269 = vmatprep.subr.mxu0 %v318_v0 }
  0x32   :  { %270 = vmatpush3.xpose.msra.mxu0 %v18_v13 }
  0x33   :  { %271 = vmatprep.subr.mxu0 %v318_v0 }
  0x36   :  { %272 = vmatpush3.xpose.msra.mxu0 %v17_v14 }
  0x37   :  { %273 = vmatprep.subr.mxu0 %v318_v0 }
  0x3a   :  { %274 = vmatpush3.xpose.msra.mxu0 %v16_v15 }
  0x3b   :  { %275 = vmatprep.subr.mxu0 %v318_v0 }
  0x3e   :  { %276 = vmatpush3.xpose.msra.mxu0 %v15_v16 }
  0x41   :  { %278 = vmatmul.mubr.f32.vlgmr.msra.gmra.mxu0 %v14_v17 }
 0x101   :  { %v97_v18 = vpop.f32.mrf.mxu0 }
 0x102   :  { %v102_v20 = vmul.f32 2.0, %v97_v18 }
 0x103   :  { %v279_v21 = vpop.f32.mrf.mxu0 }
 0x104   :  { %v109_v22 = vsub.f32 %v208_v19, %v102_v20 }
 0x106   :  { %110 = vmin.xlane.f32.xlu0 %v109_v22 }
 0x18f   :  { %v111_v25 = vpop.xlane.xlu0 %110 }
 0x190   :  { %vm114_vm1 = vcmp.le.f32.partialorder %v109_v22, %v111_v25 }
 0x191   :  { %v115_v26 = vsel %vm114_vm1, %v113_v24, 128 }
 0x192   :  { %v117_v27 = vshra.s32 %v115_v26, 16  ;;  %v116_v29 = vand.u32 65535, %v115_v26 }
 0x194   :  { %v119_v28 = vcvt.s32.f32 %v117_v27  ;;  %v118_v31 = vcvt.s32.f32 %v116_v29 }
 0x196   :  { %120 = vmin.xlane.f32.xlu0 %v119_v28 }
 0x21f   :  { %v121_v30 = vpop.xlane.xlu0 %120 }
 0x220   :  { %vm122_vm2 = vcmp.eq.f32.partialorder %v119_v28, %v121_v30  ;;  %v127_v33 = vcvt.f32.s32 %v121_v30 }
 0x221   :  { %v123_v32 = vsel %vm122_vm2, %v118_v31, inf }
 0x222   :  { %124 = vmin.xlane.f32.xlu1 %v123_v32  ;;  %v128_v35 = vshll.u32 %v127_v33, 16 }
 0x2ab   :  { %v125_v34 = vpop.xlane.xlu1 %124 }
 0x2ac   :  { %v126_v36 = vcvt.f32.s32 %v125_v34 }
 0x2ae   :  { %v129_v37 = vadd.s32 %v128_v35, %v126_v36 }
 0x2b0   :  { %vm130_vm3 = vcmp.eq.s32.totalorder %v113_v24, %v129_v37 }
 0x2b1   :  { %313 = vmatmul.mubr.msk.f32.vlgmr.msra.gmra.mxu1 %vm130_vm3, %v320_v38 }
 0x371   :  { %v199_v39 = vpop.f32.mrf.mxu1 }
 0x372   :  { %203 = vst [vmem:[%s435_s3] sm:$0xff] %v199_v39 }
 0x373   :  { %v314_v40 = vpop.f32.mrf.mxu1 }

// kernel: vqcae_forward.18
= control target key start
LH: loop header
LB: loop body
LE: loop exit
PB: predicated region body
PF: predicated region fallthrough
CT: control target
= control target key end

     0   :  { %s1757_s1 = inlined_call_operand.vmem [shape: bf16[512,512], index: 1, kind: input, shape index: {}]   ;;  %s1758_s0 = inlined_call_operand.vmem [shape: bf16[8,512], index: 0, kind: input, shape index: {}]   ;;  %s1759_s2 = inlined_call_operand.vmem [shape: f32[1,512], index: 2, kind: input, shape index: {}]   ;;  %s1760_s3 = inlined_call_operand.vmem [shape: f32[8,512], index: 3, kind: output, shape index: {}]  }
   0x1   :  { %v1124_v0 = vld [vmem:[%s1757_s1 + $0xe4] ss:$16 sps:$4 sm:$0xff]   ;;  %v1128_v2 = vld [vmem:[%s1757_s1 + $0xe0] ss:$16 sps:$4 sm:$0xff]   ;;  %v15_v48 = vld [vmem:[%s1758_s0 + $0x8] sm:$0xff] }
   0x2   :  { %v1126_v1 = vld [vmem:[%s1757_s1 + $0x2e4] ss:$16 sps:$4 sm:$0xff]   ;;  %820 = vmatprep.subr.bf16.mxu0 %v1124_v0  ;;  %v1129_v3 = vld [vmem:[%s1757_s1 + $0x2e0] ss:$16 sps:$4 sm:$0xff]   ;;  %v995_v51 = vcombine.high %v15_v48, %v15_v48 }
   0x3   :  { %861 = vmatprep.subr.bf16.mxu1 %v1126_v1  ;;  %v1130_v4 = vld [vmem:[%s1757_s1 + $0xc4] ss:$16 sps:$4 sm:$0xff]   ;;  %821 = vmatpush1.bf16.msra.mxu0 %v1128_v2  ;;  %v1134_v6 = vld [vmem:[%s1757_s1 + $0xc0] ss:$16 sps:$4 sm:$0xff]  }
   0x4   :  { %862 = vmatpush1.bf16.msra.mxu1 %v1129_v3  ;;  %v1132_v5 = vld [vmem:[%s1757_s1 + $0x2c4] ss:$16 sps:$4 sm:$0xff]   ;;  %822 = vmatprep.subr.bf16.mxu0 %v1130_v4  ;;  %v1135_v7 = vld [vmem:[%s1757_s1 + $0x2c0] ss:$16 sps:$4 sm:$0xff]   ;;  %v1226_v4 = vld [vmem:[%s1757_s1 + $0xec] ss:$16 sps:$4 sm:$0xff]  }
   0x5   :  { %863 = vmatprep.subr.bf16.mxu1 %v1132_v5  ;;  %v1136_v8 = vld [vmem:[%s1757_s1 + $0xa4] ss:$16 sps:$4 sm:$0xff]   ;;  %v1140_v10 = vld [vmem:[%s1757_s1 + $0xa0] ss:$16 sps:$4 sm:$0xff]   ;;  %893 = vmatprep.mubr.bf16.mxu1 %v995_v51  ;;  %v1229_v5 = vld [vmem:[%s1757_s1 + $0x2ec] ss:$16 sps:$4 sm:$0xff]  }
   0x6   :  { %v1138_v9 = vld [vmem:[%s1757_s1 + $0x2a4] ss:$16 sps:$4 sm:$0xff]   ;;  %v1141_v11 = vld [vmem:[%s1757_s1 + $0x2a0] ss:$16 sps:$4 sm:$0xff]  }
   0x7   :  { %823 = vmatpush1.bf16.msra.mxu0 %v1134_v6  ;;  %v1142_v12 = vld [vmem:[%s1757_s1 + $0x84] ss:$16 sps:$4 sm:$0xff]   ;;  %v1146_v14 = vld [vmem:[%s1757_s1 + $0x80] ss:$16 sps:$4 sm:$0xff]  }
   0x8   :  { %864 = vmatpush1.bf16.msra.mxu1 %v1135_v7  ;;  %824 = vmatprep.subr.bf16.mxu0 %v1136_v8  ;;  %v1144_v13 = vld [vmem:[%s1757_s1 + $0x284] ss:$16 sps:$4 sm:$0xff]   ;;  %v1147_v15 = vld [vmem:[%s1757_s1 + $0x280] ss:$16 sps:$4 sm:$0xff]   ;;  %v1549_v7 = vcombine.low %v15_v48, %v15_v48  ;;  %v1224_v8 = vld [vmem:[%s1757_s1 + $0xe8] ss:$16 sps:$4 sm:$0xff]  }
   0x9   :  { %865 = vmatprep.subr.bf16.mxu1 %v1138_v9  ;;  %v1148_v16 = vld [vmem:[%s1757_s1 + $0x64] ss:$16 sps:$4 sm:$0xff]   ;;  %v1152_v18 = vld [vmem:[%s1757_s1 + $0x60] ss:$16 sps:$4 sm:$0xff]   ;;  %v1227_v9 = vld [vmem:[%s1757_s1 + $0x2e8] ss:$16 sps:$4 sm:$0xff]  }
   0xa   :  { %v1150_v17 = vld [vmem:[%s1757_s1 + $0x264] ss:$16 sps:$4 sm:$0xff]   ;;  %v1153_v19 = vld [vmem:[%s1757_s1 + $0x260] ss:$16 sps:$4 sm:$0xff]   ;;  %v1284_v48 = vld [vmem:[%s1757_s1 + $0x1a8] ss:$16 sps:$4 sm:$0xff]  }
   0xb   :  { %825 = vmatpush1.bf16.msra.mxu0 %v1140_v10  ;;  %v1154_v20 = vld [vmem:[%s1757_s1 + $0x44] ss:$16 sps:$4 sm:$0xff]   ;;  %v1158_v22 = vld [vmem:[%s1757_s1 + $0x40] ss:$16 sps:$4 sm:$0xff]   ;;  %v1232_v10 = vld [vmem:[%s1757_s1 + $0xcc] ss:$16 sps:$4 sm:$0xff]  }
   0xc   :  { %866 = vmatpush1.bf16.msra.mxu1 %v1141_v11  ;;  %826 = vmatprep.subr.bf16.mxu0 %v1142_v12  ;;  %v1156_v21 = vld [vmem:[%s1757_s1 + $0x244] ss:$16 sps:$4 sm:$0xff]   ;;  %v1159_v23 = vld [vmem:[%s1757_s1 + $0x240] ss:$16 sps:$4 sm:$0xff]   ;;  %v1235_v11 = vld [vmem:[%s1757_s1 + $0x2cc] ss:$16 sps:$4 sm:$0xff]  }
   0xd   :  { %867 = vmatprep.subr.bf16.mxu1 %v1144_v13  ;;  %v1160_v24 = vld [vmem:[%s1757_s1 + $0x24] ss:$16 sps:$4 sm:$0xff]   ;;  %v1164_v26 = vld [vmem:[%s1757_s1 + $0x20] ss:$16 sps:$4 sm:$0xff]   ;;  %v1230_v12 = vld [vmem:[%s1757_s1 + $0xc8] ss:$16 sps:$4 sm:$0xff]  }
   0xe   :  { %v1162_v25 = vld [vmem:[%s1757_s1 + $0x224] ss:$16 sps:$4 sm:$0xff]   ;;  %v1165_v27 = vld [vmem:[%s1757_s1 + $0x220] ss:$16 sps:$4 sm:$0xff]   ;;  %v1233_v13 = vld [vmem:[%s1757_s1 + $0x2c8] ss:$16 sps:$4 sm:$0xff]  }
   0xf   :  { %827 = vmatpush1.bf16.msra.mxu0 %v1146_v14  ;;  %v1166_v28 = vld [vmem:[%s1757_s1 + $0x4] ss:$16 sps:$4 sm:$0xff]   ;;  %v1170_v30 = vld [vmem:[%s1757_s1] ss:$16 sps:$4 sm:$0xff]   ;;  %v1238_v14 = vld [vmem:[%s1757_s1 + $0xac] ss:$16 sps:$4 sm:$0xff]  }
  0x10   :  { %868 = vmatpush1.bf16.msra.mxu1 %v1147_v15  ;;  %828 = vmatprep.subr.bf16.mxu0 %v1148_v16  ;;  %v1168_v29 = vld [vmem:[%s1757_s1 + $0x204] ss:$16 sps:$4 sm:$0xff]   ;;  %v1171_v31 = vld [vmem:[%s1757_s1 + $0x200] ss:$16 sps:$4 sm:$0xff]   ;;  %v1241_v15 = vld [vmem:[%s1757_s1 + $0x2ac] ss:$16 sps:$4 sm:$0xff]  }
  0x11   :  { %869 = vmatprep.subr.bf16.mxu1 %v1150_v17  ;;  %v1172_v32 = vld [vmem:[%s1757_s1 + $0x1e4] ss:$16 sps:$4 sm:$0xff]   ;;  %v1176_v34 = vld [vmem:[%s1757_s1 + $0x1e0] ss:$16 sps:$4 sm:$0xff]   ;;  %v1236_v16 = vld [vmem:[%s1757_s1 + $0xa8] ss:$16 sps:$4 sm:$0xff]  }
  0x12   :  { %v1174_v33 = vld [vmem:[%s1757_s1 + $0x3e4] ss:$16 sps:$4 sm:$0xff]   ;;  %v1177_v35 = vld [vmem:[%s1757_s1 + $0x3e0] ss:$16 sps:$4 sm:$0xff]   ;;  %v1239_v17 = vld [vmem:[%s1757_s1 + $0x2a8] ss:$16 sps:$4 sm:$0xff]  }
  0x13   :  { %829 = vmatpush1.bf16.msra.mxu0 %v1152_v18  ;;  %v1178_v36 = vld [vmem:[%s1757_s1 + $0x1c4] ss:$16 sps:$4 sm:$0xff]   ;;  %v1182_v38 = vld [vmem:[%s1757_s1 + $0x1c0] ss:$16 sps:$4 sm:$0xff]   ;;  %v1244_v18 = vld [vmem:[%s1757_s1 + $0x8c] ss:$16 sps:$4 sm:$0xff]  }
  0x14   :  { %870 = vmatpush1.bf16.msra.mxu1 %v1153_v19  ;;  %830 = vmatprep.subr.bf16.mxu0 %v1154_v20  ;;  %v1180_v37 = vld [vmem:[%s1757_s1 + $0x3c4] ss:$16 sps:$4 sm:$0xff]   ;;  %v1183_v39 = vld [vmem:[%s1757_s1 + $0x3c0] ss:$16 sps:$4 sm:$0xff]   ;;  %v1247_v19 = vld [vmem:[%s1757_s1 + $0x28c] ss:$16 sps:$4 sm:$0xff]  }
  0x15   :  { %871 = vmatprep.subr.bf16.mxu1 %v1156_v21  ;;  %v1184_v40 = vld [vmem:[%s1757_s1 + $0x1a4] ss:$16 sps:$4 sm:$0xff]   ;;  %v1188_v42 = vld [vmem:[%s1757_s1 + $0x1a0] ss:$16 sps:$4 sm:$0xff]   ;;  %v1242_v20 = vld [vmem:[%s1757_s1 + $0x88] ss:$16 sps:$4 sm:$0xff]  }
  0x16   :  { %v1186_v41 = vld [vmem:[%s1757_s1 + $0x3a4] ss:$16 sps:$4 sm:$0xff]   ;;  %v1189_v43 = vld [vmem:[%s1757_s1 + $0x3a0] ss:$16 sps:$4 sm:$0xff]   ;;  %v1245_v21 = vld [vmem:[%s1757_s1 + $0x288] ss:$16 sps:$4 sm:$0xff]  }
  0x17   :  { %831 = vmatpush1.bf16.msra.mxu0 %v1158_v22  ;;  %v1190_v44 = vld [vmem:[%s1757_s1 + $0x184] ss:$16 sps:$4 sm:$0xff]   ;;  %v1194_v49 = vld [vmem:[%s1757_s1 + $0x180] ss:$16 sps:$4 sm:$0xff]   ;;  %v1250_v22 = vld [vmem:[%s1757_s1 + $0x6c] ss:$16 sps:$4 sm:$0xff]  }
  0x18   :  { %872 = vmatpush1.bf16.msra.mxu1 %v1159_v23  ;;  %832 = vmatprep.subr.bf16.mxu0 %v1160_v24  ;;  %v1192_v45 = vld [vmem:[%s1757_s1 + $0x384] ss:$16 sps:$4 sm:$0xff]   ;;  %v1195_v50 = vld [vmem:[%s1757_s1 + $0x380] ss:$16 sps:$4 sm:$0xff]   ;;  %v1253_v23 = vld [vmem:[%s1757_s1 + $0x26c] ss:$16 sps:$4 sm:$0xff]  }
  0x19   :  { %873 = vmatprep.subr.bf16.mxu1 %v1162_v25  ;;  %v14_v46 = vld [vmem:[%s1758_s0] sm:$0xff]  ;;  %v1248_v24 = vld [vmem:[%s1757_s1 + $0x68] ss:$16 sps:$4 sm:$0xff]  }
  0x1a   :  { %v1481_v47 = vcombine.high %v14_v46, %v14_v46  ;;  %v1196_v52 = vld [vmem:[%s1757_s1 + $0x164] ss:$16 sps:$4 sm:$0xff]   ;;  %v1200_v54 = vld [vmem:[%s1757_s1 + $0x160] ss:$16 sps:$4 sm:$0xff]   ;;  %v1547_v6 = vcombine.low %v14_v46, %v14_v46  ;;  %v1251_v25 = vld [vmem:[%s1757_s1 + $0x268] ss:$16 sps:$4 sm:$0xff]  }
  0x1b   :  { %833 = vmatpush1.bf16.msra.mxu0 %v1164_v26  ;;  %v1198_v53 = vld [vmem:[%s1757_s1 + $0x364] ss:$16 sps:$4 sm:$0xff]   ;;  %v1201_v55 = vld [vmem:[%s1757_s1 + $0x360] ss:$16 sps:$4 sm:$0xff]   ;;  %v1256_v26 = vld [vmem:[%s1757_s1 + $0x4c] ss:$16 sps:$4 sm:$0xff]  }
  0x1c   :  { %874 = vmatpush1.bf16.msra.mxu1 %v1165_v27  ;;  %834 = vmatprep.subr.bf16.mxu0 %v1166_v28  ;;  %v1202_v56 = vld [vmem:[%s1757_s1 + $0x144] ss:$16 sps:$4 sm:$0xff]   ;;  %v1206_v58 = vld [vmem:[%s1757_s1 + $0x140] ss:$16 sps:$4 sm:$0xff]   ;;  %v1259_v27 = vld [vmem:[%s1757_s1 + $0x24c] ss:$16 sps:$4 sm:$0xff]  }
  0x1d   :  { %875 = vmatprep.subr.bf16.mxu1 %v1168_v29  ;;  %852 = vmatprep.mubr.bf16.mxu0 %v1481_v47  ;;  %v1204_v57 = vld [vmem:[%s1757_s1 + $0x344] ss:$16 sps:$4 sm:$0xff]   ;;  %v1207_v59 = vld [vmem:[%s1757_s1 + $0x340] ss:$16 sps:$4 sm:$0xff]   ;;  %v1254_v28 = vld [vmem:[%s1757_s1 + $0x48] ss:$16 sps:$4 sm:$0xff]  }
  0x1e   :  { %v1208_v60 = vld [vmem:[%s1757_s1 + $0x124] ss:$16 sps:$4 sm:$0xff]   ;;  %v1212_v62 = vld [vmem:[%s1757_s1 + $0x120] ss:$16 sps:$4 sm:$0xff]   ;;  %v1257_v29 = vld [vmem:[%s1757_s1 + $0x248] ss:$16 sps:$4 sm:$0xff]  }
  0x1f   :  { %835 = vmatpush1.bf16.msra.mxu0 %v1170_v30  ;;  %v1210_v61 = vld [vmem:[%s1757_s1 + $0x324] ss:$16 sps:$4 sm:$0xff]   ;;  %v1213_v63 = vld [vmem:[%s1757_s1 + $0x320] ss:$16 sps:$4 sm:$0xff]   ;;  %v1262_v30 = vld [vmem:[%s1757_s1 + $0x2c] ss:$16 sps:$4 sm:$0xff]  }
  0x20   :  { %876 = vmatpush1.bf16.msra.mxu1 %v1171_v31  ;;  %836 = vmatprep.subr.bf16.mxu0 %v1172_v32  ;;  %v1214_v0 = vld [vmem:[%s1757_s1 + $0x104] ss:$16 sps:$4 sm:$0xff]   ;;  %v1218_v2 = vld [vmem:[%s1757_s1 + $0x100] ss:$16 sps:$4 sm:$0xff]   ;;  %v1265_v31 = vld [vmem:[%s1757_s1 + $0x22c] ss:$16 sps:$4 sm:$0xff]  }
  0x21   :  { %877 = vmatprep.subr.bf16.mxu1 %v1174_v33  ;;  %v1216_v1 = vld [vmem:[%s1757_s1 + $0x304] ss:$16 sps:$4 sm:$0xff]   ;;  %v1219_v3 = vld [vmem:[%s1757_s1 + $0x300] ss:$16 sps:$4 sm:$0xff]   ;;  %v1260_v32 = vld [vmem:[%s1757_s1 + $0x28] ss:$16 sps:$4 sm:$0xff]  }
  0x22   :  { %v1263_v33 = vld [vmem:[%s1757_s1 + $0x228] ss:$16 sps:$4 sm:$0xff]   ;;  %v1286_v46 = vld [vmem:[%s1757_s1 + $0x1ac] ss:$16 sps:$4 sm:$0xff]  }
  0x23   :  { %837 = vmatpush2.bf16.msra.mxu0 %v1176_v34  ;;  %v1268_v34 = vld [vmem:[%s1757_s1 + $0xc] ss:$16 sps:$4 sm:$0xff]  }
  0x24   :  { %878 = vmatpush2.bf16.msra.mxu1 %v1177_v35  ;;  %838 = vmatprep.subr.bf16.mxu0 %v1178_v36  ;;  %v1271_v35 = vld [vmem:[%s1757_s1 + $0x20c] ss:$16 sps:$4 sm:$0xff]   ;;  %v1266_v36 = vld [vmem:[%s1757_s1 + $0x8] ss:$16 sps:$4 sm:$0xff]  }
  0x25   :  { %879 = vmatprep.subr.bf16.mxu1 %v1180_v37  ;;  %v1269_v37 = vld [vmem:[%s1757_s1 + $0x208] ss:$16 sps:$4 sm:$0xff]  }
  0x27   :  { %839 = vmatpush2.bf16.msra.mxu0 %v1182_v38  ;;  %v1274_v38 = vld [vmem:[%s1757_s1 + $0x1ec] ss:$16 sps:$4 sm:$0xff]  }
  0x28   :  { %880 = vmatpush2.bf16.msra.mxu1 %v1183_v39  ;;  %840 = vmatprep.subr.bf16.mxu0 %v1184_v40  ;;  %v1277_v39 = vld [vmem:[%s1757_s1 + $0x3ec] ss:$16 sps:$4 sm:$0xff]   ;;  %v1272_v40 = vld [vmem:[%s1757_s1 + $0x1e8] ss:$16 sps:$4 sm:$0xff]  }
  0x29   :  { %881 = vmatprep.subr.bf16.mxu1 %v1186_v41  ;;  %v1275_v41 = vld [vmem:[%s1757_s1 + $0x3e8] ss:$16 sps:$4 sm:$0xff]  }
  0x2b   :  { %841 = vmatpush2.bf16.msra.mxu0 %v1188_v42  ;;  %v1280_v42 = vld [vmem:[%s1757_s1 + $0x1cc] ss:$16 sps:$4 sm:$0xff]  }
  0x2c   :  { %882 = vmatpush2.bf16.msra.mxu1 %v1189_v43  ;;  %842 = vmatprep.subr.bf16.mxu0 %v1190_v44  ;;  %v1283_v43 = vld [vmem:[%s1757_s1 + $0x3cc] ss:$16 sps:$4 sm:$0xff]   ;;  %v1278_v44 = vld [vmem:[%s1757_s1 + $0x1c8] ss:$16 sps:$4 sm:$0xff]  }
  0x2d   :  { %883 = vmatprep.subr.bf16.mxu1 %v1192_v45  ;;  %v1281_v45 = vld [vmem:[%s1757_s1 + $0x3c8] ss:$16 sps:$4 sm:$0xff]  }
  0x2f   :  { %843 = vmatpush2.bf16.msra.mxu0 %v1194_v49  ;;  %v1287_v49 = vld [vmem:[%s1757_s1 + $0x3a8] ss:$16 sps:$4 sm:$0xff]  }
  0x30   :  { %884 = vmatpush2.bf16.msra.mxu1 %v1195_v50  ;;  %844 = vmatprep.subr.bf16.mxu0 %v1196_v52  ;;  %v1292_v50 = vld [vmem:[%s1757_s1 + $0x18c] ss:$16 sps:$4 sm:$0xff]   ;;  %v1290_v52 = vld [vmem:[%s1757_s1 + $0x188] ss:$16 sps:$4 sm:$0xff]  }
  0x31   :  { %885 = vmatprep.subr.bf16.mxu1 %v1198_v53  ;;  %v1293_v53 = vld [vmem:[%s1757_s1 + $0x388] ss:$16 sps:$4 sm:$0xff]  }
  0x33   :  { %845 = vmatpush2.bf16.msra.mxu0 %v1200_v54  ;;  %v1298_v54 = vld [vmem:[%s1757_s1 + $0x16c] ss:$16 sps:$4 sm:$0xff]  }
  0x34   :  { %886 = vmatpush2.bf16.msra.mxu1 %v1201_v55  ;;  %846 = vmatprep.subr.bf16.mxu0 %v1202_v56  ;;  %v1301_v55 = vld [vmem:[%s1757_s1 + $0x36c] ss:$16 sps:$4 sm:$0xff]   ;;  %v1296_v56 = vld [vmem:[%s1757_s1 + $0x168] ss:$16 sps:$4 sm:$0xff]  }
  0x35   :  { %887 = vmatprep.subr.bf16.mxu1 %v1204_v57  ;;  %v1299_v57 = vld [vmem:[%s1757_s1 + $0x368] ss:$16 sps:$4 sm:$0xff]  }
  0x37   :  { %847 = vmatpush2.bf16.msra.mxu0 %v1206_v58  ;;  %v1304_v58 = vld [vmem:[%s1757_s1 + $0x14c] ss:$16 sps:$4 sm:$0xff]  }
  0x38   :  { %888 = vmatpush2.bf16.msra.mxu1 %v1207_v59  ;;  %848 = vmatprep.subr.bf16.mxu0 %v1208_v60  ;;  %v1307_v59 = vld [vmem:[%s1757_s1 + $0x34c] ss:$16 sps:$4 sm:$0xff]   ;;  %v1302_v60 = vld [vmem:[%s1757_s1 + $0x148] ss:$16 sps:$4 sm:$0xff]  }
  0x39   :  { %889 = vmatprep.subr.bf16.mxu1 %v1210_v61  ;;  %v1305_v61 = vld [vmem:[%s1757_s1 + $0x348] ss:$16 sps:$4 sm:$0xff]  }
  0x3b   :  { %849 = vmatpush2.bf16.msra.mxu0 %v1212_v62  ;;  %v1310_v62 = vld [vmem:[%s1757_s1 + $0x12c] ss:$16 sps:$4 sm:$0xff]  }
  0x3c   :  { %890 = vmatpush2.bf16.msra.mxu1 %v1213_v63  ;;  %850 = vmatprep.subr.bf16.mxu0 %v1214_v0  ;;  %v1313_v63 = vld [vmem:[%s1757_s1 + $0x32c] ss:$16 sps:$4 sm:$0xff]   ;;  %v1308_v0 = vld [vmem:[%s1757_s1 + $0x128] ss:$16 sps:$4 sm:$0xff]  }
  0x3d   :  { %891 = vmatprep.subr.bf16.mxu1 %v1216_v1  ;;  %v1311_v1 = vld [vmem:[%s1757_s1 + $0x328] ss:$16 sps:$4 sm:$0xff]  }
  0x3f   :  { %851 = vmatpush2.bf16.msra.mxu0 %v1218_v2  ;;  %v1316_v2 = vld [vmem:[%s1757_s1 + $0x10c] ss:$16 sps:$4 sm:$0xff]  }
  0x40   :  { %892 = vmatpush2.bf16.msra.mxu1 %v1219_v3  ;;  %902 = vmatprep.subr.bf16.mxu0 %v1226_v4  ;;  %v1319_v3 = vld [vmem:[%s1757_s1 + $0x30c] ss:$16 sps:$4 sm:$0xff]   ;;  %v1314_v4 = vld [vmem:[%s1757_s1 + $0x108] ss:$16 sps:$4 sm:$0xff]  }
  0x41   :  { %943 = vmatprep.subr.bf16.mxu1 %v1229_v5  ;;  %v1317_v5 = vld [vmem:[%s1757_s1 + $0x308] ss:$16 sps:$4 sm:$0xff]  }
  0x42   :  { %853 = vmatmul.mubr.bf16.vlgmr.msra.gmra.mxu0 %v1547_v6 }
  0x43   :  { %894 = vmatmul.mubr.bf16.vlgmr.msra.gmra.mxu1 %v1549_v7  ;;  %903 = vmatpush1.bf16.msra.mxu0 %v1224_v8  ;;  %v146_v8 = vlaneseq }
  0x44   :  { %944 = vmatpush1.bf16.msra.mxu1 %v1227_v9  ;;  %904 = vmatprep.subr.bf16.mxu0 %v1232_v10 }
  0x45   :  { %945 = vmatprep.subr.bf16.mxu1 %v1235_v11  ;;  %934 = vmatprep.mubr.bf16.mxu0 %v1481_v47  ;;  %v1289_v47 = vld [vmem:[%s1757_s1 + $0x3ac] ss:$16 sps:$4 sm:$0xff]   ;;  %v147_v9 = vshrl.u32 %v146_v8, 7  ;;  %v144_v11 = vld [vmem:[%s1759_s2] sm:$0xf] }
  0x46   :  { %975 = vmatprep.mubr.bf16.mxu1 %v995_v51  ;;  %v1295_v51 = vld [vmem:[%s1757_s1 + $0x38c] ss:$16 sps:$4 sm:$0xff]  }
  0x47   :  { %905 = vmatpush1.bf16.msra.mxu0 %v1230_v12  ;;  %v148_v10 = vsub.s32 0, %v147_v9  ;;  %v152_v12 = vsub.s32 1, %v147_v9 }
  0x48   :  { %946 = vmatpush1.bf16.msra.mxu1 %v1233_v13  ;;  %906 = vmatprep.subr.bf16.mxu0 %v1238_v14 }
  0x49   :  { %947 = vmatprep.subr.bf16.mxu1 %v1241_v15  ;;  %v149_v13 = vrot.slane %v144_v11, %v148_v10  ;;  %v153_v14 = vrot.slane %v144_v11, %v152_v12 }
  0x4b   :  { %907 = vmatpush1.bf16.msra.mxu0 %v1236_v16 }
  0x4c   :  { %948 = vmatpush1.bf16.msra.mxu1 %v1239_v17  ;;  %908 = vmatprep.subr.bf16.mxu0 %v1244_v18 }
  0x4d   :  { %949 = vmatprep.subr.bf16.mxu1 %v1247_v19 }
  0x4f   :  { %909 = vmatpush1.bf16.msra.mxu0 %v1242_v20 }
  0x50   :  { %950 = vmatpush1.bf16.msra.mxu1 %v1245_v21  ;;  %910 = vmatprep.subr.bf16.mxu0 %v1250_v22 }
  0x51   :  { %951 = vmatprep.subr.bf16.mxu1 %v1253_v23 }
  0x53   :  { %911 = vmatpush1.bf16.msra.mxu0 %v1248_v24 }
  0x54   :  { %952 = vmatpush1.bf16.msra.mxu1 %v1251_v25  ;;  %912 = vmatprep.subr.bf16.mxu0 %v1256_v26  ;;  %v156_v25 = vsub.s32 2, %v147_v9  ;;  %v160_v26 = vsub.s32 3, %v147_v9 }
  0x55   :  { %953 = vmatprep.subr.bf16.mxu1 %v1259_v27 }
  0x56   :  { %v157_v27 = vrot.slane %v144_v11, %v156_v25 }
  0x57   :  { %913 = vmatpush1.bf16.msra.mxu0 %v1254_v28  ;;  %v161_v28 = vrot.slane %v144_v11, %v160_v26 }
  0x58   :  { %954 = vmatpush1.bf16.msra.mxu1 %v1257_v29  ;;  %914 = vmatprep.subr.bf16.mxu0 %v1262_v30 }
  0x59   :  { %955 = vmatprep.subr.bf16.mxu1 %v1265_v31 }
  0x5b   :  { %915 = vmatpush1.bf16.msra.mxu0 %v1260_v32 }
  0x5c   :  { %956 = vmatpush1.bf16.msra.mxu1 %v1263_v33  ;;  %916 = vmatprep.subr.bf16.mxu0 %v1268_v34 }
  0x5d   :  { %957 = vmatprep.subr.bf16.mxu1 %v1271_v35 }
  0x5f   :  { %917 = vmatpush1.bf16.msra.mxu0 %v1266_v36 }
  0x60   :  { %958 = vmatpush1.bf16.msra.mxu1 %v1269_v37  ;;  %918 = vmatprep.subr.bf16.mxu0 %v1274_v38 }
  0x61   :  { %959 = vmatprep.subr.bf16.mxu1 %v1277_v39 }
  0x63   :  { %919 = vmatpush2.bf16.msra.mxu0 %v1272_v40 }
  0x64   :  { %960 = vmatpush2.bf16.msra.mxu1 %v1275_v41  ;;  %920 = vmatprep.subr.bf16.mxu0 %v1280_v42 }
  0x65   :  { %961 = vmatprep.subr.bf16.mxu1 %v1283_v43 }
  0x67   :  { %921 = vmatpush2.bf16.msra.mxu0 %v1278_v44 }
  0x68   :  { %962 = vmatpush2.bf16.msra.mxu1 %v1281_v45  ;;  %922 = vmatprep.subr.bf16.mxu0 %v1286_v46 }
  0x69   :  { %963 = vmatprep.subr.bf16.mxu1 %v1289_v47 }
  0x6b   :  { %923 = vmatpush2.bf16.msra.mxu0 %v1284_v48 }
  0x6c   :  { %964 = vmatpush2.bf16.msra.mxu1 %v1287_v49  ;;  %924 = vmatprep.subr.bf16.mxu0 %v1292_v50 }
  0x6d   :  { %965 = vmatprep.subr.bf16.mxu1 %v1295_v51 }
  0x6f   :  { %925 = vmatpush2.bf16.msra.mxu0 %v1290_v52 }
  0x70   :  { %966 = vmatpush2.bf16.msra.mxu1 %v1293_v53  ;;  %926 = vmatprep.subr.bf16.mxu0 %v1298_v54 }
  0x71   :  { %967 = vmatprep.subr.bf16.mxu1 %v1301_v55 }
  0x73   :  { %927 = vmatpush2.bf16.msra.mxu0 %v1296_v56 }
  0x74   :  { %968 = vmatpush2.bf16.msra.mxu1 %v1299_v57  ;;  %928 = vmatprep.subr.bf16.mxu0 %v1304_v58 }
  0x75   :  { %969 = vmatprep.subr.bf16.mxu1 %v1307_v59 }
  0x77   :  { %929 = vmatpush2.bf16.msra.mxu0 %v1302_v60 }
  0x78   :  { %970 = vmatpush2.bf16.msra.mxu1 %v1305_v61  ;;  %930 = vmatprep.subr.bf16.mxu0 %v1310_v62 }
  0x79   :  { %971 = vmatprep.subr.bf16.mxu1 %v1313_v63 }
  0x7b   :  { %931 = vmatpush2.bf16.msra.mxu0 %v1308_v0 }
  0x7c   :  { %972 = vmatpush2.bf16.msra.mxu1 %v1311_v1  ;;  %932 = vmatprep.subr.bf16.mxu0 %v1316_v2 }
  0x7d   :  { %973 = vmatprep.subr.bf16.mxu1 %v1319_v3 }
  0x7f   :  { %933 = vmatpush2.bf16.msra.mxu0 %v1314_v4 }
  0x80   :  { %974 = vmatpush2.bf16.msra.mxu1 %v1317_v5 }
  0x82   :  { %935 = vmatmul.mubr.bf16.vlgmr.msra.gmra.mxu0 %v1547_v6 }
  0x83   :  { %976 = vmatmul.mubr.bf16.vlgmr.msra.gmra.mxu1 %v1549_v7 }
 0x102   :  { %v854_v15 = vpop.f32.mrf.mxu0 }
 0x103   :  { %v895_v16 = vpop.f32.mrf.mxu1  ;;  %v855_v17 = vadd.f32 %v854_v15, %v149_v13 }
 0x104   :  { %v856_v18 = vpop.f32.mrf.mxu0 }
 0x105   :  { %v897_v19 = vpop.f32.mrf.mxu1  ;;  %v896_v20 = vadd.f32 %v895_v16, %v855_v17  ;;  %v857_v21 = vadd.f32 %v856_v18, %v153_v14 }
 0x106   :  { %v858_v6 = vpop.f32.mrf.mxu0 }
 0x107   :  { %v899_v22 = vpop.f32.mrf.mxu1  ;;  %984 = vst [vmem:[%s1760_s3] sm:$0xff] %v896_v20  ;;  %v898_v7 = vadd.f32 %v897_v19, %v857_v21 }
 0x108   :  { %v859_v23 = vpop.f32.mrf.mxu0 }
 0x109   :  { %v900_v24 = vpop.f32.mrf.mxu1  ;;  %985 = vst [vmem:[%s1760_s3 + $0x8] sm:$0xff] %v898_v7 }
 0x142   :  { %v936_v29 = vpop.f32.mrf.mxu0 }
 0x143   :  { %v977_v30 = vpop.f32.mrf.mxu1  ;;  %v937_v31 = vadd.f32 %v936_v29, %v157_v27 }
 0x144   :  { %v938_v32 = vpop.f32.mrf.mxu0 }
 0x145   :  { %v979_v33 = vpop.f32.mrf.mxu1  ;;  %v978_v34 = vadd.f32 %v977_v30, %v937_v31  ;;  %v939_v35 = vadd.f32 %v938_v32, %v161_v28 }
 0x146   :  { %v940_v36 = vpop.f32.mrf.mxu0 }
 0x147   :  { %v981_v37 = vpop.f32.mrf.mxu1  ;;  %986 = vst [vmem:[%s1760_s3 + $0x10] sm:$0xff] %v978_v34  ;;  %v980_v38 = vadd.f32 %v979_v33, %v939_v35 }
 0x148   :  { %v941_v39 = vpop.f32.mrf.mxu0 }
 0x149   :  { %v982_v40 = vpop.f32.mrf.mxu1  ;;  %987 = vst [vmem:[%s1760_s3 + $0x18] sm:$0xff] %v980_v38 }

// kernel: vqcae_forward.19
= control target key start
LH: loop header
LB: loop body
LE: loop exit
PB: predicated region body
PF: predicated region fallthrough
CT: control target
= control target key end

     0   :  { %s1995_s1 = inlined_call_operand.vmem [shape: bf16[512,512], index: 1, kind: input, shape index: {}]   ;;  %s1996_s0 = inlined_call_operand.vmem [shape: bf16[32,512], index: 0, kind: input, shape index: {}]   ;;  %s1997_s2 = inlined_call_operand.vmem [shape: f32[1,512], index: 2, kind: input, shape index: {}]   ;;  %s1998_s3 = inlined_call_operand.vmem [shape: bf16[32,512], index: 3, kind: output, shape index: {}]  }
   0x1   :  { %v1292_v0 = vld [vmem:[%s1995_s1 + $0xe4] ss:$16 sps:$4 sm:$0xff]   ;;  %v1296_v2 = vld [vmem:[%s1995_s1 + $0xe0] ss:$16 sps:$4 sm:$0xff]   ;;  %v1674_v51 = vld [vmem:[%s1996_s0 + $0xc] ss:$16 sps:$4 sm:$0xff]  }
   0x2   :  { %v1294_v1 = vld [vmem:[%s1995_s1 + $0x2e4] ss:$16 sps:$4 sm:$0xff]   ;;  %852 = vmatprep.subr.bf16.mxu0 %v1292_v0  ;;  %v1297_v3 = vld [vmem:[%s1995_s1 + $0x2e0] ss:$16 sps:$4 sm:$0xff]   ;;  %937 = vmatprep.mubr.bf16.mxu1 %v1674_v51 }
   0x3   :  { %905 = vmatprep.subr.bf16.mxu1 %v1294_v1  ;;  %v1298_v4 = vld [vmem:[%s1995_s1 + $0xc4] ss:$16 sps:$4 sm:$0xff]   ;;  %853 = vmatpush1.bf16.msra.mxu0 %v1296_v2  ;;  %v1302_v6 = vld [vmem:[%s1995_s1 + $0xc0] ss:$16 sps:$4 sm:$0xff]   ;;  %v1396_v2 = vld [vmem:[%s1995_s1 + $0xec] ss:$16 sps:$4 sm:$0xff]  }
   0x4   :  { %906 = vmatpush1.bf16.msra.mxu1 %v1297_v3  ;;  %v1300_v5 = vld [vmem:[%s1995_s1 + $0x2c4] ss:$16 sps:$4 sm:$0xff]   ;;  %854 = vmatprep.subr.bf16.mxu0 %v1298_v4  ;;  %v1303_v7 = vld [vmem:[%s1995_s1 + $0x2c0] ss:$16 sps:$4 sm:$0xff]   ;;  %v1399_v3 = vld [vmem:[%s1995_s1 + $0x2ec] ss:$16 sps:$4 sm:$0xff]  }
   0x5   :  { %907 = vmatprep.subr.bf16.mxu1 %v1300_v5  ;;  %v1304_v8 = vld [vmem:[%s1995_s1 + $0xa4] ss:$16 sps:$4 sm:$0xff]   ;;  %v1308_v10 = vld [vmem:[%s1995_s1 + $0xa0] ss:$16 sps:$4 sm:$0xff]   ;;  %v1734_v5 = vld [vmem:[%s1996_s0 + $0x8] ss:$16 sps:$4 sm:$0xff]  }
   0x6   :  { %v1306_v9 = vld [vmem:[%s1995_s1 + $0x2a4] ss:$16 sps:$4 sm:$0xff]   ;;  %v1309_v11 = vld [vmem:[%s1995_s1 + $0x2a0] ss:$16 sps:$4 sm:$0xff]  }
   0x7   :  { %855 = vmatpush1.bf16.msra.mxu0 %v1302_v6  ;;  %v1310_v12 = vld [vmem:[%s1995_s1 + $0x84] ss:$16 sps:$4 sm:$0xff]   ;;  %v1314_v14 = vld [vmem:[%s1995_s1 + $0x80] ss:$16 sps:$4 sm:$0xff]   ;;  %v1394_v6 = vld [vmem:[%s1995_s1 + $0xe8] ss:$16 sps:$4 sm:$0xff]  }
   0x8   :  { %908 = vmatpush1.bf16.msra.mxu1 %v1303_v7  ;;  %856 = vmatprep.subr.bf16.mxu0 %v1304_v8  ;;  %v1312_v13 = vld [vmem:[%s1995_s1 + $0x284] ss:$16 sps:$4 sm:$0xff]   ;;  %v1315_v15 = vld [vmem:[%s1995_s1 + $0x280] ss:$16 sps:$4 sm:$0xff]   ;;  %v1397_v7 = vld [vmem:[%s1995_s1 + $0x2e8] ss:$16 sps:$4 sm:$0xff]  }
   0x9   :  { %909 = vmatprep.subr.bf16.mxu1 %v1306_v9  ;;  %v1316_v16 = vld [vmem:[%s1995_s1 + $0x64] ss:$16 sps:$4 sm:$0xff]   ;;  %v1320_v18 = vld [vmem:[%s1995_s1 + $0x60] ss:$16 sps:$4 sm:$0xff]   ;;  %v1402_v8 = vld [vmem:[%s1995_s1 + $0xcc] ss:$16 sps:$4 sm:$0xff]  }
   0xa   :  { %v1318_v17 = vld [vmem:[%s1995_s1 + $0x264] ss:$16 sps:$4 sm:$0xff]   ;;  %v1321_v19 = vld [vmem:[%s1995_s1 + $0x260] ss:$16 sps:$4 sm:$0xff]   ;;  %v1405_v9 = vld [vmem:[%s1995_s1 + $0x2cc] ss:$16 sps:$4 sm:$0xff]  }
   0xb   :  { %857 = vmatpush1.bf16.msra.mxu0 %v1308_v10  ;;  %v1322_v20 = vld [vmem:[%s1995_s1 + $0x44] ss:$16 sps:$4 sm:$0xff]   ;;  %v1326_v22 = vld [vmem:[%s1995_s1 + $0x40] ss:$16 sps:$4 sm:$0xff]   ;;  %v1400_v10 = vld [vmem:[%s1995_s1 + $0xc8] ss:$16 sps:$4 sm:$0xff]  }
   0xc   :  { %910 = vmatpush1.bf16.msra.mxu1 %v1309_v11  ;;  %858 = vmatprep.subr.bf16.mxu0 %v1310_v12  ;;  %v1324_v21 = vld [vmem:[%s1995_s1 + $0x244] ss:$16 sps:$4 sm:$0xff]   ;;  %v1327_v23 = vld [vmem:[%s1995_s1 + $0x240] ss:$16 sps:$4 sm:$0xff]   ;;  %v1403_v11 = vld [vmem:[%s1995_s1 + $0x2c8] ss:$16 sps:$4 sm:$0xff]  }
   0xd   :  { %911 = vmatprep.subr.bf16.mxu1 %v1312_v13  ;;  %v1328_v24 = vld [vmem:[%s1995_s1 + $0x24] ss:$16 sps:$4 sm:$0xff]   ;;  %v1332_v26 = vld [vmem:[%s1995_s1 + $0x20] ss:$16 sps:$4 sm:$0xff]   ;;  %v1408_v12 = vld [vmem:[%s1995_s1 + $0xac] ss:$16 sps:$4 sm:$0xff]  }
   0xe   :  { %v1330_v25 = vld [vmem:[%s1995_s1 + $0x224] ss:$16 sps:$4 sm:$0xff]   ;;  %v1333_v27 = vld [vmem:[%s1995_s1 + $0x220] ss:$16 sps:$4 sm:$0xff]   ;;  %v1411_v13 = vld [vmem:[%s1995_s1 + $0x2ac] ss:$16 sps:$4 sm:$0xff]  }
   0xf   :  { %859 = vmatpush1.bf16.msra.mxu0 %v1314_v14  ;;  %v1334_v28 = vld [vmem:[%s1995_s1 + $0x4] ss:$16 sps:$4 sm:$0xff]   ;;  %v1338_v30 = vld [vmem:[%s1995_s1] ss:$16 sps:$4 sm:$0xff]   ;;  %v1406_v14 = vld [vmem:[%s1995_s1 + $0xa8] ss:$16 sps:$4 sm:$0xff]  }
  0x10   :  { %912 = vmatpush1.bf16.msra.mxu1 %v1315_v15  ;;  %860 = vmatprep.subr.bf16.mxu0 %v1316_v16  ;;  %v1336_v29 = vld [vmem:[%s1995_s1 + $0x204] ss:$16 sps:$4 sm:$0xff]   ;;  %v1339_v31 = vld [vmem:[%s1995_s1 + $0x200] ss:$16 sps:$4 sm:$0xff]   ;;  %v1409_v15 = vld [vmem:[%s1995_s1 + $0x2a8] ss:$16 sps:$4 sm:$0xff]  }
  0x11   :  { %913 = vmatprep.subr.bf16.mxu1 %v1318_v17  ;;  %v1340_v32 = vld [vmem:[%s1995_s1 + $0x1e4] ss:$16 sps:$4 sm:$0xff]   ;;  %v1344_v34 = vld [vmem:[%s1995_s1 + $0x1e0] ss:$16 sps:$4 sm:$0xff]   ;;  %v1414_v16 = vld [vmem:[%s1995_s1 + $0x8c] ss:$16 sps:$4 sm:$0xff]  }
  0x12   :  { %v1342_v33 = vld [vmem:[%s1995_s1 + $0x3e4] ss:$16 sps:$4 sm:$0xff]   ;;  %v1345_v35 = vld [vmem:[%s1995_s1 + $0x3e0] ss:$16 sps:$4 sm:$0xff]   ;;  %v1417_v17 = vld [vmem:[%s1995_s1 + $0x28c] ss:$16 sps:$4 sm:$0xff]  }
  0x13   :  { %861 = vmatpush1.bf16.msra.mxu0 %v1320_v18  ;;  %v1346_v36 = vld [vmem:[%s1995_s1 + $0x1c4] ss:$16 sps:$4 sm:$0xff]   ;;  %v1350_v38 = vld [vmem:[%s1995_s1 + $0x1c0] ss:$16 sps:$4 sm:$0xff]   ;;  %v1412_v18 = vld [vmem:[%s1995_s1 + $0x88] ss:$16 sps:$4 sm:$0xff]  }
  0x14   :  { %914 = vmatpush1.bf16.msra.mxu1 %v1321_v19  ;;  %862 = vmatprep.subr.bf16.mxu0 %v1322_v20  ;;  %v1348_v37 = vld [vmem:[%s1995_s1 + $0x3c4] ss:$16 sps:$4 sm:$0xff]   ;;  %v1351_v39 = vld [vmem:[%s1995_s1 + $0x3c0] ss:$16 sps:$4 sm:$0xff]   ;;  %v1415_v19 = vld [vmem:[%s1995_s1 + $0x288] ss:$16 sps:$4 sm:$0xff]  }
  0x15   :  { %915 = vmatprep.subr.bf16.mxu1 %v1324_v21  ;;  %v1352_v40 = vld [vmem:[%s1995_s1 + $0x1a4] ss:$16 sps:$4 sm:$0xff]   ;;  %v1356_v42 = vld [vmem:[%s1995_s1 + $0x1a0] ss:$16 sps:$4 sm:$0xff]   ;;  %v1420_v20 = vld [vmem:[%s1995_s1 + $0x6c] ss:$16 sps:$4 sm:$0xff]  }
  0x16   :  { %v1354_v41 = vld [vmem:[%s1995_s1 + $0x3a4] ss:$16 sps:$4 sm:$0xff]   ;;  %v1357_v43 = vld [vmem:[%s1995_s1 + $0x3a0] ss:$16 sps:$4 sm:$0xff]   ;;  %v1423_v21 = vld [vmem:[%s1995_s1 + $0x26c] ss:$16 sps:$4 sm:$0xff]  }
  0x17   :  { %863 = vmatpush1.bf16.msra.mxu0 %v1326_v22  ;;  %v1358_v44 = vld [vmem:[%s1995_s1 + $0x184] ss:$16 sps:$4 sm:$0xff]   ;;  %v1362_v46 = vld [vmem:[%s1995_s1 + $0x180] ss:$16 sps:$4 sm:$0xff]   ;;  %v1418_v22 = vld [vmem:[%s1995_s1 + $0x68] ss:$16 sps:$4 sm:$0xff]  }
  0x18   :  { %916 = vmatpush1.bf16.msra.mxu1 %v1327_v23  ;;  %864 = vmatprep.subr.bf16.mxu0 %v1328_v24  ;;  %v1360_v45 = vld [vmem:[%s1995_s1 + $0x384] ss:$16 sps:$4 sm:$0xff]   ;;  %v1363_v47 = vld [vmem:[%s1995_s1 + $0x380] ss:$16 sps:$4 sm:$0xff]   ;;  %v1421_v23 = vld [vmem:[%s1995_s1 + $0x268] ss:$16 sps:$4 sm:$0xff]  }
  0x19   :  { %917 = vmatprep.subr.bf16.mxu1 %v1330_v25  ;;  %v1364_v48 = vld [vmem:[%s1995_s1 + $0x164] ss:$16 sps:$4 sm:$0xff]   ;;  %v1368_v52 = vld [vmem:[%s1995_s1 + $0x160] ss:$16 sps:$4 sm:$0xff]   ;;  %v1426_v24 = vld [vmem:[%s1995_s1 + $0x4c] ss:$16 sps:$4 sm:$0xff]  }
  0x1a   :  { %v1666_v49 = vld [vmem:[%s1996_s0 + $0x4] ss:$16 sps:$4 sm:$0xff]   ;;  %v1369_v53 = vld [vmem:[%s1995_s1 + $0x360] ss:$16 sps:$4 sm:$0xff]   ;;  %v1429_v25 = vld [vmem:[%s1995_s1 + $0x24c] ss:$16 sps:$4 sm:$0xff]  }
  0x1b   :  { %865 = vmatpush1.bf16.msra.mxu0 %v1332_v26  ;;  %v1366_v50 = vld [vmem:[%s1995_s1 + $0x364] ss:$16 sps:$4 sm:$0xff]   ;;  %884 = vmatprep.mubr.bf16.mxu0 %v1666_v49  ;;  %v1374_v56 = vld [vmem:[%s1995_s1 + $0x140] ss:$16 sps:$4 sm:$0xff]  }
  0x1c   :  { %918 = vmatpush1.bf16.msra.mxu1 %v1333_v27  ;;  %866 = vmatprep.subr.bf16.mxu0 %v1334_v28  ;;  %v1370_v54 = vld [vmem:[%s1995_s1 + $0x144] ss:$16 sps:$4 sm:$0xff]   ;;  %v1375_v57 = vld [vmem:[%s1995_s1 + $0x340] ss:$16 sps:$4 sm:$0xff]   ;;  %v1424_v28 = vld [vmem:[%s1995_s1 + $0x48] ss:$16 sps:$4 sm:$0xff]  }
  0x1d   :  { %919 = vmatprep.subr.bf16.mxu1 %v1336_v29  ;;  %v1372_v55 = vld [vmem:[%s1995_s1 + $0x344] ss:$16 sps:$4 sm:$0xff]   ;;  %v1380_v60 = vld [vmem:[%s1995_s1 + $0x120] ss:$16 sps:$4 sm:$0xff]   ;;  %v1815_v29 = vld [vmem:[%s1996_s0 + $0x2c] ss:$16 sps:$4 sm:$0xff]  }
  0x1e   :  { %v1376_v58 = vld [vmem:[%s1995_s1 + $0x124] ss:$16 sps:$4 sm:$0xff]   ;;  %v1381_v61 = vld [vmem:[%s1995_s1 + $0x320] ss:$16 sps:$4 sm:$0xff]  }
  0x1f   :  { %867 = vmatpush1.bf16.msra.mxu0 %v1338_v30  ;;  %v1378_v59 = vld [vmem:[%s1995_s1 + $0x324] ss:$16 sps:$4 sm:$0xff]   ;;  %v1386_v0 = vld [vmem:[%s1995_s1 + $0x100] ss:$16 sps:$4 sm:$0xff]   ;;  %v1427_v30 = vld [vmem:[%s1995_s1 + $0x248] ss:$16 sps:$4 sm:$0xff]  }
  0x20   :  { %920 = vmatpush1.bf16.msra.mxu1 %v1339_v31  ;;  %868 = vmatprep.subr.bf16.mxu0 %v1340_v32  ;;  %v1382_v62 = vld [vmem:[%s1995_s1 + $0x104] ss:$16 sps:$4 sm:$0xff]   ;;  %v1387_v1 = vld [vmem:[%s1995_s1 + $0x300] ss:$16 sps:$4 sm:$0xff]   ;;  %v1824_v31 = vld [vmem:[%s1996_s0 + $0x28] ss:$16 sps:$4 sm:$0xff]  }
  0x21   :  { %921 = vmatprep.subr.bf16.mxu1 %v1342_v33  ;;  %v1384_v63 = vld [vmem:[%s1995_s1 + $0x304] ss:$16 sps:$4 sm:$0xff]   ;;  %v1729_v4 = vld [vmem:[%s1996_s0] ss:$16 sps:$4 sm:$0xff]   ;;  %v1432_v32 = vld [vmem:[%s1995_s1 + $0x2c] ss:$16 sps:$4 sm:$0xff]  }
  0x22   :  { %v1801_v26 = vld [vmem:[%s1996_s0 + $0x24] ss:$16 sps:$4 sm:$0xff]   ;;  %v1806_v27 = vld [vmem:[%s1996_s0 + $0x20] ss:$16 sps:$4 sm:$0xff]   ;;  %v1435_v33 = vld [vmem:[%s1995_s1 + $0x22c] ss:$16 sps:$4 sm:$0xff]  }
  0x23   :  { %869 = vmatpush2.bf16.msra.mxu0 %v1344_v34  ;;  %v1430_v34 = vld [vmem:[%s1995_s1 + $0x28] ss:$16 sps:$4 sm:$0xff]  }
  0x24   :  { %922 = vmatpush2.bf16.msra.mxu1 %v1345_v35  ;;  %870 = vmatprep.subr.bf16.mxu0 %v1346_v36  ;;  %v1433_v35 = vld [vmem:[%s1995_s1 + $0x228] ss:$16 sps:$4 sm:$0xff]   ;;  %v1438_v36 = vld [vmem:[%s1995_s1 + $0xc] ss:$16 sps:$4 sm:$0xff]  }
  0x25   :  { %923 = vmatprep.subr.bf16.mxu1 %v1348_v37  ;;  %v1441_v37 = vld [vmem:[%s1995_s1 + $0x20c] ss:$16 sps:$4 sm:$0xff]  }
  0x27   :  { %871 = vmatpush2.bf16.msra.mxu0 %v1350_v38  ;;  %v1436_v38 = vld [vmem:[%s1995_s1 + $0x8] ss:$16 sps:$4 sm:$0xff]  }
  0x28   :  { %924 = vmatpush2.bf16.msra.mxu1 %v1351_v39  ;;  %872 = vmatprep.subr.bf16.mxu0 %v1352_v40  ;;  %v1439_v39 = vld [vmem:[%s1995_s1 + $0x208] ss:$16 sps:$4 sm:$0xff]   ;;  %v1444_v40 = vld [vmem:[%s1995_s1 + $0x1ec] ss:$16 sps:$4 sm:$0xff]  }
  0x29   :  { %925 = vmatprep.subr.bf16.mxu1 %v1354_v41  ;;  %v1447_v41 = vld [vmem:[%s1995_s1 + $0x3ec] ss:$16 sps:$4 sm:$0xff]  }
  0x2b   :  { %873 = vmatpush2.bf16.msra.mxu0 %v1356_v42  ;;  %v1442_v42 = vld [vmem:[%s1995_s1 + $0x1e8] ss:$16 sps:$4 sm:$0xff]  }
  0x2c   :  { %926 = vmatpush2.bf16.msra.mxu1 %v1357_v43  ;;  %874 = vmatprep.subr.bf16.mxu0 %v1358_v44  ;;  %v1445_v43 = vld [vmem:[%s1995_s1 + $0x3e8] ss:$16 sps:$4 sm:$0xff]   ;;  %v1450_v44 = vld [vmem:[%s1995_s1 + $0x1cc] ss:$16 sps:$4 sm:$0xff]  }
  0x2d   :  { %927 = vmatprep.subr.bf16.mxu1 %v1360_v45  ;;  %v1453_v45 = vld [vmem:[%s1995_s1 + $0x3cc] ss:$16 sps:$4 sm:$0xff]  }
  0x2f   :  { %875 = vmatpush2.bf16.msra.mxu0 %v1362_v46  ;;  %v1448_v46 = vld [vmem:[%s1995_s1 + $0x1c8] ss:$16 sps:$4 sm:$0xff]  }
  0x30   :  { %928 = vmatpush2.bf16.msra.mxu1 %v1363_v47  ;;  %876 = vmatprep.subr.bf16.mxu0 %v1364_v48  ;;  %v1451_v47 = vld [vmem:[%s1995_s1 + $0x3c8] ss:$16 sps:$4 sm:$0xff]   ;;  %v1456_v48 = vld [vmem:[%s1995_s1 + $0x1ac] ss:$16 sps:$4 sm:$0xff]  }
  0x31   :  { %929 = vmatprep.subr.bf16.mxu1 %v1366_v50  ;;  %v1454_v50 = vld [vmem:[%s1995_s1 + $0x1a8] ss:$16 sps:$4 sm:$0xff]  }
  0x33   :  { %877 = vmatpush2.bf16.msra.mxu0 %v1368_v52  ;;  %v1462_v52 = vld [vmem:[%s1995_s1 + $0x18c] ss:$16 sps:$4 sm:$0xff]  }
  0x34   :  { %930 = vmatpush2.bf16.msra.mxu1 %v1369_v53  ;;  %878 = vmatprep.subr.bf16.mxu0 %v1370_v54  ;;  %v1465_v53 = vld [vmem:[%s1995_s1 + $0x38c] ss:$16 sps:$4 sm:$0xff]   ;;  %v1460_v54 = vld [vmem:[%s1995_s1 + $0x188] ss:$16 sps:$4 sm:$0xff]  }
  0x35   :  { %931 = vmatprep.subr.bf16.mxu1 %v1372_v55  ;;  %v1463_v55 = vld [vmem:[%s1995_s1 + $0x388] ss:$16 sps:$4 sm:$0xff]  }
  0x37   :  { %879 = vmatpush2.bf16.msra.mxu0 %v1374_v56  ;;  %v1468_v56 = vld [vmem:[%s1995_s1 + $0x16c] ss:$16 sps:$4 sm:$0xff]  }
  0x38   :  { %932 = vmatpush2.bf16.msra.mxu1 %v1375_v57  ;;  %880 = vmatprep.subr.bf16.mxu0 %v1376_v58  ;;  %v1471_v57 = vld [vmem:[%s1995_s1 + $0x36c] ss:$16 sps:$4 sm:$0xff]   ;;  %v1466_v58 = vld [vmem:[%s1995_s1 + $0x168] ss:$16 sps:$4 sm:$0xff]  }
  0x39   :  { %933 = vmatprep.subr.bf16.mxu1 %v1378_v59  ;;  %v1469_v59 = vld [vmem:[%s1995_s1 + $0x368] ss:$16 sps:$4 sm:$0xff]  }
  0x3b   :  { %881 = vmatpush2.bf16.msra.mxu0 %v1380_v60  ;;  %v1480_v60 = vld [vmem:[%s1995_s1 + $0x14c] ss:$16 sps:$4 sm:$0xff]  }
  0x3c   :  { %934 = vmatpush2.bf16.msra.mxu1 %v1381_v61  ;;  %882 = vmatprep.subr.bf16.mxu0 %v1382_v62  ;;  %v1483_v61 = vld [vmem:[%s1995_s1 + $0x34c] ss:$16 sps:$4 sm:$0xff]   ;;  %v1478_v62 = vld [vmem:[%s1995_s1 + $0x148] ss:$16 sps:$4 sm:$0xff]  }
  0x3d   :  { %935 = vmatprep.subr.bf16.mxu1 %v1384_v63  ;;  %v1481_v63 = vld [vmem:[%s1995_s1 + $0x348] ss:$16 sps:$4 sm:$0xff]  }
  0x3f   :  { %883 = vmatpush2.bf16.msra.mxu0 %v1386_v0  ;;  %v1486_v0 = vld [vmem:[%s1995_s1 + $0x12c] ss:$16 sps:$4 sm:$0xff]  }
  0x40   :  { %936 = vmatpush2.bf16.msra.mxu1 %v1387_v1  ;;  %958 = vmatprep.subr.bf16.mxu0 %v1396_v2  ;;  %v1489_v1 = vld [vmem:[%s1995_s1 + $0x32c] ss:$16 sps:$4 sm:$0xff]   ;;  %v1484_v2 = vld [vmem:[%s1995_s1 + $0x128] ss:$16 sps:$4 sm:$0xff]  }
  0x41   :  { %1011 = vmatprep.subr.bf16.mxu1 %v1399_v3  ;;  %v1487_v3 = vld [vmem:[%s1995_s1 + $0x328] ss:$16 sps:$4 sm:$0xff]  }
  0x42   :  { %885 = vmatmul.mubr.bf16.vlgmr.msra.gmra.mxu0 %v1729_v4 }
  0x43   :  { %938 = vmatmul.mubr.bf16.vlgmr.msra.gmra.mxu1 %v1734_v5  ;;  %959 = vmatpush1.bf16.msra.mxu0 %v1394_v6  ;;  %v1492_v6 = vld [vmem:[%s1995_s1 + $0x10c] ss:$16 sps:$4 sm:$0xff]  }
  0x44   :  { %1012 = vmatpush1.bf16.msra.mxu1 %v1397_v7  ;;  %960 = vmatprep.subr.bf16.mxu0 %v1402_v8  ;;  %v1495_v7 = vld [vmem:[%s1995_s1 + $0x30c] ss:$16 sps:$4 sm:$0xff]   ;;  %v1490_v8 = vld [vmem:[%s1995_s1 + $0x108] ss:$16 sps:$4 sm:$0xff]  }
  0x45   :  { %1013 = vmatprep.subr.bf16.mxu1 %v1405_v9  ;;  %894 = vmatprep.mubr.bf16.mxu0 %v1801_v26  ;;  %v1493_v9 = vld [vmem:[%s1995_s1 + $0x308] ss:$16 sps:$4 sm:$0xff]  }
  0x46   :  { %947 = vmatprep.mubr.bf16.mxu1 %v1815_v29 }
  0x47   :  { %961 = vmatpush1.bf16.msra.mxu0 %v1400_v10  ;;  %v152_v10 = vlaneseq }
  0x48   :  { %1014 = vmatpush1.bf16.msra.mxu1 %v1403_v11  ;;  %962 = vmatprep.subr.bf16.mxu0 %v1408_v12 }
  0x49   :  { %1015 = vmatprep.subr.bf16.mxu1 %v1411_v13  ;;  %v153_v11 = vshrl.u32 %v152_v10, 7  ;;  %v150_v13 = vld [vmem:[%s1997_s2] sm:$0xf] }
  0x4a   :  { %895 = vmatmul.mubr.bf16.gmra.mxu0 %v1806_v27 }
  0x4b   :  { %963 = vmatpush1.bf16.msra.mxu0 %v1406_v14  ;;  %990 = vmatprep.mubr.bf16.mxu0 %v1666_v49  ;;  %v1459_v49 = vld [vmem:[%s1995_s1 + $0x3ac] ss:$16 sps:$4 sm:$0xff]   ;;  %v162_v12 = vsub.s32 2, %v153_v11 }
  0x4c   :  { %1016 = vmatpush1.bf16.msra.mxu1 %v1409_v15  ;;  %964 = vmatprep.subr.bf16.mxu0 %v1414_v16  ;;  %v158_v16 = vsub.s32 1, %v153_v11 }
  0x4d   :  { %1017 = vmatprep.subr.bf16.mxu1 %v1417_v17  ;;  %948 = vmatmul.mubr.bf16.gmra.mxu1 %v1824_v31  ;;  %v1959_v14 = vrot.slane %v150_v13, %v162_v12 }
  0x4e   :  { %1043 = vmatprep.mubr.bf16.mxu1 %v1674_v51  ;;  %v1457_v51 = vld [vmem:[%s1995_s1 + $0x3a8] ss:$16 sps:$4 sm:$0xff]  }
  0x4f   :  { %965 = vmatpush1.bf16.msra.mxu0 %v1412_v18  ;;  %v159_v18 = vrot.slane %v150_v13, %v158_v16 }
  0x50   :  { %1018 = vmatpush1.bf16.msra.mxu1 %v1415_v19  ;;  %966 = vmatprep.subr.bf16.mxu0 %v1420_v20 }
  0x51   :  { %1019 = vmatprep.subr.bf16.mxu1 %v1423_v21 }
  0x53   :  { %967 = vmatpush1.bf16.msra.mxu0 %v1418_v22 }
  0x54   :  { %1020 = vmatpush1.bf16.msra.mxu1 %v1421_v23  ;;  %968 = vmatprep.subr.bf16.mxu0 %v1426_v24 }
  0x55   :  { %1021 = vmatprep.subr.bf16.mxu1 %v1429_v25 }
  0x57   :  { %969 = vmatpush1.bf16.msra.mxu0 %v1424_v28 }
  0x58   :  { %1022 = vmatpush1.bf16.msra.mxu1 %v1427_v30  ;;  %970 = vmatprep.subr.bf16.mxu0 %v1432_v32 }
  0x59   :  { %1023 = vmatprep.subr.bf16.mxu1 %v1435_v33 }
  0x5b   :  { %971 = vmatpush1.bf16.msra.mxu0 %v1430_v34 }
  0x5c   :  { %1024 = vmatpush1.bf16.msra.mxu1 %v1433_v35  ;;  %972 = vmatprep.subr.bf16.mxu0 %v1438_v36 }
  0x5d   :  { %1025 = vmatprep.subr.bf16.mxu1 %v1441_v37 }
  0x5f   :  { %973 = vmatpush1.bf16.msra.mxu0 %v1436_v38 }
  0x60   :  { %1026 = vmatpush1.bf16.msra.mxu1 %v1439_v39  ;;  %974 = vmatprep.subr.bf16.mxu0 %v1444_v40 }
  0x61   :  { %1027 = vmatprep.subr.bf16.mxu1 %v1447_v41 }
  0x63   :  { %975 = vmatpush2.bf16.msra.mxu0 %v1442_v42 }
  0x64   :  { %1028 = vmatpush2.bf16.msra.mxu1 %v1445_v43  ;;  %976 = vmatprep.subr.bf16.mxu0 %v1450_v44 }
  0x65   :  { %1029 = vmatprep.subr.bf16.mxu1 %v1453_v45 }
  0x67   :  { %977 = vmatpush2.bf16.msra.mxu0 %v1448_v46 }
  0x68   :  { %1030 = vmatpush2.bf16.msra.mxu1 %v1451_v47  ;;  %978 = vmatprep.subr.bf16.mxu0 %v1456_v48 }
  0x69   :  { %1031 = vmatprep.subr.bf16.mxu1 %v1459_v49 }
  0x6b   :  { %979 = vmatpush2.bf16.msra.mxu0 %v1454_v50 }
  0x6c   :  { %1032 = vmatpush2.bf16.msra.mxu1 %v1457_v51  ;;  %980 = vmatprep.subr.bf16.mxu0 %v1462_v52 }
  0x6d   :  { %1033 = vmatprep.subr.bf16.mxu1 %v1465_v53 }
  0x6f   :  { %981 = vmatpush2.bf16.msra.mxu0 %v1460_v54 }
  0x70   :  { %1034 = vmatpush2.bf16.msra.mxu1 %v1463_v55  ;;  %982 = vmatprep.subr.bf16.mxu0 %v1468_v56 }
  0x71   :  { %1035 = vmatprep.subr.bf16.mxu1 %v1471_v57 }
  0x73   :  { %983 = vmatpush2.bf16.msra.mxu0 %v1466_v58 }
  0x74   :  { %1036 = vmatpush2.bf16.msra.mxu1 %v1469_v59  ;;  %984 = vmatprep.subr.bf16.mxu0 %v1480_v60 }
  0x75   :  { %1037 = vmatprep.subr.bf16.mxu1 %v1483_v61 }
  0x77   :  { %985 = vmatpush2.bf16.msra.mxu0 %v1478_v62 }
  0x78   :  { %1038 = vmatpush2.bf16.msra.mxu1 %v1481_v63  ;;  %986 = vmatprep.subr.bf16.mxu0 %v1486_v0 }
  0x79   :  { %1039 = vmatprep.subr.bf16.mxu1 %v1489_v1 }
  0x7b   :  { %987 = vmatpush2.bf16.msra.mxu0 %v1484_v2 }
  0x7c   :  { %1040 = vmatpush2.bf16.msra.mxu1 %v1487_v3  ;;  %988 = vmatprep.subr.bf16.mxu0 %v1492_v6 }
  0x7d   :  { %1041 = vmatprep.subr.bf16.mxu1 %v1495_v7 }
  0x7f   :  { %989 = vmatpush2.bf16.msra.mxu0 %v1490_v8 }
  0x80   :  { %1042 = vmatpush2.bf16.msra.mxu1 %v1493_v9 }
  0x82   :  { %991 = vmatmul.mubr.bf16.vlgmr.msra.gmra.mxu0 %v1729_v4  ;;  %v166_v4 = vsub.s32 3, %v153_v11 }
  0x83   :  { %1044 = vmatmul.mubr.bf16.vlgmr.msra.gmra.mxu1 %v1734_v5  ;;  %1000 = vmatprep.mubr.bf16.mxu0 %v1801_v26  ;;  %v154_v5 = vsub.s32 0, %v153_v11 }
  0x84   :  { %1053 = vmatprep.mubr.bf16.mxu1 %v1815_v29  ;;  %v1961_v15 = vrot.slane %v150_v13, %v166_v4 }
  0x85   :  { %v155_v17 = vrot.slane %v150_v13, %v154_v5 }
  0x8a   :  { %1001 = vmatmul.mubr.bf16.gmra.mxu0 %v1806_v27 }
  0x8b   :  { %1054 = vmatmul.mubr.bf16.gmra.mxu1 %v1824_v31 }
 0x102   :  { %v886_v19 = vpop.f32.mrf.mxu0 }
 0x103   :  { %v939_v20 = vpop.f32.mrf.mxu1  ;;  %v887_v21 = vadd.f32 %v886_v19, %v155_v17 }
 0x104   :  { %v888_v22 = vpop.f32.mrf.mxu0 }
 0x105   :  { %v941_v23 = vpop.f32.mrf.mxu1  ;;  %v940_v24 = vadd.f32 %v939_v20, %v887_v21  ;;  %v889_v25 = vadd.f32 %v888_v22, %v159_v18 }
 0x106   :  { %v890_v26 = vpop.f32.mrf.mxu0 }
 0x107   :  { %v943_v27 = vpop.f32.mrf.mxu1  ;;  %v1064_v28 = vmax.f32 %v940_v24, 0.0  ;;  %v942_v29 = vadd.f32 %v941_v23, %v889_v25  ;;  %v891_v30 = vadd.f32 %v890_v26, %v155_v17 }
 0x108   :  { %v892_v31 = vpop.f32.mrf.mxu0 }
 0x109   :  { %v1065_v32 = vmax.f32 %v942_v29, 0.0  ;;  %v944_v33 = vadd.f32 %v943_v27, %v891_v30  ;;  %v893_v34 = vadd.f32 %v892_v31, %v159_v18  ;;  %v945_v35 = vpop.f32.mrf.mxu1 }
 0x10a   :  { %v896_v41 = vpop.f32.mrf.mxu0 }
 0x10b   :  { %v1284_v36 = vpack.c.bf16 %v1065_v32, %v1064_v28  ;;  %v946_v37 = vadd.f32 %v945_v35, %v893_v34  ;;  %v1068_v38 = vmax.f32 %v944_v33, 0.0  ;;  %v897_v42 = vadd.f32 %v896_v41, %v155_v17 }
 0x10c   :  { %v898_v43 = vpop.f32.mrf.mxu0 }
 0x10d   :  { %1128 = vst [vmem:[%s1998_s3] sm:$0xff] %v1284_v36  ;;  %v1069_v39 = vmax.f32 %v946_v37, 0.0  ;;  %v899_v44 = vadd.f32 %v898_v43, %v159_v18  ;;  %v949_v45 = vpop.f32.mrf.mxu1 }
 0x10e   :  { %v900_v46 = vpop.f32.mrf.mxu0  ;;  %v950_v47 = vadd.f32 %v949_v45, %v897_v42 }
 0x10f   :  { %v1286_v40 = vpack.c.bf16 %v1069_v39, %v1068_v38  ;;  %v901_v48 = vadd.f32 %v900_v46, %v155_v17  ;;  %v951_v49 = vpop.f32.mrf.mxu1 }
 0x110   :  { %v902_v50 = vpop.f32.mrf.mxu0  ;;  %v1072_v51 = vmax.f32 %v950_v47, 0.0  ;;  %v952_v52 = vadd.f32 %v951_v49, %v899_v44 }
 0x111   :  { %1130 = vst [vmem:[%s1998_s3 + $0x10] sm:$0xff] %v1286_v40  ;;  %v903_v53 = vadd.f32 %v902_v50, %v159_v18  ;;  %v953_v54 = vpop.f32.mrf.mxu1 }
 0x112   :  { %v1073_v55 = vmax.f32 %v952_v52, 0.0  ;;  %v954_v56 = vadd.f32 %v953_v54, %v901_v48 }
 0x113   :  { %v955_v57 = vpop.f32.mrf.mxu1 }
 0x114   :  { %v1288_v58 = vpack.c.bf16 %v1073_v55, %v1072_v51  ;;  %v1076_v59 = vmax.f32 %v954_v56, 0.0  ;;  %v956_v60 = vadd.f32 %v955_v57, %v903_v53 }
 0x116   :  { %1132 = vst [vmem:[%s1998_s3 + $0x20] sm:$0xff] %v1288_v58  ;;  %v1077_v61 = vmax.f32 %v956_v60, 0.0 }
 0x118   :  { %v1290_v62 = vpack.c.bf16 %v1077_v61, %v1076_v59 }
 0x11a   :  { %1134 = vst [vmem:[%s1998_s3 + $0x30] sm:$0xff] %v1290_v62 }
 0x142   :  { %v992_v63 = vpop.f32.mrf.mxu0 }
 0x143   :  { %v1045_v0 = vpop.f32.mrf.mxu1  ;;  %v993_v1 = vadd.f32 %v992_v63, %v1959_v14 }
 0x144   :  { %v994_v2 = vpop.f32.mrf.mxu0 }
 0x145   :  { %v1047_v3 = vpop.f32.mrf.mxu1  ;;  %v1046_v6 = vadd.f32 %v1045_v0, %v993_v1  ;;  %v995_v7 = vadd.f32 %v994_v2, %v1961_v15 }
 0x146   :  { %v996_v8 = vpop.f32.mrf.mxu0 }
 0x147   :  { %v1049_v9 = vpop.f32.mrf.mxu1  ;;  %v1048_v10 = vadd.f32 %v1047_v3, %v995_v7  ;;  %v997_v11 = vadd.f32 %v996_v8, %v1959_v14  ;;  %v1066_v4 = vmax.f32 %v1046_v6, 0.0 }
 0x148   :  { %v998_v12 = vpop.f32.mrf.mxu0 }
 0x149   :  { %v1051_v13 = vpop.f32.mrf.mxu1  ;;  %v1067_v5 = vmax.f32 %v1048_v10, 0.0  ;;  %v1050_v16 = vadd.f32 %v1049_v9, %v997_v11  ;;  %v999_v17 = vadd.f32 %v998_v12, %v1961_v15 }
 0x14a   :  { %v1002_v18 = vpop.f32.mrf.mxu0 }
 0x14b   :  { %v1055_v19 = vpop.f32.mrf.mxu1  ;;  %v1285_v20 = vpack.c.bf16 %v1067_v5, %v1066_v4  ;;  %v1052_v21 = vadd.f32 %v1051_v13, %v999_v17  ;;  %v1003_v22 = vadd.f32 %v1002_v18, %v1959_v14  ;;  %v1070_v25 = vmax.f32 %v1050_v16, 0.0 }
 0x14c   :  { %v1004_v23 = vpop.f32.mrf.mxu0 }
 0x14d   :  { %v1057_v24 = vpop.f32.mrf.mxu1  ;;  %1129 = vst [vmem:[%s1998_s3 + $0x8] sm:$0xff] %v1285_v20  ;;  %v1071_v26 = vmax.f32 %v1052_v21, 0.0  ;;  %v1056_v27 = vadd.f32 %v1055_v19, %v1003_v22  ;;  %v1005_v28 = vadd.f32 %v1004_v23, %v1961_v15 }
 0x14e   :  { %v1006_v29 = vpop.f32.mrf.mxu0 }
 0x14f   :  { %v1059_v30 = vpop.f32.mrf.mxu1  ;;  %v1287_v31 = vpack.c.bf16 %v1071_v26, %v1070_v25  ;;  %v1058_v32 = vadd.f32 %v1057_v24, %v1005_v28  ;;  %v1007_v33 = vadd.f32 %v1006_v29, %v1959_v14  ;;  %v1074_v35 = vmax.f32 %v1056_v27, 0.0 }
 0x150   :  { %v1008_v34 = vpop.f32.mrf.mxu0 }
 0x151   :  { %1131 = vst [vmem:[%s1998_s3 + $0x18] sm:$0xff] %v1287_v31  ;;  %v1075_v36 = vmax.f32 %v1058_v32, 0.0  ;;  %v1060_v37 = vadd.f32 %v1059_v30, %v1007_v33  ;;  %v1009_v38 = vadd.f32 %v1008_v34, %v1961_v15  ;;  %v1061_v39 = vpop.f32.mrf.mxu1 }
 0x153   :  { %v1289_v40 = vpack.c.bf16 %v1075_v36, %v1074_v35  ;;  %v1062_v41 = vadd.f32 %v1061_v39, %v1009_v38  ;;  %v1078_v42 = vmax.f32 %v1060_v37, 0.0 }
 0x155   :  { %1133 = vst [vmem:[%s1998_s3 + $0x28] sm:$0xff] %v1289_v40  ;;  %v1079_v43 = vmax.f32 %v1062_v41, 0.0 }
 0x157   :  { %v1291_v14 = vpack.c.bf16 %v1079_v43, %v1078_v42 }
 0x159   :  { %1135 = vst [vmem:[%s1998_s3 + $0x38] sm:$0xff] %v1291_v14 }

// kernel: vqcae_forward.20
= control target key start
LH: loop header
LB: loop body
LE: loop exit
PB: predicated region body
PF: predicated region fallthrough
CT: control target
= control target key end

     0   :  { %s2987_s1 = inlined_call_operand.vmem [shape: bf16[512,512], index: 1, kind: input, shape index: {}]   ;;  %s2988_s0 = inlined_call_operand.vmem [shape: bf16[128,512], index: 0, kind: input, shape index: {}]   ;;  %s2989_s2 = inlined_call_operand.vmem [shape: f32[1,512], index: 2, kind: input, shape index: {}]   ;;  %s2990_s3 = inlined_call_operand.vmem [shape: bf16[128,512], index: 3, kind: output, shape index: {}]  }
   0x1   :  { %v1964_v0 = vld [vmem:[%s2987_s1 + $0xe4] ss:$16 sps:$4 sm:$0xff]   ;;  %v1968_v2 = vld [vmem:[%s2987_s1 + $0xe0] ss:$16 sps:$4 sm:$0xff]   ;;  %v2382_v51 = vld [vmem:[%s2988_s0 + $0xc] ss:$16 sps:$4 sm:$0xff]  }
   0x2   :  { %v1966_v1 = vld [vmem:[%s2987_s1 + $0x2e4] ss:$16 sps:$4 sm:$0xff]   ;;  %996 = vmatprep.subr.bf16.mxu0 %v1964_v0  ;;  %v1969_v3 = vld [vmem:[%s2987_s1 + $0x2e0] ss:$16 sps:$4 sm:$0xff]   ;;  %1141 = vmatprep.mubr.bf16.mxu1 %v2382_v51 }
   0x3   :  { %1109 = vmatprep.subr.bf16.mxu1 %v1966_v1  ;;  %v1970_v4 = vld [vmem:[%s2987_s1 + $0xc4] ss:$16 sps:$4 sm:$0xff]   ;;  %997 = vmatpush1.bf16.msra.mxu0 %v1968_v2  ;;  %v1974_v6 = vld [vmem:[%s2987_s1 + $0xc0] ss:$16 sps:$4 sm:$0xff]   ;;  %v2068_v2 = vld [vmem:[%s2987_s1 + $0xec] ss:$16 sps:$4 sm:$0xff]  }
   0x4   :  { %1110 = vmatpush1.bf16.msra.mxu1 %v1969_v3  ;;  %v1972_v5 = vld [vmem:[%s2987_s1 + $0x2c4] ss:$16 sps:$4 sm:$0xff]   ;;  %998 = vmatprep.subr.bf16.mxu0 %v1970_v4  ;;  %v1975_v7 = vld [vmem:[%s2987_s1 + $0x2c0] ss:$16 sps:$4 sm:$0xff]   ;;  %v2071_v3 = vld [vmem:[%s2987_s1 + $0x2ec] ss:$16 sps:$4 sm:$0xff]  }
   0x5   :  { %1111 = vmatprep.subr.bf16.mxu1 %v1972_v5  ;;  %v1976_v8 = vld [vmem:[%s2987_s1 + $0xa4] ss:$16 sps:$4 sm:$0xff]   ;;  %v1980_v10 = vld [vmem:[%s2987_s1 + $0xa0] ss:$16 sps:$4 sm:$0xff]   ;;  %v2442_v5 = vld [vmem:[%s2988_s0 + $0x8] ss:$16 sps:$4 sm:$0xff]  }
   0x6   :  { %v1978_v9 = vld [vmem:[%s2987_s1 + $0x2a4] ss:$16 sps:$4 sm:$0xff]   ;;  %v1981_v11 = vld [vmem:[%s2987_s1 + $0x2a0] ss:$16 sps:$4 sm:$0xff]  }
   0x7   :  { %999 = vmatpush1.bf16.msra.mxu0 %v1974_v6  ;;  %v1982_v12 = vld [vmem:[%s2987_s1 + $0x84] ss:$16 sps:$4 sm:$0xff]   ;;  %v1986_v14 = vld [vmem:[%s2987_s1 + $0x80] ss:$16 sps:$4 sm:$0xff]   ;;  %v2066_v6 = vld [vmem:[%s2987_s1 + $0xe8] ss:$16 sps:$4 sm:$0xff]  }
   0x8   :  { %1112 = vmatpush1.bf16.msra.mxu1 %v1975_v7  ;;  %1000 = vmatprep.subr.bf16.mxu0 %v1976_v8  ;;  %v1984_v13 = vld [vmem:[%s2987_s1 + $0x284] ss:$16 sps:$4 sm:$0xff]   ;;  %v1987_v15 = vld [vmem:[%s2987_s1 + $0x280] ss:$16 sps:$4 sm:$0xff]   ;;  %v2069_v7 = vld [vmem:[%s2987_s1 + $0x2e8] ss:$16 sps:$4 sm:$0xff]  }
   0x9   :  { %1113 = vmatprep.subr.bf16.mxu1 %v1978_v9  ;;  %v1988_v16 = vld [vmem:[%s2987_s1 + $0x64] ss:$16 sps:$4 sm:$0xff]   ;;  %v1992_v18 = vld [vmem:[%s2987_s1 + $0x60] ss:$16 sps:$4 sm:$0xff]   ;;  %v2074_v8 = vld [vmem:[%s2987_s1 + $0xcc] ss:$16 sps:$4 sm:$0xff]  }
   0xa   :  { %v1990_v17 = vld [vmem:[%s2987_s1 + $0x264] ss:$16 sps:$4 sm:$0xff]   ;;  %v1993_v19 = vld [vmem:[%s2987_s1 + $0x260] ss:$16 sps:$4 sm:$0xff]   ;;  %v2077_v9 = vld [vmem:[%s2987_s1 + $0x2cc] ss:$16 sps:$4 sm:$0xff]  }
   0xb   :  { %1001 = vmatpush1.bf16.msra.mxu0 %v1980_v10  ;;  %v1994_v20 = vld [vmem:[%s2987_s1 + $0x44] ss:$16 sps:$4 sm:$0xff]   ;;  %v1998_v22 = vld [vmem:[%s2987_s1 + $0x40] ss:$16 sps:$4 sm:$0xff]  }
   0xc   :  { %1114 = vmatpush1.bf16.msra.mxu1 %v1981_v11  ;;  %1002 = vmatprep.subr.bf16.mxu0 %v1982_v12  ;;  %v1996_v21 = vld [vmem:[%s2987_s1 + $0x244] ss:$16 sps:$4 sm:$0xff]   ;;  %v1999_v23 = vld [vmem:[%s2987_s1 + $0x240] ss:$16 sps:$4 sm:$0xff]   ;;  %v2464_v11 = vld [vmem:[%s2988_s0 + $0x2c] ss:$16 sps:$4 sm:$0xff]  }
   0xd   :  { %1115 = vmatprep.subr.bf16.mxu1 %v1984_v13  ;;  %v2000_v24 = vld [vmem:[%s2987_s1 + $0x24] ss:$16 sps:$4 sm:$0xff]   ;;  %v2004_v26 = vld [vmem:[%s2987_s1 + $0x20] ss:$16 sps:$4 sm:$0xff]   ;;  %v2072_v12 = vld [vmem:[%s2987_s1 + $0xc8] ss:$16 sps:$4 sm:$0xff]  }
   0xe   :  { %v2002_v25 = vld [vmem:[%s2987_s1 + $0x224] ss:$16 sps:$4 sm:$0xff]   ;;  %v2005_v27 = vld [vmem:[%s2987_s1 + $0x220] ss:$16 sps:$4 sm:$0xff]   ;;  %v2075_v13 = vld [vmem:[%s2987_s1 + $0x2c8] ss:$16 sps:$4 sm:$0xff]  }
   0xf   :  { %1003 = vmatpush1.bf16.msra.mxu0 %v1986_v14  ;;  %v2006_v28 = vld [vmem:[%s2987_s1 + $0x4] ss:$16 sps:$4 sm:$0xff]   ;;  %v2010_v30 = vld [vmem:[%s2987_s1] ss:$16 sps:$4 sm:$0xff]   ;;  %v2086_v14 = vld [vmem:[%s2987_s1 + $0xac] ss:$16 sps:$4 sm:$0xff]  }
  0x10   :  { %1116 = vmatpush1.bf16.msra.mxu1 %v1987_v15  ;;  %1004 = vmatprep.subr.bf16.mxu0 %v1988_v16  ;;  %v2008_v29 = vld [vmem:[%s2987_s1 + $0x204] ss:$16 sps:$4 sm:$0xff]   ;;  %v2011_v31 = vld [vmem:[%s2987_s1 + $0x200] ss:$16 sps:$4 sm:$0xff]   ;;  %v2089_v15 = vld [vmem:[%s2987_s1 + $0x2ac] ss:$16 sps:$4 sm:$0xff]  }
  0x11   :  { %1117 = vmatprep.subr.bf16.mxu1 %v1990_v17  ;;  %v2012_v32 = vld [vmem:[%s2987_s1 + $0x1e4] ss:$16 sps:$4 sm:$0xff]   ;;  %v2016_v34 = vld [vmem:[%s2987_s1 + $0x1e0] ss:$16 sps:$4 sm:$0xff]   ;;  %v2490_v17 = vld [vmem:[%s2988_s0 + $0x28] ss:$16 sps:$4 sm:$0xff]  }
  0x12   :  { %v2014_v33 = vld [vmem:[%s2987_s1 + $0x3e4] ss:$16 sps:$4 sm:$0xff]   ;;  %v2017_v35 = vld [vmem:[%s2987_s1 + $0x3e0] ss:$16 sps:$4 sm:$0xff]  }
  0x13   :  { %1005 = vmatpush1.bf16.msra.mxu0 %v1992_v18  ;;  %v2018_v36 = vld [vmem:[%s2987_s1 + $0x1c4] ss:$16 sps:$4 sm:$0xff]   ;;  %v2022_v38 = vld [vmem:[%s2987_s1 + $0x1c0] ss:$16 sps:$4 sm:$0xff]   ;;  %v2084_v18 = vld [vmem:[%s2987_s1 + $0xa8] ss:$16 sps:$4 sm:$0xff]  }
  0x14   :  { %1118 = vmatpush1.bf16.msra.mxu1 %v1993_v19  ;;  %1006 = vmatprep.subr.bf16.mxu0 %v1994_v20  ;;  %v2020_v37 = vld [vmem:[%s2987_s1 + $0x3c4] ss:$16 sps:$4 sm:$0xff]   ;;  %v2023_v39 = vld [vmem:[%s2987_s1 + $0x3c0] ss:$16 sps:$4 sm:$0xff]   ;;  %v2087_v19 = vld [vmem:[%s2987_s1 + $0x2a8] ss:$16 sps:$4 sm:$0xff]  }
  0x15   :  { %1119 = vmatprep.subr.bf16.mxu1 %v1996_v21  ;;  %v2024_v40 = vld [vmem:[%s2987_s1 + $0x1a4] ss:$16 sps:$4 sm:$0xff]   ;;  %v2028_v42 = vld [vmem:[%s2987_s1 + $0x1a0] ss:$16 sps:$4 sm:$0xff]   ;;  %v2092_v20 = vld [vmem:[%s2987_s1 + $0x8c] ss:$16 sps:$4 sm:$0xff]  }
  0x16   :  { %v2026_v41 = vld [vmem:[%s2987_s1 + $0x3a4] ss:$16 sps:$4 sm:$0xff]   ;;  %v2029_v43 = vld [vmem:[%s2987_s1 + $0x3a0] ss:$16 sps:$4 sm:$0xff]   ;;  %v2095_v21 = vld [vmem:[%s2987_s1 + $0x28c] ss:$16 sps:$4 sm:$0xff]  }
  0x17   :  { %1007 = vmatpush1.bf16.msra.mxu0 %v1998_v22  ;;  %v2030_v44 = vld [vmem:[%s2987_s1 + $0x184] ss:$16 sps:$4 sm:$0xff]   ;;  %v2034_v46 = vld [vmem:[%s2987_s1 + $0x180] ss:$16 sps:$4 sm:$0xff]  }
  0x18   :  { %1120 = vmatpush1.bf16.msra.mxu1 %v1999_v23  ;;  %1008 = vmatprep.subr.bf16.mxu0 %v2000_v24  ;;  %v2032_v45 = vld [vmem:[%s2987_s1 + $0x384] ss:$16 sps:$4 sm:$0xff]   ;;  %v2035_v47 = vld [vmem:[%s2987_s1 + $0x380] ss:$16 sps:$4 sm:$0xff]   ;;  %v2512_v23 = vld [vmem:[%s2988_s0 + $0x4c] ss:$16 sps:$4 sm:$0xff]  }
  0x19   :  { %1121 = vmatprep.subr.bf16.mxu1 %v2002_v25  ;;  %v2036_v48 = vld [vmem:[%s2987_s1 + $0x164] ss:$16 sps:$4 sm:$0xff]   ;;  %v2040_v52 = vld [vmem:[%s2987_s1 + $0x160] ss:$16 sps:$4 sm:$0xff]   ;;  %v2090_v24 = vld [vmem:[%s2987_s1 + $0x88] ss:$16 sps:$4 sm:$0xff]  }
  0x1a   :  { %v2374_v49 = vld [vmem:[%s2988_s0 + $0x4] ss:$16 sps:$4 sm:$0xff]   ;;  %v2041_v53 = vld [vmem:[%s2987_s1 + $0x360] ss:$16 sps:$4 sm:$0xff]   ;;  %v2093_v25 = vld [vmem:[%s2987_s1 + $0x288] ss:$16 sps:$4 sm:$0xff]  }
  0x1b   :  { %1009 = vmatpush1.bf16.msra.mxu0 %v2004_v26  ;;  %v2038_v50 = vld [vmem:[%s2987_s1 + $0x364] ss:$16 sps:$4 sm:$0xff]   ;;  %1028 = vmatprep.mubr.bf16.mxu0 %v2374_v49  ;;  %v2046_v56 = vld [vmem:[%s2987_s1 + $0x140] ss:$16 sps:$4 sm:$0xff]   ;;  %v2104_v26 = vld [vmem:[%s2987_s1 + $0x6c] ss:$16 sps:$4 sm:$0xff]  }
  0x1c   :  { %1122 = vmatpush1.bf16.msra.mxu1 %v2005_v27  ;;  %1010 = vmatprep.subr.bf16.mxu0 %v2006_v28  ;;  %v2042_v54 = vld [vmem:[%s2987_s1 + $0x144] ss:$16 sps:$4 sm:$0xff]   ;;  %v2047_v57 = vld [vmem:[%s2987_s1 + $0x340] ss:$16 sps:$4 sm:$0xff]   ;;  %v2107_v27 = vld [vmem:[%s2987_s1 + $0x26c] ss:$16 sps:$4 sm:$0xff]  }
  0x1d   :  { %1123 = vmatprep.subr.bf16.mxu1 %v2008_v29  ;;  %v2044_v55 = vld [vmem:[%s2987_s1 + $0x344] ss:$16 sps:$4 sm:$0xff]   ;;  %v2052_v60 = vld [vmem:[%s2987_s1 + $0x120] ss:$16 sps:$4 sm:$0xff]   ;;  %v2538_v29 = vld [vmem:[%s2988_s0 + $0x48] ss:$16 sps:$4 sm:$0xff]  }
  0x1e   :  { %v2048_v58 = vld [vmem:[%s2987_s1 + $0x124] ss:$16 sps:$4 sm:$0xff]   ;;  %v2053_v61 = vld [vmem:[%s2987_s1 + $0x320] ss:$16 sps:$4 sm:$0xff]  }
  0x1f   :  { %1011 = vmatpush1.bf16.msra.mxu0 %v2010_v30  ;;  %v2050_v59 = vld [vmem:[%s2987_s1 + $0x324] ss:$16 sps:$4 sm:$0xff]   ;;  %v2058_v0 = vld [vmem:[%s2987_s1 + $0x100] ss:$16 sps:$4 sm:$0xff]   ;;  %v2102_v30 = vld [vmem:[%s2987_s1 + $0x68] ss:$16 sps:$4 sm:$0xff]  }
  0x20   :  { %1124 = vmatpush1.bf16.msra.mxu1 %v2011_v31  ;;  %1012 = vmatprep.subr.bf16.mxu0 %v2012_v32  ;;  %v2054_v62 = vld [vmem:[%s2987_s1 + $0x104] ss:$16 sps:$4 sm:$0xff]   ;;  %v2059_v1 = vld [vmem:[%s2987_s1 + $0x300] ss:$16 sps:$4 sm:$0xff]   ;;  %v2105_v31 = vld [vmem:[%s2987_s1 + $0x268] ss:$16 sps:$4 sm:$0xff]  }
  0x21   :  { %1125 = vmatprep.subr.bf16.mxu1 %v2014_v33  ;;  %v2056_v63 = vld [vmem:[%s2987_s1 + $0x304] ss:$16 sps:$4 sm:$0xff]   ;;  %v2437_v4 = vld [vmem:[%s2988_s0] ss:$16 sps:$4 sm:$0xff]   ;;  %v2110_v32 = vld [vmem:[%s2987_s1 + $0x4c] ss:$16 sps:$4 sm:$0xff]  }
  0x22   :  { %v2459_v10 = vld [vmem:[%s2988_s0 + $0x24] ss:$16 sps:$4 sm:$0xff]   ;;  %v2485_v16 = vld [vmem:[%s2988_s0 + $0x20] ss:$16 sps:$4 sm:$0xff]   ;;  %v2113_v33 = vld [vmem:[%s2987_s1 + $0x24c] ss:$16 sps:$4 sm:$0xff]  }
  0x23   :  { %1013 = vmatpush2.bf16.msra.mxu0 %v2016_v34  ;;  %v2507_v22 = vld [vmem:[%s2988_s0 + $0x44] ss:$16 sps:$4 sm:$0xff]   ;;  %v2533_v28 = vld [vmem:[%s2988_s0 + $0x40] ss:$16 sps:$4 sm:$0xff]  }
  0x24   :  { %1126 = vmatpush2.bf16.msra.mxu1 %v2017_v35  ;;  %1014 = vmatprep.subr.bf16.mxu0 %v2018_v36  ;;  %v2555_v34 = vld [vmem:[%s2988_s0 + $0x64] ss:$16 sps:$4 sm:$0xff]   ;;  %v2560_v35 = vld [vmem:[%s2988_s0 + $0x6c] ss:$16 sps:$4 sm:$0xff]   ;;  %v2108_v36 = vld [vmem:[%s2987_s1 + $0x48] ss:$16 sps:$4 sm:$0xff]  }
  0x25   :  { %1127 = vmatprep.subr.bf16.mxu1 %v2020_v37  ;;  %v2111_v37 = vld [vmem:[%s2987_s1 + $0x248] ss:$16 sps:$4 sm:$0xff]  }
  0x27   :  { %1015 = vmatpush2.bf16.msra.mxu0 %v2022_v38  ;;  %v2122_v38 = vld [vmem:[%s2987_s1 + $0x2c] ss:$16 sps:$4 sm:$0xff]  }
  0x28   :  { %1128 = vmatpush2.bf16.msra.mxu1 %v2023_v39  ;;  %1016 = vmatprep.subr.bf16.mxu0 %v2024_v40  ;;  %v2125_v39 = vld [vmem:[%s2987_s1 + $0x22c] ss:$16 sps:$4 sm:$0xff]   ;;  %v2581_v40 = vld [vmem:[%s2988_s0 + $0x60] ss:$16 sps:$4 sm:$0xff]  }
  0x29   :  { %1129 = vmatprep.subr.bf16.mxu1 %v2026_v41  ;;  %v2586_v41 = vld [vmem:[%s2988_s0 + $0x68] ss:$16 sps:$4 sm:$0xff]  }
  0x2b   :  { %1017 = vmatpush2.bf16.msra.mxu0 %v2028_v42  ;;  %v2120_v42 = vld [vmem:[%s2987_s1 + $0x28] ss:$16 sps:$4 sm:$0xff]  }
  0x2c   :  { %1130 = vmatpush2.bf16.msra.mxu1 %v2029_v43  ;;  %1018 = vmatprep.subr.bf16.mxu0 %v2030_v44  ;;  %v2123_v43 = vld [vmem:[%s2987_s1 + $0x228] ss:$16 sps:$4 sm:$0xff]   ;;  %v2128_v44 = vld [vmem:[%s2987_s1 + $0xc] ss:$16 sps:$4 sm:$0xff]  }
  0x2d   :  { %1131 = vmatprep.subr.bf16.mxu1 %v2032_v45  ;;  %v2131_v45 = vld [vmem:[%s2987_s1 + $0x20c] ss:$16 sps:$4 sm:$0xff]  }
  0x2f   :  { %1019 = vmatpush2.bf16.msra.mxu0 %v2034_v46  ;;  %v2603_v46 = vld [vmem:[%s2988_s0 + $0x84] ss:$16 sps:$4 sm:$0xff]  }
  0x30   :  { %1132 = vmatpush2.bf16.msra.mxu1 %v2035_v47  ;;  %1020 = vmatprep.subr.bf16.mxu0 %v2036_v48  ;;  %v2608_v47 = vld [vmem:[%s2988_s0 + $0x8c] ss:$16 sps:$4 sm:$0xff]   ;;  %v2126_v48 = vld [vmem:[%s2987_s1 + $0x8] ss:$16 sps:$4 sm:$0xff]  }
  0x31   :  { %1133 = vmatprep.subr.bf16.mxu1 %v2038_v50  ;;  %v2129_v50 = vld [vmem:[%s2987_s1 + $0x208] ss:$16 sps:$4 sm:$0xff]  }
  0x33   :  { %1021 = vmatpush2.bf16.msra.mxu0 %v2040_v52  ;;  %v2140_v52 = vld [vmem:[%s2987_s1 + $0x1ec] ss:$16 sps:$4 sm:$0xff]  }
  0x34   :  { %1134 = vmatpush2.bf16.msra.mxu1 %v2041_v53  ;;  %1022 = vmatprep.subr.bf16.mxu0 %v2042_v54  ;;  %v2143_v53 = vld [vmem:[%s2987_s1 + $0x3ec] ss:$16 sps:$4 sm:$0xff]   ;;  %v2629_v54 = vld [vmem:[%s2988_s0 + $0x80] ss:$16 sps:$4 sm:$0xff]  }
  0x35   :  { %1135 = vmatprep.subr.bf16.mxu1 %v2044_v55  ;;  %v2634_v55 = vld [vmem:[%s2988_s0 + $0x88] ss:$16 sps:$4 sm:$0xff]  }
  0x37   :  { %1023 = vmatpush2.bf16.msra.mxu0 %v2046_v56  ;;  %v2138_v56 = vld [vmem:[%s2987_s1 + $0x1e8] ss:$16 sps:$4 sm:$0xff]  }
  0x38   :  { %1136 = vmatpush2.bf16.msra.mxu1 %v2047_v57  ;;  %1024 = vmatprep.subr.bf16.mxu0 %v2048_v58  ;;  %v2141_v57 = vld [vmem:[%s2987_s1 + $0x3e8] ss:$16 sps:$4 sm:$0xff]   ;;  %v2146_v58 = vld [vmem:[%s2987_s1 + $0x1cc] ss:$16 sps:$4 sm:$0xff]  }
  0x39   :  { %1137 = vmatprep.subr.bf16.mxu1 %v2050_v59  ;;  %v2149_v59 = vld [vmem:[%s2987_s1 + $0x3cc] ss:$16 sps:$4 sm:$0xff]  }
  0x3b   :  { %1025 = vmatpush2.bf16.msra.mxu0 %v2052_v60  ;;  %v2651_v60 = vld [vmem:[%s2988_s0 + $0xa4] ss:$16 sps:$4 sm:$0xff]  }
  0x3c   :  { %1138 = vmatpush2.bf16.msra.mxu1 %v2053_v61  ;;  %1026 = vmatprep.subr.bf16.mxu0 %v2054_v62  ;;  %v2656_v61 = vld [vmem:[%s2988_s0 + $0xac] ss:$16 sps:$4 sm:$0xff]   ;;  %v2144_v62 = vld [vmem:[%s2987_s1 + $0x1c8] ss:$16 sps:$4 sm:$0xff]  }
  0x3d   :  { %1139 = vmatprep.subr.bf16.mxu1 %v2056_v63  ;;  %v2147_v63 = vld [vmem:[%s2987_s1 + $0x3c8] ss:$16 sps:$4 sm:$0xff]  }
  0x3f   :  { %1027 = vmatpush2.bf16.msra.mxu0 %v2058_v0  ;;  %v2158_v0 = vld [vmem:[%s2987_s1 + $0x1ac] ss:$16 sps:$4 sm:$0xff]  }
  0x40   :  { %1140 = vmatpush2.bf16.msra.mxu1 %v2059_v1  ;;  %1222 = vmatprep.subr.bf16.mxu0 %v2068_v2  ;;  %v2161_v1 = vld [vmem:[%s2987_s1 + $0x3ac] ss:$16 sps:$4 sm:$0xff]   ;;  %v2677_v2 = vld [vmem:[%s2988_s0 + $0xa0] ss:$16 sps:$4 sm:$0xff]  }
  0x41   :  { %1335 = vmatprep.subr.bf16.mxu1 %v2071_v3  ;;  %v2682_v3 = vld [vmem:[%s2988_s0 + $0xa8] ss:$16 sps:$4 sm:$0xff]  }
  0x42   :  { %1029 = vmatmul.mubr.bf16.vlgmr.msra.gmra.mxu0 %v2437_v4 }
  0x43   :  { %1142 = vmatmul.mubr.bf16.vlgmr.msra.gmra.mxu1 %v2442_v5  ;;  %1223 = vmatpush1.bf16.msra.mxu0 %v2066_v6  ;;  %v2156_v6 = vld [vmem:[%s2987_s1 + $0x1a8] ss:$16 sps:$4 sm:$0xff]  }
  0x44   :  { %1336 = vmatpush1.bf16.msra.mxu1 %v2069_v7  ;;  %1224 = vmatprep.subr.bf16.mxu0 %v2074_v8  ;;  %v2159_v7 = vld [vmem:[%s2987_s1 + $0x3a8] ss:$16 sps:$4 sm:$0xff]   ;;  %v2164_v8 = vld [vmem:[%s2987_s1 + $0x18c] ss:$16 sps:$4 sm:$0xff]  }
  0x45   :  { %1337 = vmatprep.subr.bf16.mxu1 %v2077_v9  ;;  %1038 = vmatprep.mubr.bf16.mxu0 %v2459_v10  ;;  %v2167_v9 = vld [vmem:[%s2987_s1 + $0x38c] ss:$16 sps:$4 sm:$0xff]  }
  0x46   :  { %1151 = vmatprep.mubr.bf16.mxu1 %v2464_v11 }
  0x47   :  { %1225 = vmatpush1.bf16.msra.mxu0 %v2072_v12  ;;  %v2699_v12 = vld [vmem:[%s2988_s0 + $0xc4] ss:$16 sps:$4 sm:$0xff]  }
  0x48   :  { %1338 = vmatpush1.bf16.msra.mxu1 %v2075_v13  ;;  %1226 = vmatprep.subr.bf16.mxu0 %v2086_v14  ;;  %v2704_v13 = vld [vmem:[%s2988_s0 + $0xcc] ss:$16 sps:$4 sm:$0xff]   ;;  %v2162_v14 = vld [vmem:[%s2987_s1 + $0x188] ss:$16 sps:$4 sm:$0xff]  }
  0x49   :  { %1339 = vmatprep.subr.bf16.mxu1 %v2089_v15  ;;  %v2165_v15 = vld [vmem:[%s2987_s1 + $0x388] ss:$16 sps:$4 sm:$0xff]  }
  0x4a   :  { %1039 = vmatmul.mubr.bf16.gmra.mxu0 %v2485_v16 }
  0x4b   :  { %1152 = vmatmul.mubr.bf16.gmra.mxu1 %v2490_v17  ;;  %1227 = vmatpush1.bf16.msra.mxu0 %v2084_v18  ;;  %v2176_v18 = vld [vmem:[%s2987_s1 + $0x16c] ss:$16 sps:$4 sm:$0xff]  }
  0x4c   :  { %1340 = vmatpush1.bf16.msra.mxu1 %v2087_v19  ;;  %1228 = vmatprep.subr.bf16.mxu0 %v2092_v20  ;;  %v2179_v19 = vld [vmem:[%s2987_s1 + $0x36c] ss:$16 sps:$4 sm:$0xff]   ;;  %v2725_v20 = vld [vmem:[%s2988_s0 + $0xc0] ss:$16 sps:$4 sm:$0xff]  }
  0x4d   :  { %1341 = vmatprep.subr.bf16.mxu1 %v2095_v21  ;;  %1048 = vmatprep.mubr.bf16.mxu0 %v2507_v22  ;;  %v2730_v21 = vld [vmem:[%s2988_s0 + $0xc8] ss:$16 sps:$4 sm:$0xff]  }
  0x4e   :  { %1161 = vmatprep.mubr.bf16.mxu1 %v2512_v23 }
  0x4f   :  { %1229 = vmatpush1.bf16.msra.mxu0 %v2090_v24  ;;  %v2174_v24 = vld [vmem:[%s2987_s1 + $0x168] ss:$16 sps:$4 sm:$0xff]  }
  0x50   :  { %1342 = vmatpush1.bf16.msra.mxu1 %v2093_v25  ;;  %1230 = vmatprep.subr.bf16.mxu0 %v2104_v26  ;;  %v2177_v25 = vld [vmem:[%s2987_s1 + $0x368] ss:$16 sps:$4 sm:$0xff]   ;;  %v2182_v26 = vld [vmem:[%s2987_s1 + $0x14c] ss:$16 sps:$4 sm:$0xff]  }
  0x51   :  { %1343 = vmatprep.subr.bf16.mxu1 %v2107_v27  ;;  %v2185_v27 = vld [vmem:[%s2987_s1 + $0x34c] ss:$16 sps:$4 sm:$0xff]  }
  0x52   :  { %1049 = vmatmul.mubr.bf16.gmra.mxu0 %v2533_v28 }
  0x53   :  { %1162 = vmatmul.mubr.bf16.gmra.mxu1 %v2538_v29  ;;  %1231 = vmatpush1.bf16.msra.mxu0 %v2102_v30  ;;  %v2186_v30 = vld [vmem:[%s2988_s0 + $0xe4] ss:$16 sps:$4 sm:$0xff]  }
  0x54   :  { %1344 = vmatpush1.bf16.msra.mxu1 %v2105_v31  ;;  %1232 = vmatprep.subr.bf16.mxu0 %v2110_v32  ;;  %v2188_v31 = vld [vmem:[%s2988_s0 + $0xec] ss:$16 sps:$4 sm:$0xff]   ;;  %v2180_v32 = vld [vmem:[%s2987_s1 + $0x148] ss:$16 sps:$4 sm:$0xff]  }
  0x55   :  { %1345 = vmatprep.subr.bf16.mxu1 %v2113_v33  ;;  %1058 = vmatprep.mubr.bf16.mxu0 %v2555_v34  ;;  %v2183_v33 = vld [vmem:[%s2987_s1 + $0x348] ss:$16 sps:$4 sm:$0xff]  }
  0x56   :  { %1171 = vmatprep.mubr.bf16.mxu1 %v2560_v35 }
  0x57   :  { %1233 = vmatpush1.bf16.msra.mxu0 %v2108_v36  ;;  %v2194_v36 = vld [vmem:[%s2987_s1 + $0x12c] ss:$16 sps:$4 sm:$0xff]  }
  0x58   :  { %1346 = vmatpush1.bf16.msra.mxu1 %v2111_v37  ;;  %1234 = vmatprep.subr.bf16.mxu0 %v2122_v38  ;;  %v2197_v37 = vld [vmem:[%s2987_s1 + $0x32c] ss:$16 sps:$4 sm:$0xff]   ;;  %v2190_v38 = vld [vmem:[%s2988_s0 + $0xe0] ss:$16 sps:$4 sm:$0xff]  }
  0x59   :  { %1347 = vmatprep.subr.bf16.mxu1 %v2125_v39  ;;  %v2191_v39 = vld [vmem:[%s2988_s0 + $0xe8] ss:$16 sps:$4 sm:$0xff]  }
  0x5a   :  { %1059 = vmatmul.mubr.bf16.gmra.mxu0 %v2581_v40 }
  0x5b   :  { %1172 = vmatmul.mubr.bf16.gmra.mxu1 %v2586_v41  ;;  %1235 = vmatpush1.bf16.msra.mxu0 %v2120_v42  ;;  %v2192_v42 = vld [vmem:[%s2987_s1 + $0x128] ss:$16 sps:$4 sm:$0xff]  }
  0x5c   :  { %1348 = vmatpush1.bf16.msra.mxu1 %v2123_v43  ;;  %1236 = vmatprep.subr.bf16.mxu0 %v2128_v44  ;;  %v2195_v43 = vld [vmem:[%s2987_s1 + $0x328] ss:$16 sps:$4 sm:$0xff]   ;;  %v2200_v44 = vld [vmem:[%s2987_s1 + $0x10c] ss:$16 sps:$4 sm:$0xff]  }
  0x5d   :  { %1349 = vmatprep.subr.bf16.mxu1 %v2131_v45  ;;  %1068 = vmatprep.mubr.bf16.mxu0 %v2603_v46  ;;  %v2203_v45 = vld [vmem:[%s2987_s1 + $0x30c] ss:$16 sps:$4 sm:$0xff]  }
  0x5e   :  { %1181 = vmatprep.mubr.bf16.mxu1 %v2608_v47 }
  0x5f   :  { %1237 = vmatpush1.bf16.msra.mxu0 %v2126_v48  ;;  %v2198_v48 = vld [vmem:[%s2987_s1 + $0x108] ss:$16 sps:$4 sm:$0xff]  }
  0x60   :  { %1350 = vmatpush1.bf16.msra.mxu1 %v2129_v50  ;;  %1238 = vmatprep.subr.bf16.mxu0 %v2140_v52  ;;  %v2201_v50 = vld [vmem:[%s2987_s1 + $0x308] ss:$16 sps:$4 sm:$0xff]  }
  0x61   :  { %1351 = vmatprep.subr.bf16.mxu1 %v2143_v53 }
  0x62   :  { %1069 = vmatmul.mubr.bf16.gmra.mxu0 %v2629_v54 }
  0x63   :  { %1182 = vmatmul.mubr.bf16.gmra.mxu1 %v2634_v55  ;;  %1239 = vmatpush2.bf16.msra.mxu0 %v2138_v56 }
  0x64   :  { %1352 = vmatpush2.bf16.msra.mxu1 %v2141_v57  ;;  %1240 = vmatprep.subr.bf16.mxu0 %v2146_v58 }
  0x65   :  { %1353 = vmatprep.subr.bf16.mxu1 %v2149_v59  ;;  %1078 = vmatprep.mubr.bf16.mxu0 %v2651_v60 }
  0x66   :  { %1191 = vmatprep.mubr.bf16.mxu1 %v2656_v61 }
  0x67   :  { %1241 = vmatpush2.bf16.msra.mxu0 %v2144_v62 }
  0x68   :  { %1354 = vmatpush2.bf16.msra.mxu1 %v2147_v63  ;;  %1242 = vmatprep.subr.bf16.mxu0 %v2158_v0 }
  0x69   :  { %1355 = vmatprep.subr.bf16.mxu1 %v2161_v1 }
  0x6a   :  { %1079 = vmatmul.mubr.bf16.gmra.mxu0 %v2677_v2 }
  0x6b   :  { %1192 = vmatmul.mubr.bf16.gmra.mxu1 %v2682_v3  ;;  %1243 = vmatpush2.bf16.msra.mxu0 %v2156_v6 }
  0x6c   :  { %1356 = vmatpush2.bf16.msra.mxu1 %v2159_v7  ;;  %1244 = vmatprep.subr.bf16.mxu0 %v2164_v8 }
  0x6d   :  { %1357 = vmatprep.subr.bf16.mxu1 %v2167_v9  ;;  %1088 = vmatprep.mubr.bf16.mxu0 %v2699_v12 }
  0x6e   :  { %1201 = vmatprep.mubr.bf16.mxu1 %v2704_v13 }
  0x6f   :  { %1245 = vmatpush2.bf16.msra.mxu0 %v2162_v14 }
  0x70   :  { %1358 = vmatpush2.bf16.msra.mxu1 %v2165_v15  ;;  %1246 = vmatprep.subr.bf16.mxu0 %v2176_v18 }
  0x71   :  { %1359 = vmatprep.subr.bf16.mxu1 %v2179_v19 }
  0x72   :  { %1089 = vmatmul.mubr.bf16.gmra.mxu0 %v2725_v20 }
  0x73   :  { %1202 = vmatmul.mubr.bf16.gmra.mxu1 %v2730_v21  ;;  %1247 = vmatpush2.bf16.msra.mxu0 %v2174_v24 }
  0x74   :  { %1360 = vmatpush2.bf16.msra.mxu1 %v2177_v25  ;;  %1248 = vmatprep.subr.bf16.mxu0 %v2182_v26 }
  0x75   :  { %1361 = vmatprep.subr.bf16.mxu1 %v2185_v27  ;;  %1098 = vmatprep.mubr.bf16.mxu0 %v2186_v30 }
  0x76   :  { %1211 = vmatprep.mubr.bf16.mxu1 %v2188_v31 }
  0x77   :  { %1249 = vmatpush2.bf16.msra.mxu0 %v2180_v32 }
  0x78   :  { %1362 = vmatpush2.bf16.msra.mxu1 %v2183_v33  ;;  %1250 = vmatprep.subr.bf16.mxu0 %v2194_v36 }
  0x79   :  { %1363 = vmatprep.subr.bf16.mxu1 %v2197_v37 }
  0x7a   :  { %1099 = vmatmul.mubr.bf16.gmra.mxu0 %v2190_v38 }
  0x7b   :  { %1212 = vmatmul.mubr.bf16.gmra.mxu1 %v2191_v39  ;;  %1251 = vmatpush2.bf16.msra.mxu0 %v2192_v42 }
  0x7c   :  { %1364 = vmatpush2.bf16.msra.mxu1 %v2195_v43  ;;  %1252 = vmatprep.subr.bf16.mxu0 %v2200_v44 }
  0x7d   :  { %1365 = vmatprep.subr.bf16.mxu1 %v2203_v45  ;;  %1254 = vmatprep.mubr.bf16.mxu0 %v2374_v49  ;;  %v176_v49 = vlaneseq }
  0x7e   :  { %1367 = vmatprep.mubr.bf16.mxu1 %v2382_v51 }
  0x7f   :  { %1253 = vmatpush2.bf16.msra.mxu0 %v2198_v48  ;;  %v177_v51 = vshrl.u32 %v176_v49, 7 }
  0x80   :  { %1366 = vmatpush2.bf16.msra.mxu1 %v2201_v50 }
  0x82   :  { %1255 = vmatmul.mubr.bf16.vlgmr.msra.gmra.mxu0 %v2437_v4  ;;  %v186_v4 = vsub.s32 2, %v177_v51 }
  0x83   :  { %1368 = vmatmul.mubr.bf16.vlgmr.msra.gmra.mxu1 %v2442_v5  ;;  %1264 = vmatprep.mubr.bf16.mxu0 %v2459_v10  ;;  %v174_v5 = vld [vmem:[%s2989_s2] sm:$0xf] }
  0x84   :  { %1377 = vmatprep.mubr.bf16.mxu1 %v2464_v11  ;;  %v2819_v10 = vrot.slane %v174_v5, %v186_v4  ;;  %v190_v11 = vsub.s32 3, %v177_v51 }
  0x8a   :  { %1265 = vmatmul.mubr.bf16.gmra.mxu0 %v2485_v16  ;;  %v2821_v16 = vrot.slane %v174_v5, %v190_v11 }
  0x8b   :  { %1378 = vmatmul.mubr.bf16.gmra.mxu1 %v2490_v17  ;;  %1274 = vmatprep.mubr.bf16.mxu0 %v2507_v22  ;;  %v178_v17 = vsub.s32 0, %v177_v51  ;;  %v182_v22 = vsub.s32 1, %v177_v51 }
  0x8c   :  { %1387 = vmatprep.mubr.bf16.mxu1 %v2512_v23 }
  0x8d   :  { %v2823_v23 = vrot.slane %v174_v5, %v178_v17 }
  0x92   :  { %1275 = vmatmul.mubr.bf16.gmra.mxu0 %v2533_v28  ;;  %v2825_v28 = vrot.slane %v174_v5, %v182_v22 }
  0x93   :  { %1388 = vmatmul.mubr.bf16.gmra.mxu1 %v2538_v29  ;;  %1284 = vmatprep.mubr.bf16.mxu0 %v2555_v34 }
  0x94   :  { %1397 = vmatprep.mubr.bf16.mxu1 %v2560_v35 }
  0x9a   :  { %1285 = vmatmul.mubr.bf16.gmra.mxu0 %v2581_v40 }
  0x9b   :  { %1398 = vmatmul.mubr.bf16.gmra.mxu1 %v2586_v41  ;;  %1294 = vmatprep.mubr.bf16.mxu0 %v2603_v46 }
  0x9c   :  { %1407 = vmatprep.mubr.bf16.mxu1 %v2608_v47 }
  0xa2   :  { %1295 = vmatmul.mubr.bf16.gmra.mxu0 %v2629_v54 }
  0xa3   :  { %1408 = vmatmul.mubr.bf16.gmra.mxu1 %v2634_v55  ;;  %1304 = vmatprep.mubr.bf16.mxu0 %v2651_v60 }
  0xa4   :  { %1417 = vmatprep.mubr.bf16.mxu1 %v2656_v61 }
  0xaa   :  { %1305 = vmatmul.mubr.bf16.gmra.mxu0 %v2677_v2 }
  0xab   :  { %1418 = vmatmul.mubr.bf16.gmra.mxu1 %v2682_v3  ;;  %1314 = vmatprep.mubr.bf16.mxu0 %v2699_v12 }
  0xac   :  { %1427 = vmatprep.mubr.bf16.mxu1 %v2704_v13 }
  0xb2   :  { %1315 = vmatmul.mubr.bf16.gmra.mxu0 %v2725_v20 }
  0xb3   :  { %1428 = vmatmul.mubr.bf16.gmra.mxu1 %v2730_v21  ;;  %1324 = vmatprep.mubr.bf16.mxu0 %v2186_v30 }
  0xb4   :  { %1437 = vmatprep.mubr.bf16.mxu1 %v2188_v31 }
  0xba   :  { %1325 = vmatmul.mubr.bf16.gmra.mxu0 %v2190_v38 }
  0xbb   :  { %1438 = vmatmul.mubr.bf16.gmra.mxu1 %v2191_v39 }
 0x102   :  { %v1030_v29 = vpop.f32.mrf.mxu0 }
 0x103   :  { %v1143_v34 = vpop.f32.mrf.mxu1  ;;  %v1031_v35 = vadd.f32 %v1030_v29, %v2823_v23 }
 0x104   :  { %v1032_v40 = vpop.f32.mrf.mxu0 }
 0x105   :  { %v1145_v41 = vpop.f32.mrf.mxu1  ;;  %v1144_v46 = vadd.f32 %v1143_v34, %v1031_v35  ;;  %v1033_v47 = vadd.f32 %v1032_v40, %v2825_v28 }
 0x106   :  { %v1034_v52 = vpop.f32.mrf.mxu0 }
 0x107   :  { %v1147_v53 = vpop.f32.mrf.mxu1  ;;  %v1146_v54 = vadd.f32 %v1145_v41, %v1033_v47  ;;  %v1035_v55 = vadd.f32 %v1034_v52, %v2823_v23  ;;  %v1448_v58 = vmax.f32 %v1144_v46, 0.0 }
 0x108   :  { %v1036_v56 = vpop.f32.mrf.mxu0 }
 0x109   :  { %v1149_v57 = vpop.f32.mrf.mxu1  ;;  %v1449_v59 = vmax.f32 %v1146_v54, 0.0  ;;  %v1148_v60 = vadd.f32 %v1147_v53, %v1035_v55  ;;  %v1037_v61 = vadd.f32 %v1036_v56, %v2825_v28 }
 0x10a   :  { %v1040_v62 = vpop.f32.mrf.mxu0 }
 0x10b   :  { %v1153_v63 = vpop.f32.mrf.mxu1  ;;  %v1932_v0 = vpack.c.bf16 %v1449_v59, %v1448_v58  ;;  %v1150_v1 = vadd.f32 %v1149_v57, %v1037_v61  ;;  %v1041_v2 = vadd.f32 %v1040_v62, %v2823_v23  ;;  %v1452_v7 = vmax.f32 %v1148_v60, 0.0 }
 0x10c   :  { %v1042_v3 = vpop.f32.mrf.mxu0 }
 0x10d   :  { %v1155_v6 = vpop.f32.mrf.mxu1  ;;  %1704 = vst [vmem:[%s2990_s3] sm:$0xff] %v1932_v0  ;;  %v1453_v8 = vmax.f32 %v1150_v1, 0.0  ;;  %v1154_v9 = vadd.f32 %v1153_v63, %v1041_v2  ;;  %v1043_v12 = vadd.f32 %v1042_v3, %v2825_v28 }
 0x10e   :  { %v1044_v13 = vpop.f32.mrf.mxu0 }
 0x10f   :  { %v1157_v14 = vpop.f32.mrf.mxu1  ;;  %v1934_v15 = vpack.c.bf16 %v1453_v8, %v1452_v7  ;;  %v1156_v18 = vadd.f32 %v1155_v6, %v1043_v12  ;;  %v1045_v19 = vadd.f32 %v1044_v13, %v2823_v23  ;;  %v1456_v24 = vmax.f32 %v1154_v9, 0.0 }
 0x110   :  { %v1046_v20 = vpop.f32.mrf.mxu0 }
 0x111   :  { %v1159_v21 = vpop.f32.mrf.mxu1  ;;  %1706 = vst [vmem:[%s2990_s3 + $0x10] sm:$0xff] %v1934_v15  ;;  %v1457_v25 = vmax.f32 %v1156_v18, 0.0  ;;  %v1158_v26 = vadd.f32 %v1157_v14, %v1045_v19  ;;  %v1047_v27 = vadd.f32 %v1046_v20, %v2825_v28 }
 0x112   :  { %v1050_v30 = vpop.f32.mrf.mxu0 }
 0x113   :  { %v1163_v31 = vpop.f32.mrf.mxu1  ;;  %v1936_v32 = vpack.c.bf16 %v1457_v25, %v1456_v24  ;;  %v1160_v33 = vadd.f32 %v1159_v21, %v1047_v27  ;;  %v1051_v36 = vadd.f32 %v1050_v30, %v2823_v23  ;;  %v1460_v39 = vmax.f32 %v1158_v26, 0.0 }
 0x114   :  { %v1052_v37 = vpop.f32.mrf.mxu0 }
 0x115   :  { %v1165_v38 = vpop.f32.mrf.mxu1  ;;  %1708 = vst [vmem:[%s2990_s3 + $0x20] sm:$0xff] %v1936_v32  ;;  %v1461_v42 = vmax.f32 %v1160_v33, 0.0  ;;  %v1164_v43 = vadd.f32 %v1163_v31, %v1051_v36  ;;  %v1053_v44 = vadd.f32 %v1052_v37, %v2825_v28 }
 0x116   :  { %v1054_v45 = vpop.f32.mrf.mxu0 }
 0x117   :  { %v1167_v48 = vpop.f32.mrf.mxu1  ;;  %v1938_v50 = vpack.c.bf16 %v1461_v42, %v1460_v39  ;;  %v1166_v49 = vadd.f32 %v1165_v38, %v1053_v44  ;;  %v1055_v51 = vadd.f32 %v1054_v45, %v2823_v23  ;;  %v1464_v11 = vmax.f32 %v1164_v43, 0.0 }
 0x118   :  { %v1056_v4 = vpop.f32.mrf.mxu0 }
 0x119   :  { %v1169_v5 = vpop.f32.mrf.mxu1  ;;  %1710 = vst [vmem:[%s2990_s3 + $0x30] sm:$0xff] %v1938_v50  ;;  %v1465_v17 = vmax.f32 %v1166_v49, 0.0  ;;  %v1168_v22 = vadd.f32 %v1167_v48, %v1055_v51  ;;  %v1057_v29 = vadd.f32 %v1056_v4, %v2825_v28 }
 0x11a   :  { %v1060_v34 = vpop.f32.mrf.mxu0 }
 0x11b   :  { %v1173_v35 = vpop.f32.mrf.mxu1  ;;  %v1940_v40 = vpack.c.bf16 %v1465_v17, %v1464_v11  ;;  %v1170_v41 = vadd.f32 %v1169_v5, %v1057_v29  ;;  %v1061_v46 = vadd.f32 %v1060_v34, %v2823_v23  ;;  %v1468_v53 = vmax.f32 %v1168_v22, 0.0 }
 0x11c   :  { %v1062_v47 = vpop.f32.mrf.mxu0 }
 0x11d   :  { %v1175_v52 = vpop.f32.mrf.mxu1  ;;  %1712 = vst [vmem:[%s2990_s3 + $0x40] sm:$0xff] %v1940_v40  ;;  %v1469_v54 = vmax.f32 %v1170_v41, 0.0  ;;  %v1174_v55 = vadd.f32 %v1173_v35, %v1061_v46  ;;  %v1063_v56 = vadd.f32 %v1062_v47, %v2825_v28 }
 0x11e   :  { %v1064_v57 = vpop.f32.mrf.mxu0 }
 0x11f   :  { %v1177_v58 = vpop.f32.mrf.mxu1  ;;  %v1942_v59 = vpack.c.bf16 %v1469_v54, %v1468_v53  ;;  %v1176_v60 = vadd.f32 %v1175_v52, %v1063_v56  ;;  %v1065_v61 = vadd.f32 %v1064_v57, %v2823_v23  ;;  %v1472_v0 = vmax.f32 %v1174_v55, 0.0 }
 0x120   :  { %v1066_v62 = vpop.f32.mrf.mxu0 }
 0x121   :  { %v1179_v63 = vpop.f32.mrf.mxu1  ;;  %1714 = vst [vmem:[%s2990_s3 + $0x50] sm:$0xff] %v1942_v59  ;;  %v1473_v1 = vmax.f32 %v1176_v60, 0.0  ;;  %v1178_v2 = vadd.f32 %v1177_v58, %v1065_v61  ;;  %v1067_v3 = vadd.f32 %v1066_v62, %v2825_v28 }
 0x122   :  { %v1070_v6 = vpop.f32.mrf.mxu0 }
 0x123   :  { %v1183_v7 = vpop.f32.mrf.mxu1  ;;  %v1944_v8 = vpack.c.bf16 %v1473_v1, %v1472_v0  ;;  %v1180_v9 = vadd.f32 %v1179_v63, %v1067_v3  ;;  %v1071_v12 = vadd.f32 %v1070_v6, %v2823_v23  ;;  %v1476_v15 = vmax.f32 %v1178_v2, 0.0 }
 0x124   :  { %v1072_v13 = vpop.f32.mrf.mxu0 }
 0x125   :  { %v1185_v14 = vpop.f32.mrf.mxu1  ;;  %1716 = vst [vmem:[%s2990_s3 + $0x60] sm:$0xff] %v1944_v8  ;;  %v1477_v18 = vmax.f32 %v1180_v9, 0.0  ;;  %v1184_v19 = vadd.f32 %v1183_v7, %v1071_v12  ;;  %v1073_v20 = vadd.f32 %v1072_v13, %v2825_v28 }
 0x126   :  { %v1074_v21 = vpop.f32.mrf.mxu0 }
 0x127   :  { %v1187_v24 = vpop.f32.mrf.mxu1  ;;  %v1946_v25 = vpack.c.bf16 %v1477_v18, %v1476_v15  ;;  %v1186_v26 = vadd.f32 %v1185_v14, %v1073_v20  ;;  %v1075_v27 = vadd.f32 %v1074_v21, %v2823_v23  ;;  %v1480_v32 = vmax.f32 %v1184_v19, 0.0 }
 0x128   :  { %v1076_v30 = vpop.f32.mrf.mxu0 }
 0x129   :  { %v1189_v31 = vpop.f32.mrf.mxu1  ;;  %1718 = vst [vmem:[%s2990_s3 + $0x70] sm:$0xff] %v1946_v25  ;;  %v1481_v33 = vmax.f32 %v1186_v26, 0.0  ;;  %v1188_v36 = vadd.f32 %v1187_v24, %v1075_v27  ;;  %v1077_v37 = vadd.f32 %v1076_v30, %v2825_v28 }
 0x12a   :  { %v1080_v38 = vpop.f32.mrf.mxu0 }
 0x12b   :  { %v1193_v39 = vpop.f32.mrf.mxu1  ;;  %v1948_v42 = vpack.c.bf16 %v1481_v33, %v1480_v32  ;;  %v1190_v43 = vadd.f32 %v1189_v31, %v1077_v37  ;;  %v1081_v44 = vadd.f32 %v1080_v38, %v2823_v23  ;;  %v1484_v50 = vmax.f32 %v1188_v36, 0.0 }
 0x12c   :  { %v1082_v45 = vpop.f32.mrf.mxu0 }
 0x12d   :  { %v1195_v48 = vpop.f32.mrf.mxu1  ;;  %1720 = vst [vmem:[%s2990_s3 + $0x80] sm:$0xff] %v1948_v42  ;;  %v1485_v49 = vmax.f32 %v1190_v43, 0.0  ;;  %v1194_v51 = vadd.f32 %v1193_v39, %v1081_v44  ;;  %v1083_v4 = vadd.f32 %v1082_v45, %v2825_v28 }
 0x12e   :  { %v1084_v5 = vpop.f32.mrf.mxu0 }
 0x12f   :  { %v1197_v11 = vpop.f32.mrf.mxu1  ;;  %v1950_v17 = vpack.c.bf16 %v1485_v49, %v1484_v50  ;;  %v1196_v22 = vadd.f32 %v1195_v48, %v1083_v4  ;;  %v1085_v29 = vadd.f32 %v1084_v5, %v2823_v23  ;;  %v1488_v40 = vmax.f32 %v1194_v51, 0.0 }
 0x130   :  { %v1086_v34 = vpop.f32.mrf.mxu0 }
 0x131   :  { %v1199_v35 = vpop.f32.mrf.mxu1  ;;  %1722 = vst [vmem:[%s2990_s3 + $0x90] sm:$0xff] %v1950_v17  ;;  %v1489_v41 = vmax.f32 %v1196_v22, 0.0  ;;  %v1198_v46 = vadd.f32 %v1197_v11, %v1085_v29  ;;  %v1087_v47 = vadd.f32 %v1086_v34, %v2825_v28 }
 0x132   :  { %v1090_v52 = vpop.f32.mrf.mxu0 }
 0x133   :  { %v1203_v53 = vpop.f32.mrf.mxu1  ;;  %v1952_v54 = vpack.c.bf16 %v1489_v41, %v1488_v40  ;;  %v1200_v55 = vadd.f32 %v1199_v35, %v1087_v47  ;;  %v1091_v56 = vadd.f32 %v1090_v52, %v2823_v23  ;;  %v1492_v59 = vmax.f32 %v1198_v46, 0.0 }
 0x134   :  { %v1092_v57 = vpop.f32.mrf.mxu0 }
 0x135   :  { %v1205_v58 = vpop.f32.mrf.mxu1  ;;  %1724 = vst [vmem:[%s2990_s3 + $0xa0] sm:$0xff] %v1952_v54  ;;  %v1493_v60 = vmax.f32 %v1200_v55, 0.0  ;;  %v1204_v61 = vadd.f32 %v1203_v53, %v1091_v56  ;;  %v1093_v62 = vadd.f32 %v1092_v57, %v2825_v28 }
 0x136   :  { %v1094_v63 = vpop.f32.mrf.mxu0 }
 0x137   :  { %v1207_v0 = vpop.f32.mrf.mxu1  ;;  %v1954_v1 = vpack.c.bf16 %v1493_v60, %v1492_v59  ;;  %v1206_v2 = vadd.f32 %v1205_v58, %v1093_v62  ;;  %v1095_v3 = vadd.f32 %v1094_v63, %v2823_v23  ;;  %v1496_v8 = vmax.f32 %v1204_v61, 0.0 }
 0x138   :  { %v1096_v6 = vpop.f32.mrf.mxu0 }
 0x139   :  { %v1209_v7 = vpop.f32.mrf.mxu1  ;;  %1726 = vst [vmem:[%s2990_s3 + $0xb0] sm:$0xff] %v1954_v1  ;;  %v1497_v9 = vmax.f32 %v1206_v2, 0.0  ;;  %v1208_v12 = vadd.f32 %v1207_v0, %v1095_v3  ;;  %v1097_v13 = vadd.f32 %v1096_v6, %v2825_v28 }
 0x13a   :  { %v1100_v14 = vpop.f32.mrf.mxu0 }
 0x13b   :  { %v1213_v15 = vpop.f32.mrf.mxu1  ;;  %v1956_v18 = vpack.c.bf16 %v1497_v9, %v1496_v8  ;;  %v1210_v19 = vadd.f32 %v1209_v7, %v1097_v13  ;;  %v1101_v20 = vadd.f32 %v1100_v14, %v2823_v23  ;;  %v1500_v25 = vmax.f32 %v1208_v12, 0.0 }
 0x13c   :  { %v1102_v21 = vpop.f32.mrf.mxu0 }
 0x13d   :  { %v1215_v24 = vpop.f32.mrf.mxu1  ;;  %1728 = vst [vmem:[%s2990_s3 + $0xc0] sm:$0xff] %v1956_v18  ;;  %v1501_v26 = vmax.f32 %v1210_v19, 0.0  ;;  %v1214_v27 = vadd.f32 %v1213_v15, %v1101_v20  ;;  %v1103_v30 = vadd.f32 %v1102_v21, %v2825_v28 }
 0x13e   :  { %v1104_v31 = vpop.f32.mrf.mxu0 }
 0x13f   :  { %v1217_v32 = vpop.f32.mrf.mxu1  ;;  %v1958_v33 = vpack.c.bf16 %v1501_v26, %v1500_v25  ;;  %v1216_v36 = vadd.f32 %v1215_v24, %v1103_v30  ;;  %v1105_v37 = vadd.f32 %v1104_v31, %v2823_v23  ;;  %v1504_v42 = vmax.f32 %v1214_v27, 0.0 }
 0x140   :  { %v1106_v38 = vpop.f32.mrf.mxu0 }
 0x141   :  { %v1219_v39 = vpop.f32.mrf.mxu1  ;;  %1730 = vst [vmem:[%s2990_s3 + $0xd0] sm:$0xff] %v1958_v33  ;;  %v1505_v43 = vmax.f32 %v1216_v36, 0.0  ;;  %v1218_v44 = vadd.f32 %v1217_v32, %v1105_v37  ;;  %v1107_v45 = vadd.f32 %v1106_v38, %v2825_v28 }
 0x142   :  { %v1256_v48 = vpop.f32.mrf.mxu0 }
 0x143   :  { %v1369_v50 = vpop.f32.mrf.mxu1  ;;  %v1960_v49 = vpack.c.bf16 %v1505_v43, %v1504_v42  ;;  %v1220_v51 = vadd.f32 %v1219_v39, %v1107_v45  ;;  %v1257_v4 = vadd.f32 %v1256_v48, %v2819_v10  ;;  %v1508_v23 = vmax.f32 %v1218_v44, 0.0 }
 0x144   :  { %v1258_v5 = vpop.f32.mrf.mxu0 }
 0x145   :  { %v1371_v11 = vpop.f32.mrf.mxu1  ;;  %1732 = vst [vmem:[%s2990_s3 + $0xe0] sm:$0xff] %v1960_v49  ;;  %v1509_v17 = vmax.f32 %v1220_v51, 0.0  ;;  %v1370_v22 = vadd.f32 %v1369_v50, %v1257_v4  ;;  %v1259_v29 = vadd.f32 %v1258_v5, %v2821_v16 }
 0x146   :  { %v1260_v34 = vpop.f32.mrf.mxu0 }
 0x147   :  { %v1373_v35 = vpop.f32.mrf.mxu1  ;;  %v1962_v28 = vpack.c.bf16 %v1509_v17, %v1508_v23  ;;  %v1372_v40 = vadd.f32 %v1371_v11, %v1259_v29  ;;  %v1261_v41 = vadd.f32 %v1260_v34, %v2819_v10  ;;  %v1450_v52 = vmax.f32 %v1370_v22, 0.0 }
 0x148   :  { %v1262_v46 = vpop.f32.mrf.mxu0 }
 0x149   :  { %v1375_v47 = vpop.f32.mrf.mxu1  ;;  %1734 = vst [vmem:[%s2990_s3 + $0xf0] sm:$0xff] %v1962_v28  ;;  %v1451_v53 = vmax.f32 %v1372_v40, 0.0  ;;  %v1374_v54 = vadd.f32 %v1373_v35, %v1261_v41  ;;  %v1263_v55 = vadd.f32 %v1262_v46, %v2821_v16 }
 0x14a   :  { %v1266_v56 = vpop.f32.mrf.mxu0 }
 0x14b   :  { %v1379_v57 = vpop.f32.mrf.mxu1  ;;  %v1933_v58 = vpack.c.bf16 %v1451_v53, %v1450_v52  ;;  %v1376_v59 = vadd.f32 %v1375_v47, %v1263_v55  ;;  %v1267_v60 = vadd.f32 %v1266_v56, %v2819_v10  ;;  %v1454_v63 = vmax.f32 %v1374_v54, 0.0 }
 0x14c   :  { %v1268_v61 = vpop.f32.mrf.mxu0 }
 0x14d   :  { %v1381_v62 = vpop.f32.mrf.mxu1  ;;  %1705 = vst [vmem:[%s2990_s3 + $0x8] sm:$0xff] %v1933_v58  ;;  %v1455_v0 = vmax.f32 %v1376_v59, 0.0  ;;  %v1380_v1 = vadd.f32 %v1379_v57, %v1267_v60  ;;  %v1269_v2 = vadd.f32 %v1268_v61, %v2821_v16 }
 0x14e   :  { %v1270_v3 = vpop.f32.mrf.mxu0 }
 0x14f   :  { %v1383_v6 = vpop.f32.mrf.mxu1  ;;  %v1935_v7 = vpack.c.bf16 %v1455_v0, %v1454_v63  ;;  %v1382_v8 = vadd.f32 %v1381_v62, %v1269_v2  ;;  %v1271_v9 = vadd.f32 %v1270_v3, %v2819_v10  ;;  %v1458_v14 = vmax.f32 %v1380_v1, 0.0 }
 0x150   :  { %v1272_v12 = vpop.f32.mrf.mxu0 }
 0x151   :  { %v1385_v13 = vpop.f32.mrf.mxu1  ;;  %1707 = vst [vmem:[%s2990_s3 + $0x18] sm:$0xff] %v1935_v7  ;;  %v1459_v15 = vmax.f32 %v1382_v8, 0.0  ;;  %v1384_v18 = vadd.f32 %v1383_v6, %v1271_v9  ;;  %v1273_v19 = vadd.f32 %v1272_v12, %v2821_v16 }
 0x152   :  { %v1276_v20 = vpop.f32.mrf.mxu0 }
 0x153   :  { %v1389_v21 = vpop.f32.mrf.mxu1  ;;  %v1937_v24 = vpack.c.bf16 %v1459_v15, %v1458_v14  ;;  %v1386_v25 = vadd.f32 %v1385_v13, %v1273_v19  ;;  %v1277_v26 = vadd.f32 %v1276_v20, %v2819_v10  ;;  %v1462_v31 = vmax.f32 %v1384_v18, 0.0 }
 0x154   :  { %v1278_v27 = vpop.f32.mrf.mxu0 }
 0x155   :  { %v1391_v30 = vpop.f32.mrf.mxu1  ;;  %1709 = vst [vmem:[%s2990_s3 + $0x28] sm:$0xff] %v1937_v24  ;;  %v1463_v32 = vmax.f32 %v1386_v25, 0.0  ;;  %v1390_v33 = vadd.f32 %v1389_v21, %v1277_v26  ;;  %v1279_v36 = vadd.f32 %v1278_v27, %v2821_v16 }
 0x156   :  { %v1280_v37 = vpop.f32.mrf.mxu0 }
 0x157   :  { %v1393_v38 = vpop.f32.mrf.mxu1  ;;  %v1939_v39 = vpack.c.bf16 %v1463_v32, %v1462_v31  ;;  %v1392_v42 = vadd.f32 %v1391_v30, %v1279_v36  ;;  %v1281_v43 = vadd.f32 %v1280_v37, %v2819_v10  ;;  %v1466_v48 = vmax.f32 %v1390_v33, 0.0 }
 0x158   :  { %v1282_v44 = vpop.f32.mrf.mxu0 }
 0x159   :  { %v1395_v45 = vpop.f32.mrf.mxu1  ;;  %1711 = vst [vmem:[%s2990_s3 + $0x38] sm:$0xff] %v1939_v39  ;;  %v1467_v50 = vmax.f32 %v1392_v42, 0.0  ;;  %v1394_v49 = vadd.f32 %v1393_v38, %v1281_v43  ;;  %v1283_v51 = vadd.f32 %v1282_v44, %v2821_v16 }
 0x15a   :  { %v1286_v4 = vpop.f32.mrf.mxu0 }
 0x15b   :  { %v1399_v5 = vpop.f32.mrf.mxu1  ;;  %v1941_v11 = vpack.c.bf16 %v1467_v50, %v1466_v48  ;;  %v1396_v23 = vadd.f32 %v1395_v45, %v1283_v51  ;;  %v1287_v17 = vadd.f32 %v1286_v4, %v2819_v10  ;;  %v1470_v34 = vmax.f32 %v1394_v49, 0.0 }
 0x15c   :  { %v1288_v22 = vpop.f32.mrf.mxu0 }
 0x15d   :  { %v1401_v29 = vpop.f32.mrf.mxu1  ;;  %1713 = vst [vmem:[%s2990_s3 + $0x48] sm:$0xff] %v1941_v11  ;;  %v1471_v35 = vmax.f32 %v1396_v23, 0.0  ;;  %v1400_v28 = vadd.f32 %v1399_v5, %v1287_v17  ;;  %v1289_v40 = vadd.f32 %v1288_v22, %v2821_v16 }
 0x15e   :  { %v1290_v41 = vpop.f32.mrf.mxu0 }
 0x15f   :  { %v1403_v46 = vpop.f32.mrf.mxu1  ;;  %v1943_v47 = vpack.c.bf16 %v1471_v35, %v1470_v34  ;;  %v1402_v52 = vadd.f32 %v1401_v29, %v1289_v40  ;;  %v1291_v53 = vadd.f32 %v1290_v41, %v2819_v10  ;;  %v1474_v56 = vmax.f32 %v1400_v28, 0.0 }
 0x160   :  { %v1292_v54 = vpop.f32.mrf.mxu0 }
 0x161   :  { %v1405_v55 = vpop.f32.mrf.mxu1  ;;  %1715 = vst [vmem:[%s2990_s3 + $0x58] sm:$0xff] %v1943_v47  ;;  %v1475_v57 = vmax.f32 %v1402_v52, 0.0  ;;  %v1404_v58 = vadd.f32 %v1403_v46, %v1291_v53  ;;  %v1293_v59 = vadd.f32 %v1292_v54, %v2821_v16 }
 0x162   :  { %v1296_v60 = vpop.f32.mrf.mxu0 }
 0x163   :  { %v1409_v61 = vpop.f32.mrf.mxu1  ;;  %v1945_v62 = vpack.c.bf16 %v1475_v57, %v1474_v56  ;;  %v1406_v63 = vadd.f32 %v1405_v55, %v1293_v59  ;;  %v1297_v0 = vadd.f32 %v1296_v60, %v2819_v10  ;;  %v1478_v3 = vmax.f32 %v1404_v58, 0.0 }
 0x164   :  { %v1298_v1 = vpop.f32.mrf.mxu0 }
 0x165   :  { %v1411_v2 = vpop.f32.mrf.mxu1  ;;  %1717 = vst [vmem:[%s2990_s3 + $0x68] sm:$0xff] %v1945_v62  ;;  %v1479_v6 = vmax.f32 %v1406_v63, 0.0  ;;  %v1410_v7 = vadd.f32 %v1409_v61, %v1297_v0  ;;  %v1299_v8 = vadd.f32 %v1298_v1, %v2821_v16 }
 0x166   :  { %v1300_v9 = vpop.f32.mrf.mxu0 }
 0x167   :  { %v1413_v12 = vpop.f32.mrf.mxu1  ;;  %v1947_v13 = vpack.c.bf16 %v1479_v6, %v1478_v3  ;;  %v1412_v14 = vadd.f32 %v1411_v2, %v1299_v8  ;;  %v1301_v15 = vadd.f32 %v1300_v9, %v2819_v10  ;;  %v1482_v20 = vmax.f32 %v1410_v7, 0.0 }
 0x168   :  { %v1302_v18 = vpop.f32.mrf.mxu0 }
 0x169   :  { %v1415_v19 = vpop.f32.mrf.mxu1  ;;  %1719 = vst [vmem:[%s2990_s3 + $0x78] sm:$0xff] %v1947_v13  ;;  %v1483_v21 = vmax.f32 %v1412_v14, 0.0  ;;  %v1414_v24 = vadd.f32 %v1413_v12, %v1301_v15  ;;  %v1303_v25 = vadd.f32 %v1302_v18, %v2821_v16 }
 0x16a   :  { %v1306_v26 = vpop.f32.mrf.mxu0 }
 0x16b   :  { %v1419_v27 = vpop.f32.mrf.mxu1  ;;  %v1949_v30 = vpack.c.bf16 %v1483_v21, %v1482_v20  ;;  %v1416_v31 = vadd.f32 %v1415_v19, %v1303_v25  ;;  %v1307_v32 = vadd.f32 %v1306_v26, %v2819_v10  ;;  %v1486_v37 = vmax.f32 %v1414_v24, 0.0 }
 0x16c   :  { %v1308_v33 = vpop.f32.mrf.mxu0 }
 0x16d   :  { %v1421_v36 = vpop.f32.mrf.mxu1  ;;  %1721 = vst [vmem:[%s2990_s3 + $0x88] sm:$0xff] %v1949_v30  ;;  %v1487_v38 = vmax.f32 %v1416_v31, 0.0  ;;  %v1420_v39 = vadd.f32 %v1419_v27, %v1307_v32  ;;  %v1309_v42 = vadd.f32 %v1308_v33, %v2821_v16 }
 0x16e   :  { %v1310_v43 = vpop.f32.mrf.mxu0 }
 0x16f   :  { %v1423_v44 = vpop.f32.mrf.mxu1  ;;  %v1951_v45 = vpack.c.bf16 %v1487_v38, %v1486_v37  ;;  %v1422_v48 = vadd.f32 %v1421_v36, %v1309_v42  ;;  %v1311_v50 = vadd.f32 %v1310_v43, %v2819_v10  ;;  %v1490_v4 = vmax.f32 %v1420_v39, 0.0 }
 0x170   :  { %v1312_v49 = vpop.f32.mrf.mxu0 }
 0x171   :  { %v1425_v51 = vpop.f32.mrf.mxu1  ;;  %1723 = vst [vmem:[%s2990_s3 + $0x98] sm:$0xff] %v1951_v45  ;;  %v1491_v5 = vmax.f32 %v1422_v48, 0.0  ;;  %v1424_v11 = vadd.f32 %v1423_v44, %v1311_v50  ;;  %v1313_v23 = vadd.f32 %v1312_v49, %v2821_v16 }
 0x172   :  { %v1316_v17 = vpop.f32.mrf.mxu0 }
 0x173   :  { %v1429_v22 = vpop.f32.mrf.mxu1  ;;  %v1953_v29 = vpack.c.bf16 %v1491_v5, %v1490_v4  ;;  %v1426_v34 = vadd.f32 %v1425_v51, %v1313_v23  ;;  %v1317_v35 = vadd.f32 %v1316_v17, %v2819_v10  ;;  %v1494_v41 = vmax.f32 %v1424_v11, 0.0 }
 0x174   :  { %v1318_v28 = vpop.f32.mrf.mxu0 }
 0x175   :  { %v1431_v40 = vpop.f32.mrf.mxu1  ;;  %1725 = vst [vmem:[%s2990_s3 + $0xa8] sm:$0xff] %v1953_v29  ;;  %v1495_v46 = vmax.f32 %v1426_v34, 0.0  ;;  %v1430_v47 = vadd.f32 %v1429_v22, %v1317_v35  ;;  %v1319_v52 = vadd.f32 %v1318_v28, %v2821_v16 }
 0x176   :  { %v1320_v53 = vpop.f32.mrf.mxu0 }
 0x177   :  { %v1433_v54 = vpop.f32.mrf.mxu1  ;;  %v1955_v55 = vpack.c.bf16 %v1495_v46, %v1494_v41  ;;  %v1432_v56 = vadd.f32 %v1431_v40, %v1319_v52  ;;  %v1321_v57 = vadd.f32 %v1320_v53, %v2819_v10  ;;  %v1498_v60 = vmax.f32 %v1430_v47, 0.0 }
 0x178   :  { %v1322_v58 = vpop.f32.mrf.mxu0 }
 0x179   :  { %v1435_v59 = vpop.f32.mrf.mxu1  ;;  %1727 = vst [vmem:[%s2990_s3 + $0xb8] sm:$0xff] %v1955_v55  ;;  %v1499_v61 = vmax.f32 %v1432_v56, 0.0  ;;  %v1434_v62 = vadd.f32 %v1433_v54, %v1321_v57  ;;  %v1323_v63 = vadd.f32 %v1322_v58, %v2821_v16 }
 0x17a   :  { %v1326_v0 = vpop.f32.mrf.mxu0 }
 0x17b   :  { %v1439_v1 = vpop.f32.mrf.mxu1  ;;  %v1957_v2 = vpack.c.bf16 %v1499_v61, %v1498_v60  ;;  %v1436_v3 = vadd.f32 %v1435_v59, %v1323_v63  ;;  %v1327_v6 = vadd.f32 %v1326_v0, %v2819_v10  ;;  %v1502_v9 = vmax.f32 %v1434_v62, 0.0 }
 0x17c   :  { %v1328_v7 = vpop.f32.mrf.mxu0 }
 0x17d   :  { %v1441_v8 = vpop.f32.mrf.mxu1  ;;  %1729 = vst [vmem:[%s2990_s3 + $0xc8] sm:$0xff] %v1957_v2  ;;  %v1503_v12 = vmax.f32 %v1436_v3, 0.0  ;;  %v1440_v13 = vadd.f32 %v1439_v1, %v1327_v6  ;;  %v1329_v14 = vadd.f32 %v1328_v7, %v2821_v16 }
 0x17e   :  { %v1330_v15 = vpop.f32.mrf.mxu0 }
 0x17f   :  { %v1443_v18 = vpop.f32.mrf.mxu1  ;;  %v1959_v19 = vpack.c.bf16 %v1503_v12, %v1502_v9  ;;  %v1442_v20 = vadd.f32 %v1441_v8, %v1329_v14  ;;  %v1331_v21 = vadd.f32 %v1330_v15, %v2819_v10  ;;  %v1506_v25 = vmax.f32 %v1440_v13, 0.0 }
 0x180   :  { %v1332_v24 = vpop.f32.mrf.mxu0 }
 0x181   :  { %1731 = vst [vmem:[%s2990_s3 + $0xd8] sm:$0xff] %v1959_v19  ;;  %v1507_v26 = vmax.f32 %v1442_v20, 0.0  ;;  %v1444_v27 = vadd.f32 %v1443_v18, %v1331_v21  ;;  %v1333_v30 = vadd.f32 %v1332_v24, %v2821_v16  ;;  %v1445_v31 = vpop.f32.mrf.mxu1 }
 0x183   :  { %v1961_v32 = vpack.c.bf16 %v1507_v26, %v1506_v25  ;;  %v1446_v33 = vadd.f32 %v1445_v31, %v1333_v30  ;;  %v1510_v36 = vmax.f32 %v1444_v27, 0.0 }
 0x185   :  { %1733 = vst [vmem:[%s2990_s3 + $0xe8] sm:$0xff] %v1961_v32  ;;  %v1511_v37 = vmax.f32 %v1446_v33, 0.0 }
 0x187   :  { %v1963_v10 = vpack.c.bf16 %v1511_v37, %v1510_v36 }
 0x189   :  { %1735 = vst [vmem:[%s2990_s3 + $0xf8] sm:$0xff] %v1963_v10 }

// kernel: vqcae_forward.21
= control target key start
LH: loop header
LB: loop body
LE: loop exit
PB: predicated region body
PF: predicated region fallthrough
CT: control target
= control target key end

     0   :  { %s3727_s12 = smov 0   ;;  %s4601_s0 = inlined_call_operand.vmem [shape: bf16[512,1152], index: 0, kind: input, shape index: {}]   ;;  %s4602_s1 = inlined_call_operand.vmem [shape: bf16[1152,128], index: 1, kind: input, shape index: {}]   ;;  %s4603_s2 = inlined_call_operand.vmem [shape: f32[1,128], index: 2, kind: input, shape index: {}]   ;;  %s4604_s3 = inlined_call_operand.vmem [shape: f32[512,128], index: 3, kind: output, shape index: {}]  }
   0x1 LB: > { %s2582_s13 = sadd.s32 4294967295, %s3705_s12   ;;  %p2586_p0 = scmp.ge.s32.totalorder %s3705_s12, 1  ;;  %s3705_s12 = sphi %s3727_s12, %s13_s12  }
   0x2   : > { %p139_p1 = scmp.lt.s32.totalorder %s3705_s12, 3 }
   0x4   : > { %p140_p2 = pnand %p2586_p0, %p139_p1 }
   0x6   : > { %143 = sbr.rel (%p140_p2) target bundleno = 544 (0x220), region = 32 }
   0xb   : > { %v3355_v0 = vld [vmem:[%s4602_s1 + $0x78] sm:$0xff]   ;;  %s2587_s16 = sshll.u32 %s2582_s13, 5  ;;  %v3357_v2 = vld [vmem:[%s4602_s1 + $0x70] sm:$0xff]   ;;  %v3359_v4 = vld [vmem:[%s4602_s1 + $0x68] sm:$0xff]  }
   0xc   : > { %v3356_v1 = vld [vmem:[%s4602_s1 + $0x38] sm:$0xff]   ;;  %2810 = vmatprep.subr.bf16.mxu0 %v3355_v0  ;;  %3330 = vmatprep.subr.bf16.mxu1 %v3355_v0  ;;  %p165_p3 = scmp.lt.s32.totalorder %s2587_s16, 63  ;;  %v3358_v3 = vld [vmem:[%s4602_s1 + $0x30] sm:$0xff]   ;;  %v3360_v5 = vld [vmem:[%s4602_s1 + $0x28] sm:$0xff]  }
   0xd   : > { %2811 = vmatpush3.bf16.msra.mxu0 %v3356_v1  ;;  %3338 = vmatpush3.bf16.msra.mxu1 %v3356_v1  ;;  %v3361_v6 = vld [vmem:[%s4602_s1 + $0x60] sm:$0xff]   ;;  %v3363_v8 = vld [vmem:[%s4602_s1 + $0x58] sm:$0xff]   ;;  %v3365_v10 = vld [vmem:[%s4602_s1 + $0x50] sm:$0xff]  }
   0xe   : > { %2812 = vmatprep.subr.bf16.mxu0 %v3357_v2  ;;  %3331 = vmatprep.subr.bf16.mxu1 %v3357_v2  ;;  %s4628_s16 = smov (!%p165_p3, %s2587_s16), 63  ;;  %v3362_v7 = vld [vmem:[%s4602_s1 + $0x20] sm:$0xff]   ;;  %v3364_v9 = vld [vmem:[%s4602_s1 + $0x18] sm:$0xff]   ;;  %v3366_v13 = vld [vmem:[%s4602_s1 + $0x10] sm:$0xff]  }
   0xf   : > { %s3346_s29 = smul.u32 36, %s4628_s16  ;;  %v3367_v14 = vld [vmem:[%s4602_s1 + $0x48] sm:$0xff]   ;;  %v3369_v16 = vld [vmem:[%s4602_s1 + $0x40] sm:$0xff]   ;;  %v3377_v18 = vld [vmem:[%s4602_s1 + $0xf8] sm:$0xff]  }
  0x10   : > { %v3368_v15 = vld [vmem:[%s4602_s1 + $0x8] sm:$0xff]   ;;  %v3370_v17 = vld [vmem:[%s4602_s1] sm:$0xff]   ;;  %v3380_v21 = vld [vmem:[%s4602_s1 + $0x178] sm:$0xff]  }
  0x11   : > { %2813 = vmatpush3.bf16.msra.mxu0 %v3358_v3  ;;  %3339 = vmatpush3.bf16.msra.mxu1 %v3358_v3  ;;  %s3768_s9 = scalar_lea.vmem %s4601_s0, %s3346_s29  ;;  %v3378_v22 = vld [vmem:[%s4602_s1 + $0xb8] sm:$0xff]   ;;  %v3379_v23 = vld [vmem:[%s4602_s1 + $0xf0] sm:$0xff]   ;;  %v3389_v31 = vld [vmem:[%s4602_s1 + $0xe8] sm:$0xff]  }
  0x12   : > { %2814 = vmatprep.subr.bf16.mxu0 %v3359_v4  ;;  %3332 = vmatprep.subr.bf16.mxu1 %v3359_v4  ;;  %v3373_v11 = vld [vmem:[%s3768_s9 + $0x4] ss:$36 sps:$4 sm:$0xff]   ;;  %v3382_v24 = vld [vmem:[%s4602_s1 + $0x138] sm:$0xff]   ;;  %v3383_v25 = vld [vmem:[%s3768_s9 + $0x4c] ss:$36 sps:$4 sm:$0xff]  }
  0x13   : > { %v3376_v12 = vld [vmem:[%s3768_s9 + $0x364] ss:$36 sps:$4 sm:$0xff]   ;;  %1689 = vmatprep.mubr.bf16.mxu0 %v3373_v11  ;;  %v3385_v26 = vld [vmem:[%s3768_s9 + $0x3ac] ss:$36 sps:$4 sm:$0xff]   ;;  %v3393_v35 = vld [vmem:[%s3768_s9 + $0x94] ss:$36 sps:$4 sm:$0xff]  }
  0x14   : > { %1785 = vmatprep.mubr.bf16.mxu1 %v3376_v12  ;;  %v3371_v19 = vld [vmem:[%s3768_s9] ss:$36 sps:$4 sm:$0xff]   ;;  %v3381_v27 = vld [vmem:[%s4602_s1 + $0xb0] sm:$0xff]   ;;  %v3387_v29 = vld [vmem:[%s3768_s9 + $0x48] ss:$36 sps:$4 sm:$0xff]  }
  0x15   : > { %2815 = vmatpush3.bf16.msra.mxu0 %v3360_v5  ;;  %3340 = vmatpush3.bf16.msra.mxu1 %v3360_v5  ;;  %v3374_v20 = vld [vmem:[%s3768_s9 + $0x360] ss:$36 sps:$4 sm:$0xff]   ;;  %v3400_v28 = vld [vmem:[%s4602_s1 + $0x170] sm:$0xff]   ;;  %v3388_v30 = vld [vmem:[%s3768_s9 + $0x3a8] ss:$36 sps:$4 sm:$0xff]  }
  0x16   : > { %2816 = vmatprep.subr.bf16.mxu0 %v3361_v6  ;;  %3333 = vmatprep.subr.bf16.mxu1 %v3361_v6  ;;  %v3390_v32 = vld [vmem:[%s4602_s1 + $0xa8] sm:$0xff]   ;;  %v3402_v33 = vld [vmem:[%s4602_s1 + $0x130] sm:$0xff]   ;;  %v3391_v34 = vld [vmem:[%s4602_s1 + $0xe0] sm:$0xff]  }
  0x17   : > { %v3395_v36 = vld [vmem:[%s3768_s9 + $0x3f4] ss:$36 sps:$4 sm:$0xff]   ;;  %v3392_v37 = vld [vmem:[%s4602_s1 + $0xa0] sm:$0xff]   ;;  %v3414_v43 = vld [vmem:[%s4602_s1 + $0x168] sm:$0xff]  }
  0x18   : > { %v3397_v38 = vld [vmem:[%s3768_s9 + $0x90] ss:$36 sps:$4 sm:$0xff]   ;;  %v3399_v40 = vld [vmem:[%s4602_s1 + $0xd8] sm:$0xff]   ;;  %v3416_v46 = vld [vmem:[%s4602_s1 + $0x128] sm:$0xff]  }
  0x19   : > { %2817 = vmatpush3.bf16.msra.mxu0 %v3362_v7  ;;  %3341 = vmatpush3.bf16.msra.mxu1 %v3362_v7  ;;  %v3398_v39 = vld [vmem:[%s3768_s9 + $0x3f0] ss:$36 sps:$4 sm:$0xff]   ;;  %v3401_v41 = vld [vmem:[%s4602_s1 + $0x98] sm:$0xff]   ;;  %v3411_v48 = vld [vmem:[%s4602_s1 + $0xc8] sm:$0xff]  }
  0x1a   : > { %2818 = vmatprep.subr.bf16.mxu0 %v3363_v8  ;;  %3334 = vmatprep.subr.bf16.mxu1 %v3363_v8  ;;  %v3403_v42 = vld [vmem:[%s4602_s1 + $0xd0] sm:$0xff]   ;;  %v3405_v44 = vld [vmem:[%s3768_s9 + $0xdc] ss:$36 sps:$4 sm:$0xff]   ;;  %v3412_v51 = vld [vmem:[%s4602_s1 + $0x88] sm:$0xff]  }
  0x1b   : > { %v3407_v45 = vld [vmem:[%s3768_s9 + $0x43c] ss:$36 sps:$4 sm:$0xff]   ;;  %v3404_v47 = vld [vmem:[%s4602_s1 + $0x90] sm:$0xff]   ;;  %v3417_v53 = vld [vmem:[%s3768_s9 + $0x124] ss:$36 sps:$4 sm:$0xff]  }
  0x1c   : > { %v3409_v49 = vld [vmem:[%s3768_s9 + $0xd8] ss:$36 sps:$4 sm:$0xff]   ;;  %v3413_v52 = vld [vmem:[%s4602_s1 + $0xc0] sm:$0xff]   ;;  %v3421_v54 = vld [vmem:[%s3768_s9 + $0xc] ss:$36 sps:$4 sm:$0xff]  }
  0x1d   : > { %2819 = vmatpush3.bf16.msra.mxu0 %v3364_v9  ;;  %3342 = vmatpush3.bf16.msra.mxu1 %v3364_v9  ;;  %v3410_v50 = vld [vmem:[%s3768_s9 + $0x438] ss:$36 sps:$4 sm:$0xff]   ;;  %v3431_v55 = vld [vmem:[%s4602_s1 + $0x160] sm:$0xff]   ;;  %v3419_v58 = vld [vmem:[%s3768_s9 + $0x8] ss:$36 sps:$4 sm:$0xff]  }
  0x1e   : > { %2820 = vmatprep.subr.bf16.mxu0 %v3365_v10  ;;  %3335 = vmatprep.subr.bf16.mxu1 %v3365_v10  ;;  %v3432_v56 = vld [vmem:[%s4602_s1 + $0x120] sm:$0xff]   ;;  %v3423_v60 = vld [vmem:[%s4602_s1 + $0x1f8] sm:$0xff]   ;;  %v3425_v62 = vld [vmem:[%s3768_s9 + $0x16c] ss:$36 sps:$4 sm:$0xff]  }
  0x1f   : > { %v3415_v57 = vld [vmem:[%s4602_s1 + $0x80] sm:$0xff]   ;;  %v3424_v61 = vld [vmem:[%s4602_s1 + $0x1b8] sm:$0xff]   ;;  %v3439_v1 = vld [vmem:[%s4602_s1 + $0x1f0] sm:$0xff]  }
  0x20   : > { %v3422_v59 = vld [vmem:[%s3768_s9 + $0x120] ss:$36 sps:$4 sm:$0xff]   ;;  %v3427_v63 = vld [vmem:[%s3768_s9 + $0x54] ss:$36 sps:$4 sm:$0xff]   ;;  %v3429_v4 = vld [vmem:[%s3768_s9 + $0x168] ss:$36 sps:$4 sm:$0xff]  }
  0x21   : > { %2821 = vmatpush3.bf16.msra.mxu0 %v3366_v13  ;;  %3343 = vmatpush3.bf16.msra.mxu1 %v3366_v13  ;;  %v3441_v0 = vld [vmem:[%s4602_s1 + $0x158] sm:$0xff]   ;;  %v3440_v3 = vld [vmem:[%s4602_s1 + $0x1b0] sm:$0xff]   ;;  %v3456_v9 = vld [vmem:[%s4602_s1 + $0x1e8] sm:$0xff]  }
  0x22   : > { %2822 = vmatprep.subr.bf16.mxu0 %v3367_v14  ;;  %3336 = vmatprep.subr.bf16.mxu1 %v3367_v14  ;;  %v3442_v2 = vld [vmem:[%s4602_s1 + $0x118] sm:$0xff]   ;;  %v3430_v5 = vld [vmem:[%s3768_s9 + $0x50] ss:$36 sps:$4 sm:$0xff]   ;;  %v3458_v11 = vld [vmem:[%s4602_s1 + $0x1a8] sm:$0xff]  }
  0x23   : > { %v3433_v6 = vld [vmem:[%s3768_s9 + $0x1b4] ss:$36 sps:$4 sm:$0xff]   ;;  %v3435_v7 = vld [vmem:[%s3768_s9 + $0x9c] ss:$36 sps:$4 sm:$0xff]  }
  0x24   : > { %v3455_v8 = vld [vmem:[%s4602_s1 + $0x150] sm:$0xff]   ;;  %v3438_v13 = vld [vmem:[%s3768_s9 + $0x98] ss:$36 sps:$4 sm:$0xff]  }
  0x25   : > { %2823 = vmatpush3.bf16.msra.mxu0 %v3368_v15  ;;  %3344 = vmatpush3.bf16.msra.mxu1 %v3368_v15  ;;  %v3457_v10 = vld [vmem:[%s4602_s1 + $0x110] sm:$0xff]   ;;  %v3443_v14 = vld [vmem:[%s3768_s9 + $0x1fc] ss:$36 sps:$4 sm:$0xff]   ;;  %v3465_v15 = vld [vmem:[%s4602_s1 + $0x148] sm:$0xff]  }
  0x26   : > { %2824 = vmatprep.subr.bf16.mxu0 %v3369_v16  ;;  %3337 = vmatprep.subr.bf16.mxu1 %v3369_v16  ;;  %v3437_v12 = vld [vmem:[%s3768_s9 + $0x1b0] ss:$36 sps:$4 sm:$0xff]   ;;  %v3466_v16 = vld [vmem:[%s4602_s1 + $0x108] sm:$0xff]  }
  0x29   : > { %2825 = vmatpush3.bf16.msra.mxu0 %v3370_v17  ;;  %3345 = vmatpush3.bf16.msra.mxu1 %v3370_v17  ;;  %v3445_v17 = vld [vmem:[%s3768_s9 + $0xe4] ss:$36 sps:$4 sm:$0xff]  }
  0x2a   : > { %2922 = vmatprep.subr.bf16.mxu1 %v3377_v18  ;;  %3034 = vmatprep.subr.bf16.mxu0 %v3380_v21  ;;  %v3473_v18 = vld [vmem:[%s4602_s1 + $0x1e0] sm:$0xff]  }
  0x2b   : > { %v3448_v21 = vld [vmem:[%s3768_s9 + $0xe0] ss:$36 sps:$4 sm:$0xff]  }
  0x2c   : > { %1690 = vmatmul.mubr.bf16.vlgmr.msra.gmra.mxu0 %v3371_v19  ;;  %1786 = vmatmul.mubr.bf16.vlgmr.msra.gmra.mxu1 %v3374_v20  ;;  %v3474_v19 = vld [vmem:[%s4602_s1 + $0x1a0] sm:$0xff]   ;;  %v3447_v20 = vld [vmem:[%s3768_s9 + $0x1f8] ss:$36 sps:$4 sm:$0xff]  }
  0x2d   : > { %2923 = vmatpush3.bf16.msra.mxu1 %v3378_v22  ;;  %3035 = vmatpush3.bf16.msra.mxu0 %v3382_v24  ;;  %v3449_v22 = vld [vmem:[%s3768_s9 + $0x244] ss:$36 sps:$4 sm:$0xff]  }
  0x2e   : > { %2924 = vmatprep.subr.bf16.mxu1 %v3379_v23  ;;  %1697 = vmatprep.mubr.bf16.mxu0 %v3383_v25  ;;  %v3451_v23 = vld [vmem:[%s3768_s9 + $0x12c] ss:$36 sps:$4 sm:$0xff]   ;;  %v3481_v24 = vld [vmem:[%s4602_s1 + $0x140] sm:$0xff]  }
  0x2f   : > { %1793 = vmatprep.mubr.bf16.mxu1 %v3385_v26  ;;  %3036 = vmatprep.subr.bf16.mxu0 %v3400_v28  ;;  %v3482_v25 = vld [vmem:[%s4602_s1 + $0x100] sm:$0xff]   ;;  %v3489_v26 = vld [vmem:[%s4602_s1 + $0x1d8] sm:$0xff]  }
  0x30   : > { %v3490_v28 = vld [vmem:[%s4602_s1 + $0x198] sm:$0xff]  }
  0x31   : > { %2925 = vmatpush3.bf16.msra.mxu1 %v3381_v27  ;;  %3037 = vmatpush3.bf16.msra.mxu0 %v3402_v33  ;;  %v3453_v27 = vld [vmem:[%s3768_s9 + $0x240] ss:$36 sps:$4 sm:$0xff]   ;;  %v3504_v33 = vld [vmem:[%s4602_s1 + $0x1d0] sm:$0xff]  }
  0x32   : > { %2926 = vmatprep.subr.bf16.mxu1 %v3389_v31  ;;  %3038 = vmatprep.subr.bf16.mxu0 %v3414_v43  ;;  %v3459_v31 = vld [vmem:[%s3768_s9 + $0x28c] ss:$36 sps:$4 sm:$0xff]   ;;  %v3475_v43 = vld [vmem:[%s3768_s9 + $0x31c] ss:$36 sps:$4 sm:$0xff]  }
  0x34   : > { %1698 = vmatmul.mubr.bf16.gmra.mxu0 %v3387_v29  ;;  %1794 = vmatmul.mubr.bf16.gmra.mxu1 %v3388_v30  ;;  %v3491_v29 = vld [vmem:[%s4602_s1 + $0x238] sm:$0xff]   ;;  %v3454_v30 = vld [vmem:[%s3768_s9 + $0x128] ss:$36 sps:$4 sm:$0xff]  }
  0x35   : > { %2927 = vmatpush3.bf16.msra.mxu1 %v3390_v32  ;;  %1705 = vmatprep.mubr.bf16.mxu0 %v3393_v35  ;;  %v3461_v32 = vld [vmem:[%s3768_s9 + $0x174] ss:$36 sps:$4 sm:$0xff]  }
  0x36   : > { %2928 = vmatprep.subr.bf16.mxu1 %v3391_v34  ;;  %1801 = vmatprep.mubr.bf16.mxu1 %v3395_v36  ;;  %v3463_v34 = vld [vmem:[%s3768_s9 + $0x288] ss:$36 sps:$4 sm:$0xff]   ;;  %v3505_v35 = vld [vmem:[%s4602_s1 + $0x190] sm:$0xff]  }
  0x37   : > { %3039 = vmatpush3.bf16.msra.mxu0 %v3416_v46  ;;  %v3464_v36 = vld [vmem:[%s3768_s9 + $0x170] ss:$36 sps:$4 sm:$0xff]   ;;  %v3480_v46 = vld [vmem:[%s3768_s9 + $0x200] ss:$36 sps:$4 sm:$0xff]  }
  0x38   : > { %3040 = vmatprep.subr.bf16.mxu0 %v3431_v55  ;;  %v3506_v55 = vld [vmem:[%s4602_s1 + $0x230] sm:$0xff]  }
  0x39   : > { %2929 = vmatpush3.bf16.msra.mxu1 %v3392_v37  ;;  %v3467_v37 = vld [vmem:[%s3768_s9 + $0x2d4] ss:$36 sps:$4 sm:$0xff]  }
  0x3a   : > { %2930 = vmatprep.subr.bf16.mxu1 %v3399_v40  ;;  %v3472_v40 = vld [vmem:[%s3768_s9 + $0x1b8] ss:$36 sps:$4 sm:$0xff]  }
  0x3b   : > { %3041 = vmatpush3.bf16.msra.mxu0 %v3432_v56  ;;  %v3521_v56 = vld [vmem:[%s4602_s1 + $0x228] sm:$0xff]  }
  0x3c   : > { %1706 = vmatmul.mubr.bf16.gmra.mxu0 %v3397_v38  ;;  %1802 = vmatmul.mubr.bf16.gmra.mxu1 %v3398_v39  ;;  %v3469_v38 = vld [vmem:[%s3768_s9 + $0x1bc] ss:$36 sps:$4 sm:$0xff]   ;;  %v3471_v39 = vld [vmem:[%s3768_s9 + $0x2d0] ss:$36 sps:$4 sm:$0xff]  }
  0x3d   : > { %2931 = vmatpush3.bf16.msra.mxu1 %v3401_v41  ;;  %1713 = vmatprep.mubr.bf16.mxu0 %v3405_v44  ;;  %v3519_v41 = vld [vmem:[%s4602_s1 + $0x1c8] sm:$0xff]  }
  0x3e   : > { %2932 = vmatprep.subr.bf16.mxu1 %v3403_v42  ;;  %1809 = vmatprep.mubr.bf16.mxu1 %v3407_v45  ;;  %v3520_v42 = vld [vmem:[%s4602_s1 + $0x188] sm:$0xff]   ;;  %v3479_v45 = vld [vmem:[%s3768_s9 + $0x318] ss:$36 sps:$4 sm:$0xff]  }
  0x3f   : > { %3042 = vmatprep.subr.bf16.mxu0 %v3441_v0  ;;  %v3477_v44 = vld [vmem:[%s3768_s9 + $0x204] ss:$36 sps:$4 sm:$0xff]  }
  0x40   : > { %3043 = vmatpush3.bf16.msra.mxu0 %v3442_v2  ;;  %v3503_v0 = vld [vmem:[%s3768_s9 + $0xa0] ss:$36 sps:$4 sm:$0xff]   ;;  %v3509_v2 = vld [vmem:[%s3768_s9 + $0xec] ss:$36 sps:$4 sm:$0xff]  }
  0x41   : > { %2933 = vmatpush3.bf16.msra.mxu1 %v3404_v47  ;;  %3044 = vmatprep.subr.bf16.mxu0 %v3455_v8  ;;  %v3534_v47 = vld [vmem:[%s4602_s1 + $0x1c0] sm:$0xff]   ;;  %v3515_v8 = vld [vmem:[%s3768_s9 + $0x134] ss:$36 sps:$4 sm:$0xff]  }
  0x42   : > { %2934 = vmatprep.subr.bf16.mxu1 %v3411_v48  ;;  %v3535_v48 = vld [vmem:[%s4602_s1 + $0x180] sm:$0xff]  }
  0x44   : > { %1714 = vmatmul.mubr.bf16.gmra.mxu0 %v3409_v49  ;;  %1810 = vmatmul.mubr.bf16.gmra.mxu1 %v3410_v50  ;;  %v3483_v49 = vld [vmem:[%s3768_s9 + $0x24c] ss:$36 sps:$4 sm:$0xff]   ;;  %v3487_v50 = vld [vmem:[%s3768_s9 + $0x14] ss:$36 sps:$4 sm:$0xff]  }
  0x45   : > { %2935 = vmatpush3.bf16.msra.mxu1 %v3412_v51  ;;  %1721 = vmatprep.mubr.bf16.mxu0 %v3417_v53  ;;  %v3485_v51 = vld [vmem:[%s3768_s9 + $0x10] ss:$36 sps:$4 sm:$0xff]  }
  0x46   : > { %2936 = vmatprep.subr.bf16.mxu1 %v3413_v52  ;;  %1850 = vmatprep.mubr.bf16.mxu1 %v3421_v54  ;;  %v3488_v52 = vld [vmem:[%s3768_s9 + $0x248] ss:$36 sps:$4 sm:$0xff]   ;;  %v3492_v53 = vld [vmem:[%s3768_s9 + $0x294] ss:$36 sps:$4 sm:$0xff]   ;;  %v3494_v54 = vld [vmem:[%s3768_s9 + $0x5c] ss:$36 sps:$4 sm:$0xff]  }
  0x47   : > { %3045 = vmatpush3.bf16.msra.mxu0 %v3457_v10  ;;  %v3517_v10 = vld [vmem:[%s3768_s9 + $0x368] ss:$36 sps:$4 sm:$0xff]  }
  0x48   : > { %3046 = vmatprep.subr.bf16.mxu0 %v3465_v15  ;;  %v3527_v15 = vld [vmem:[%s3768_s9 + $0x178] ss:$36 sps:$4 sm:$0xff]  }
  0x49   : > { %2937 = vmatpush3.bf16.msra.mxu1 %v3415_v57  ;;  %v3496_v57 = vld [vmem:[%s3768_s9 + $0x290] ss:$36 sps:$4 sm:$0xff]  }
  0x4a   : > { %3146 = vmatprep.subr.bf16.mxu1 %v3423_v60  ;;  %v3500_v60 = vld [vmem:[%s3768_s9 + $0xa4] ss:$36 sps:$4 sm:$0xff]  }
  0x4b   : > { %3047 = vmatpush3.bf16.msra.mxu0 %v3466_v16  ;;  %v3528_v16 = vld [vmem:[%s3768_s9 + $0x3fc] ss:$36 sps:$4 sm:$0xff]  }
  0x4c   : > { %1722 = vmatmul.mubr.bf16.gmra.mxu0 %v3422_v59  ;;  %1851 = vmatmul.mubr.bf16.vlgmr.msra.gmra.mxu1 %v3419_v58  ;;  %v3497_v58 = vld [vmem:[%s3768_s9 + $0x58] ss:$36 sps:$4 sm:$0xff]  }
  0x4d   : > { %3147 = vmatpush3.bf16.msra.mxu1 %v3424_v61  ;;  %1729 = vmatprep.mubr.bf16.mxu0 %v3425_v62  ;;  %v3498_v59 = vld [vmem:[%s3768_s9 + $0x2dc] ss:$36 sps:$4 sm:$0xff]  }
  0x4e   : > { %1858 = vmatprep.mubr.bf16.mxu1 %v3427_v63  ;;  %3148 = vmatprep.subr.bf16.mxu1 %v3439_v1  ;;  %v3536_v61 = vld [vmem:[%s4602_s1 + $0x220] sm:$0xff]   ;;  %v3502_v62 = vld [vmem:[%s3768_s9 + $0x2d8] ss:$36 sps:$4 sm:$0xff]  }
  0x4f   : > { %3048 = vmatprep.subr.bf16.mxu0 %v3481_v24  ;;  %v3549_v63 = vld [vmem:[%s4602_s1 + $0x218] sm:$0xff]   ;;  %v3507_v1 = vld [vmem:[%s3768_s9 + $0x324] ss:$36 sps:$4 sm:$0xff]  }
  0x50   : > { %3049 = vmatpush3.bf16.msra.mxu0 %v3482_v25  ;;  %v3543_v24 = vld [vmem:[%s3768_s9 + $0x254] ss:$36 sps:$4 sm:$0xff]   ;;  %v3547_v25 = vld [vmem:[%s3768_s9 + $0x1c] ss:$36 sps:$4 sm:$0xff]  }
  0x51   : > { %3149 = vmatpush3.bf16.msra.mxu1 %v3440_v3  ;;  %3282 = vmatprep.subr.bf16.mxu0 %v3491_v29  ;;  %v3562_v3 = vld [vmem:[%s4602_s1 + $0x210] sm:$0xff]  }
  0x52   : > { %3150 = vmatprep.subr.bf16.mxu1 %v3456_v9  ;;  %v3588_v9 = vld [vmem:[%s4602_s1 + $0x200] sm:$0xff]  }
  0x54   : > { %1730 = vmatmul.mubr.bf16.gmra.mxu0 %v3429_v4  ;;  %1859 = vmatmul.mubr.bf16.gmra.mxu1 %v3430_v5  ;;  %v3511_v4 = vld [vmem:[%s3768_s9 + $0x320] ss:$36 sps:$4 sm:$0xff]   ;;  %v3575_v5 = vld [vmem:[%s4602_s1 + $0x208] sm:$0xff]  }
  0x55   : > { %1737 = vmatprep.mubr.bf16.mxu0 %v3433_v6  ;;  %1866 = vmatprep.mubr.bf16.mxu1 %v3435_v7  ;;  %v3512_v6 = vld [vmem:[%s3768_s9 + $0xe8] ss:$36 sps:$4 sm:$0xff]  }
  0x56   : > { %3151 = vmatpush3.bf16.msra.mxu1 %v3458_v11  ;;  %v3513_v7 = vld [vmem:[%s3768_s9 + $0x36c] ss:$36 sps:$4 sm:$0xff]  }
  0x57   : > { %3152 = vmatprep.subr.bf16.mxu1 %v3473_v18  ;;  %v3518_v11 = vld [vmem:[%s3768_s9 + $0x130] ss:$36 sps:$4 sm:$0xff]   ;;  %v3532_v18 = vld [vmem:[%s3768_s9 + $0x3f8] ss:$36 sps:$4 sm:$0xff]  }
  0x5a   : > { %3153 = vmatpush3.bf16.msra.mxu1 %v3474_v19  ;;  %v3533_v19 = vld [vmem:[%s3768_s9 + $0x1c0] ss:$36 sps:$4 sm:$0xff]  }
  0x5b   : > { %3154 = vmatprep.subr.bf16.mxu1 %v3489_v26  ;;  %v3545_v26 = vld [vmem:[%s3768_s9 + $0x18] ss:$36 sps:$4 sm:$0xff]  }
  0x5c   : > { %1738 = vmatmul.mubr.bf16.gmra.mxu0 %v3437_v12  ;;  %1867 = vmatmul.mubr.bf16.gmra.mxu1 %v3438_v13  ;;  %v3522_v12 = vld [vmem:[%s3768_s9 + $0x3b4] ss:$36 sps:$4 sm:$0xff]   ;;  %v3524_v13 = vld [vmem:[%s3768_s9 + $0x17c] ss:$36 sps:$4 sm:$0xff]  }
  0x5d   : > { %1745 = vmatprep.mubr.bf16.mxu0 %v3443_v14  ;;  %1874 = vmatprep.mubr.bf16.mxu1 %v3445_v17  ;;  %v3526_v14 = vld [vmem:[%s3768_s9 + $0x3b0] ss:$36 sps:$4 sm:$0xff]   ;;  %v3530_v17 = vld [vmem:[%s3768_s9 + $0x1c4] ss:$36 sps:$4 sm:$0xff]  }
  0x5e   : > { %3155 = vmatpush3.bf16.msra.mxu1 %v3490_v28  ;;  %v3550_v28 = vld [vmem:[%s3768_s9 + $0x29c] ss:$36 sps:$4 sm:$0xff]  }
  0x5f   : > { %3156 = vmatprep.subr.bf16.mxu1 %v3504_v33  ;;  %v3558_v33 = vld [vmem:[%s3768_s9 + $0xac] ss:$36 sps:$4 sm:$0xff]  }
  0x62   : > { %3157 = vmatpush3.bf16.msra.mxu1 %v3505_v35  ;;  %v3561_v35 = vld [vmem:[%s3768_s9 + $0xa8] ss:$36 sps:$4 sm:$0xff]  }
  0x63   : > { %3158 = vmatprep.subr.bf16.mxu1 %v3519_v41  ;;  %v3571_v41 = vld [vmem:[%s3768_s9 + $0x13c] ss:$36 sps:$4 sm:$0xff]  }
  0x64   : > { %1746 = vmatmul.mubr.bf16.gmra.mxu0 %v3447_v20  ;;  %1875 = vmatmul.mubr.bf16.gmra.mxu1 %v3448_v21  ;;  %v3537_v20 = vld [vmem:[%s3768_s9 + $0x444] ss:$36 sps:$4 sm:$0xff]   ;;  %v3539_v21 = vld [vmem:[%s3768_s9 + $0x20c] ss:$36 sps:$4 sm:$0xff]  }
  0x65   : > { %1753 = vmatprep.mubr.bf16.mxu0 %v3449_v22  ;;  %1882 = vmatprep.mubr.bf16.mxu1 %v3451_v23  ;;  %v3541_v22 = vld [vmem:[%s3768_s9 + $0x440] ss:$36 sps:$4 sm:$0xff]   ;;  %v3542_v23 = vld [vmem:[%s3768_s9 + $0x208] ss:$36 sps:$4 sm:$0xff]  }
  0x66   : > { %3159 = vmatpush3.bf16.msra.mxu1 %v3520_v42  ;;  %v3573_v42 = vld [vmem:[%s3768_s9 + $0x370] ss:$36 sps:$4 sm:$0xff]  }
  0x67   : > { %3160 = vmatprep.subr.bf16.mxu1 %v3534_v47 }
  0x6a   : > { %3161 = vmatpush3.bf16.msra.mxu1 %v3535_v48 }
  0x6c   : > { %1754 = vmatmul.mubr.bf16.gmra.mxu0 %v3453_v27  ;;  %1883 = vmatmul.mubr.bf16.gmra.mxu1 %v3454_v30  ;;  %v3548_v27 = vld [vmem:[%s3768_s9 + $0x250] ss:$36 sps:$4 sm:$0xff]   ;;  %v3554_v30 = vld [vmem:[%s3768_s9 + $0x298] ss:$36 sps:$4 sm:$0xff]  }
  0x6d   : > { %1761 = vmatprep.mubr.bf16.mxu0 %v3459_v31  ;;  %1890 = vmatprep.mubr.bf16.mxu1 %v3461_v32  ;;  %v3555_v31 = vld [vmem:[%s3768_s9 + $0x60] ss:$36 sps:$4 sm:$0xff]  }
  0x6e   : > { %v3556_v32 = vld [vmem:[%s3768_s9 + $0x2e4] ss:$36 sps:$4 sm:$0xff]  }
  0x74   : > { %1762 = vmatmul.mubr.bf16.gmra.mxu0 %v3463_v34  ;;  %1891 = vmatmul.mubr.bf16.gmra.mxu1 %v3464_v36  ;;  %v3560_v34 = vld [vmem:[%s3768_s9 + $0x2e0] ss:$36 sps:$4 sm:$0xff]   ;;  %v3563_v36 = vld [vmem:[%s3768_s9 + $0x32c] ss:$36 sps:$4 sm:$0xff]  }
  0x75   : > { %1769 = vmatprep.mubr.bf16.mxu0 %v3467_v37  ;;  %1898 = vmatprep.mubr.bf16.mxu1 %v3469_v38  ;;  %v3565_v37 = vld [vmem:[%s3768_s9 + $0xf4] ss:$36 sps:$4 sm:$0xff]   ;;  %v3567_v38 = vld [vmem:[%s3768_s9 + $0x328] ss:$36 sps:$4 sm:$0xff]  }
  0x7c   : > { %1770 = vmatmul.mubr.bf16.gmra.mxu0 %v3471_v39  ;;  %1899 = vmatmul.mubr.bf16.gmra.mxu1 %v3472_v40  ;;  %v3568_v39 = vld [vmem:[%s3768_s9 + $0xf0] ss:$36 sps:$4 sm:$0xff]  }
  0x7d   : > { %1777 = vmatprep.mubr.bf16.mxu0 %v3475_v43  ;;  %1906 = vmatprep.mubr.bf16.mxu1 %v3477_v44  ;;  %v3569_v40 = vld [vmem:[%s3768_s9 + $0x374] ss:$36 sps:$4 sm:$0xff]   ;;  %v3576_v44 = vld [vmem:[%s3768_s9 + $0x3bc] ss:$36 sps:$4 sm:$0xff]  }
  0x7e   : > { %v3574_v43 = vld [vmem:[%s3768_s9 + $0x138] ss:$36 sps:$4 sm:$0xff]  }
  0x84   : > { %1778 = vmatmul.mubr.bf16.gmra.mxu0 %v3479_v45  ;;  %1907 = vmatmul.mubr.bf16.gmra.mxu1 %v3480_v46  ;;  %v3578_v45 = vld [vmem:[%s3768_s9 + $0x184] ss:$36 sps:$4 sm:$0xff]  }
  0x85   : > { %1914 = vmatprep.mubr.bf16.mxu1 %v3483_v49  ;;  %2011 = vmatprep.mubr.bf16.mxu0 %v3487_v50 }
  0x8c   : > { %1915 = vmatmul.mubr.bf16.gmra.mxu1 %v3488_v52  ;;  %2012 = vmatmul.mubr.bf16.vlgmr.msra.gmra.mxu0 %v3485_v51 }
  0x8d   : > { %3283 = vmatpush3.bf16.msra.mxu0 %v3491_v29  ;;  %1922 = vmatprep.mubr.bf16.mxu1 %v3492_v53  ;;  %v3552_v29 = vld [vmem:[%s3768_s9 + $0x64] ss:$36 sps:$4 sm:$0xff]  }
  0x8e   : > { %2019 = vmatprep.mubr.bf16.mxu0 %v3494_v54  ;;  %3284 = vmatprep.subr.bf16.mxu0 %v3506_v55  ;;  %v3580_v54 = vld [vmem:[%s3768_s9 + $0x3b8] ss:$36 sps:$4 sm:$0xff]  }
  0x91   : > { %3285 = vmatpush3.bf16.msra.mxu0 %v3506_v55  ;;  %v3581_v55 = vld [vmem:[%s3768_s9 + $0x180] ss:$36 sps:$4 sm:$0xff]  }
  0x92   : > { %3286 = vmatprep.subr.bf16.mxu0 %v3521_v56 }
  0x94   : > { %1923 = vmatmul.mubr.bf16.gmra.mxu1 %v3496_v57  ;;  %2020 = vmatmul.mubr.bf16.gmra.mxu0 %v3497_v58  ;;  %v3584_v57 = vld [vmem:[%s3768_s9 + $0x1cc] ss:$36 sps:$4 sm:$0xff]  }
  0x95   : > { %1930 = vmatprep.mubr.bf16.mxu1 %v3498_v59  ;;  %2027 = vmatprep.mubr.bf16.mxu0 %v3500_v60 }
  0x96   : > { %3287 = vmatpush3.bf16.msra.mxu0 %v3521_v56  ;;  %v3582_v56 = vld [vmem:[%s3768_s9 + $0x404] ss:$36 sps:$4 sm:$0xff]  }
  0x97   : > { %3288 = vmatprep.subr.bf16.mxu0 %v3536_v61 }
  0x9a   : > { %3289 = vmatpush3.bf16.msra.mxu0 %v3536_v61 }
  0x9b   : > { %3290 = vmatprep.subr.bf16.mxu0 %v3549_v63 }
  0x9c   : > { %1931 = vmatmul.mubr.bf16.gmra.mxu1 %v3502_v62  ;;  %2028 = vmatmul.mubr.bf16.gmra.mxu0 %v3503_v0 }
  0x9d   : > { %1938 = vmatprep.mubr.bf16.mxu1 %v3507_v1  ;;  %2035 = vmatprep.mubr.bf16.mxu0 %v3509_v2 }
  0x9e   : > { %3291 = vmatpush3.bf16.msra.mxu0 %v3549_v63 }
  0x9f   : > { %3292 = vmatprep.subr.bf16.mxu0 %v3562_v3 }
  0xa2   : > { %3293 = vmatpush3.bf16.msra.mxu0 %v3562_v3 }
  0xa3   : > { %3294 = vmatprep.subr.bf16.mxu0 %v3575_v5 }
  0xa4   : > { %1939 = vmatmul.mubr.bf16.gmra.mxu1 %v3511_v4  ;;  %2036 = vmatmul.mubr.bf16.gmra.mxu0 %v3512_v6  ;;  %v3586_v6 = vld [vmem:[%s3768_s9 + $0x400] ss:$36 sps:$4 sm:$0xff]  }
  0xa5   : > { %1946 = vmatprep.mubr.bf16.mxu1 %v3513_v7  ;;  %2043 = vmatprep.mubr.bf16.mxu0 %v3515_v8  ;;  %v3587_v7 = vld [vmem:[%s3768_s9 + $0x1c8] ss:$36 sps:$4 sm:$0xff]  }
  0xa6   : > { %3295 = vmatpush3.bf16.msra.mxu0 %v3575_v5  ;;  %v3589_v8 = vld [vmem:[%s3768_s9 + $0x44c] ss:$36 sps:$4 sm:$0xff]  }
  0xa7   : > { %3296 = vmatprep.subr.bf16.mxu0 %v3588_v9 }
  0xaa   : > { %3297 = vmatpush3.bf16.msra.mxu0 %v3588_v9  ;;  %v3591_v9 = vld [vmem:[%s3768_s9 + $0x214] ss:$36 sps:$4 sm:$0xff]  }
  0xac   : > { %1947 = vmatmul.mubr.bf16.gmra.mxu1 %v3517_v10  ;;  %2044 = vmatmul.mubr.bf16.gmra.mxu0 %v3518_v11 }
  0xad   : > { %1954 = vmatprep.mubr.bf16.mxu1 %v3522_v12  ;;  %2051 = vmatprep.mubr.bf16.mxu0 %v3524_v13 }
  0xb4   : > { %1955 = vmatmul.mubr.bf16.gmra.mxu1 %v3526_v14  ;;  %2052 = vmatmul.mubr.bf16.gmra.mxu0 %v3527_v15 }
  0xb5   : > { %1962 = vmatprep.mubr.bf16.mxu1 %v3528_v16  ;;  %2059 = vmatprep.mubr.bf16.mxu0 %v3530_v17 }
  0xbc   : > { %1963 = vmatmul.mubr.bf16.gmra.mxu1 %v3532_v18  ;;  %2060 = vmatmul.mubr.bf16.gmra.mxu0 %v3533_v19 }
  0xbd   : > { %1970 = vmatprep.mubr.bf16.mxu1 %v3537_v20  ;;  %2067 = vmatprep.mubr.bf16.mxu0 %v3539_v21 }
  0xc4   : > { %1971 = vmatmul.mubr.bf16.gmra.mxu1 %v3541_v22  ;;  %2068 = vmatmul.mubr.bf16.gmra.mxu0 %v3542_v23  ;;  %v3593_v22 = vld [vmem:[%s3768_s9 + $0x448] ss:$36 sps:$4 sm:$0xff]   ;;  %v3594_v23 = vld [vmem:[%s3768_s9 + $0x210] ss:$36 sps:$4 sm:$0xff]  }
  0xc5   : > { %2075 = vmatprep.mubr.bf16.mxu0 %v3543_v24  ;;  %2172 = vmatprep.mubr.bf16.mxu1 %v3547_v25  ;;  %v3597_v24 = vld [vmem:[%s3768_s9 + $0x25c] ss:$36 sps:$4 sm:$0xff]  }
  0xc6   : > { %v3598_v25 = vld [vmem:[%s3768_s9 + $0x20] ss:$36 sps:$4 sm:$0xff]  }
  0xcc   : > { %2076 = vmatmul.mubr.bf16.gmra.mxu0 %v3548_v27  ;;  %2173 = vmatmul.mubr.bf16.vlgmr.msra.gmra.mxu1 %v3545_v26 }
  0xcd   : > { %2083 = vmatprep.mubr.bf16.mxu0 %v3550_v28  ;;  %2180 = vmatprep.mubr.bf16.mxu1 %v3552_v29 }
  0xd4   : > { %2084 = vmatmul.mubr.bf16.gmra.mxu0 %v3554_v30  ;;  %2181 = vmatmul.mubr.bf16.gmra.mxu1 %v3555_v31 }
  0xd5   : > { %2091 = vmatprep.mubr.bf16.mxu0 %v3556_v32  ;;  %2188 = vmatprep.mubr.bf16.mxu1 %v3558_v33 }
  0xdc   : > { %2092 = vmatmul.mubr.bf16.gmra.mxu0 %v3560_v34  ;;  %2189 = vmatmul.mubr.bf16.gmra.mxu1 %v3561_v35 }
  0xdd   : > { %2099 = vmatprep.mubr.bf16.mxu0 %v3563_v36  ;;  %2196 = vmatprep.mubr.bf16.mxu1 %v3565_v37 }
  0xe4   : > { %2100 = vmatmul.mubr.bf16.gmra.mxu0 %v3567_v38  ;;  %2197 = vmatmul.mubr.bf16.gmra.mxu1 %v3568_v39  ;;  %v3595_v38 = vld [vmem:[%s3768_s9 + $0x258] ss:$36 sps:$4 sm:$0xff]   ;;  %v3599_v39 = vld [vmem:[%s3768_s9 + $0x68] ss:$36 sps:$4 sm:$0xff]  }
  0xe5   : > { %2107 = vmatprep.mubr.bf16.mxu0 %v3569_v40  ;;  %2204 = vmatprep.mubr.bf16.mxu1 %v3571_v41  ;;  %v3602_v40 = vld [vmem:[%s3768_s9 + $0x2a4] ss:$36 sps:$4 sm:$0xff]   ;;  %v3603_v41 = vld [vmem:[%s3768_s9 + $0xb0] ss:$36 sps:$4 sm:$0xff]  }
  0xec   : > { %v2826_v46 = vpop.f32.mrf.mxu0  ;;  %v2898_v47 = vpop.f32.mrf.mxu1  ;;  %2108 = vmatmul.mubr.bf16.gmra.mxu0 %v3573_v42  ;;  %2205 = vmatmul.mubr.bf16.gmra.mxu1 %v3574_v43 }
  0xed   : > { %2115 = vmatprep.mubr.bf16.mxu0 %v3576_v44  ;;  %2212 = vmatprep.mubr.bf16.mxu1 %v3578_v45 }
  0xee   : > { %v2827_v48 = vpop.f32.mrf.mxu0  ;;  %v2899_v49 = vpop.f32.mrf.mxu1 }
  0xef   : > { %v4061_v50 = vadd.f32 %v2827_v48, %v2826_v46  ;;  %v4063_v51 = vadd.f32 %v2899_v49, %v2898_v47  ;;  %v4112_v48 = vld [vmem:[%s4603_s2] ss:$0 sm:$0xff] }
  0xf0   : > { %v2829_v52 = vpop.f32.mrf.mxu0  ;;  %v2901_v53 = vpop.f32.mrf.mxu1 }
  0xf2   : > { %v2830_v58 = vpop.f32.mrf.mxu0  ;;  %v2902_v59 = vpop.f32.mrf.mxu1 }
  0xf3   : > { %v4069_v60 = vadd.f32 %v2830_v58, %v2829_v52  ;;  %v4071_v61 = vadd.f32 %v2902_v59, %v2901_v53  ;;  %v1692_v53 = vadd.f32 %v4061_v50, %v4112_v48  ;;  %v3600_v58 = vld [vmem:[%s3768_s9 + $0x2a0] ss:$36 sps:$4 sm:$0xff]   ;;  %v3604_v59 = vld [vmem:[%s3768_s9 + $0xf8] ss:$36 sps:$4 sm:$0xff]  }
  0xf4   : > { %v2832_v62 = vpop.f32.mrf.mxu0  ;;  %v2904_v63 = vpop.f32.mrf.mxu1  ;;  %2116 = vmatmul.mubr.bf16.gmra.mxu0 %v3580_v54  ;;  %2213 = vmatmul.mubr.bf16.gmra.mxu1 %v3581_v55 }
  0xf5   : > { %2123 = vmatprep.mubr.bf16.mxu0 %v3582_v56  ;;  %2220 = vmatprep.mubr.bf16.mxu1 %v3584_v57 }
  0xf6   : > { %v2833_v0 = vpop.f32.mrf.mxu0  ;;  %v2905_v1 = vpop.f32.mrf.mxu1 }
  0xf7   : > { %v4073_v2 = vadd.f32 %v2833_v0, %v2832_v62  ;;  %v4075_v3 = vadd.f32 %v2905_v1, %v2904_v63  ;;  %v3607_v63 = vld [vmem:[%s3768_s9 + $0x2ec] ss:$36 sps:$4 sm:$0xff]   ;;  %v3608_v0 = vld [vmem:[%s3768_s9 + $0x140] ss:$36 sps:$4 sm:$0xff]  }
  0xf8   : > { %v2835_v4 = vpop.f32.mrf.mxu0  ;;  %v2907_v5 = vpop.f32.mrf.mxu1 }
  0xfa   : > { %v2836_v10 = vpop.f32.mrf.mxu0  ;;  %v2908_v11 = vpop.f32.mrf.mxu1 }
  0xfb   : > { %v4081_v12 = vadd.f32 %v2836_v10, %v2835_v4  ;;  %v4083_v13 = vadd.f32 %v2908_v11, %v2907_v5  ;;  %v1695_v5 = vadd.f32 %v4069_v60, %v4112_v48  ;;  %v1700_v60 = vadd.f32 %v4073_v2, %v4112_v48 }
  0xfc   : > { %v2838_v14 = vpop.f32.mrf.mxu0  ;;  %v2910_v15 = vpop.f32.mrf.mxu1  ;;  %2124 = vmatmul.mubr.bf16.gmra.mxu0 %v3586_v6  ;;  %2221 = vmatmul.mubr.bf16.gmra.mxu1 %v3587_v7 }
  0xfd   : > { %2131 = vmatprep.mubr.bf16.mxu0 %v3589_v8  ;;  %2228 = vmatprep.mubr.bf16.mxu1 %v3591_v9 }
  0xfe   : > { %v2839_v16 = vpop.f32.mrf.mxu0  ;;  %v2911_v17 = vpop.f32.mrf.mxu1 }
  0xff   : > { %v4085_v18 = vadd.f32 %v2839_v16, %v2838_v14  ;;  %v4087_v19 = vadd.f32 %v2911_v17, %v2910_v15 }
 0x100   : > { %v2841_v20 = vpop.f32.mrf.mxu0  ;;  %v2913_v21 = vpop.f32.mrf.mxu1 }
 0x102   : > { %v2842_v26 = vpop.f32.mrf.mxu0  ;;  %v2914_v27 = vpop.f32.mrf.mxu1 }
 0x103   : > { %v4093_v28 = vadd.f32 %v2842_v26, %v2841_v20  ;;  %v4095_v29 = vadd.f32 %v2914_v27, %v2913_v21  ;;  %v3605_v20 = vld [vmem:[%s3768_s9 + $0x2e8] ss:$36 sps:$4 sm:$0xff]   ;;  %v1703_v27 = vadd.f32 %v4081_v12, %v4112_v48  ;;  %v1708_v12 = vadd.f32 %v4085_v18, %v4112_v48 }
 0x104   : > { %v2844_v30 = vpop.f32.mrf.mxu0  ;;  %v2916_v31 = vpop.f32.mrf.mxu1  ;;  %2132 = vmatmul.mubr.bf16.gmra.mxu0 %v3593_v22  ;;  %2229 = vmatmul.mubr.bf16.gmra.mxu1 %v3594_v23  ;;  %v3609_v21 = vld [vmem:[%s3768_s9 + $0x188] ss:$36 sps:$4 sm:$0xff]   ;;  %v3612_v23 = vld [vmem:[%s3768_s9 + $0x334] ss:$36 sps:$4 sm:$0xff]  }
 0x105   : > { %2236 = vmatprep.mubr.bf16.mxu1 %v3597_v24  ;;  %3298 = vmatprep.mubr.bf16.mxu0 %v3598_v25  ;;  %v3613_v24 = vld [vmem:[%s3768_s9 + $0x1d0] ss:$36 sps:$4 sm:$0xff]  }
 0x106   : > { %v2845_v32 = vpop.f32.mrf.mxu0  ;;  %v2917_v33 = vpop.f32.mrf.mxu1 }
 0x107   : > { %v4097_v34 = vadd.f32 %v2845_v32, %v2844_v30  ;;  %v4099_v35 = vadd.f32 %v2917_v33, %v2916_v31 }
 0x108   : > { %v2847_v36 = vpop.f32.mrf.mxu0  ;;  %v2919_v37 = vpop.f32.mrf.mxu1 }
 0x10a   : > { %v2848_v42 = vpop.f32.mrf.mxu0  ;;  %v2920_v43 = vpop.f32.mrf.mxu1 }
 0x10b   : > { %v4105_v44 = vadd.f32 %v2848_v42, %v2847_v36  ;;  %v4107_v45 = vadd.f32 %v2920_v43, %v2919_v37  ;;  %v3610_v42 = vld [vmem:[%s3768_s9 + $0x330] ss:$36 sps:$4 sm:$0xff]   ;;  %v3614_v43 = vld [vmem:[%s3768_s9 + $0x218] ss:$36 sps:$4 sm:$0xff]  }
 0x10c   : > { %v2850_v46 = vpop.f32.mrf.mxu0  ;;  %v2938_v47 = vpop.f32.mrf.mxu1  ;;  %2237 = vmatmul.mubr.bf16.gmra.mxu1 %v3595_v38  ;;  %3299 = vmatmul.mubr.bf16.vlgmr.msra.gmra.mxu0 %v3599_v39 }
 0x10d   : > { %2244 = vmatprep.mubr.bf16.mxu1 %v3602_v40  ;;  %3302 = vmatprep.mubr.bf16.mxu0 %v3603_v41 }
 0x10e   : > { %v2851_v49 = vpop.f32.mrf.mxu0  ;;  %v2939_v52 = vpop.f32.mrf.mxu1 }
 0x10f   : > { %v4116_v54 = vadd.f32 %v2851_v49, %v2850_v46  ;;  %v2940_v55 = vadd.f32 %v2939_v52, %v2938_v47  ;;  %v3617_v47 = vld [vmem:[%s3768_s9 + $0x37c] ss:$36 sps:$4 sm:$0xff]  }
 0x110   : > { %v2853_v56 = vpop.f32.mrf.mxu0  ;;  %v2941_v57 = vpop.f32.mrf.mxu1  ;;  %v3618_v49 = vld [vmem:[%s3768_s9 + $0x260] ss:$36 sps:$4 sm:$0xff]  }
 0x111   : > { %v4120_v62 = vadd.f32 %v2940_v55, %v1692_v53  ;;  %v1711_v55 = vadd.f32 %v4093_v28, %v4112_v48  ;;  %v1716_v28 = vadd.f32 %v4097_v34, %v4112_v48 }
 0x112   : > { %v2854_v1 = vpop.f32.mrf.mxu0  ;;  %v2942_v4 = vpop.f32.mrf.mxu1 }
 0x113   : > { %v4126_v6 = vadd.f32 %v2854_v1, %v2853_v56  ;;  %v2943_v50 = vadd.f32 %v2942_v4, %v2941_v57 }
 0x114   : > { %v2856_v7 = vpop.f32.mrf.mxu0  ;;  %v2944_v8 = vpop.f32.mrf.mxu1  ;;  %2245 = vmatmul.mubr.bf16.gmra.mxu1 %v3600_v58  ;;  %3303 = vmatmul.mubr.bf16.gmra.mxu0 %v3604_v59 }
 0x115   : > { %v4128_v9 = vadd.f32 %v2943_v50, %v1695_v5  ;;  %2252 = vmatprep.mubr.bf16.mxu1 %v3607_v63  ;;  %3306 = vmatprep.mubr.bf16.mxu0 %v3608_v0 }
 0x116   : > { %v2857_v10 = vpop.f32.mrf.mxu0  ;;  %v2945_v11 = vpop.f32.mrf.mxu1 }
 0x117   : > { %v4132_v14 = vadd.f32 %v2857_v10, %v2856_v7  ;;  %v2946_v15 = vadd.f32 %v2945_v11, %v2944_v8  ;;  %v3615_v7 = vld [vmem:[%s3768_s9 + $0x378] ss:$36 sps:$4 sm:$0xff]   ;;  %v3619_v8 = vld [vmem:[%s3768_s9 + $0x2a8] ss:$36 sps:$4 sm:$0xff]  }
 0x118   : > { %v2859_v16 = vpop.f32.mrf.mxu0  ;;  %v2947_v17 = vpop.f32.mrf.mxu1  ;;  %v3622_v11 = vld [vmem:[%s3768_s9 + $0x3c4] ss:$36 sps:$4 sm:$0xff]  }
 0x119   : > { %v4136_v22 = vadd.f32 %v2946_v15, %v1700_v60  ;;  %v3623_v60 = vld [vmem:[%s3768_s9 + $0x2f0] ss:$36 sps:$4 sm:$0xff]  }
 0x11a   : > { %v2860_v25 = vpop.f32.mrf.mxu0  ;;  %v2948_v26 = vpop.f32.mrf.mxu1 }
 0x11b   : > { %v4142_v30 = vadd.f32 %v2860_v25, %v2859_v16  ;;  %v2949_v2 = vadd.f32 %v2948_v26, %v2947_v17  ;;  %v1719_v17 = vadd.f32 %v4105_v44, %v4112_v48  ;;  %v1724_v44 = vadd.f32 %v4116_v54, %v4112_v48 }
 0x11c   : > { %v2862_v31 = vpop.f32.mrf.mxu0  ;;  %v2950_v32 = vpop.f32.mrf.mxu1  ;;  %2253 = vmatmul.mubr.bf16.gmra.mxu1 %v3605_v20  ;;  %3307 = vmatmul.mubr.bf16.gmra.mxu0 %v3609_v21 }
 0x11d   : > { %v4144_v33 = vadd.f32 %v2949_v2, %v1703_v27  ;;  %2260 = vmatprep.mubr.bf16.mxu1 %v3612_v23  ;;  %3310 = vmatprep.mubr.bf16.mxu0 %v3613_v24 }
 0x11e   : > { %v2863_v36 = vpop.f32.mrf.mxu0  ;;  %v2951_v37 = vpop.f32.mrf.mxu1 }
 0x11f   : > { %v4148_v38 = vadd.f32 %v2863_v36, %v2862_v31  ;;  %v2952_v39 = vadd.f32 %v2951_v37, %v2950_v32  ;;  %v3620_v36 = vld [vmem:[%s3768_s9 + $0x3c0] ss:$36 sps:$4 sm:$0xff]   ;;  %v3624_v37 = vld [vmem:[%s3768_s9 + $0x338] ss:$36 sps:$4 sm:$0xff]  }
 0x120   : > { %v2865_v40 = vpop.f32.mrf.mxu0  ;;  %v2953_v41 = vpop.f32.mrf.mxu1 }
 0x121   : > { %v4152_v46 = vadd.f32 %v2952_v39, %v1708_v12  ;;  %v3627_v39 = vld [vmem:[%s3768_s9 + $0x40c] ss:$36 sps:$4 sm:$0xff]  }
 0x122   : > { %v2866_v52 = vpop.f32.mrf.mxu0  ;;  %v2954_v53 = vpop.f32.mrf.mxu1 }
 0x123   : > { %v4158_v56 = vadd.f32 %v2866_v52, %v2865_v40  ;;  %v2955_v18 = vadd.f32 %v2954_v53, %v2953_v41  ;;  %v3628_v40 = vld [vmem:[%s3768_s9 + $0x380] ss:$36 sps:$4 sm:$0xff]  }
 0x124   : > { %v2868_v57 = vpop.f32.mrf.mxu0  ;;  %v2956_v58 = vpop.f32.mrf.mxu1  ;;  %2261 = vmatmul.mubr.bf16.gmra.mxu1 %v3610_v42  ;;  %3311 = vmatmul.mubr.bf16.gmra.mxu0 %v3614_v43  ;;  %v1727_v43 = vadd.f32 %v4126_v6, %v4112_v48  ;;  %v1732_v6 = vadd.f32 %v4132_v14, %v4112_v48 }
 0x125   : > { %v4160_v59 = vadd.f32 %v2955_v18, %v1711_v55  ;;  %2268 = vmatprep.mubr.bf16.mxu1 %v3617_v47  ;;  %3314 = vmatprep.mubr.bf16.mxu0 %v3618_v49 }
 0x126   : > { %v2869_v63 = vpop.f32.mrf.mxu0  ;;  %v2957_v0 = vpop.f32.mrf.mxu1 }
 0x127   : > { %v4164_v1 = vadd.f32 %v2869_v63, %v2868_v57  ;;  %v2958_v4 = vadd.f32 %v2957_v0, %v2956_v58 }
 0x128   : > { %v2871_v5 = vpop.f32.mrf.mxu0  ;;  %v2959_v50 = vpop.f32.mrf.mxu1 }
 0x129   : > { %v4168_v10 = vadd.f32 %v2958_v4, %v1716_v28  ;;  %v3625_v28 = vld [vmem:[%s3768_s9 + $0x408] ss:$36 sps:$4 sm:$0xff]  }
 0x12a   : > { %v2872_v15 = vpop.f32.mrf.mxu0  ;;  %v2960_v16 = vpop.f32.mrf.mxu1  ;;  %v3629_v4 = vld [vmem:[%s3768_s9 + $0x3c8] ss:$36 sps:$4 sm:$0xff]  }
 0x12b   : > { %v4174_v20 = vadd.f32 %v2872_v15, %v2871_v5  ;;  %v2961_v34 = vadd.f32 %v2960_v16, %v2959_v50  ;;  %v3632_v50 = vld [vmem:[%s3768_s9 + $0x454] ss:$36 sps:$4 sm:$0xff]  }
 0x12c   : > { %v2874_v21 = vpop.f32.mrf.mxu0  ;;  %v2962_v23 = vpop.f32.mrf.mxu1  ;;  %2269 = vmatmul.mubr.bf16.gmra.mxu1 %v3615_v7  ;;  %3315 = vmatmul.mubr.bf16.gmra.mxu0 %v3619_v8  ;;  %v3633_v7 = vld [vmem:[%s3768_s9 + $0x410] ss:$36 sps:$4 sm:$0xff]  }
 0x12d   : > { %v4176_v24 = vadd.f32 %v2961_v34, %v1719_v17  ;;  %2276 = vmatprep.mubr.bf16.mxu1 %v3622_v11  ;;  %3318 = vmatprep.mubr.bf16.mxu0 %v3623_v60  ;;  %v1735_v60 = vadd.f32 %v4142_v30, %v4112_v48 }
 0x12e   : > { %v2875_v25 = vpop.f32.mrf.mxu0  ;;  %v2963_v26 = vpop.f32.mrf.mxu1 }
 0x12f   : > { %v4180_v27 = vadd.f32 %v2875_v25, %v2874_v21  ;;  %v2964_v2 = vadd.f32 %v2963_v26, %v2962_v23  ;;  %v1740_v25 = vadd.f32 %v4148_v38, %v4112_v48 }
 0x130   : > { %v2877_v31 = vpop.f32.mrf.mxu0  ;;  %v2965_v32 = vpop.f32.mrf.mxu1 }
 0x131   : > { %v4184_v12 = vadd.f32 %v2964_v2, %v1724_v44 }
 0x132   : > { %v2878_v41 = vpop.f32.mrf.mxu0  ;;  %v2966_v42 = vpop.f32.mrf.mxu1 }
 0x133   : > { %v4190_v47 = vadd.f32 %v2878_v41, %v2877_v31  ;;  %v2967_v54 = vadd.f32 %v2966_v42, %v2965_v32  ;;  %v3630_v31 = vld [vmem:[%s3768_s9 + $0x450] ss:$36 sps:$4 sm:$0xff]   ;;  %v3634_v32 = vld [vmem:[%s3768_s9 + $0x458] ss:$36 sps:$4 sm:$0xff]   ;;  %s2590_s9 = sshll.u32 %s4628_s16, 3 }
 0x134   : > { %v2880_v49 = vpop.f32.mrf.mxu0  ;;  %v2968_v52 = vpop.f32.mrf.mxu1  ;;  %2277 = vmatmul.mubr.bf16.gmra.mxu1 %v3620_v36  ;;  %3319 = vmatmul.mubr.bf16.gmra.mxu0 %v3624_v37  ;;  %s4506_s22 = scalar_lea.vmem %s4604_s3, %s2590_s9 }
 0x135   : > { %v4192_v53 = vadd.f32 %v2967_v54, %v1727_v43  ;;  %2284 = vmatprep.mubr.bf16.mxu1 %v3627_v39  ;;  %3322 = vmatprep.mubr.bf16.mxu0 %v3628_v40  ;;  %v1743_v40 = vadd.f32 %v4158_v56, %v4112_v48 }
 0x136   : > { %v2881_v55 = vpop.f32.mrf.mxu0  ;;  %v2969_v18 = vpop.f32.mrf.mxu1 }
 0x137   : > { %v4196_v57 = vadd.f32 %v2881_v55, %v2880_v49  ;;  %v2970_v58 = vadd.f32 %v2969_v18, %v2968_v52  ;;  %v1748_v55 = vadd.f32 %v4164_v1, %v4112_v48 }
 0x138   : > { %v2883_v63 = vpop.f32.mrf.mxu0  ;;  %v2971_v0 = vpop.f32.mrf.mxu1 }
 0x139   : > { %v4200_v5 = vadd.f32 %v2970_v58, %v1732_v6 }
 0x13a   : > { %v2884_v8 = vpop.f32.mrf.mxu0  ;;  %v2972_v11 = vpop.f32.mrf.mxu1 }
 0x13b   : > { %v4206_v15 = vadd.f32 %v2884_v8, %v2883_v63  ;;  %v2973_v14 = vadd.f32 %v2972_v11, %v2971_v0 }
 0x13c   : > { %v2886_v16 = vpop.f32.mrf.mxu0  ;;  %v2974_v17 = vpop.f32.mrf.mxu1  ;;  %2285 = vmatmul.mubr.bf16.gmra.mxu1 %v3625_v28  ;;  %3323 = vmatmul.mubr.bf16.gmra.mxu0 %v3629_v4  ;;  %v1751_v4 = vadd.f32 %v4174_v20, %v4112_v48 }
 0x13d   : > { %v4208_v34 = vadd.f32 %v2973_v14, %v1735_v60  ;;  %2292 = vmatprep.mubr.bf16.mxu1 %v3632_v50  ;;  %3326 = vmatprep.mubr.bf16.mxu0 %v3633_v7 }
 0x13e   : > { %v2887_v21 = vpop.f32.mrf.mxu0  ;;  %v2975_v23 = vpop.f32.mrf.mxu1 }
 0x13f   : > { %v4212_v26 = vadd.f32 %v2887_v21, %v2886_v16  ;;  %v2976_v30 = vadd.f32 %v2975_v23, %v2974_v17  ;;  %v1756_v16 = vadd.f32 %v4180_v27, %v4112_v48 }
 0x140   : > { %v2889_v44 = vpop.f32.mrf.mxu0  ;;  %v2977_v2 = vpop.f32.mrf.mxu1 }
 0x141   : > { %v4216_v36 = vadd.f32 %v2976_v30, %v1740_v25 }
 0x142   : > { %v2890_v37 = vpop.f32.mrf.mxu0  ;;  %v2978_v39 = vpop.f32.mrf.mxu1 }
 0x143   : > { %v4220_v41 = vadd.f32 %v2890_v37, %v2889_v44  ;;  %v2979_v42 = vadd.f32 %v2978_v39, %v2977_v2 }
 0x144   : > { %v2892_v43 = vpop.f32.mrf.mxu0  ;;  %v2980_v54 = vpop.f32.mrf.mxu1  ;;  %2293 = vmatmul.mubr.bf16.gmra.mxu1 %v3630_v31  ;;  %3327 = vmatmul.mubr.bf16.gmra.mxu0 %v3634_v32  ;;  %v1759_v31 = vadd.f32 %v4190_v47, %v4112_v48 }
 0x145   : > { %v4222_v38 = vadd.f32 %v2979_v42, %v1743_v40 }
 0x146   : > { %v2893_v49 = vpop.f32.mrf.mxu0  ;;  %v2981_v52 = vpop.f32.mrf.mxu1 }
 0x147   : > { %v4226_v18 = vadd.f32 %v2893_v49, %v2892_v43  ;;  %v2982_v6 = vadd.f32 %v2981_v52, %v2980_v54 }
 0x148   : > { %v2895_v58 = vpop.f32.mrf.mxu0  ;;  %v2983_v63 = vpop.f32.mrf.mxu1 }
 0x149   : > { %v4228_v56 = vadd.f32 %v2982_v6, %v1748_v55 }
 0x14a   : > { %v2896_v0 = vpop.f32.mrf.mxu0  ;;  %v2984_v28 = vpop.f32.mrf.mxu1 }
 0x14b   : > { %v4232_v50 = vadd.f32 %v2896_v0, %v2895_v58  ;;  %v2985_v7 = vadd.f32 %v2984_v28, %v2983_v63 }
 0x14c   : > { %v2986_v8 = vpop.f32.mrf.mxu1  ;;  %v3050_v11 = vpop.f32.mrf.mxu0 }
 0x14d   : > { %v4234_v60 = vadd.f32 %v2985_v7, %v1751_v4 }
 0x14e   : > { %v2987_v1 = vpop.f32.mrf.mxu1  ;;  %v3051_v14 = vpop.f32.mrf.mxu0 }
 0x14f   : > { %v2988_v17 = vadd.f32 %v2987_v1, %v2986_v8  ;;  %v3052_v21 = vadd.f32 %v3051_v14, %v3050_v11 }
 0x150   : > { %v2989_v23 = vpop.f32.mrf.mxu1  ;;  %v3053_v25 = vpop.f32.mrf.mxu0 }
 0x151   : > { %v4238_v30 = vadd.f32 %v2988_v17, %v1756_v16  ;;  %v4241_v20 = vadd.f32 %v3052_v21, %v4120_v62  ;;  %v1764_v62 = vadd.f32 %v4196_v57, %v4112_v48 }
 0x152   : > { %v2990_v44 = vpop.f32.mrf.mxu1  ;;  %v3054_v2 = vpop.f32.mrf.mxu0 }
 0x153   : > { %v2991_v32 = vadd.f32 %v2990_v44, %v2989_v23  ;;  %v3055_v37 = vadd.f32 %v3054_v2, %v3053_v25 }
 0x154   : > { %v2992_v39 = vpop.f32.mrf.mxu1  ;;  %v3056_v40 = vpop.f32.mrf.mxu0 }
 0x155   : > { %v4245_v42 = vadd.f32 %v2991_v32, %v1759_v31  ;;  %v4248_v27 = vadd.f32 %v3055_v37, %v4128_v9  ;;  %v1767_v9 = vadd.f32 %v4206_v15, %v4112_v48 }
 0x156   : > { %v2993_v43 = vpop.f32.mrf.mxu1  ;;  %v3057_v54 = vpop.f32.mrf.mxu0 }
 0x157   : > { %v2994_v49 = vadd.f32 %v2993_v43, %v2992_v39  ;;  %v3058_v52 = vadd.f32 %v3057_v54, %v3056_v40 }
 0x158   : > { %v2995_v55 = vpop.f32.mrf.mxu1  ;;  %v3059_v6 = vpop.f32.mrf.mxu0 }
 0x159   : > { %v4252_v58 = vadd.f32 %v2994_v49, %v1764_v62  ;;  %v4255_v47 = vadd.f32 %v3058_v52, %v4136_v22  ;;  %v1772_v22 = vadd.f32 %v4212_v26, %v4112_v48 }
 0x15a   : > { %v2996_v63 = vpop.f32.mrf.mxu1  ;;  %v3060_v0 = vpop.f32.mrf.mxu0 }
 0x15b   : > { %v2997_v28 = vadd.f32 %v2996_v63, %v2995_v55  ;;  %v3061_v4 = vadd.f32 %v3060_v0, %v3059_v6 }
 0x15c   : > { %v2998_v7 = vpop.f32.mrf.mxu1  ;;  %v3062_v8 = vpop.f32.mrf.mxu0 }
 0x15d   : > { %v4259_v11 = vadd.f32 %v2997_v28, %v1767_v9  ;;  %v4262_v57 = vadd.f32 %v3061_v4, %v4144_v33  ;;  %v1775_v33 = vadd.f32 %v4220_v41, %v4112_v48 }
 0x15e   : > { %v2999_v1 = vpop.f32.mrf.mxu1  ;;  %v3063_v14 = vpop.f32.mrf.mxu0 }
 0x15f   : > { %v3000_v16 = vadd.f32 %v2999_v1, %v2998_v7  ;;  %v3064_v17 = vadd.f32 %v3063_v14, %v3062_v8 }
 0x160   : > { %v3001_v21 = vpop.f32.mrf.mxu1  ;;  %v3065_v23 = vpop.f32.mrf.mxu0 }
 0x161   : > { %v4266_v25 = vadd.f32 %v3000_v16, %v1772_v22  ;;  %v4269_v15 = vadd.f32 %v3064_v17, %v4152_v46  ;;  %v1780_v46 = vadd.f32 %v4226_v18, %v4112_v48 }
 0x162   : > { %v3002_v44 = vpop.f32.mrf.mxu1  ;;  %v3066_v2 = vpop.f32.mrf.mxu0 }
 0x163   : > { %v3003_v31 = vadd.f32 %v3002_v44, %v3001_v21  ;;  %v3067_v32 = vadd.f32 %v3066_v2, %v3065_v23 }
 0x164   : > { %v3004_v37 = vpop.f32.mrf.mxu1  ;;  %v3068_v39 = vpop.f32.mrf.mxu0 }
 0x165   : > { %v4273_v40 = vadd.f32 %v3003_v31, %v1775_v33  ;;  %v4276_v26 = vadd.f32 %v3067_v32, %v4160_v59  ;;  %v1783_v59 = vadd.f32 %v4232_v50, %v4112_v48 }
 0x166   : > { %v3005_v43 = vpop.f32.mrf.mxu1  ;;  %v3069_v54 = vpop.f32.mrf.mxu0 }
 0x167   : > { %v3006_v62 = vadd.f32 %v3005_v43, %v3004_v37  ;;  %v3070_v49 = vadd.f32 %v3069_v54, %v3068_v39 }
 0x168   : > { %v3007_v52 = vpop.f32.mrf.mxu1  ;;  %v3071_v55 = vpop.f32.mrf.mxu0 }
 0x169   : > { %v4280_v6 = vadd.f32 %v3006_v62, %v1780_v46  ;;  %v4283_v41 = vadd.f32 %v3070_v49, %v4168_v10  ;;  %v1788_v10 = vadd.f32 %v4063_v51, %v4112_v48 }
 0x16a   : > { %v3008_v63 = vpop.f32.mrf.mxu1  ;;  %v3072_v0 = vpop.f32.mrf.mxu0 }
 0x16b   : > { %v3009_v9 = vadd.f32 %v3008_v63, %v3007_v52  ;;  %v3073_v28 = vadd.f32 %v3072_v0, %v3071_v55 }
 0x16c   : > { %v3010_v4 = vpop.f32.mrf.mxu1  ;;  %v3074_v7 = vpop.f32.mrf.mxu0 }
 0x16d   : > { %v4287_v8 = vadd.f32 %v3009_v9, %v1783_v59  ;;  %v4290_v18 = vadd.f32 %v3073_v28, %v4176_v24  ;;  %v1791_v24 = vadd.f32 %v4071_v61, %v4112_v48 }
 0x16e   : > { %v3011_v1 = vpop.f32.mrf.mxu1  ;;  %v3075_v14 = vpop.f32.mrf.mxu0 }
 0x16f   : > { %v3012_v22 = vadd.f32 %v3011_v1, %v3010_v4  ;;  %v3076_v16 = vadd.f32 %v3075_v14, %v3074_v7 }
 0x170   : > { %v3013_v17 = vpop.f32.mrf.mxu1  ;;  %v3077_v21 = vpop.f32.mrf.mxu0 }
 0x171   : > { %v4294_v23 = vadd.f32 %v3012_v22, %v1788_v10  ;;  %v4297_v50 = vadd.f32 %v3076_v16, %v4184_v12  ;;  %v1796_v12 = vadd.f32 %v4075_v3, %v4112_v48 }
 0x172   : > { %v3014_v44 = vpop.f32.mrf.mxu1  ;;  %v3078_v2 = vpop.f32.mrf.mxu0 }
 0x173   : > { %v3015_v33 = vadd.f32 %v3014_v44, %v3013_v17  ;;  %v3079_v31 = vadd.f32 %v3078_v2, %v3077_v21 }
 0x174   : > { %v3016_v32 = vpop.f32.mrf.mxu1  ;;  %v3080_v37 = vpop.f32.mrf.mxu0 }
 0x175   : > { %v4301_v39 = vadd.f32 %v3015_v33, %v1791_v24  ;;  %v4304_v51 = vadd.f32 %v3079_v31, %v4192_v53  ;;  %v1799_v53 = vadd.f32 %v4083_v13, %v4112_v48 }
 0x176   : > { %v3017_v43 = vpop.f32.mrf.mxu1  ;;  %v3081_v54 = vpop.f32.mrf.mxu0 }
 0x177   : > { %v3018_v46 = vadd.f32 %v3017_v43, %v3016_v32  ;;  %v3082_v62 = vadd.f32 %v3081_v54, %v3080_v37 }
 0x178   : > { %v3019_v49 = vpop.f32.mrf.mxu1  ;;  %v3083_v52 = vpop.f32.mrf.mxu0 }
 0x179   : > { %v4308_v55 = vadd.f32 %v3018_v46, %v1796_v12  ;;  %v4311_v61 = vadd.f32 %v3082_v62, %v4200_v5  ;;  %v1804_v5 = vadd.f32 %v4087_v19, %v4112_v48 }
 0x17a   : > { %v3020_v63 = vpop.f32.mrf.mxu1  ;;  %v3084_v0 = vpop.f32.mrf.mxu0 }
 0x17b   : > { %v3021_v59 = vadd.f32 %v3020_v63, %v3019_v49  ;;  %v3085_v9 = vadd.f32 %v3084_v0, %v3083_v52 }
 0x17c   : > { %v3022_v28 = vpop.f32.mrf.mxu1  ;;  %v3086_v4 = vpop.f32.mrf.mxu0 }
 0x17d   : > { %v4315_v7 = vadd.f32 %v3021_v59, %v1799_v53  ;;  %v4318_v3 = vadd.f32 %v3085_v9, %v4208_v34  ;;  %v1807_v34 = vadd.f32 %v4095_v29, %v4112_v48 }
 0x17e   : > { %v3023_v1 = vpop.f32.mrf.mxu1  ;;  %v3087_v14 = vpop.f32.mrf.mxu0 }
 0x17f   : > { %v3024_v10 = vadd.f32 %v3023_v1, %v3022_v28  ;;  %v3088_v22 = vadd.f32 %v3087_v14, %v3086_v4 }
 0x180   : > { %v3025_v16 = vpop.f32.mrf.mxu1  ;;  %v3089_v17 = vpop.f32.mrf.mxu0 }
 0x181   : > { %v4322_v21 = vadd.f32 %v3024_v10, %v1804_v5  ;;  %v4325_v13 = vadd.f32 %v3088_v22, %v4216_v36  ;;  %v1812_v36 = vadd.f32 %v4099_v35, %v4112_v48 }
 0x182   : > { %v3026_v44 = vpop.f32.mrf.mxu1  ;;  %v3090_v2 = vpop.f32.mrf.mxu0 }
 0x183   : > { %v3027_v24 = vadd.f32 %v3026_v44, %v3025_v16  ;;  %v3091_v33 = vadd.f32 %v3090_v2, %v3089_v17 }
 0x184   : > { %v3028_v31 = vpop.f32.mrf.mxu1  ;;  %v3092_v32 = vpop.f32.mrf.mxu0 }
 0x185   : > { %v4329_v37 = vadd.f32 %v3027_v24, %v1807_v34  ;;  %v4332_v19 = vadd.f32 %v3091_v33, %v4222_v38  ;;  %v1815_v38 = vadd.f32 %v4107_v45, %v4112_v48 }
 0x186   : > { %v3029_v43 = vpop.f32.mrf.mxu1  ;;  %v3093_v54 = vpop.f32.mrf.mxu0 }
 0x187   : > { %v3030_v12 = vadd.f32 %v3029_v43, %v3028_v31  ;;  %v3094_v46 = vadd.f32 %v3093_v54, %v3092_v32 }
 0x188   : > { %v3031_v62 = vpop.f32.mrf.mxu1  ;;  %v3095_v49 = vpop.f32.mrf.mxu0 }
 0x189   : > { %v4336_v52 = vadd.f32 %v3030_v12, %v1812_v36  ;;  %v4339_v29 = vadd.f32 %v3094_v46, %v4228_v56 }
 0x18a   : > { %v3032_v63 = vpop.f32.mrf.mxu1  ;;  %v3096_v0 = vpop.f32.mrf.mxu0 }
 0x18b   : > { %v3033_v53 = vadd.f32 %v3032_v63, %v3031_v62  ;;  %v3097_v59 = vadd.f32 %v3096_v0, %v3095_v49 }
 0x18c   : > { %v3098_v9 = vpop.f32.mrf.mxu0  ;;  %v4343_v28 = vpop.f32.mrf.mxu1 }
 0x18d   : > { %v4345_v35 = vadd.f32 %v3033_v53, %v1815_v38  ;;  %v4348_v4 = vadd.f32 %v3097_v59, %v4234_v60 }
 0x18e   : > { %v3099_v1 = vpop.f32.mrf.mxu0  ;;  %v4350_v14 = vpop.f32.mrf.mxu1 }
 0x18f   : > { %v3100_v56 = vadd.f32 %v3099_v1, %v3098_v9 }
 0x190   : > { %v3101_v5 = vpop.f32.mrf.mxu0  ;;  %v4352_v10 = vpop.f32.mrf.mxu1 }
 0x191   : > { %v4355_v22 = vadd.f32 %v3100_v56, %v4238_v30 }
 0x192   : > { %v3102_v45 = vpop.f32.mrf.mxu0  ;;  %v4357_v48 = vpop.f32.mrf.mxu1 }
 0x193   : > { %v3103_v16 = vadd.f32 %v3102_v45, %v3101_v5 }
 0x194   : > { %v3104_v17 = vpop.f32.mrf.mxu0  ;;  %v4359_v44 = vpop.f32.mrf.mxu1 }
 0x195   : > { %v4362_v60 = vadd.f32 %v3103_v16, %v4245_v42 }
 0x196   : > { %v3105_v2 = vpop.f32.mrf.mxu0  ;;  %v4364_v34 = vpop.f32.mrf.mxu1 }
 0x197   : > { %4605 = vst [vmem:[#allocation2_spill] sm:$0xff] %v4362_v60  ;;  %v3106_v24 = vadd.f32 %v3105_v2, %v3104_v17 }
 0x198   : > { %v3107_v33 = vpop.f32.mrf.mxu0  ;;  %v4366_v31 = vpop.f32.mrf.mxu1 }
 0x199   : > { %v4369_v30 = vadd.f32 %v3106_v24, %v4252_v58 }
 0x19a   : > { %v3108_v32 = vpop.f32.mrf.mxu0  ;;  %v4371_v43 = vpop.f32.mrf.mxu1 }
 0x19b   : > { %v3109_v54 = vadd.f32 %v3108_v32, %v3107_v33 }
 0x19c   : > { %v3110_v36 = vpop.f32.mrf.mxu0  ;;  %v4373_v12 = vpop.f32.mrf.mxu1 }
 0x19d   : > { %v4376_v42 = vadd.f32 %v3109_v54, %v4259_v11 }
 0x19e   : > { %v3111_v46 = vpop.f32.mrf.mxu0  ;;  %v4378_v62 = vpop.f32.mrf.mxu1 }
 0x19f   : > { %v3112_v49 = vadd.f32 %v3111_v46, %v3110_v36 }
 0x1a0   : > { %v3113_v63 = vpop.f32.mrf.mxu0  ;;  %v4380_v0 = vpop.f32.mrf.mxu1 }
 0x1a1   : > { %v4383_v58 = vadd.f32 %v3112_v49, %v4266_v25 }
 0x1a2   : > { %v3114_v38 = vpop.f32.mrf.mxu0  ;;  %v4385_v53 = vpop.f32.mrf.mxu1 }
 0x1a3   : > { %4606 = vst [vmem:[#allocation3_spill] sm:$0xff] %v4383_v58  ;;  %v3115_v59 = vadd.f32 %v3114_v38, %v3113_v63 }
 0x1a4   : > { %v3116_v9 = vpop.f32.mrf.mxu0  ;;  %v4387_v1 = vpop.f32.mrf.mxu1 }
 0x1a5   : > { %v4390_v11 = vadd.f32 %v3115_v59, %v4273_v40 }
 0x1a6   : > { %v3117_v56 = vpop.f32.mrf.mxu0  ;;  %v4392_v5 = vpop.f32.mrf.mxu1 }
 0x1a7   : > { %4607 = vst [vmem:[#allocation4_spill] sm:$0xff] %v4390_v11  ;;  %v3118_v45 = vadd.f32 %v3117_v56, %v3116_v9 }
 0x1a8   : > { %v3119_v16 = vpop.f32.mrf.mxu0  ;;  %v4394_v17 = vpop.f32.mrf.mxu1 }
 0x1a9   : > { %v4397_v25 = vadd.f32 %v3118_v45, %v4280_v6 }
 0x1aa   : > { %v3120_v2 = vpop.f32.mrf.mxu0  ;;  %v4399_v24 = vpop.f32.mrf.mxu1 }
 0x1ab   : > { %4608 = vst [vmem:[#allocation5_spill] sm:$0xff] %v4397_v25  ;;  %v3121_v33 = vadd.f32 %v3120_v2, %v3119_v16 }
 0x1ac   : > { %v3122_v32 = vpop.f32.mrf.mxu0  ;;  %v4401_v54 = vpop.f32.mrf.mxu1 }
 0x1ad   : > { %v4404_v40 = vadd.f32 %v3121_v33, %v4287_v8 }
 0x1ae   : > { %v3123_v36 = vpop.f32.mrf.mxu0  ;;  %v4406_v46 = vpop.f32.mrf.mxu1 }
 0x1af   : > { %4609 = vst [vmem:[#allocation6_spill] sm:$0xff] %v4404_v40  ;;  %v3124_v49 = vadd.f32 %v3123_v36, %v3122_v32 }
 0x1b0   : > { %v3125_v63 = vpop.f32.mrf.mxu0  ;;  %v4408_v38 = vpop.f32.mrf.mxu1 }
 0x1b1   : > { %v4411_v6 = vadd.f32 %v3124_v49, %v4294_v23 }
 0x1b2   : > { %v3126_v59 = vpop.f32.mrf.mxu0  ;;  %v4413_v9 = vpop.f32.mrf.mxu1 }
 0x1b3   : > { %4610 = vst [vmem:[#allocation7_spill] sm:$0xff] %v4411_v6  ;;  %v3127_v56 = vadd.f32 %v3126_v59, %v3125_v63 }
 0x1b4   : > { %v3128_v45 = vpop.f32.mrf.mxu0  ;;  %v4415_v16 = vpop.f32.mrf.mxu1 }
 0x1b5   : > { %v4418_v8 = vadd.f32 %v3127_v56, %v4301_v39 }
 0x1b6   : > { %v3129_v2 = vpop.f32.mrf.mxu0  ;;  %v4420_v33 = vpop.f32.mrf.mxu1 }
 0x1b7   : > { %4611 = vst [vmem:[#allocation8_spill] sm:$0xff] %v4418_v8  ;;  %v3130_v32 = vadd.f32 %v3129_v2, %v3128_v45 }
 0x1b8   : > { %v3131_v36 = vpop.f32.mrf.mxu0  ;;  %v4422_v11 = vpop.f32.mrf.mxu1 }
 0x1b9   : > { %v4425_v23 = vadd.f32 %v3130_v32, %v4308_v55 }
 0x1ba   : > { %v3132_v49 = vpop.f32.mrf.mxu0  ;;  %v4427_v6 = vpop.f32.mrf.mxu1 }
 0x1bb   : > { %4612 = vst [vmem:[#allocation9_spill] sm:$0xff] %v4425_v23  ;;  %v3133_v63 = vadd.f32 %v3132_v49, %v3131_v36 }
 0x1bc   : > { %v3134_v59 = vpop.f32.mrf.mxu0  ;;  %v4429_v40 = vpop.f32.mrf.mxu1 }
 0x1bd   : > { %v4432_v39 = vadd.f32 %v3133_v63, %v4315_v7 }
 0x1be   : > { %v3135_v56 = vpop.f32.mrf.mxu0  ;;  %v4434_v8 = vpop.f32.mrf.mxu1 }
 0x1bf   : > { %4613 = vst [vmem:[#allocation10_spill] sm:$0xff] %v4432_v39  ;;  %v3136_v45 = vadd.f32 %v3135_v56, %v3134_v59  ;;  %v3170_v59 = vadd.f32 %v4364_v34, %v4359_v44 }
 0x1c0   : > { %v3137_v2 = vpop.f32.mrf.mxu0  ;;  %v4436_v58 = vpop.f32.mrf.mxu1 }
 0x1c1   : > { %v4439_v55 = vadd.f32 %v3136_v45, %v4322_v21  ;;  %v3164_v45 = vadd.f32 %v4350_v14, %v4343_v28 }
 0x1c2   : > { %v3138_v32 = vpop.f32.mrf.mxu0  ;;  %v4441_v23 = vpop.f32.mrf.mxu1 }
 0x1c3   : > { %4614 = vst [vmem:[#allocation11_spill] sm:$0xff] %v4439_v55  ;;  %v3139_v36 = vadd.f32 %v3138_v32, %v3137_v2  ;;  %v2175_v14 = vadd.f32 %v3164_v45, %v4241_v20 }
 0x1c4   : > { %v3140_v49 = vpop.f32.mrf.mxu0  ;;  %v4443_v25 = vpop.f32.mrf.mxu1 }
 0x1c5   : > { %v4446_v7 = vadd.f32 %v3139_v36, %v4329_v37  ;;  %v3173_v37 = vadd.f32 %v4371_v43, %v4366_v31 }
 0x1c6   : > { %v3141_v63 = vpop.f32.mrf.mxu0  ;;  %v4448_v39 = vpop.f32.mrf.mxu1 }
 0x1c7   : > { %4615 = vst [vmem:[#allocation12_spill] sm:$0xff] %v4446_v7  ;;  %v3142_v56 = vadd.f32 %v3141_v63, %v3140_v49  ;;  %v2183_v7 = vadd.f32 %v3170_v59, %v4255_v47  ;;  %v3167_v49 = vadd.f32 %v4357_v48, %v4352_v10  ;;  %v2186_v31 = vadd.f32 %v3173_v37, %v4262_v57 }
 0x1c8   : > { %v3143_v60 = vpop.f32.mrf.mxu0  ;;  %v4452_v21 = vpop.f32.mrf.mxu1 }
 0x1c9   : > { %v4457_v2 = vadd.f32 %v3142_v56, %v4336_v52  ;;  %v2178_v20 = vadd.f32 %v3167_v49, %v4248_v27 }
 0x1ca   : > { %v3144_v32 = vpop.f32.mrf.mxu0  ;;  %v4459_v55 = vpop.f32.mrf.mxu1 }
 0x1cb   : > { %v3145_v36 = vadd.f32 %v3144_v32, %v3143_v60  ;;  %v3182_v60 = vadd.f32 %v4392_v5, %v4387_v1  ;;  %v3185_v1 = vadd.f32 %v4399_v24, %v4394_v17  ;;  %v3194_v17 = vadd.f32 %v4420_v33, %v4415_v16 }
 0x1cc   : > { %v4464_v44 = vpop.f32.mrf.mxu1  ;;  %v3300_v34 = vpop.f32.mrf.mxu0 }
 0x1cd   : > { %v4469_v28 = vadd.f32 %v3145_v36, %v4345_v35  ;;  %v2344_v52 = vadd.f32 %v3300_v34, %v2183_v7  ;;  %v3176_v35 = vadd.f32 %v4378_v62, %v4373_v12  ;;  %v2199_v57 = vadd.f32 %v3182_v60, %v4283_v41 }
 0x1ce   : > { %v4472_v63 = vpop.f32.mrf.mxu1  ;;  %v2335_v56 = vpop.f32.mrf.mxu0  ;;  %v3179_v12 = vadd.f32 %v4385_v53, %v4380_v0  ;;  %v2202_v41 = vadd.f32 %v3185_v1, %v4290_v18  ;;  %v3188_v0 = vadd.f32 %v4406_v46, %v4401_v54  ;;  %v3197_v18 = vadd.f32 %v4427_v6, %v4422_v11 }
 0x1cf   : > { %3635 = vtanh.f32 %v2344_v52  ;;  %v2336_v47 = vadd.f32 %v2335_v56, %v2175_v14  ;;  %v2191_v27 = vadd.f32 %v3176_v35, %v4269_v15  ;;  %v2215_v54 = vadd.f32 %v3194_v17, %v4311_v61 }
 0x1d0   : > { %v4477_v43 = vpop.f32.mrf.mxu1  ;;  %v3301_v59 = vpop.f32.mrf.mxu0  ;;  %v2194_v15 = vadd.f32 %v3179_v12, %v4276_v26  ;;  %v3191_v56 = vadd.f32 %v4413_v9, %v4408_v38  ;;  %v3206_v61 = vadd.f32 %v4448_v39, %v4443_v25  ;;  %v2218_v35 = vadd.f32 %v3197_v18, %v4318_v3 }
 0x1d1   : > { %3637 = vtanh.f32 %v2336_v47  ;;  %v2347_v10 = vadd.f32 %v3301_v59, %v2186_v31  ;;  %v2207_v47 = vadd.f32 %v3188_v0, %v4297_v50  ;;  %v3200_v50 = vadd.f32 %v4434_v8, %v4429_v40 }
 0x1d2   : > { %v4482_v48 = vpop.f32.mrf.mxu1  ;;  %v2338_v7 = vpop.f32.mrf.mxu0  ;;  %v3209_v3 = vadd.f32 %v4459_v55, %v4452_v21  ;;  %v3203_v12 = vadd.f32 %v4441_v23, %v4436_v58 }
 0x1d3   : > { %3639 = vtanh.f32 %v2347_v10  ;;  %v2339_v5 = vadd.f32 %v2338_v7, %v2178_v20  ;;  %v2210_v7 = vadd.f32 %v3191_v56, %v4304_v51  ;;  %v3215_v18 = vadd.f32 %v4482_v48, %v4477_v43  ;;  %v4616_v48 = vld [vmem:[#allocation2_spill] sm:$0xff] }
 0x1d4   : > { %v4487_v45 = vpop.f32.mrf.mxu1  ;;  %v3304_v32 = vpop.f32.mrf.mxu0  ;;  %v2234_v17 = vadd.f32 %v3209_v3, %v4348_v4 }
 0x1d5   : > { %3641 = vtanh.f32 %v2339_v5  ;;  %v2360_v62 = vadd.f32 %v3304_v32, %v2199_v57  ;;  %v2231_v57 = vadd.f32 %v3206_v61, %v4339_v29 }
 0x1d6   : > { %v4492_v37 = vpop.f32.mrf.mxu1  ;;  %v2351_v36 = vpop.f32.mrf.mxu0 }
 0x1d7   : > { %3643 = vtanh.f32 %v2360_v62  ;;  %v2352_v24 = vadd.f32 %v2351_v36, %v2191_v27  ;;  %v2223_v62 = vadd.f32 %v3200_v50, %v4325_v13  ;;  %v3218_v36 = vadd.f32 %v4492_v37, %v4487_v45 }
 0x1d8   : > { %v4498_v34 = vpop.f32.mrf.mxu1  ;;  %v3305_v49 = vpop.f32.mrf.mxu0 }
 0x1d9   : > { %3645 = vtanh.f32 %v2352_v24  ;;  %v2363_v53 = vadd.f32 %v3305_v49, %v2202_v41  ;;  %v3212_v41 = vadd.f32 %v4472_v63, %v4464_v44  ;;  %v2226_v49 = vadd.f32 %v3203_v12, %v4332_v19 }
 0x1da   : > { %v4508_v16 = vpop.f32.mrf.mxu1  ;;  %v2354_v33 = vpop.f32.mrf.mxu0 }
 0x1db   : > { %3647 = vtanh.f32 %v2363_v53  ;;  %v2355_v52 = vadd.f32 %v2354_v33, %v2194_v15  ;;  %v3221_v53 = vadd.f32 %v4508_v16, %v4498_v34  ;;  %v2247_v15 = vadd.f32 %v3218_v36, %v4369_v30 }
 0x1dc   : > { %v3636_v46 = vpop.eup %3635  ;;  %v4513_v14 = vpop.f32.mrf.mxu1 }
 0x1dd   : > { %v3308_v26 = vpop.f32.mrf.mxu0  ;;  %2496 = vst [vmem:[%s4506_s22 + $0x10] sm:$0xff] %v3636_v46  ;;  %3649 = vtanh.f32 %v2355_v52  ;;  %v2239_v52 = vadd.f32 %v3212_v41, %v4355_v22 }
 0x1de   : > { %v2376_v60 = vadd.f32 %v3308_v26, %v2215_v54  ;;  %v3638_v31 = vpop.eup %3637  ;;  %v4519_v11 = vpop.f32.mrf.mxu1  ;;  %v2250_v26 = vadd.f32 %v3221_v53, %v4376_v42  ;;  %v4622_v53 = vld [vmem:[#allocation7_spill] sm:$0xff] }
 0x1df   : > { %v2367_v6 = vpop.f32.mrf.mxu0  ;;  %2494 = vst [vmem:[%s4506_s22] sm:$0xff] %v3638_v31  ;;  %v3224_v43 = vadd.f32 %v4519_v11, %v4513_v14  ;;  %v2242_v31 = vadd.f32 %v3215_v18, %v4616_v48  ;;  %v4623_v18 = vld [vmem:[#allocation10_spill] sm:$0xff] }
 0x1e0   : > { %3651 = vtanh.f32 %v2376_v60  ;;  %v2368_v59 = vadd.f32 %v2367_v6, %v2207_v47  ;;  %v3640_v38 = vpop.eup %3639  ;;  %v4525_v9 = vpop.f32.mrf.mxu1 }
 0x1e1   : > { %v3309_v10 = vpop.f32.mrf.mxu0  ;;  %2497 = vst [vmem:[%s4506_s22 + $0x18] sm:$0xff] %v3640_v38  ;;  %v4617_v38 = vld [vmem:[#allocation5_spill] sm:$0xff] }
 0x1e2   : > { %3653 = vtanh.f32 %v2368_v59  ;;  %v2379_v20 = vadd.f32 %v3309_v10, %v2218_v35  ;;  %v3642_v25 = vpop.eup %3641  ;;  %v4531_v39 = vpop.f32.mrf.mxu1 }
 0x1e3   : > { %v2370_v1 = vpop.f32.mrf.mxu0  ;;  %2495 = vst [vmem:[%s4506_s22 + $0x8] sm:$0xff] %v3642_v25  ;;  %v3227_v14 = vadd.f32 %v4531_v39, %v4525_v9  ;;  %v4618_v25 = vld [vmem:[#allocation3_spill] sm:$0xff] }
 0x1e4   : > { %3655 = vtanh.f32 %v2379_v20  ;;  %v2371_v5 = vadd.f32 %v2370_v1, %v2210_v7  ;;  %v3644_v40 = vpop.eup %3643  ;;  %v3228_v8 = vpop.f32.mrf.mxu1  ;;  %v2255_v1 = vadd.f32 %v3224_v43, %v4618_v25  ;;  %v4626_v25 = vld [vmem:[#allocation12_spill] sm:$0xff] }
 0x1e5   : > { %v3312_v32 = vpop.f32.mrf.mxu0  ;;  %2500 = vst [vmem:[%s4506_s22 + $0x30] sm:$0xff] %v3644_v40 }
 0x1e6   : > { %3657 = vtanh.f32 %v2371_v5  ;;  %v2392_v51 = vadd.f32 %v3312_v32, %v2231_v57  ;;  %v3646_v27 = vpop.eup %3645  ;;  %v3229_v55 = vpop.f32.mrf.mxu1  ;;  %v4619_v32 = vld [vmem:[#allocation6_spill] sm:$0xff] }
 0x1e7   : > { %v2383_v21 = vpop.f32.mrf.mxu0  ;;  %2498 = vst [vmem:[%s4506_s22 + $0x20] sm:$0xff] %v3646_v27  ;;  %v3230_v46 = vadd.f32 %v3229_v55, %v3228_v8  ;;  %v4620_v55 = vld [vmem:[#allocation4_spill] sm:$0xff] }
 0x1e8   : > { %3659 = vtanh.f32 %v2392_v51  ;;  %v2384_v29 = vadd.f32 %v2383_v21, %v2223_v62  ;;  %v3648_v24 = vpop.eup %3647  ;;  %v3231_v58 = vpop.f32.mrf.mxu1  ;;  %v2258_v21 = vadd.f32 %v3227_v14, %v4620_v55 }
 0x1e9   : > { %v3313_v23 = vpop.f32.mrf.mxu0  ;;  %2501 = vst [vmem:[%s4506_s22 + $0x38] sm:$0xff] %v3648_v24  ;;  %v2263_v10 = vadd.f32 %v3230_v46, %v4617_v38 }
 0x1ea   : > { %3661 = vtanh.f32 %v2384_v29  ;;  %v2395_v13 = vadd.f32 %v3313_v23, %v2234_v17  ;;  %v3650_v0 = vpop.eup %3649  ;;  %v3232_v45 = vpop.f32.mrf.mxu1  ;;  %v4621_v23 = vld [vmem:[#allocation9_spill] sm:$0xff] }
 0x1eb   : > { %v2386_v37 = vpop.f32.mrf.mxu0  ;;  %2499 = vst [vmem:[%s4506_s22 + $0x28] sm:$0xff] %v3650_v0  ;;  %v3233_v35 = vadd.f32 %v3232_v45, %v3231_v58 }
 0x1ec   : > { %3663 = vtanh.f32 %v2395_v13  ;;  %v2387_v4 = vadd.f32 %v2386_v37, %v2226_v49  ;;  %v3234_v44 = vpop.f32.mrf.mxu1 }
 0x1ed   : > { %v3652_v33 = vpop.eup %3651  ;;  %v3316_v63 = vpop.f32.mrf.mxu0  ;;  %v2266_v12 = vadd.f32 %v3233_v35, %v4619_v32 }
 0x1ee   : > { %2504 = vst [vmem:[%s4506_s22 + $0x50] sm:$0xff] %v3652_v33  ;;  %3665 = vtanh.f32 %v2387_v4  ;;  %v2408_v19 = vadd.f32 %v3316_v63, %v2247_v15  ;;  %v3235_v34 = vpop.f32.mrf.mxu1 }
 0x1ef   : > { %v3654_v54 = vpop.eup %3653  ;;  %v2399_v16 = vpop.f32.mrf.mxu0  ;;  %v3236_v9 = vadd.f32 %v3235_v34, %v3234_v44 }
 0x1f0   : > { %2502 = vst [vmem:[%s4506_s22 + $0x40] sm:$0xff] %v3654_v54  ;;  %3667 = vtanh.f32 %v2408_v19  ;;  %v2400_v30 = vadd.f32 %v2399_v16, %v2239_v52  ;;  %v3237_v60 = vpop.f32.mrf.mxu1 }
 0x1f1   : > { %v3656_v56 = vpop.eup %3655  ;;  %v3317_v47 = vpop.f32.mrf.mxu0  ;;  %v2271_v4 = vadd.f32 %v3236_v9, %v4622_v53 }
 0x1f2   : > { %2505 = vst [vmem:[%s4506_s22 + $0x58] sm:$0xff] %v3656_v56  ;;  %3669 = vtanh.f32 %v2400_v30  ;;  %v2411_v22 = vadd.f32 %v3317_v47, %v2250_v26  ;;  %v3238_v61 = vpop.f32.mrf.mxu1  ;;  %v4624_v30 = vld [vmem:[#allocation8_spill] sm:$0xff] }
 0x1f3   : > { %v3658_v6 = vpop.eup %3657  ;;  %v2402_v59 = vpop.f32.mrf.mxu0  ;;  %v3239_v45 = vadd.f32 %v3238_v61, %v3237_v60  ;;  %v4625_v61 = vld [vmem:[#allocation11_spill] sm:$0xff] }
 0x1f4   : > { %2503 = vst [vmem:[%s4506_s22 + $0x48] sm:$0xff] %v3658_v6  ;;  %3671 = vtanh.f32 %v2411_v22  ;;  %v2403_v42 = vadd.f32 %v2402_v59, %v2242_v31  ;;  %v3240_v20 = vpop.f32.mrf.mxu1 }
 0x1f5   : > { %v3660_v50 = vpop.eup %3659  ;;  %v3320_v7 = vpop.f32.mrf.mxu0  ;;  %v2274_v26 = vadd.f32 %v3239_v45, %v4624_v30 }
 0x1f6   : > { %2508 = vst [vmem:[%s4506_s22 + $0x70] sm:$0xff] %v3660_v50  ;;  %3673 = vtanh.f32 %v2403_v42  ;;  %v2424_v11 = vadd.f32 %v3320_v7, %v2263_v10  ;;  %v3241_v5 = vpop.f32.mrf.mxu1 }
 0x1f7   : > { %v3662_v3 = vpop.eup %3661  ;;  %v2415_v57 = vpop.f32.mrf.mxu0  ;;  %v3242_v40 = vadd.f32 %v3241_v5, %v3240_v20 }
 0x1f8   : > { %2506 = vst [vmem:[%s4506_s22 + $0x60] sm:$0xff] %v3662_v3  ;;  %3675 = vtanh.f32 %v2424_v11  ;;  %v2416_v8 = vadd.f32 %v2415_v57, %v2255_v1  ;;  %v3243_v62 = vpop.f32.mrf.mxu1 }
 0x1f9   : > { %v3664_v51 = vpop.eup %3663  ;;  %v3321_v27 = vpop.f32.mrf.mxu0  ;;  %v2279_v41 = vadd.f32 %v3242_v40, %v4621_v23 }
 0x1fa   : > { %2509 = vst [vmem:[%s4506_s22 + $0x78] sm:$0xff] %v3664_v51  ;;  %3677 = vtanh.f32 %v2416_v8  ;;  %v2427_v39 = vadd.f32 %v3321_v27, %v2266_v12  ;;  %v3244_v29 = vpop.f32.mrf.mxu1 }
 0x1fb   : > { %v3666_v36 = vpop.eup %3665  ;;  %v2418_v17 = vpop.f32.mrf.mxu0  ;;  %v3245_v24 = vadd.f32 %v3244_v29, %v3243_v62 }
 0x1fc   : > { %2507 = vst [vmem:[%s4506_s22 + $0x68] sm:$0xff] %v3666_v36  ;;  %3679 = vtanh.f32 %v2427_v39  ;;  %v2419_v58 = vadd.f32 %v2418_v17, %v2258_v21  ;;  %v3246_v49 = vpop.f32.mrf.mxu1 }
 0x1fd   : > { %v3668_v13 = vpop.eup %3667  ;;  %v3324_v0 = vpop.f32.mrf.mxu0  ;;  %v2282_v19 = vadd.f32 %v3245_v24, %v4623_v18 }
 0x1fe   : > { %2512 = vst [vmem:[%s4506_s22 + $0x90] sm:$0xff] %v3668_v13  ;;  %3681 = vtanh.f32 %v2419_v58  ;;  %v2440_v37 = vadd.f32 %v3324_v0, %v2279_v41  ;;  %v3247_v33 = vpop.f32.mrf.mxu1 }
 0x1ff   : > { %v3670_v15 = vpop.eup %3669  ;;  %v2431_v44 = vpop.f32.mrf.mxu0  ;;  %v3248_v16 = vadd.f32 %v3247_v33, %v3246_v49 }
 0x200   : > { %2510 = vst [vmem:[%s4506_s22 + $0x80] sm:$0xff] %v3670_v15  ;;  %3683 = vtanh.f32 %v2440_v37  ;;  %v2432_v63 = vadd.f32 %v2431_v44, %v2271_v4  ;;  %v3249_v54 = vpop.f32.mrf.mxu1 }
 0x201   : > { %v3672_v52 = vpop.eup %3671  ;;  %v3325_v34 = vpop.f32.mrf.mxu0  ;;  %v2287_v59 = vadd.f32 %v3248_v16, %v4625_v61 }
 0x202   : > { %2513 = vst [vmem:[%s4506_s22 + $0x98] sm:$0xff] %v3672_v52  ;;  %3685 = vtanh.f32 %v2432_v63  ;;  %v2443_v46 = vadd.f32 %v3325_v34, %v2282_v19  ;;  %v3250_v60 = vpop.f32.mrf.mxu1 }
 0x203   : > { %v3674_v56 = vpop.eup %3673  ;;  %v2434_v47 = vpop.f32.mrf.mxu0  ;;  %v3251_v6 = vadd.f32 %v3250_v60, %v3249_v54 }
 0x204   : > { %2511 = vst [vmem:[%s4506_s22 + $0x88] sm:$0xff] %v3674_v56  ;;  %3687 = vtanh.f32 %v2443_v46  ;;  %v2435_v43 = vadd.f32 %v2434_v47, %v2274_v26  ;;  %v3252_v48 = vpop.f32.mrf.mxu1 }
 0x205   : > { %v3676_v22 = vpop.eup %3675  ;;  %v3328_v31 = vpop.f32.mrf.mxu0  ;;  %v2290_v1 = vadd.f32 %v3251_v6, %v4626_v25 }
 0x206   : > { %2516 = vst [vmem:[%s4506_s22 + $0xb0] sm:$0xff] %v3676_v22  ;;  %3689 = vtanh.f32 %v2435_v43  ;;  %v3253_v42 = vpop.f32.mrf.mxu1 }
 0x207   : > { %v3678_v35 = vpop.eup %3677  ;;  %v2447_v38 = vpop.f32.mrf.mxu0  ;;  %v3254_v10 = vadd.f32 %v3253_v42, %v3252_v48 }
 0x208   : > { %2514 = vst [vmem:[%s4506_s22 + $0xa0] sm:$0xff] %v3678_v35  ;;  %v2448_v50 = vadd.f32 %v2447_v38, %v2287_v59  ;;  %v3255_v7 = vpop.f32.mrf.mxu1 }
 0x209   : > { %v3680_v20 = vpop.eup %3679  ;;  %v3329_v14 = vpop.f32.mrf.mxu0  ;;  %v2295_v11 = vadd.f32 %v3254_v10, %v4457_v2 }
 0x20a   : > { %2517 = vst [vmem:[%s4506_s22 + $0xb8] sm:$0xff] %v3680_v20  ;;  %3691 = vtanh.f32 %v2448_v50  ;;  %v3256_v5 = vpop.f32.mrf.mxu1 }
 0x20b   : > { %v3682_v3 = vpop.eup %3681  ;;  %v2450_v57 = vpop.f32.mrf.mxu0  ;;  %v2456_v40 = vadd.f32 %v3328_v31, %v2295_v11  ;;  %v3257_v8 = vadd.f32 %v3256_v5, %v3255_v7 }
 0x20c   : > { %2515 = vst [vmem:[%s4506_s22 + $0xa8] sm:$0xff] %v3682_v3  ;;  %v2451_v32 = vadd.f32 %v2450_v57, %v2290_v1 }
 0x20d   : > { %v3684_v12 = vpop.eup %3683  ;;  %3693 = vtanh.f32 %v2456_v40  ;;  %v2298_v2 = vadd.f32 %v3257_v8, %v4469_v28 }
 0x20e   : > { %2520 = vst [vmem:[%s4506_s22 + $0xd0] sm:$0xff] %v3684_v12  ;;  %3695 = vtanh.f32 %v2451_v32 }
 0x20f   : > { %v3686_v51 = vpop.eup %3685  ;;  %v2459_v62 = vadd.f32 %v3329_v14, %v2298_v2 }
 0x210   : > { %2518 = vst [vmem:[%s4506_s22 + $0xc0] sm:$0xff] %v3686_v51 }
 0x211   : > { %v3688_v27 = vpop.eup %3687  ;;  %3697 = vtanh.f32 %v2459_v62 }
 0x212   : > { %2521 = vst [vmem:[%s4506_s22 + $0xd8] sm:$0xff] %v3688_v27 }
 0x213   : > { %v3690_v9 = vpop.eup %3689 }
 0x214   : > { %2519 = vst [vmem:[%s4506_s22 + $0xc8] sm:$0xff] %v3690_v9 }
 0x217   : > { %v3692_v39 = vpop.eup %3691 }
 0x218   : > { %2522 = vst [vmem:[%s4506_s22 + $0xe0] sm:$0xff] %v3692_v39 }
 0x21a   : > { %v3694_v55 = vpop.eup %3693 }
 0x21b   : > { %v3696_v21 = vpop.eup %3695  ;;  %2524 = vst [vmem:[%s4506_s22 + $0xf0] sm:$0xff] %v3694_v55 }
 0x21c   : > { %2523 = vst [vmem:[%s4506_s22 + $0xe8] sm:$0xff] %v3696_v21 }
 0x21e   : > { %v3698_v36 = vpop.eup %3697 }
 0x21f   : > { %2525 = vst [vmem:[%s4506_s22 + $0xf8] sm:$0xff] %v3698_v36 }
 0x220 PF: > { %s13_s12 = sadd.s32 1, %s3705_s12  }
 0x221   : > { %p10_p4 = scmp.ge.s32.totalorder %s13_s12, 4  }
 0x223   :  { %12 = sbr.rel (!%p10_p4) target bundleno = 1 (0x1), region = 62 }

</bundles_post_ra>
